<compile_context>
chip_gen: v5e
topology: v5e:2x2
jax: 0.10.0
libtpu: 0.0.40
codegen_flags: <defaults>
</compile_context>

<pallas_src>
import functools

import jax
import jax.numpy as jnp
from jax.experimental import pallas as pl
from jax.experimental.pallas import tpu as pltpu


# ---------------------------------------------------------------------------
# In-kernel helpers
# ---------------------------------------------------------------------------

def _boundary_masks(num_seg, seg_len):
    """(n,1) bool masks marking the first / last row of every packed sample."""
    n = num_seg * seg_len
    if seg_len & (seg_len - 1) == 0:          # power of two: cheap AND mask
        row = jax.lax.broadcasted_iota(jnp.int32, (n, 1), 0)
        pos = jnp.bitwise_and(row, seg_len - 1)
    else:                                     # general case: 3-D iota + merge
        pos = jax.lax.broadcasted_iota(jnp.int32, (num_seg, seg_len, 1), 1)
        pos = pos.reshape(n, 1)
    return pos == 0, pos == seg_len - 1


def _shift_zero(a, first_mask, last_mask, *, down):
    """Shift rows of (n, c) by one with per-sample zero halos (XLU roll + VPU).

    down=True  -> out[i] = a[i-1], zero where i is a sample's first row
    down=False -> out[i] = a[i+1], zero where i is a sample's last  row
    """
    n = a.shape[0]
    if down:
        return jnp.where(first_mask, 0.0, pltpu.roll(a, shift=1, axis=0))
    return jnp.where(last_mask, 0.0, pltpu.roll(a, shift=n - 1, axis=0))


def _im2col3(a, first_mask, last_mask):
    """(n, c) -> (n, 3c): row l is [a[l-1], a[l], a[l+1]] with per-sample zeros."""
    return jnp.concatenate(
        [_shift_zero(a, first_mask, last_mask, down=True),
         a,
         _shift_zero(a, first_mask, last_mask, down=False)], axis=-1)


def _maxpool2(a):
    """MaxPool1d(kernel=2, stride=2) over the row axis (pairs never straddle
    a sample boundary because per-sample length is even)."""
    n, c = a.shape
    return jnp.max(a.reshape(n // 2, 2, c), axis=1)


# ---------------------------------------------------------------------------
# Fused kernel: conv1+pool, conv2+pool, conv3, avg-pool, fc1, fc2
# ---------------------------------------------------------------------------

def fused_cnn_kernel(x_ref, w1_ref, b1_ref, w2_ref, b2_ref, w3_ref, b3_ref,
                     pool_ref, fw1_ref, fb1_ref, fw2_ref, fb2_ref, o_ref,
                     *, seg_len):
    """Forward pass for one block of BB packed samples (eval mode).

    x_ref:    (BB*L, Cin)   flattened channels-last input block, f32
    w1_ref:   (3, Cin, 32)  conv1 weights (BN1 folded), f32 (VPU path)
    b1_ref:   (1, 32)                                        f32
    w2_ref:   (96, 64)      conv2 tap-fused (BN2 folded),    bf16
    b2_ref:   (1, 64)                                        f32
    w3_ref:   (192, 128)    conv3 tap-fused (BN3 folded),    bf16
    b3_ref:   (1, 128)                                       f32
    pool_ref: (BB, BB*L/4)  per-sample avg-pool matrix (1/(L/4) folded), bf16
    fw1_ref:  (128, 256) bf16   fb1_ref: (1, 256) f32
    fw2_ref:  (256, NCP) bf16   fb2_ref: (1, NCP) f32   (NCP = classes padded to 128)
    o_ref:    (BB, NCP)     lane-dense logits block
    """
    L = seg_len
    n1, cin = x_ref.shape
    bb = n1 // L

    # Hoisted per-sample boundary masks (one iota per resolution level).
    f1, g1 = _boundary_masks(bb, L)
    f2, g2 = _boundary_masks(bb, L // 2)
    f3, g3 = _boundary_masks(bb, L // 4)

    x = x_ref[...]                                        # (bb*L, cin) f32

    # ---- conv1 (k=3, pad=1) + folded BN1 + ReLU + MaxPool(2) ---------------
    if cin == 1:
        # Contraction depth 1: broadcast MACs on the VPU (kept f32; v5e-safe).
        xm = _shift_zero(x, f1, g1, down=True)
        xp = _shift_zero(x, f1, g1, down=False)
        y1 = xm * w1_ref[0] + x * w1_ref[1] + xp * w1_ref[2] + b1_ref[...]
    else:
        # TODO(synk): for cin > 1, pre-flatten w1 to (3*cin, 32) bf16 in
        # make_params to avoid this per-step in-kernel reshape.
        col1 = _im2col3(x, f1, g1)
        y1 = jnp.dot(col1.astype(jnp.bfloat16),
                     w1_ref[...].reshape(3 * cin, -1).astype(jnp.bfloat16),
                     preferred_element_type=jnp.float32) + b1_ref[...]
    y1 = jnp.maximum(y1, 0.0)
    y1 = _maxpool2(y1)                                    # (bb*L/2, 32)

    # ---- conv2 + folded BN2 + ReLU + MaxPool(2) ----------------------------
    col2 = _im2col3(y1, f2, g2)                           # (bb*L/2, 96)
    y2 = jnp.dot(col2.astype(jnp.bfloat16), w2_ref[...],
                 preferred_element_type=jnp.float32) + b2_ref[...]
    y2 = jnp.maximum(y2, 0.0)
    y2 = _maxpool2(y2)                                    # (bb*L/4, 64)

    # ---- conv3 + folded BN3 + ReLU -----------------------------------------
    col3 = _im2col3(y2, f3, g3)                           # (bb*L/4, 192)
    y3 = jnp.dot(col3.astype(jnp.bfloat16), w3_ref[...],
                 preferred_element_type=jnp.float32) + b3_ref[...]
    y3 = jnp.maximum(y3, 0.0)                             # (bb*L/4, 128)

    # ---- head: per-sample global avg pool (one MXU matmul, 1/(L/4) folded
    #      into pool_ref) + batched fc1 + ReLU + fc2 --------------------------
    g = jnp.dot(pool_ref[...], y3.astype(jnp.bfloat16),
                preferred_element_type=jnp.float32)       # (bb, 128)
    h = jnp.dot(g.astype(jnp.bfloat16), fw1_ref[...],
                preferred_element_type=jnp.float32) + fb1_ref[...]
    h = jnp.maximum(h, 0.0)
    # TODO(synk): Dropout(0.5) is identity in eval mode; training-mode masking
    # is not implemented.
    o = jnp.dot(h.astype(jnp.bfloat16), fw2_ref[...],
                preferred_element_type=jnp.float32) + fb2_ref[...]
    o_ref[...] = o.astype(o_ref.dtype)                    # (bb, NCP) lane-dense


# ---------------------------------------------------------------------------
# Wrapper
# ---------------------------------------------------------------------------

def _const_spec(arr):
    """Whole-array VMEM block with a constant index map (fetched once)."""
    zeros = (0,) * arr.ndim
    return pl.BlockSpec(arr.shape, lambda b: zeros)


@functools.partial(jax.jit, static_argnames=("block_batch",))
def cnn_classifier_forward(x_nchw, params, block_batch=8):
    """x_nchw: (B, C_in, L) as in PyTorch. Returns logits (B, num_classes)."""
    x = jnp.transpose(x_nchw, (0, 2, 1)).astype(jnp.float32)   # (B, L, Cin)
    B, L, cin = x.shape
    if L % 4 != 0:
        raise ValueError("two MaxPool1d(2) stages require L % 4 == 0")
    BB = int(block_batch)
    if BB % 8 != 0:
        raise ValueError("block_batch must be a multiple of 8")

    nc = params["fw2"].shape[1]
    NCP = max(128, ((nc + 127) // 128) * 128)          # lane-dense output width
    l4 = L // 4

    # Pad batch to a multiple of BB; padded samples are sliced away at the end.
    B_pad = ((B + BB - 1) // BB) * BB
    if B_pad != B:
        x = jnp.pad(x, ((0, B_pad - B), (0, 0), (0, 0)))
    x_flat = x.reshape(B_pad * L, cin)

    # Per-sample average-pool matrix with the 1/(L/4) scale folded in.
    seg_ids = jnp.repeat(jnp.arange(BB, dtype=jnp.int32), l4)
    pool_mat = ((seg_ids[None, :] == jnp.arange(BB, dtype=jnp.int32)[:, None])
                .astype(jnp.float32) / float(l4)).astype(jnp.bfloat16)

    # Pad fc2 to a lane-dense (256, NCP) / (1, NCP); extra columns are zero.
    fw2p = jnp.zeros((params["fw2"].shape[0], NCP), jnp.float32)
    fw2p = fw2p.at[:, :nc].set(params["fw2"]).astype(jnp.bfloat16)
    fb2p = jnp.zeros((1, NCP), jnp.float32).at[:, :nc].set(params["fb2"])

    weight_args = (params["w1"], params["b1"],
                   params["w2"], params["b2"],
                   params["w3"], params["b3"],
                   pool_mat,
                   params["fw1"], params["fb1"],
                   fw2p, fb2p)

    flops = 2 * B_pad * (L * 3 * cin * 32
                         + (L // 2) * 96 * 64
                         + l4 * 192 * 128
                         + l4 * 128
                         + 128 * 256
                         + 256 * NCP)
    bytes_accessed = (x_flat.size * 4
                      + sum(int(a.size) * a.dtype.itemsize for a in weight_args)
                      + B_pad * NCP * 4)

    kernel = functools.partial(fused_cnn_kernel, seg_len=L)
    out = pl.pallas_call(
        kernel,
        out_shape=jax.ShapeDtypeStruct((B_pad, NCP), jnp.float32),
        grid=(B_pad // BB,),
        in_specs=[pl.BlockSpec((BB * L, cin), lambda b: (b, 0))]
                 + [_const_spec(a) for a in weight_args],
        out_specs=pl.BlockSpec((BB, NCP), lambda b: (b, 0)),
        compiler_params=pltpu.CompilerParams(
            dimension_semantics=("parallel",),
            vmem_limit_bytes=32 * 1024 * 1024),
        cost_estimate=pl.CostEstimate(flops=flops, transcendentals=0,
                                      bytes_accessed=bytes_accessed),
    )(x_flat, *weight_args)
    return out[:B, :nc]


# ---------------------------------------------------------------------------
# Parameters (deterministic; eval-mode BatchNorm folded into conv weights)
# ---------------------------------------------------------------------------

def make_params(key, input_channels=1, num_classes=4):
    keys = jax.random.split(key, 17)
    eps = 1e-5

    def conv_bn_folded(kw, kb, kg, kbe, km, cin, cout, ksize=3):
        # conv weights stored (K, Cin, Cout) for channels-last matmul
        w = 0.1 * jax.random.normal(kw, (ksize, cin, cout), jnp.float32)
        b = 0.1 * jax.random.normal(kb, (cout,), jnp.float32)
        gamma = 1.0 + 0.1 * jax.random.normal(kg, (cout,), jnp.float32)
        beta = 0.1 * jax.random.normal(kbe, (cout,), jnp.float32)
        mean = 0.1 * jax.random.normal(km, (cout,), jnp.float32)
        var = jnp.ones((cout,), jnp.float32)
        scale = gamma / jnp.sqrt(var + eps)
        w_f = w * scale                         # fold BN scale into weights
        b_f = (b - mean) * scale + beta         # fold BN shift into bias
        return w_f, b_f.reshape(1, cout)

    p = {}
    w1, p["b1"] = conv_bn_folded(keys[0], keys[1], keys[2], keys[3], keys[4],
                                 input_channels, 32)
    p["w1"] = w1                                            # (3, Cin, 32) f32
    w2, p["b2"] = conv_bn_folded(keys[5], keys[6], keys[7], keys[8], keys[9],
                                 32, 64)
    p["w2"] = w2.reshape(3 * 32, 64).astype(jnp.bfloat16)   # tap-fused, bf16
    w3, p["b3"] = conv_bn_folded(keys[10], keys[11], keys[12], keys[13],
                                 keys[14], 64, 128)
    p["w3"] = w3.reshape(3 * 64, 128).astype(jnp.bfloat16)  # tap-fused, bf16
    # Linear layers stored as (in, out); fc2 kept at true num_classes (padding
    # to the lane-dense width is done in the wrapper).
    p["fw1"] = (0.1 * jax.random.normal(keys[15], (128, 256), jnp.float32)
                ).astype(jnp.bfloat16)
    p["fb1"] = jnp.zeros((1, 256), jnp.float32)
    p["fw2"] = 0.1 * jax.random.normal(keys[16], (256, num_classes),
                                       jnp.float32)
    p["fb2"] = jnp.zeros((1, num_classes), jnp.float32)
    return p


# ---------------------------------------------------------------------------
# Main
# ---------------------------------------------------------------------------

if __name__ == "__main__":
    key = jax.random.PRNGKey(0)
    k_params, k_x = jax.random.split(key)

    # 16 samples packed 8 per grid step -> grid of 2 (both v7x TCs busy),
    # conv2 matmul M = 8*64/2 = 256 rows.
    B, C_IN, L, NUM_CLASSES = 16, 1, 64, 4
    params = make_params(k_params, input_channels=C_IN, num_classes=NUM_CLASSES)
    x = jax.random.normal(k_x, (B, C_IN, L), jnp.float32)   # PyTorch NCW input

    logits = cnn_classifier_forward(x, params, block_batch=8)
    logits = jax.block_until_ready(logits)
    assert logits.shape == (B, NUM_CLASSES)
    assert bool(jnp.all(jnp.isfinite(logits)))
    print("KERNEL_OK")
</pallas_src>

<mosaic_0001>
module attributes {stable_mosaic.version = 11 : i64} {
  func.func @fused_cnn_kernel(%arg0: i32, %arg1: memref<512x1xf32, #tpu.memory_space<vmem>>, %arg2: memref<3x1x32xf32, #tpu.memory_space<vmem>>, %arg3: memref<1x32xf32, #tpu.memory_space<vmem>>, %arg4: memref<96x64xbf16, #tpu.memory_space<vmem>>, %arg5: memref<1x64xf32, #tpu.memory_space<vmem>>, %arg6: memref<192x128xbf16, #tpu.memory_space<vmem>>, %arg7: memref<1x128xf32, #tpu.memory_space<vmem>>, %arg8: memref<8x128xbf16, #tpu.memory_space<vmem>>, %arg9: memref<128x256xbf16, #tpu.memory_space<vmem>>, %arg10: memref<1x256xf32, #tpu.memory_space<vmem>>, %arg11: memref<256x128xbf16, #tpu.memory_space<vmem>>, %arg12: memref<1x128xf32, #tpu.memory_space<vmem>>, %arg13: memref<8x128xf32, #tpu.memory_space<vmem>>) attributes {dimension_semantics = [#tpu.dimension_semantics<parallel>], iteration_bounds = array<i64: 2>, scalar_prefetch = 0 : i64, scratch_operands = 0 : i64, tpu.core_type = #tpu.core_type<tc>, window_params = [{transform_indices = @transform_0, window_bounds = array<i64: 512, 1>}, {pipeline_mode = #tpu.pipeline_mode<synchronous>, transform_indices = @transform_1, window_bounds = array<i64: 3, 1, 32>}, {pipeline_mode = #tpu.pipeline_mode<synchronous>, transform_indices = @transform_2, window_bounds = array<i64: 1, 32>}, {pipeline_mode = #tpu.pipeline_mode<synchronous>, transform_indices = @transform_3, window_bounds = array<i64: 96, 64>}, {pipeline_mode = #tpu.pipeline_mode<synchronous>, transform_indices = @transform_4, window_bounds = array<i64: 1, 64>}, {pipeline_mode = #tpu.pipeline_mode<synchronous>, transform_indices = @transform_5, window_bounds = array<i64: 192, 128>}, {pipeline_mode = #tpu.pipeline_mode<synchronous>, transform_indices = @transform_6, window_bounds = array<i64: 1, 128>}, {pipeline_mode = #tpu.pipeline_mode<synchronous>, transform_indices = @transform_7, window_bounds = array<i64: 8, 128>}, {pipeline_mode = #tpu.pipeline_mode<synchronous>, transform_indices = @transform_8, window_bounds = array<i64: 128, 256>}, {pipeline_mode = #tpu.pipeline_mode<synchronous>, transform_indices = @transform_9, window_bounds = array<i64: 1, 256>}, {pipeline_mode = #tpu.pipeline_mode<synchronous>, transform_indices = @transform_10, window_bounds = array<i64: 256, 128>}, {pipeline_mode = #tpu.pipeline_mode<synchronous>, transform_indices = @transform_11, window_bounds = array<i64: 1, 128>}, {transform_indices = @transform_12, window_bounds = array<i64: 8, 128>}]} {
    %0 = tpu.iota {dimensions = array<i32: 0>} : vector<512x1xi32>
    %c63_i32 = arith.constant 63 : i32
    %1 = vector.broadcast %c63_i32 : i32 to vector<512x1xi32>
    %2 = arith.andi %0, %1 : vector<512x1xi32>
    %c0_i32 = arith.constant 0 : i32
    %3 = vector.broadcast %c0_i32 : i32 to vector<512x1xi32>
    %4 = arith.cmpi eq, %2, %3 : vector<512x1xi32>
    %c63_i32_0 = arith.constant 63 : i32
    %5 = vector.broadcast %c63_i32_0 : i32 to vector<512x1xi32>
    %6 = arith.cmpi eq, %2, %5 : vector<512x1xi32>
    %7 = tpu.iota {dimensions = array<i32: 0>} : vector<256x1xi32>
    %c31_i32 = arith.constant 31 : i32
    %8 = vector.broadcast %c31_i32 : i32 to vector<256x1xi32>
    %9 = arith.andi %7, %8 : vector<256x1xi32>
    %c0_i32_1 = arith.constant 0 : i32
    %10 = vector.broadcast %c0_i32_1 : i32 to vector<256x1xi32>
    %11 = arith.cmpi eq, %9, %10 : vector<256x1xi32>
    %c31_i32_2 = arith.constant 31 : i32
    %12 = vector.broadcast %c31_i32_2 : i32 to vector<256x1xi32>
    %13 = arith.cmpi eq, %9, %12 : vector<256x1xi32>
    %14 = tpu.iota {dimensions = array<i32: 0>} : vector<128x1xi32>
    %c15_i32 = arith.constant 15 : i32
    %15 = vector.broadcast %c15_i32 : i32 to vector<128x1xi32>
    %16 = arith.andi %14, %15 : vector<128x1xi32>
    %c0_i32_3 = arith.constant 0 : i32
    %17 = vector.broadcast %c0_i32_3 : i32 to vector<128x1xi32>
    %18 = arith.cmpi eq, %16, %17 : vector<128x1xi32>
    %c15_i32_4 = arith.constant 15 : i32
    %19 = vector.broadcast %c15_i32_4 : i32 to vector<128x1xi32>
    %20 = arith.cmpi eq, %16, %19 : vector<128x1xi32>
    %c0 = arith.constant 0 : index
    %c0_5 = arith.constant 0 : index
    %21 = vector.load %arg1[%c0, %c0_5] : memref<512x1xf32, #tpu.memory_space<vmem>>, vector<512x1xf32>
    %c1_i32 = arith.constant 1 : i32
    %22 = tpu.dynamic_rotate %21 by %c1_i32 dim 0 : vector<512x1xf32>, i32 -> vector<512x1xf32>
    %cst = arith.constant 0.000000e+00 : f32
    %23 = vector.broadcast %cst : f32 to vector<512x1xf32>
    %24 = arith.select %4, %23, %22 : vector<512x1xi1>, vector<512x1xf32>
    %c511_i32 = arith.constant 511 : i32
    %25 = tpu.dynamic_rotate %21 by %c511_i32 dim 0 : vector<512x1xf32>, i32 -> vector<512x1xf32>
    %cst_6 = arith.constant 0.000000e+00 : f32
    %26 = vector.broadcast %cst_6 : f32 to vector<512x1xf32>
    %27 = arith.select %6, %26, %25 : vector<512x1xi1>, vector<512x1xf32>
    %c0_7 = arith.constant 0 : index
    %c0_8 = arith.constant 0 : index
    %c0_9 = arith.constant 0 : index
    %28 = vector.load %arg2[%c0_7, %c0_8, %c0_9] : memref<3x1x32xf32, #tpu.memory_space<vmem>>, vector<1x1x32xf32>
    %29 = vector.shape_cast %28 : vector<1x1x32xf32> to vector<1x32xf32>
    %30 = vector.broadcast %24 : vector<512x1xf32> to vector<512x32xf32>
    %31 = vector.broadcast %29 : vector<1x32xf32> to vector<512x32xf32>
    %32 = arith.mulf %30, %31 : vector<512x32xf32>
    %c1 = arith.constant 1 : index
    %c0_10 = arith.constant 0 : index
    %c0_11 = arith.constant 0 : index
    %33 = vector.load %arg2[%c1, %c0_10, %c0_11] : memref<3x1x32xf32, #tpu.memory_space<vmem>>, vector<1x1x32xf32>
    %34 = vector.shape_cast %33 : vector<1x1x32xf32> to vector<1x32xf32>
    %35 = vector.broadcast %21 : vector<512x1xf32> to vector<512x32xf32>
    %36 = vector.broadcast %34 : vector<1x32xf32> to vector<512x32xf32>
    %37 = arith.mulf %35, %36 : vector<512x32xf32>
    %38 = arith.addf %32, %37 : vector<512x32xf32>
    %c2 = arith.constant 2 : index
    %c0_12 = arith.constant 0 : index
    %c0_13 = arith.constant 0 : index
    %39 = vector.load %arg2[%c2, %c0_12, %c0_13] : memref<3x1x32xf32, #tpu.memory_space<vmem>>, vector<1x1x32xf32>
    %40 = vector.shape_cast %39 : vector<1x1x32xf32> to vector<1x32xf32>
    %41 = vector.broadcast %27 : vector<512x1xf32> to vector<512x32xf32>
    %42 = vector.broadcast %40 : vector<1x32xf32> to vector<512x32xf32>
    %43 = arith.mulf %41, %42 : vector<512x32xf32>
    %44 = arith.addf %38, %43 : vector<512x32xf32>
    %c0_14 = arith.constant 0 : index
    %c0_15 = arith.constant 0 : index
    %45 = vector.load %arg3[%c0_14, %c0_15] : memref<1x32xf32, #tpu.memory_space<vmem>>, vector<1x32xf32>
    %46 = vector.broadcast %45 : vector<1x32xf32> to vector<512x32xf32>
    %47 = arith.addf %44, %46 : vector<512x32xf32>
    %cst_16 = arith.constant 0.000000e+00 : f32
    %48 = vector.broadcast %cst_16 : f32 to vector<512x32xf32>
    %49 = arith.maximumf %47, %48 : vector<512x32xf32>
    %50 = vector.shape_cast %49 : vector<512x32xf32> to vector<256x2x32xf32>
    %cst_17 = arith.constant dense<0xFF800000> : vector<256x32xf32>
    %51 = vector.multi_reduction <maximumf>, %50, %cst_17 [1] : vector<256x2x32xf32> to vector<256x32xf32>
    %c1_i32_18 = arith.constant 1 : i32
    %52 = tpu.dynamic_rotate %51 by %c1_i32_18 dim 0 : vector<256x32xf32>, i32 -> vector<256x32xf32>
    %cst_19 = arith.constant 0.000000e+00 : f32
    %53 = vector.shape_cast %11 : vector<256x1xi1> to vector<256x1xi1>
    %54 = vector.broadcast %53 : vector<256x1xi1> to vector<256x32xi1>
    %55 = vector.broadcast %cst_19 : f32 to vector<256x32xf32>
    %56 = arith.select %54, %55, %52 : vector<256x32xi1>, vector<256x32xf32>
    %c255_i32 = arith.constant 255 : i32
    %57 = tpu.dynamic_rotate %51 by %c255_i32 dim 0 : vector<256x32xf32>, i32 -> vector<256x32xf32>
    %cst_20 = arith.constant 0.000000e+00 : f32
    %58 = vector.shape_cast %13 : vector<256x1xi1> to vector<256x1xi1>
    %59 = vector.broadcast %58 : vector<256x1xi1> to vector<256x32xi1>
    %60 = vector.broadcast %cst_20 : f32 to vector<256x32xf32>
    %61 = arith.select %59, %60, %57 : vector<256x32xi1>, vector<256x32xf32>
    %62 = tpu.concatenate %56, %51, %61 in 1 : vector<256x32xf32>, vector<256x32xf32>, vector<256x32xf32> -> vector<256x96xf32>
    %63 = arith.truncf %62 : vector<256x96xf32> to vector<256x96xbf16>
    %c0_21 = arith.constant 0 : index
    %c0_22 = arith.constant 0 : index
    %64 = vector.load %arg4[%c0_21, %c0_22] : memref<96x64xbf16, #tpu.memory_space<vmem>>, vector<96x64xbf16>
    %cst_23 = arith.constant dense<0.000000e+00> : vector<256x64xf32>
    %65 = tpu.matmul %63, %64, %cst_23 {dimension_numbers = #tpu.dot_dimension_numbers<[1], [0], [0], [1], [0, 0, 1, 1], [], []>} : vector<256x96xbf16>, vector<96x64xbf16>, vector<256x64xf32> -> vector<256x64xf32>
    %c0_24 = arith.constant 0 : index
    %c0_25 = arith.constant 0 : index
    %66 = vector.load %arg5[%c0_24, %c0_25] : memref<1x64xf32, #tpu.memory_space<vmem>>, vector<1x64xf32>
    %67 = vector.broadcast %66 : vector<1x64xf32> to vector<256x64xf32>
    %68 = arith.addf %65, %67 : vector<256x64xf32>
    %cst_26 = arith.constant 0.000000e+00 : f32
    %69 = vector.broadcast %cst_26 : f32 to vector<256x64xf32>
    %70 = arith.maximumf %68, %69 : vector<256x64xf32>
    %71 = vector.shape_cast %70 : vector<256x64xf32> to vector<128x2x64xf32>
    %cst_27 = arith.constant dense<0xFF800000> : vector<128x64xf32>
    %72 = vector.multi_reduction <maximumf>, %71, %cst_27 [1] : vector<128x2x64xf32> to vector<128x64xf32>
    %c1_i32_28 = arith.constant 1 : i32
    %73 = tpu.dynamic_rotate %72 by %c1_i32_28 dim 0 : vector<128x64xf32>, i32 -> vector<128x64xf32>
    %cst_29 = arith.constant 0.000000e+00 : f32
    %74 = vector.shape_cast %18 : vector<128x1xi1> to vector<128x1xi1>
    %75 = vector.broadcast %74 : vector<128x1xi1> to vector<128x64xi1>
    %76 = vector.broadcast %cst_29 : f32 to vector<128x64xf32>
    %77 = arith.select %75, %76, %73 : vector<128x64xi1>, vector<128x64xf32>
    %c127_i32 = arith.constant 127 : i32
    %78 = tpu.dynamic_rotate %72 by %c127_i32 dim 0 : vector<128x64xf32>, i32 -> vector<128x64xf32>
    %cst_30 = arith.constant 0.000000e+00 : f32
    %79 = vector.shape_cast %20 : vector<128x1xi1> to vector<128x1xi1>
    %80 = vector.broadcast %79 : vector<128x1xi1> to vector<128x64xi1>
    %81 = vector.broadcast %cst_30 : f32 to vector<128x64xf32>
    %82 = arith.select %80, %81, %78 : vector<128x64xi1>, vector<128x64xf32>
    %83 = tpu.concatenate %77, %72, %82 in 1 : vector<128x64xf32>, vector<128x64xf32>, vector<128x64xf32> -> vector<128x192xf32>
    %84 = arith.truncf %83 : vector<128x192xf32> to vector<128x192xbf16>
    %c0_31 = arith.constant 0 : index
    %c0_32 = arith.constant 0 : index
    %85 = vector.load %arg6[%c0_31, %c0_32] : memref<192x128xbf16, #tpu.memory_space<vmem>>, vector<192x128xbf16>
    %cst_33 = arith.constant dense<0.000000e+00> : vector<128x128xf32>
    %86 = tpu.matmul %84, %85, %cst_33 {dimension_numbers = #tpu.dot_dimension_numbers<[1], [0], [0], [1], [0, 0, 1, 1], [], []>} : vector<128x192xbf16>, vector<192x128xbf16>, vector<128x128xf32> -> vector<128x128xf32>
    %c0_34 = arith.constant 0 : index
    %c0_35 = arith.constant 0 : index
    %87 = vector.load %arg7[%c0_34, %c0_35] : memref<1x128xf32, #tpu.memory_space<vmem>>, vector<1x128xf32>
    %88 = vector.broadcast %87 : vector<1x128xf32> to vector<128x128xf32>
    %89 = arith.addf %86, %88 : vector<128x128xf32>
    %cst_36 = arith.constant 0.000000e+00 : f32
    %90 = vector.broadcast %cst_36 : f32 to vector<128x128xf32>
    %91 = arith.maximumf %89, %90 : vector<128x128xf32>
    %c0_37 = arith.constant 0 : index
    %c0_38 = arith.constant 0 : index
    %92 = vector.load %arg8[%c0_37, %c0_38] : memref<8x128xbf16, #tpu.memory_space<vmem>>, vector<8x128xbf16>
    %93 = arith.truncf %91 : vector<128x128xf32> to vector<128x128xbf16>
    %cst_39 = arith.constant dense<0.000000e+00> : vector<8x128xf32>
    %94 = tpu.matmul %92, %93, %cst_39 {dimension_numbers = #tpu.dot_dimension_numbers<[1], [0], [0], [1], [0, 0, 1, 1], [], []>} : vector<8x128xbf16>, vector<128x128xbf16>, vector<8x128xf32> -> vector<8x128xf32>
    %95 = arith.truncf %94 : vector<8x128xf32> to vector<8x128xbf16>
    %c0_40 = arith.constant 0 : index
    %c0_41 = arith.constant 0 : index
    %96 = vector.load %arg9[%c0_40, %c0_41] : memref<128x256xbf16, #tpu.memory_space<vmem>>, vector<128x256xbf16>
    %cst_42 = arith.constant dense<0.000000e+00> : vector<8x256xf32>
    %97 = tpu.matmul %95, %96, %cst_42 {dimension_numbers = #tpu.dot_dimension_numbers<[1], [0], [0], [1], [0, 0, 1, 1], [], []>} : vector<8x128xbf16>, vector<128x256xbf16>, vector<8x256xf32> -> vector<8x256xf32>
    %c0_43 = arith.constant 0 : index
    %c0_44 = arith.constant 0 : index
    %98 = vector.load %arg10[%c0_43, %c0_44] : memref<1x256xf32, #tpu.memory_space<vmem>>, vector<1x256xf32>
    %99 = vector.broadcast %98 : vector<1x256xf32> to vector<8x256xf32>
    %100 = arith.addf %97, %99 : vector<8x256xf32>
    %cst_45 = arith.constant 0.000000e+00 : f32
    %101 = vector.broadcast %cst_45 : f32 to vector<8x256xf32>
    %102 = arith.maximumf %100, %101 : vector<8x256xf32>
    %103 = arith.truncf %102 : vector<8x256xf32> to vector<8x256xbf16>
    %c0_46 = arith.constant 0 : index
    %c0_47 = arith.constant 0 : index
    %104 = vector.load %arg11[%c0_46, %c0_47] : memref<256x128xbf16, #tpu.memory_space<vmem>>, vector<256x128xbf16>
    %cst_48 = arith.constant dense<0.000000e+00> : vector<8x128xf32>
    %105 = tpu.matmul %103, %104, %cst_48 {dimension_numbers = #tpu.dot_dimension_numbers<[1], [0], [0], [1], [0, 0, 1, 1], [], []>} : vector<8x256xbf16>, vector<256x128xbf16>, vector<8x128xf32> -> vector<8x128xf32>
    %c0_49 = arith.constant 0 : index
    %c0_50 = arith.constant 0 : index
    %106 = vector.load %arg12[%c0_49, %c0_50] : memref<1x128xf32, #tpu.memory_space<vmem>>, vector<1x128xf32>
    %107 = vector.broadcast %106 : vector<1x128xf32> to vector<8x128xf32>
    %108 = arith.addf %105, %107 : vector<8x128xf32>
    %c0_51 = arith.constant 0 : index
    %c0_52 = arith.constant 0 : index
    %109 = vector.load %arg13[%c0_51, %c0_52] : memref<8x128xf32, #tpu.memory_space<vmem>>, vector<8x128xf32>
    tpu.vector_store %arg13[%c0_51, %c0_52], %108 {strides = array<i32>} : memref<8x128xf32, #tpu.memory_space<vmem>>, vector<8x128xf32>,
    return
  }
  func.func @transform_0(%arg0: i32) -> (i32, i32) {
    %c0_i32 = arith.constant 0 : i32
    %c0_i32_0 = arith.constant 0 : i32
    return %arg0, %c0_i32 : i32, i32
  }
  func.func @transform_1(%arg0: i32) -> (i32, i32, i32) {
    %c0_i32 = arith.constant 0 : i32
    %c0_i32_0 = arith.constant 0 : i32
    %c0_i32_1 = arith.constant 0 : i32
    %c0_i32_2 = arith.constant 0 : i32
    return %c0_i32, %c0_i32_0, %c0_i32_1 : i32, i32, i32
  }
  func.func @transform_2(%arg0: i32) -> (i32, i32) {
    %c0_i32 = arith.constant 0 : i32
    %c0_i32_0 = arith.constant 0 : i32
    %c0_i32_1 = arith.constant 0 : i32
    return %c0_i32, %c0_i32_0 : i32, i32
  }
  func.func @transform_3(%arg0: i32) -> (i32, i32) {
    %c0_i32 = arith.constant 0 : i32
    %c0_i32_0 = arith.constant 0 : i32
    %c0_i32_1 = arith.constant 0 : i32
    return %c0_i32, %c0_i32_0 : i32, i32
  }
  func.func @transform_4(%arg0: i32) -> (i32, i32) {
    %c0_i32 = arith.constant 0 : i32
    %c0_i32_0 = arith.constant 0 : i32
    %c0_i32_1 = arith.constant 0 : i32
    return %c0_i32, %c0_i32_0 : i32, i32
  }
  func.func @transform_5(%arg0: i32) -> (i32, i32) {
    %c0_i32 = arith.constant 0 : i32
    %c0_i32_0 = arith.constant 0 : i32
    %c0_i32_1 = arith.constant 0 : i32
    return %c0_i32, %c0_i32_0 : i32, i32
  }
  func.func @transform_6(%arg0: i32) -> (i32, i32) {
    %c0_i32 = arith.constant 0 : i32
    %c0_i32_0 = arith.constant 0 : i32
    %c0_i32_1 = arith.constant 0 : i32
    return %c0_i32, %c0_i32_0 : i32, i32
  }
  func.func @transform_7(%arg0: i32) -> (i32, i32) {
    %c0_i32 = arith.constant 0 : i32
    %c0_i32_0 = arith.constant 0 : i32
    %c0_i32_1 = arith.constant 0 : i32
    return %c0_i32, %c0_i32_0 : i32, i32
  }
  func.func @transform_8(%arg0: i32) -> (i32, i32) {
    %c0_i32 = arith.constant 0 : i32
    %c0_i32_0 = arith.constant 0 : i32
    %c0_i32_1 = arith.constant 0 : i32
    return %c0_i32, %c0_i32_0 : i32, i32
  }
  func.func @transform_9(%arg0: i32) -> (i32, i32) {
    %c0_i32 = arith.constant 0 : i32
    %c0_i32_0 = arith.constant 0 : i32
    %c0_i32_1 = arith.constant 0 : i32
    return %c0_i32, %c0_i32_0 : i32, i32
  }
  func.func @transform_10(%arg0: i32) -> (i32, i32) {
    %c0_i32 = arith.constant 0 : i32
    %c0_i32_0 = arith.constant 0 : i32
    %c0_i32_1 = arith.constant 0 : i32
    return %c0_i32, %c0_i32_0 : i32, i32
  }
  func.func @transform_11(%arg0: i32) -> (i32, i32) {
    %c0_i32 = arith.constant 0 : i32
    %c0_i32_0 = arith.constant 0 : i32
    %c0_i32_1 = arith.constant 0 : i32
    return %c0_i32, %c0_i32_0 : i32, i32
  }
  func.func @transform_12(%arg0: i32) -> (i32, i32) {
    %c0_i32 = arith.constant 0 : i32
    %c0_i32_0 = arith.constant 0 : i32
    return %arg0, %c0_i32 : i32, i32
  }
}

</mosaic_0001>

<bundles_post_ra>
// kernel: eq.8
= control target key start
LH: loop header
LB: loop body
LE: loop exit
PB: predicated region body
PF: predicated region fallthrough
CT: control target
= control target key end

     0   :  { %s67_s10 = smov 112   ;;  %s68_s11 = smov 80   ;;  %vm3_vm0 = vcmask 130048   ;;  %vm9_vm1 = vcmask 1048448   ;;  %vm15_vm2 = vcmask 917248   ;;  %vm21_vm3 = vcmask 786048   ;;  %s111_s0 = inlined_call_operand.vmem [shape: s32[8,16], index: 0, kind: input, shape index: {}]   ;;  %s112_s1 = inlined_call_operand.vmem [shape: s32[128], index: 1, kind: output, shape index: {}]  }
   0x1   :  { %v53_v0 = vld [vmem:[%s111_s0 + $0x7] sm:$0x1]   ;;  %v55_v1 = vld [vmem:[%s111_s0 + $0x5] sm:$0x1]   ;;  %v57_v2 = vld [vmem:[%s111_s0 + $0x3] sm:$0x1]  }
   0x2   :  { %7 = vrot.lane.b32.xlu0 %v53_v0, %s67_s10  ;;  %19 = vrot.lane.b32.xlu1 %v55_v1, %s68_s11  ;;  %s69_s14 = smov 48   ;;  %v54_v3 = vld [vmem:[%s111_s0 + $0x6] sm:$0x1]   ;;  %v56_v4 = vld [vmem:[%s111_s0 + $0x4] sm:$0x1]   ;;  %s70_s21 = smov 96  }
   0x3   :  { %31 = vrot.lane.b32.xlu2 %v57_v2, %s69_s14  ;;  %v58_v5 = vld [vmem:[%s111_s0 + $0x2] sm:$0x1]   ;;  %s71_s22 = smov 64   ;;  %s72_s23 = smov 32   ;;  %v59_v6 = vld [vmem:[%s111_s0 + $0x1] sm:$0x1]  }
   0x4   :  { %s73_s26 = smov 16   ;;  %v2_v7 = vld [vmem:[%s111_s0] sm:$0x1]   ;;  %vm27_vm4 = vcmask 654848   ;;  %vm33_vm5 = vcmask 523648   ;;  %vm39_vm6 = vcmask 392448  }
   0x5   :  { %4 = vst.msk [vmem:[#allocation0] sm:$0x1] %vm3_vm0, %v2_v7   ;;  %vm45_vm7 = vcmask 261248  }
   0xa   :  { %13 = vrot.lane.b32.xlu0 %v54_v3, %s70_s21  ;;  %25 = vrot.lane.b32.xlu1 %v56_v4, %s71_s22 }
   0xb   :  { %37 = vrot.lane.b32.xlu2 %v58_v5, %s72_s23 }
  0x12   :  { %43 = vrot.lane.b32.xlu0 %v59_v6, %s73_s26 }
  0x5d   :  { %v32_v8 = vpop.permute.xlu2 %31  }
  0x65   :  { %v38_v9 = vpop.permute.xlu2 %37  }
  0x74   :  { %v8_v10 = vpop.permute.xlu0 %7   ;;  %v20_v11 = vpop.permute.xlu1 %19  }
  0x75   :  { %10 = vst.msk [vmem:[#allocation0] sm:$0x1] %vm9_vm1, %v8_v10  }
  0x7c   :  { %v14_v12 = vpop.permute.xlu0 %13   ;;  %v26_v13 = vpop.permute.xlu1 %25  }
  0x7d   :  { %16 = vst.msk [vmem:[#allocation0] sm:$0x1] %vm15_vm2, %v14_v12  }
  0x7e   :  { %22 = vst.msk [vmem:[#allocation0] sm:$0x1] %vm21_vm3, %v20_v11  }
  0x7f   :  { %28 = vst.msk [vmem:[#allocation0] sm:$0x1] %vm27_vm4, %v26_v13  }
  0x80   :  { %34 = vst.msk [vmem:[#allocation0] sm:$0x1] %vm33_vm5, %v32_v8  }
  0x81   :  { %40 = vst.msk [vmem:[#allocation0] sm:$0x1] %vm39_vm6, %v38_v9  }
  0x84   :  { %v44_v14 = vpop.permute.xlu0 %43  }
  0x85   :  { %46 = vst.msk [vmem:[#allocation0] sm:$0x1] %vm45_vm7, %v44_v14  }
  0x8c   :  { %v49_v15 = vld [vmem:[#allocation0] sm:$0x1] }
  0x8d   :  { %52 = vst [vmem:[%s112_s1] sm:$0x1] %v49_v15 }

// kernel: cnn_classifier_forward.1
= control target key start
LH: loop header
LB: loop body
LE: loop exit
PB: predicated region body
PF: predicated region fallthrough
CT: control target
= control target key end

     0   :  { %s9180_s21 = smov 0   ;;  %s14656_s0 = inlined_call_operand.vmem [shape: f32[1024,1], index: 0, kind: input, shape index: {}]   ;;  %s14657_s1 = inlined_call_operand.vmem [shape: f32[3,1,32], index: 1, kind: input, shape index: {}]   ;;  %s14658_s2 = inlined_call_operand.vmem [shape: f32[1,32], index: 2, kind: input, shape index: {}]   ;;  %s14659_s3 = inlined_call_operand.vmem [shape: bf16[96,64], index: 3, kind: input, shape index: {}]   ;;  %s14660_s4 = inlined_call_operand.vmem [shape: f32[1,64], index: 4, kind: input, shape index: {}]   ;;  %s14661_s5 = inlined_call_operand.vmem [shape: bf16[192,128], index: 5, kind: input, shape index: {}]   ;;  %s14662_s6 = inlined_call_operand.vmem [shape: f32[1,128], index: 6, kind: input, shape index: {}]   ;;  %s14663_s7 = inlined_call_operand.vmem [shape: bf16[8,128], index: 7, kind: input, shape index: {}]   ;;  %s14664_s8 = inlined_call_operand.vmem [shape: bf16[128,256], index: 8, kind: input, shape index: {}]   ;;  %s14665_s9 = inlined_call_operand.vmem [shape: f32[1,256], index: 9, kind: input, shape index: {}]   ;;  %s14666_s10 = inlined_call_operand.vmem [shape: bf16[256,128], index: 10, kind: input, shape index: {}]   ;;  %s14667_s11 = inlined_call_operand.vmem [shape: f32[1,128], index: 11, kind: input, shape index: {}]   ;;  %s14668_s12 = inlined_call_operand.vmem [shape: f32[16,128], index: 12, kind: output, shape index: {}]  }
   0x1 LB: > { %s9186_s22 = sadd.s32 4294967295, %s9110_s21   ;;  %p8526_p0 = scmp.ge.s32.totalorder %s9110_s21, 1  ;;  %s9110_s21 = sphi %s9180_s21, %s22_s21  }
   0x2   : > { %p363_p1 = scmp.lt.s32.totalorder %s9110_s21, 3 }
   0x4   : > { %p364_p2 = pnand %p8526_p0, %p363_p1 }
   0x6   : > { %367 = sbr.rel (%p364_p2) target bundleno = 2147 (0x863), region = 68 }
   0xb   : > { %s8527_s23 = sshll.u32 %s9186_s22, 6  ;;  %v415_v0 = vlaneseq  ;;  %v9112_v1 = vmov 0   ;;  %vm3140_vm11 = vcmask 254976   ;;  %vm5189_vm12 = vcmask 1041409   ;;  %s9113_s18 = smov 32  }
   0xc   : > { %8839 = vset.pattern.permute.xlu2 %v9112_v1  ;;  %8838 = vset.pattern.permute.xlu1 %v9112_v1  ;;  %p405_p3 = scmp.lt.s32.totalorder %s8527_s23, 127  ;;  %vm5191_vm13 = vcmask 1042434   ;;  %vm5193_vm14 = vcmask 1043459   ;;  %vm5195_vm15 = vcmask 1044484   ;;  %s9114_s19 = smov 64  }
   0xd   : > { %8837 = vset.pattern.permute.xlu0 %v9112_v1  ;;  %v9191_v2 = vshrl.u32 %v415_v0, 7  ;;  %p410_p4 = scmp.lt.s32.totalorder %s9186_s22, 1 }
   0xe   : > { %s15475_s23 = smov (!%p405_p3, %s8527_s23), 127 }
   0xf   : > { %s8528_s24 = sshll.u32 %s15475_s23, 3  ;;  %vm944_vm0 = vcmp.lt.s32.totalorder %v9191_v2, 1  ;;  %v480_v16 = vand.u32 63, %v9191_v2  ;;  %v9235_v21 = vadd.s32 64, %v9191_v2  ;;  %v9295_v52 = vadd.s32 128, %v9191_v2  ;;  %s15477_s22 = smov (!%p410_p4, %s9186_s22), 1 }
  0x10   : > { %s9196_s27 = scalar_lea.vmem %s14656_s0, %s8528_s24  ;;  %vm1137_vm7 = vcmp.lt.s32.totalorder %v9191_v2, 7 }
  0x11   : > { %v9199_v3 = vld [vmem:[%s9196_s27 + $0x18] sm:$0xff]  ;;  %v9202_v4 = vld [vmem:[%s9196_s27 + $0x20] sm:$0xff]  ;;  %v9206_v5 = vld [vmem:[%s9196_s27 + $0x8] sm:$0xff]  ;;  %14849 = vst [vmem:[#allocation2_spill] sm:$0xff] %v9235_v21  ;;  %vm544_vm1 = vcmp.eq.s32.totalorder %v480_v16, 0  ;;  %v488_v26 = vand.u32 63, %v9235_v21 }
  0x12   : > { %v883_v6 = vrot.slane %v9199_v3, 7  ;;  %v884_v7 = vrot.slane %v9202_v4, 7  ;;  %v9211_v8 = vld [vmem:[%s9196_s27 + $0x10] sm:$0xff]  ;;  %v881_v9 = vrot.slane %v9206_v5, 7  ;;  %v9215_v10 = vld [vmem:[%s9196_s27] sm:$0xff]  ;;  %v9220_v13 = vld [vmem:[%s9196_s27 + $0x28] sm:$0xff] }
  0x13   : > { %v882_v11 = vrot.slane %v9211_v8, 7  ;;  %v880_v12 = vrot.slane %v9215_v10, 7  ;;  %v9223_v14 = vld [vmem:[%s9196_s27 + $0x1f8] sm:$0xff]  ;;  %v885_v20 = vrot.slane %v9220_v13, 7  ;;  %v9245_v24 = vld [vmem:[%s9196_s27 + $0x40] sm:$0xff]  ;;  %v9255_v31 = vld [vmem:[%s9196_s27 + $0x30] sm:$0xff] }
  0x14   : > { %v1004_v15 = vsel %vm944_vm0, %v883_v6, %v884_v7  ;;  %v14671_v17 = vrot.slane %v9223_v14, 7  ;;  %v9242_v23 = vld [vmem:[%s9196_s27 + $0x38] sm:$0xff]  ;;  %v888_v30 = vrot.slane %v9245_v24, 7  ;;  %vm552_vm2 = vcmp.eq.s32.totalorder %v488_v26, 0  ;;  %v9265_v37 = vld [vmem:[%s9196_s27 + $0x50] sm:$0xff]  ;;  %v9271_v39 = vld [vmem:[%s9196_s27 + $0x48] sm:$0xff] }
  0x15   : > { %1289 = vperm.xlu2 %8839, %v1004_v15   ;;  %v1006_v18 = vsel %vm944_vm0, %v881_v9, %v882_v11  ;;  %v1007_v19 = vsel %vm944_vm0, %v880_v12, %v881_v9  ;;  %v1003_v25 = vsel %vm944_vm0, %v884_v7, %v885_v20  ;;  %v1005_v27 = vsel %vm944_vm0, %v882_v11, %v883_v6  ;;  %v9268_v38 = vld [vmem:[%s9196_s27 + $0x58] sm:$0xff]  ;;  %v9283_v46 = vld [vmem:[%s9196_s27 + $0x68] sm:$0xff]  ;;  %v9286_v47 = vld [vmem:[%s9196_s27 + $0x70] sm:$0xff] }
  0x16   : > { %1279 = vperm.xlu1 %8838, %v1006_v18   ;;  %1274 = vperm.xlu0 %8837, %v1007_v19   ;;  %v1008_v22 = vsel %vm944_vm0, %v14671_v17, %v880_v12  ;;  %v887_v29 = vrot.slane %v9242_v23, 7  ;;  %v886_v33 = vrot.slane %v9255_v31, 7  ;;  %v890_v40 = vrot.slane %v9265_v37, 7  ;;  %v9289_v48 = vld [vmem:[%s9196_s27 + $0x60] sm:$0xff]  ;;  %14850 = vst [vmem:[#allocation3_spill] sm:$0xff] %v9295_v52  ;;  %v9301_v54 = vld [vmem:[%s9196_s27 + $0x78] sm:$0xff] }
  0x17   : > { %v1009_v28 = vsel %vm544_vm1, 0.0, %v1008_v22  ;;  %v891_v41 = vrot.slane %v9268_v38, 7  ;;  %v889_v42 = vrot.slane %v9271_v39, 7  ;;  %v893_v49 = vrot.slane %v9283_v46, 7  ;;  %v9298_v53 = vld [vmem:[%s9196_s27 + $0x80] sm:$0xff]  ;;  %v9310_v58 = vld [vmem:[%s9196_s27 + $0x88] sm:$0xff] }
  0x18   : > { %v1000_v32 = vsel %vm944_vm0, %v887_v29, %v888_v30  ;;  %v1001_v35 = vsel %vm944_vm0, %v886_v33, %v887_v29  ;;  %v1002_v36 = vsel %vm944_vm0, %v885_v20, %v886_v33  ;;  %v894_v50 = vrot.slane %v9286_v47, 7  ;;  %v9323_v7 = vld [vmem:[%s9196_s27 + $0x98] sm:$0xff]  ;;  %v9326_v9 = vld [vmem:[%s9196_s27 + $0xa0] sm:$0xff]  ;;  %v9329_v11 = vld [vmem:[%s9196_s27 + $0x90] sm:$0xff] }
  0x19   : > { %v1017_v34 = vsel %vm552_vm2, 0.0, %v1000_v32  ;;  %v997_v43 = vsel %vm944_vm0, %v890_v40, %v891_v41  ;;  %v998_v44 = vsel %vm944_vm0, %v889_v42, %v890_v40  ;;  %v999_v45 = vsel %vm944_vm0, %v888_v30, %v889_v42  ;;  %v9341_v22 = vld [vmem:[%s9196_s27 + $0xb0] sm:$0xff]  ;;  %v9345_v26 = vld [vmem:[%s9196_s27 + $0xa8] sm:$0xff]  ;;  %v9353_v32 = vld [vmem:[%s9196_s27 + $0xc0] sm:$0xff] }
  0x1a   : > { %v892_v51 = vrot.slane %v9289_v48, 7  ;;  %v994_v55 = vsel %vm944_vm0, %v893_v49, %v894_v50  ;;  %v896_v59 = vrot.slane %v9298_v53, 7  ;;  %v496_v60 = vand.u32 63, %v9295_v52  ;;  %14851 = vst [vmem:[#allocation4_spill] sm:$0xff] %v9341_v22  ;;  %v842_v40 = vld [vmem:[%s9196_s27 + $0xd0] sm:$0xff] }
  0x1b   : > { %v895_v61 = vrot.slane %v9301_v54, 7  ;;  %v897_v62 = vrot.slane %v9310_v58, 7  ;;  %v899_v12 = vrot.slane %v9323_v7, 7  ;;  %v900_v15 = vrot.slane %v9326_v9, 7  ;;  %14853 = vst [vmem:[#allocation6_spill] sm:$0xff] %v9353_v32 }
  0x1c   : > { %v995_v56 = vsel %vm944_vm0, %v892_v51, %v893_v49  ;;  %v996_v57 = vsel %vm944_vm0, %v891_v41, %v892_v51  ;;  %vm560_vm3 = vcmp.eq.s32.totalorder %v496_v60, 0  ;;  %v898_v16 = vrot.slane %v9329_v11, 7 }
  0x1d   : > { %1294 = vperm.xlu2 %8839, %v1003_v25   ;;  %v992_v63 = vsel %vm944_vm0, %v895_v61, %v896_v59  ;;  %v991_v0 = vsel %vm944_vm0, %v896_v59, %v897_v62  ;;  %v993_v6 = vsel %vm944_vm0, %v894_v50, %v895_v61  ;;  %v988_v18 = vsel %vm944_vm0, %v899_v12, %v900_v15  ;;  %v839_v25 = vld [vmem:[%s9196_s27 + $0xb8] sm:$0xff] }
  0x1e   : > { %1284 = vperm.xlu1 %8838, %v1005_v27   ;;  %1269 = vperm.xlu0 %8837, %v1009_v28   ;;  %v1025_v1 = vsel %vm560_vm3, 0.0, %v992_v63  ;;  %v989_v19 = vsel %vm944_vm0, %v898_v16, %v899_v12  ;;  %v990_v20 = vsel %vm944_vm0, %v897_v62, %v898_v16  ;;  %v902_v27 = vrot.slane %v9341_v22, 7  ;;  %v847_v63 = vld [vmem:[%s9196_s27 + $0xf8] sm:$0xff] }
  0x1f   : > { %v903_v28 = vrot.slane %v839_v25, 7  ;;  %v901_v29 = vrot.slane %v9345_v26, 7  ;;  %v9350_v30 = vadd.s32 192, %v9191_v2  ;;  %v904_v41 = vrot.slane %v9353_v32, 7 }
  0x20   : > { %v448_v62 = vadd.s32 256, %v9191_v2  ;;  %v911_v16 = vrot.slane %v847_v63, 7  ;;  %vm5197_vm1 = vcmask 1045509   ;;  %vm5199_vm2 = vcmask 1046534  }
  0x21   : > { %14852 = vst [vmem:[#allocation5_spill] sm:$0xff] %v9350_v30  ;;  %v985_v33 = vsel %vm944_vm0, %v902_v27, %v903_v28  ;;  %v504_v42 = vand.u32 63, %v9350_v30  ;;  %vm5201_vm3 = vcmask 1047559  }
  0x23   : > { %vm568_vm4 = vcmp.eq.s32.totalorder %v504_v42, 0 }
  0x25   : > { %1309 = vperm.xlu2 %8839, %v1017_v34   ;;  %v986_v34 = vsel %vm944_vm0, %v901_v29, %v902_v27 }
  0x26   : > { %1304 = vperm.xlu1 %8838, %v1001_v35   ;;  %1299 = vperm.xlu0 %8837, %v1002_v36   ;;  %v987_v35 = vsel %vm944_vm0, %v900_v15, %v901_v29  ;;  %v841_v36 = vld [vmem:[%s9196_s27 + $0xc8] sm:$0xff]  ;;  %v512_v15 = vand.u32 63, %v448_v62 }
  0x28   : > { %vm576_vm5 = vcmp.eq.s32.totalorder %v512_v15, 0 }
  0x2d   : > { %1324 = vperm.xlu2 %8839, %v997_v43   ;;  %v905_v43 = vrot.slane %v841_v36, 7 }
  0x2e   : > { %1319 = vperm.xlu1 %8838, %v998_v44   ;;  %1314 = vperm.xlu0 %8837, %v999_v45   ;;  %v906_v44 = vrot.slane %v842_v40, 7  ;;  %v984_v45 = vsel %vm944_vm0, %v903_v28, %v904_v41 }
  0x2f   : > { %v983_v50 = vsel %vm944_vm0, %v904_v41, %v905_v43  ;;  %v1033_v51 = vsel %vm568_vm4, 0.0, %v984_v45  ;;  %v853_v45 = vld [vmem:[%s9196_s27 + $0x128] sm:$0xff] }
  0x30   : > { %v982_v49 = vsel %vm944_vm0, %v905_v43, %v906_v44 }
  0x35   : > { %1339 = vperm.xlu2 %8839, %v994_v55   ;;  %v844_v55 = vld [vmem:[%s9196_s27 + $0xe0] sm:$0xff] }
  0x36   : > { %1334 = vperm.xlu1 %8838, %v995_v56   ;;  %1329 = vperm.xlu0 %8837, %v996_v57   ;;  %v845_v56 = vld [vmem:[%s9196_s27 + $0xe8] sm:$0xff]  ;;  %v843_v57 = vld [vmem:[%s9196_s27 + $0xd8] sm:$0xff]  ;;  %v908_v59 = vrot.slane %v844_v55, 7 }
  0x37   : > { %v909_v60 = vrot.slane %v845_v56, 7  ;;  %v907_v61 = vrot.slane %v843_v57, 7 }
  0x39   : > { %v981_v12 = vsel %vm944_vm0, %v906_v44, %v907_v61 }
  0x3d   : > { %1354 = vperm.xlu2 %8839, %v991_v0   ;;  %v848_v0 = vld [vmem:[%s9196_s27 + $0x100] sm:$0xff] }
  0x3e   : > { %1349 = vperm.xlu1 %8838, %v1025_v1   ;;  %1344 = vperm.xlu0 %8837, %v993_v6   ;;  %v979_v1 = vsel %vm944_vm0, %v908_v59, %v909_v60  ;;  %v980_v6 = vsel %vm944_vm0, %v907_v61, %v908_v59  ;;  %v456_v59 = vadd.s32 320, %v9191_v2  ;;  %v855_v61 = vld [vmem:[%s9196_s27 + $0x138] sm:$0xff] }
  0x3f   : > { %v919_v15 = vrot.slane %v855_v61, 7 }
  0x45   : > { %1369 = vperm.xlu2 %8839, %v988_v18   ;;  %v912_v18 = vrot.slane %v848_v0, 7 }
  0x46   : > { %1364 = vperm.xlu1 %8838, %v989_v19   ;;  %1359 = vperm.xlu0 %8837, %v990_v20   ;;  %v846_v19 = vld [vmem:[%s9196_s27 + $0xf0] sm:$0xff] }
  0x47   : > { %v976_v20 = vsel %vm944_vm0, %v911_v16, %v912_v18  ;;  %v910_v25 = vrot.slane %v846_v19, 7 }
  0x48   : > { %v1041_v27 = vsel %vm576_vm5, 0.0, %v976_v20 }
  0x49   : > { %v977_v28 = vsel %vm944_vm0, %v910_v25, %v911_v16  ;;  %v978_v29 = vsel %vm944_vm0, %v909_v60, %v910_v25  ;;  %v856_v60 = vld [vmem:[%s9196_s27 + $0x140] sm:$0xff] }
  0x4d   : > { %1384 = vperm.xlu2 %8839, %v985_v33   ;;  %v850_v33 = vld [vmem:[%s9196_s27 + $0x110] sm:$0xff] }
  0x4e   : > { %1379 = vperm.xlu1 %8838, %v986_v34   ;;  %1374 = vperm.xlu0 %8837, %v987_v35   ;;  %v851_v34 = vld [vmem:[%s9196_s27 + $0x118] sm:$0xff]  ;;  %v849_v35 = vld [vmem:[%s9196_s27 + $0x108] sm:$0xff]  ;;  %v914_v36 = vrot.slane %v850_v33, 7  ;;  %v858_v33 = vld [vmem:[%s9196_s27 + $0x150] sm:$0xff] }
  0x4f   : > { %v915_v40 = vrot.slane %v851_v34, 7  ;;  %v913_v41 = vrot.slane %v849_v35, 7 }
  0x51   : > { %v973_v42 = vsel %vm944_vm0, %v914_v36, %v915_v40  ;;  %v974_v43 = vsel %vm944_vm0, %v913_v41, %v914_v36  ;;  %v975_v44 = vsel %vm944_vm0, %v912_v18, %v913_v41 }
  0x55   : > { %1399 = vperm.xlu2 %8839, %v982_v49   ;;  %v854_v49 = vld [vmem:[%s9196_s27 + $0x130] sm:$0xff] }
  0x56   : > { %1394 = vperm.xlu1 %8838, %v983_v50   ;;  %1389 = vperm.xlu0 %8837, %v1033_v51   ;;  %v852_v50 = vld [vmem:[%s9196_s27 + $0x120] sm:$0xff]  ;;  %v917_v51 = vrot.slane %v853_v45, 7  ;;  %v918_v55 = vrot.slane %v854_v49, 7  ;;  %v9435_v45 = vld [vmem:[%s9196_s27 + $0x178] sm:$0xff]  ;;  %v861_v49 = vld [vmem:[%s9196_s27 + $0x168] sm:$0xff] }
  0x57   : > { %v916_v57 = vrot.slane %v852_v50, 7  ;;  %14854 = vst [vmem:[#allocation7_spill] sm:$0xff] %v9435_v45 }
  0x58   : > { %v970_v62 = vsel %vm944_vm0, %v917_v51, %v918_v55 }
  0x59   : > { %v971_v63 = vsel %vm944_vm0, %v916_v57, %v917_v51  ;;  %v972_v0 = vsel %vm944_vm0, %v915_v40, %v916_v57  ;;  %v922_v40 = vrot.slane %v858_v33, 7  ;;  %v14669_v51 = vrot.slane %v9435_v45, 7 }
  0x5a   : > { %v925_v57 = vrot.slane %v861_v49, 7 }
  0x5d   : > { %1414 = vperm.xlu2 %8839, %v979_v1   ;;  %v857_v1 = vld [vmem:[%s9196_s27 + $0x148] sm:$0xff] }
  0x5e   : > { %1409 = vperm.xlu1 %8838, %v980_v6   ;;  %1404 = vperm.xlu0 %8837, %v981_v12   ;;  %v920_v6 = vrot.slane %v856_v60, 7  ;;  %v520_v12 = vand.u32 63, %v456_v59  ;;  %v921_v16 = vrot.slane %v857_v1, 7 }
  0x60   : > { %vm584_vm6 = vcmp.eq.s32.totalorder %v520_v12, 0  ;;  %v968_v19 = vsel %vm944_vm0, %v919_v15, %v920_v6  ;;  %v967_v20 = vsel %vm944_vm0, %v920_v6, %v921_v16  ;;  %v1077_v12 = vrot.slane %v9202_v4, 1 }
  0x61   : > { %v1049_v25 = vsel %vm584_vm6, 0.0, %v968_v19  ;;  %v1075_v19 = vrot.slane %v9211_v8, 1 }
  0x65   : > { %1429 = vperm.xlu2 %8839, %v1041_v27   ;;  %v969_v27 = vsel %vm944_vm0, %v918_v55, %v919_v15  ;;  %v1078_v15 = vrot.slane %v9220_v13, 1 }
  0x66   : > { %1424 = vperm.xlu1 %8838, %v977_v28   ;;  %1419 = vperm.xlu0 %8837, %v978_v29   ;;  %v859_v28 = vld [vmem:[%s9196_s27 + $0x158] sm:$0xff]  ;;  %v860_v29 = vld [vmem:[%s9196_s27 + $0x160] sm:$0xff] }
  0x67   : > { %v923_v34 = vrot.slane %v859_v28, 7  ;;  %v924_v35 = vrot.slane %v860_v29, 7 }
  0x69   : > { %v964_v41 = vsel %vm944_vm0, %v923_v34, %v924_v35 }
  0x6d   : > { %1444 = vperm.xlu2 %8839, %v973_v42   ;;  %v965_v42 = vsel %vm944_vm0, %v922_v40, %v923_v34 }
  0x6e   : > { %1439 = vperm.xlu1 %8838, %v974_v43   ;;  %1434 = vperm.xlu0 %8837, %v975_v44   ;;  %v966_v43 = vsel %vm944_vm0, %v921_v16, %v922_v40  ;;  %v862_v44 = vld [vmem:[%s9196_s27 + $0x170] sm:$0xff] }
  0x6f   : > { %v9402_v56 = vpop.permute.xlu2 %1289  ;;  %v926_v50 = vrot.slane %v862_v44, 7 }
  0x71   : > { %v961_v61 = vsel %vm944_vm0, %v926_v50, %v14669_v51 }
  0x75   : > { %1459 = vperm.xlu2 %8839, %v970_v62   ;;  %v962_v62 = vsel %vm944_vm0, %v925_v57, %v926_v50 }
  0x76   : > { %1454 = vperm.xlu1 %8838, %v971_v63   ;;  %1449 = vperm.xlu0 %8837, %v972_v0   ;;  %v963_v63 = vsel %vm944_vm0, %v924_v35, %v925_v57 }
  0x77   : > { %v9414_v18 = vpop.permute.xlu2 %1294 }
  0x7d   : > { %1474 = vperm.xlu2 %8839, %v967_v20   ;;  %v1076_v20 = vrot.slane %v9199_v3, 1 }
  0x7e   : > { %1469 = vperm.xlu1 %8838, %v1049_v25   ;;  %1464 = vperm.xlu0 %8837, %v969_v27   ;;  %v14670_v25 = vrot.slane %v9215_v10, 1  ;;  %v1074_v27 = vrot.slane %v9206_v5, 1 }
  0x7f   : > { %v9425_v36 = vpop.permute.xlu2 %1309  ;;  %v1198_v33 = vsel %vm1137_vm7, %v1075_v19, %v1076_v20  ;;  %v1197_v50 = vsel %vm1137_vm7, %v1076_v20, %v1077_v12 }
  0x85   : > { %1489 = vperm.xlu2 %8839, %v964_v41   ;;  %v1079_v41 = vrot.slane %v9255_v31, 1 }
  0x86   : > { %1484 = vperm.xlu1 %8838, %v965_v42   ;;  %1479 = vperm.xlu0 %8837, %v966_v43  }
  0x87   : > { %v9439_v55 = vpop.permute.xlu2 %1324  ;;  %v1195_v49 = vsel %vm1137_vm7, %v1078_v15, %v1079_v41 }
  0x88   : > { %v9441_v59 = vpop.permute.xlu1 %1279  ;;  %v9443_v60 = vpop.permute.xlu0 %1274 }
  0x8d   : > { %1504 = vperm.xlu2 %8839, %v961_v61  }
  0x8e   : > { %1499 = vperm.xlu1 %8838, %v962_v62   ;;  %1494 = vperm.xlu0 %8837, %v963_v63  }
  0x8f   : > { %v9453_v0 = vpop.permute.xlu2 %1339 }
  0x90   : > { %v9455_v1 = vpop.permute.xlu1 %1284  ;;  %v9457_v6 = vpop.permute.xlu0 %1269 }
  0x95   : > { %1678 = vperm.xlu2 %8839, %v9202_v4   ;;  %v1196_v4 = vsel %vm1137_vm7, %v1077_v12, %v1078_v15  ;;  %v1081_v12 = vrot.slane %v9245_v24, 1  ;;  %v1082_v15 = vrot.slane %v9271_v39, 1 }
  0x96   : > { %1668 = vperm.xlu1 %8838, %v9211_v8   ;;  %1658 = vperm.xlu0 %8837, %v9215_v10   ;;  %v1200_v8 = vsel %vm1137_vm7, %v14670_v25, %v1074_v27 }
  0x97   : > { %v9465_v16 = vpop.permute.xlu2 %1354 }
  0x98   : > { %v9471_v28 = vpop.permute.xlu1 %1304  ;;  %v9473_v29 = vpop.permute.xlu0 %1299 }
  0x9d   : > { %2131 = vperm.xlu2 %8839, %v1196_v4   ;;  %v1192_v4 = vsel %vm1137_vm7, %v1081_v12, %v1082_v15 }
  0x9e   : > { %2121 = vperm.xlu1 %8838, %v1198_v33   ;;  %2111 = vperm.xlu0 %8837, %v1200_v8  }
  0x9f   : > { %v9483_v34 = vpop.permute.xlu2 %1369 }
  0xa0   : > { %v9485_v35 = vpop.permute.xlu1 %1319  ;;  %v9487_v40 = vpop.permute.xlu0 %1314 }
  0xa5   : > { %1683 = vperm.xlu2 %8839, %v9220_v13   ;;  %v1199_v13 = vsel %vm1137_vm7, %v1074_v27, %v1075_v19  ;;  %v9525_v27 = vadd.s32 56, %v9191_v2 }
  0xa6   : > { %1673 = vperm.xlu1 %8838, %v9199_v3   ;;  %1663 = vperm.xlu0 %8837, %v9206_v5   ;;  %v1080_v3 = vrot.slane %v9242_v23, 1 }
  0xa7   : > { %v9493_v42 = vpop.permute.xlu2 %1384  ;;  %14855 = vst [vmem:[#allocation8_spill] sm:$0xff] %v9525_v27  ;;  %v487_v33 = vand.u32 63, %v9525_v27 }
  0xa8   : > { %v9495_v43 = vpop.permute.xlu1 %1334  ;;  %v9497_v44 = vpop.permute.xlu0 %1329  ;;  %v1194_v62 = vsel %vm1137_vm7, %v1079_v41, %v1080_v3 }
  0xa9   : > { %vm615_vm8 = vcmp.eq.s32.totalorder %v487_v33, 63 }
  0xad   : > { %2136 = vperm.xlu2 %8839, %v1195_v49   ;;  %v1193_v49 = vsel %vm1137_vm7, %v1080_v3, %v1081_v12  ;;  %v9558_v12 = vld [vmem:[%s9196_s27 + $0x1e8] sm:$0xff] }
  0xae   : > { %2126 = vperm.xlu1 %8838, %v1197_v50   ;;  %2116 = vperm.xlu0 %8837, %v1199_v13   ;;  %v1209_v50 = vsel %vm615_vm8, 0.0, %v1193_v49  ;;  %v1086_v13 = vrot.slane %v9283_v46, 1  ;;  %14856 = vst [vmem:[#allocation9_spill] sm:$0xff] %v9558_v12  ;;  %v14677_v49 = vrot.slane %v9558_v12, 7  ;;  %v479_v12 = vadd.s32 504, %v9191_v2 }
  0xaf   : > { %v9506_v5 = vpop.permute.xlu2 %1399 }
  0xb0   : > { %v9508_v57 = vpop.permute.xlu1 %1349  ;;  %v9510_v61 = vpop.permute.xlu0 %1344 }
  0xb5   : > { %2141 = vperm.xlu2 %8839, %v1194_v62  }
  0xb6   : > { %1698 = vperm.xlu1 %8838, %v9245_v24   ;;  %1688 = vperm.xlu0 %8837, %v9255_v31   ;;  %v1083_v31 = vrot.slane %v9265_v37, 1 }
  0xb7   : > { %v9516_v63 = vpop.permute.xlu2 %1414 }
  0xb8   : > { %v9520_v19 = vpop.permute.xlu1 %1364  ;;  %v9522_v20 = vpop.permute.xlu0 %1359 }
  0xbd   : > { %1703 = vperm.xlu2 %8839, %v9271_v39   ;;  %v1191_v39 = vsel %vm1137_vm7, %v1082_v15, %v1083_v31  ;;  %v9561_v15 = vld [vmem:[%s9196_s27 + $0x1f0] sm:$0xff] }
  0xbe   : > { %1693 = vperm.xlu1 %8838, %v9242_v23   ;;  %2151 = vperm.xlu0 %8837, %v1192_v4   ;;  %v1085_v23 = vrot.slane %v9289_v48, 1  ;;  %v1084_v4 = vrot.slane %v9268_v38, 1  ;;  %14857 = vst [vmem:[#allocation10_spill] sm:$0xff] %v9561_v15 }
  0xbf   : > { %v9532_v24 = vpop.permute.xlu2 %1429 }
  0xc0   : > { %v9535_v8 = vpop.permute.xlu1 %1379  ;;  %v9537_v41 = vpop.permute.xlu0 %1374  ;;  %v1188_v3 = vsel %vm1137_vm7, %v1085_v23, %v1086_v13  ;;  %v1189_v45 = vsel %vm1137_vm7, %v1084_v4, %v1085_v23  ;;  %v543_v23 = vand.u32 63, %v479_v12  ;;  %v1090_v12 = vrot.slane %v9310_v58, 1 }
  0xc2   : > { %vm671_vm9 = vcmp.eq.s32.totalorder %v543_v23, 63 }
  0xc5   : > { %1708 = vperm.xlu2 %8839, %v9265_v37   ;;  %v1190_v37 = vsel %vm1137_vm7, %v1083_v31, %v1084_v4 }
  0xc6   : > { %2156 = vperm.xlu1 %8838, %v1191_v39   ;;  %2146 = vperm.xlu0 %8837, %v1209_v50   ;;  %v942_v39 = vrot.slane %v9561_v15, 7 }
  0xc7   : > { %v9546_v62 = vpop.permute.xlu2 %1444 }
  0xc8   : > { %v9549_v33 = vpop.permute.xlu1 %1394  ;;  %v9551_v51 = vpop.permute.xlu0 %1389  ;;  %v946_v31 = vsel %vm944_vm0, %v14677_v49, %v942_v39 }
  0xcd   : > { %2171 = vperm.xlu2 %8839, %v1188_v3  }
  0xce   : > { %2161 = vperm.xlu1 %8838, %v1190_v37   ;;  %1718 = vperm.xlu0 %8837, %v9289_v48   ;;  %v1087_v48 = vrot.slane %v9286_v47, 1 }
  0xcf   : > { %v9566_v50 = vpop.permute.xlu2 %1459 }
  0xd0   : > { %v9568_v25 = vpop.permute.xlu1 %1409  ;;  %v9570_v17 = vpop.permute.xlu0 %1404  ;;  %v1187_v21 = vsel %vm1137_vm7, %v1086_v13, %v1087_v48  ;;  %v14860_v13 = vrot.slane %v9223_v14, 7 }
  0xd5   : > { %1579 = vperm.xlu2 %8839, %v946_v31   ;;  %v1136_v31 = vrot.slane %v9223_v14, 1 }
  0xd6   : > { %1723 = vperm.xlu1 %8838, %v9283_v46   ;;  %1713 = vperm.xlu0 %8837, %v9268_v38   ;;  %v14682_v38 = vrot.slane %v9561_v15, 1 }
  0xd7   : > { %v9579_v3 = vpop.permute.xlu2 %1474 }
  0xd8   : > { %v9581_v37 = vpop.permute.xlu1 %1424  ;;  %v9583_v30 = vpop.permute.xlu0 %1419 }
  0xdd   : > { %2176 = vperm.xlu2 %8839, %v1187_v21   ;;  %v945_v21 = vsel %vm944_vm0, %v942_v39, %v14860_v13 }
  0xde   : > { %2166 = vperm.xlu1 %8838, %v1189_v45   ;;  %1968 = vperm.xlu0 %8837, %v9561_v15   ;;  %v1138_v45 = vsel %vm1137_vm7, %v14682_v38, %v1136_v31 }
  0xdf   : > { %v9590_v46 = vpop.permute.xlu2 %1489 }
  0xe0   : > { %v9594_v49 = vpop.permute.xlu1 %1439  ;;  %v9596_v27 = vpop.permute.xlu0 %1434 }
  0xe1   : > { %14858 = vst [vmem:[#allocation11_spill] sm:$0xff] %v9594_v49  ;;  %v14862_v49 = vrot.slane %v9215_v10, 1  ;;  %v9628_v10 = vadd.s32 120, %v9191_v2 }
  0xe2   : > { %14859 = vst [vmem:[#allocation12_spill] sm:$0xff] %v9596_v27 }
  0xe3   : > { %v1201_v39 = vsel %vm1137_vm7, %v1136_v31, %v14862_v49  ;;  %14865 = vst [vmem:[#allocation16_spill] sm:$0xff] %v9628_v10 }
  0xe4   : > { %v1265_v13 = vsel %vm671_vm9, 0.0, %v1201_v39  ;;  %v1091_v39 = vrot.slane %v9329_v11, 1 }
  0xe5   : > { %1973 = vperm.xlu2 %8839, %v9223_v14   ;;  %v1089_v14 = vrot.slane %v9298_v53, 1 }
  0xe6   : > { %1584 = vperm.xlu1 %8838, %v945_v21   ;;  %2421 = vperm.xlu0 %8837, %v1138_v45   ;;  %v1088_v21 = vrot.slane %v9301_v54, 1 }
  0xe7   : > { %v9608_v4 = vpop.permute.xlu2 %1504  ;;  %v1184_v31 = vsel %vm1137_vm7, %v1089_v14, %v1090_v12 }
  0xe8   : > { %v9610_v32 = vpop.permute.xlu1 %1454  ;;  %v9612_v27 = vpop.permute.xlu0 %1449 }
  0xe9   : > { %14861 = vst [vmem:[#allocation13_spill] sm:$0xff] %v9612_v27 }
  0xed   : > { %1738 = vperm.xlu2 %8839, %v9298_v53   ;;  %v495_v53 = vand.u32 63, %v9628_v10 }
  0xee   : > { %1728 = vperm.xlu1 %8838, %v9286_v47   ;;  %2426 = vperm.xlu0 %8837, %v1265_v13   ;;  %v1186_v47 = vsel %vm1137_vm7, %v1087_v48, %v1088_v21  ;;  %v9640_v13 = vld [vmem:[%s14657_s1 + $0x1] ss:$0 sm:$0xff]  ;;  %v1185_v48 = vsel %vm1137_vm7, %v1088_v21, %v1089_v14 }
  0xef   : > { %v1679_v49 = vpop.permute.xlu2 %1678  ;;  %vm623_vm10 = vcmp.eq.s32.totalorder %v495_v53, 63 }
  0xf0   : > { %v9623_v45 = vpop.permute.xlu1 %1469  ;;  %v9625_v23 = vpop.permute.xlu0 %1464  ;;  %v1983_v53 = vmul.f32 %v9640_v13, %v1679_v49 }
  0xf1   : > { %14863 = vst [vmem:[#allocation14_spill] sm:$0xff] %v9623_v45 }
  0xf2   : > { %14864 = vst [vmem:[#allocation15_spill] sm:$0xff] %v9625_v23 }
  0xf5   : > { %1733 = vperm.xlu2 %8839, %v9301_v54   ;;  %v9651_v54 = vld [vmem:[%s14657_s1] ss:$0 sm:$0xff] }
  0xf6   : > { %2191 = vperm.xlu1 %8838, %v1184_v31   ;;  %2181 = vperm.xlu0 %8837, %v1186_v47   ;;  %v9656_v31 = vld [vmem:[%s14657_s1 + $0x2] ss:$0 sm:$0xff]  ;;  %v1183_v47 = vsel %vm1137_vm7, %v1090_v12, %v1091_v39  ;;  %v1594_v14 = vmul.f32 %v9651_v54, %v9402_v56  ;;  %v9673_v12 = vld [vmem:[%s14658_s2] ss:$0 sm:$0xff] }
  0xf7   : > { %v2132_v10 = vpop.permute.xlu2 %2131 }
  0xf8   : > { %v9642_v38 = vpop.permute.xlu1 %1484  ;;  %v9644_v15 = vpop.permute.xlu0 %1479  ;;  %v2436_v21 = vmul.f32 %v9656_v31, %v2132_v10  ;;  %v2047_v23 = vadd.f32 %v1983_v53, %v1594_v14  ;;  %v1093_v10 = vrot.slane %v9326_v9, 1 }
  0xf9   : > { %14866 = vst [vmem:[#allocation17_spill] sm:$0xff] %v9642_v38  ;;  %v1217_v38 = vsel %vm623_vm10, 0.0, %v1185_v48  ;;  %v1094_v48 = vrot.slane %v9345_v26, 1  ;;  %vm5996_vm10 = vcmask 261120  }
  0xfa   : > { %14867 = vst [vmem:[#allocation18_spill] sm:$0xff] %v9644_v15  ;;  %v1092_v15 = vrot.slane %v9323_v7, 1  ;;  %v2500_v49 = vadd.f32 %v2436_v21, %v2047_v23 }
  0xfb   : > { %v1180_v23 = vsel %vm1137_vm7, %v1093_v10, %v1094_v48 }
  0xfc   : > { %v1182_v56 = vsel %vm1137_vm7, %v1091_v39, %v1092_v15  ;;  %v9718_v39 = vmul.f32 %v9651_v54, %v9465_v16 }
  0xfd   : > { %2196 = vperm.xlu2 %8839, %v1183_v47  }
  0xfe   : > { %2186 = vperm.xlu1 %8838, %v1217_v38   ;;  %1743 = vperm.xlu0 %8837, %v9310_v58   ;;  %v2568_v38 = vadd.f32 %v9673_v12, %v2500_v49  ;;  %14870 = vst [vmem:[#allocation21_spill] sm:$0xff] %v9718_v39  ;;  %v14871_v39 = vrot.slane %v9341_v22, 1  ;;  %v9751_v22 = vld [vmem:[%s9196_s27 + $0x1b0] sm:$0xff] }
  0xff   : > { %v1684_v58 = vpop.permute.xlu2 %1683  ;;  %14873 = vst [vmem:[#allocation23_spill] sm:$0xff] %v9751_v22 }
 0x100   : > { %v9666_v45 = vpop.permute.xlu1 %1499  ;;  %v9668_v27 = vpop.permute.xlu0 %1494  ;;  %v2632_v53 = vmax.f32 %v2568_v38, 0.0  ;;  %v1592_v38 = vmul.f32 %v9651_v54, %v9441_v59  ;;  %v1984_v52 = vmul.f32 %v9640_v13, %v1684_v58  ;;  %v9744_v58 = vmul.f32 %v9651_v54, %v9485_v35 }
 0x102   : > { %v2768_v21 = vrot.slane %v2632_v53, 2  ;;  %v2769_v49 = vrot.slane %v2632_v53, 4  ;;  %v3253_v59 = vsel %vm3140_vm11, %v2632_v53, -inf }
 0x104   : > { %v3267_v16 = vsel %vm3140_vm11, %v2769_v49, -inf }
 0x105   : > { %2201 = vperm.xlu2 %8839, %v1182_v56   ;;  %v2770_v56 = vrot.slane %v2632_v53, 6  ;;  %v9740_v53 = vmul.f32 %v9651_v54, %v9483_v34  ;;  %v9759_v34 = vmul.f32 %v9651_v54, %v9493_v42 }
 0x106   : > { %1758 = vperm.xlu1 %8838, %v9326_v9   ;;  %1748 = vperm.xlu0 %8837, %v9329_v11   ;;  %v1595_v9 = vmul.f32 %v9651_v54, %v9414_v18  ;;  %v9693_v11 = vmul.f32 %v9651_v54, %v9425_v36  ;;  %v9708_v18 = vmul.f32 %v9651_v54, %v9453_v0 }
 0x107   : > { %v9723_v0 = vmul.f32 %v9651_v54, %v9471_v28  ;;  %v1181_v28 = vsel %vm1137_vm7, %v1092_v15, %v1093_v10  ;;  %14872 = vst [vmem:[#allocation22_spill] sm:$0xff] %v9740_v53  ;;  %v9764_v10 = vmul.f32 %v9651_v54, %v9495_v43  ;;  %v9776_v43 = vmul.f32 %v9651_v54, %v9506_v5 }
 0x108   : > { %v9682_v47 = vpop.permute.xlu0 %1658  ;;  %v1669_v14 = vpop.permute.xlu1 %1668  ;;  %14869 = vst [vmem:[#allocation20_spill] sm:$0xff] %v9708_v18  ;;  %v1179_v18 = vsel %vm1137_vm7, %v1094_v48, %v14871_v39  ;;  %v9755_v48 = vmul.f32 %v9651_v54, %v9487_v40  ;;  %v3268_v39 = vrot.slane %v3267_v16, 4  ;;  %v2048_v53 = vadd.f32 %v1984_v52, %v1595_v9 }
 0x109   : > { %14874 = vst [vmem:[#allocation24_spill] sm:$0xff] %v9759_v34  ;;  %v1981_v35 = vmul.f32 %v9640_v13, %v1669_v14  ;;  %v9769_v40 = vmul.f32 %v9651_v54, %v9497_v44  ;;  %v9786_v44 = vmul.f32 %v9651_v54, %v9510_v61  ;;  %v9790_v14 = vmul.f32 %v9651_v54, %v9516_v63 }
 0x10a   : > { %14875 = vst [vmem:[#allocation25_spill] sm:$0xff] %v9764_v10  ;;  %v9794_v5 = vmul.f32 %v9651_v54, %v9520_v19  ;;  %v9804_v61 = vmul.f32 %v9651_v54, %v9532_v24  ;;  %v14883_v63 = vrot.slane %v9751_v22, 7  ;;  %v9820_v24 = vmul.f32 %v9651_v54, %v9537_v41 }
 0x10b   : > { %14876 = vst [vmem:[#allocation26_spill] sm:$0xff] %v9776_v43  ;;  %v2045_v34 = vadd.f32 %v1981_v35, %v1592_v38  ;;  %v9828_v35 = vmul.f32 %v9651_v54, %v9549_v33  ;;  %v9836_v41 = vmul.f32 %v9651_v54, %v9566_v50 }
 0x10c   : > { %14878 = vst [vmem:[#allocation28_spill] sm:$0xff] %v9786_v44 }
 0x10d   : > { %1763 = vperm.xlu2 %8839, %v9345_v26   ;;  %v9698_v26 = vmul.f32 %v9651_v54, %v9439_v55  ;;  %v1590_v55 = vmul.f32 %v9651_v54, %v9457_v6  ;;  %v9729_v6 = vmul.f32 %v9651_v54, %v9473_v29  ;;  %v3254_v29 = vrot.slane %v3253_v59, 4  ;;  %14879 = vst [vmem:[#allocation29_spill] sm:$0xff] %v9790_v14 }
 0x10e   : > { %1753 = vperm.xlu1 %8838, %v9323_v7   ;;  %2211 = vperm.xlu0 %8837, %v1180_v23   ;;  %v9704_v7 = vmul.f32 %v9651_v54, %v9443_v60  ;;  %v9712_v23 = vmul.f32 %v9651_v54, %v9455_v1  ;;  %v2137_v60 = vpop.permute.xlu2 %2136  ;;  %v3260_v1 = vsel %vm3140_vm11, %v2768_v21, -inf  ;;  %14880 = vst [vmem:[#allocation30_spill] sm:$0xff] %v9794_v5 }
 0x10f   : > { %14868 = vst [vmem:[#allocation19_spill] sm:$0xff] %v9698_v26  ;;  %v2437_v21 = vmul.f32 %v9656_v31, %v2137_v60  ;;  %v9748_v26 = vld [vmem:[%s9196_s27 + $0x1a8] sm:$0xff]  ;;  %v3261_v15 = vrot.slane %v3260_v1, 4  ;;  %v3274_v60 = vsel %vm3140_vm11, %v2770_v56, -inf  ;;  %v9780_v56 = vmul.f32 %v9651_v54, %v9508_v57 }
 0x110   : > { %v2112_v36 = vpop.permute.xlu0 %2111  ;;  %v2122_v49 = vpop.permute.xlu1 %2121  ;;  %v3255_v52 = vmax.f32 %v3253_v59, %v3254_v29  ;;  %v3269_v57 = vmax.f32 %v3267_v16, %v3268_v39  ;;  %v1979_v59 = vmul.f32 %v9640_v13, %v9682_v47  ;;  %14882 = vst [vmem:[#allocation32_spill] sm:$0xff] %v9804_v61  ;;  %v9814_v16 = vmul.f32 %v9651_v54, %v9535_v8 }
 0x111   : > { %v2434_v42 = vmul.f32 %v9656_v31, %v2122_v49  ;;  %14877 = vst [vmem:[#allocation27_spill] sm:$0xff] %v9780_v56  ;;  %v2501_v9 = vadd.f32 %v2437_v21, %v2048_v53  ;;  %v3275_v49 = vrot.slane %v3274_v60, 4  ;;  %v9800_v53 = vmul.f32 %v9651_v54, %v9522_v20 }
 0x112   : > { %14885 = vst [vmem:[#allocation33_spill] sm:$0xff] %v9814_v16  ;;  %v3256_v47 = vrot.slane %v3255_v52, 2  ;;  %v2432_v29 = vmul.f32 %v9656_v31, %v2112_v36  ;;  %v9824_v21 = vmul.f32 %v9651_v54, %v9546_v62  ;;  %v9832_v8 = vmul.f32 %v9651_v54, %v9551_v51 }
 0x113   : > { %14881 = vst [vmem:[#allocation31_spill] sm:$0xff] %v9800_v53  ;;  %v2498_v38 = vadd.f32 %v2434_v42, %v2045_v34  ;;  %v2569_v20 = vadd.f32 %v9673_v12, %v2501_v9  ;;  %v3270_v39 = vrot.slane %v3269_v57, 2  ;;  %v2043_v36 = vadd.f32 %v1979_v59, %v1590_v55 }
 0x114   : > { %14886 = vst [vmem:[#allocation34_spill] sm:$0xff] %v9820_v24  ;;  %v9840_v62 = vmul.f32 %v9651_v54, %v9568_v25  ;;  %v9849_v51 = vmul.f32 %v9651_v54, %v9579_v3  ;;  %v3257_v55 = vmax.f32 %v3255_v52, %v3256_v47  ;;  %v9855_v25 = vmul.f32 %v9651_v54, %v9581_v37  ;;  %v14897_v52 = vld [vmem:[#allocation11_spill] sm:$0xff] }
 0x115   : > { %14887 = vst [vmem:[#allocation35_spill] sm:$0xff] %v9824_v21  ;;  %v2566_v33 = vadd.f32 %v9673_v12, %v2498_v38  ;;  %v2633_v42 = vmax.f32 %v2569_v20, 0.0  ;;  %v2496_v9 = vadd.f32 %v2432_v29, %v2043_v36  ;;  %v9863_v3 = vmul.f32 %v9651_v54, %v9590_v46  ;;  %v14903_v46 = vld [vmem:[#allocation13_spill] sm:$0xff] }
 0x116   : > { %2216 = vperm.xlu1 %8838, %v1179_v18   ;;  %2206 = vperm.xlu0 %8837, %v1181_v28   ;;  %v3262_v28 = vmax.f32 %v3260_v1, %v3261_v15  ;;  %v14884_v1 = vrot.slane %v9748_v26, 7  ;;  %v3276_v15 = vmax.f32 %v3274_v60, %v3275_v49  ;;  %14888 = vst [vmem:[#allocation36_spill] sm:$0xff] %v9828_v35  ;;  %v2142_v38 = vpop.permute.xlu2 %2141  ;;  %v3258_v36 = vrot.slane %v3257_v55, 1 }
 0x117   : > { %14889 = vst [vmem:[#allocation37_spill] sm:$0xff] %v9832_v8  ;;  %v9844_v60 = vmul.f32 %v9651_v54, %v9570_v17  ;;  %v9859_v17 = vmul.f32 %v9651_v54, %v9583_v30  ;;  %v3271_v37 = vmax.f32 %v3269_v57, %v3270_v39  ;;  %v9875_v30 = vmul.f32 %v9651_v54, %v9608_v4 }
 0x118   : > { %v9782_v18 = vpop.permute.xlu0 %1663  ;;  %v954_v19 = vsel %vm944_vm0, %v14884_v1, %v14883_v63  ;;  %v3263_v34 = vrot.slane %v3262_v28, 2  ;;  %14890 = vst [vmem:[#allocation38_spill] sm:$0xff] %v9836_v41  ;;  %v3277_v59 = vrot.slane %v3276_v15, 2  ;;  %v9867_v63 = vmul.f32 %v9651_v54, %v14897_v52  ;;  %v14899_v1 = vld [vmem:[#allocation12_spill] sm:$0xff]  ;;  %v1674_v47 = vpop.permute.xlu1 %1673 }
 0x119   : > { %14891 = vst [vmem:[#allocation39_spill] sm:$0xff] %v9840_v62  ;;  %v9883_v20 = vmul.f32 %v9651_v54, %v14903_v46  ;;  %v2630_v29 = vmax.f32 %v2566_v33, 0.0  ;;  %v2771_v52 = vrot.slane %v2633_v42, 2  ;;  %v3281_v57 = vsel %vm3140_vm11, %v2633_v42, -inf }
 0x11a   : > { %14892 = vst [vmem:[#allocation40_spill] sm:$0xff] %v9844_v60  ;;  %v3264_v49 = vmax.f32 %v3262_v28, %v3263_v34  ;;  %v9879_v28 = vmul.f32 %v9651_v54, %v9610_v32  ;;  %v9886_v34 = vld [vmem:[%s9196_s27 + $0x1c0] sm:$0xff]  ;;  %v2564_v39 = vadd.f32 %v9673_v12, %v2496_v9  ;;  %v9898_v46 = vmax.f32 %v3276_v15, %v3277_v59 }
 0x11b   : > { %14893 = vst [vmem:[#allocation41_spill] sm:$0xff] %v9849_v51  ;;  %v3272_v33 = vrot.slane %v3271_v37, 1  ;;  %v2772_v9 = vrot.slane %v2633_v42, 4  ;;  %v3282_v15 = vrot.slane %v3281_v57, 4  ;;  %v2762_v59 = vrot.slane %v2630_v29, 2 }
 0x11c   : > { %14894 = vst [vmem:[#allocation42_spill] sm:$0xff] %v9855_v25  ;;  %v3265_v51 = vrot.slane %v3264_v49, 1  ;;  %v1980_v61 = vmul.f32 %v9640_v13, %v9782_v18 }
 0x11d   : > { %14895 = vst [vmem:[#allocation43_spill] sm:$0xff] %v9859_v17 }
 0x11e   : > { %1539 = vperm.xlu1 %8838, %v954_v19   ;;  %14896 = vst [vmem:[#allocation44_spill] sm:$0xff] %v9863_v3  ;;  %v9871_v19 = vmul.f32 %v9651_v54, %v14899_v1  ;;  %v14906_v1 = vld [vmem:[#allocation14_spill] sm:$0xff]  ;;  %v14910_v3 = vld [vmem:[#allocation17_spill] sm:$0xff] }
 0x11f   : > { %14898 = vst [vmem:[#allocation11_spill] sm:$0xff] %v9867_v63  ;;  %v9892_v4 = vmul.f32 %v9651_v54, %v14906_v1  ;;  %v9902_v41 = vmul.f32 %v9651_v54, %v14910_v3  ;;  %v9911_v1 = vmul.f32 %v9651_v54, %v9666_v45  ;;  %v9917_v3 = vmul.f32 %v9651_v54, %v9668_v27 }
 0x120   : > { %v9851_v50 = vpop.permute.xlu0 %2116  ;;  %14900 = vst [vmem:[#allocation12_spill] sm:$0xff] %v9871_v19  ;;  %v2763_v45 = vrot.slane %v2630_v29, 4  ;;  %v9926_v63 = vmax.f32 %v3271_v37, %v3272_v33  ;;  %v2764_v27 = vrot.slane %v2630_v29, 6  ;;  %v9935_v19 = vpop.permute.xlu2 %1703  ;;  %v1982_v37 = vmul.f32 %v9640_v13, %v1674_v47 }
 0x121   : > { %14901 = vst [vmem:[#allocation45_spill] sm:$0xff] %v9875_v30  ;;  %v14908_v30 = vld [vmem:[#allocation15_spill] sm:$0xff]  ;;  %v2127_v33 = vpop.permute.xlu1 %2126  ;;  %v2433_v18 = vmul.f32 %v9656_v31, %v9851_v50 }
 0x122   : > { %14902 = vst [vmem:[#allocation46_spill] sm:$0xff] %v9879_v28  ;;  %v9896_v32 = vmul.f32 %v9651_v54, %v14908_v30  ;;  %v14912_v28 = vld [vmem:[#allocation18_spill] sm:$0xff]  ;;  %v2773_v30 = vrot.slane %v2633_v42, 6  ;;  %v3197_v42 = vsel %vm3140_vm11, %v2630_v29, -inf  ;;  %v3218_v25 = vsel %vm3140_vm11, %v2764_v27, -inf }
 0x123   : > { %14904 = vst [vmem:[#allocation13_spill] sm:$0xff] %v9883_v20  ;;  %v9906_v21 = vmul.f32 %v9651_v54, %v14912_v28  ;;  %v3288_v28 = vsel %vm3140_vm11, %v2771_v52, -inf  ;;  %v3283_v52 = vmax.f32 %v3281_v57, %v3282_v15  ;;  %v3198_v20 = vrot.slane %v3197_v42, 4 }
 0x124   : > { %14905 = vst [vmem:[#allocation47_spill] sm:$0xff] %v9886_v34  ;;  %v14688_v57 = vrot.slane %v9751_v22, 1  ;;  %v3219_v43 = vrot.slane %v3218_v25, 4 }
 0x125   : > { %14907 = vst [vmem:[#allocation14_spill] sm:$0xff] %v9892_v4  ;;  %v9913_v4 = vmax.f32 %v3257_v55, %v3258_v36  ;;  %v3295_v55 = vsel %vm3140_vm11, %v2772_v9, -inf  ;;  %v2438_v36 = vmul.f32 %v9656_v31, %v2142_v38  ;;  %v3211_v38 = vsel %vm3140_vm11, %v2763_v45, -inf }
 0x126   : > { %14909 = vst [vmem:[#allocation15_spill] sm:$0xff] %v9896_v32  ;;  %1938 = vperm.xlu1 %8838, %v9886_v34   ;;  %v9922_v32 = vmax.f32 %v3264_v49, %v3265_v51  ;;  %v3302_v51 = vsel %vm3140_vm11, %v2773_v30, -inf  ;;  %v3204_v49 = vsel %vm3140_vm11, %v2762_v59, -inf  ;;  %v3296_v15 = vrot.slane %v3295_v55, 4 }
 0x127   : > { %14911 = vst [vmem:[#allocation17_spill] sm:$0xff] %v9902_v41  ;;  %v9920_v41 = vmax.f32 %v2564_v39, 0.0  ;;  %v3289_v39 = vrot.slane %v3288_v28, 4  ;;  %v3205_v59 = vrot.slane %v3204_v49, 4  ;;  %v3303_v62 = vrot.slane %v3302_v51, 4 }
 0x128   : > { %14913 = vst [vmem:[#allocation18_spill] sm:$0xff] %v9906_v21  ;;  %v3279_v21 = vrot.slane %v9898_v46, 1  ;;  %v3199_v14 = vmax.f32 %v3197_v42, %v3198_v20  ;;  %v3212_v27 = vrot.slane %v3211_v38, 4  ;;  %v3297_v24 = vmax.f32 %v3295_v55, %v3296_v15 }
 0x129   : > { %14914 = vst [vmem:[#allocation48_spill] sm:$0xff] %v9911_v1  ;;  %v1689_v1 = vpop.permute.xlu0 %1688  ;;  %v2756_v17 = vrot.slane %v9920_v41, 2  ;;  %v2757_v29 = vrot.slane %v9920_v41, 4  ;;  %v3141_v47 = vsel %vm3140_vm11, %v9920_v41, -inf  ;;  %v2758_v35 = vrot.slane %v9920_v41, 6 }
 0x12a   : > { %14915 = vst [vmem:[#allocation49_spill] sm:$0xff] %v9917_v3  ;;  %v9931_v3 = vld [vmem:[%s9196_s27 + $0x1b8] sm:$0xff]  ;;  %v1985_v9 = vmul.f32 %v9640_v13, %v1689_v1  ;;  %v2435_v1 = vmul.f32 %v9656_v31, %v2127_v33  ;;  %v3142_v8 = vrot.slane %v3141_v47, 4  ;;  %v3206_v20 = vmax.f32 %v3204_v49, %v3205_v59 }
 0x12b   : > { %v14689_v30 = vrot.slane %v9931_v3, 1  ;;  %v3148_v16 = vsel %vm3140_vm11, %v2756_v17, -inf  ;;  %v3155_v33 = vsel %vm3140_vm11, %v2757_v29, -inf  ;;  %v9965_v50 = vmax.f32 %v9898_v46, %v3279_v21 }
 0x12c   : > { %v2049_v45 = vadd.f32 %v1985_v9, %v9729_v6  ;;  %v2046_v6 = vadd.f32 %v1982_v37, %v9712_v23  ;;  %v3284_v9 = vrot.slane %v3283_v52, 2  ;;  %v3156_v53 = vrot.slane %v3155_v33, 4  ;;  %v9967_v37 = vpop.permute.xlu2 %1708 }
 0x12d   : > { %v1146_v60 = vsel %vm1137_vm7, %v14688_v57, %v14689_v30  ;;  %v2044_v57 = vadd.f32 %v1980_v61, %v9704_v7  ;;  %v3290_v30 = vmax.f32 %v3288_v28, %v3289_v39  ;;  %v3200_v29 = vrot.slane %v3199_v14, 2 }
 0x12e   : > { %2381 = vperm.xlu1 %8838, %v1146_v60   ;;  %v2499_v42 = vadd.f32 %v2435_v1, %v2046_v6  ;;  %v2502_v5 = vadd.f32 %v2438_v36, %v2049_v45  ;;  %v3149_v60 = vrot.slane %v3148_v16, 4  ;;  %v3213_v44 = vmax.f32 %v3211_v38, %v3212_v27 }
 0x12f   : > { %v2497_v17 = vadd.f32 %v2433_v18, %v2044_v57  ;;  %v3220_v23 = vmax.f32 %v3218_v25, %v3219_v43  ;;  %v3285_v41 = vmax.f32 %v3283_v52, %v3284_v9  ;;  %v9969_v56 = vmax.f32 %v3302_v51, %v3303_v62  ;;  %v14916_v62 = vld [vmem:[#allocation6_spill] sm:$0xff] }
 0x130   : > { %v3143_v7 = vmax.f32 %v3141_v47, %v3142_v8  ;;  %v3162_v61 = vsel %vm3140_vm11, %v2758_v35, -inf  ;;  %v3291_v28 = vrot.slane %v3290_v30, 2  ;;  %v3207_v36 = vrot.slane %v3206_v20, 2 }
 0x131   : > { %v2567_v21 = vadd.f32 %v9673_v12, %v2499_v42  ;;  %v2570_v46 = vadd.f32 %v9673_v12, %v2502_v5  ;;  %v9977_v55 = vsel %vm5189_vm12, %v9922_v32, %v9913_v4  ;;  %v3150_v43 = vmax.f32 %v3148_v16, %v3149_v60  ;;  %v1699_v16 = vpop.permute.xlu1 %1698 }
 0x132   : > { %v3157_v25 = vmax.f32 %v3155_v33, %v3156_v53  ;;  %v2565_v52 = vadd.f32 %v9673_v12, %v2497_v17  ;;  %v3201_v8 = vmax.f32 %v3199_v14, %v3200_v29  ;;  %v3214_v39 = vrot.slane %v3213_v44, 2 }
 0x133   : > { %v3221_v35 = vrot.slane %v3220_v23, 2  ;;  %v3163_v51 = vrot.slane %v3162_v61, 4  ;;  %v3286_v49 = vrot.slane %v3285_v41, 1  ;;  %v3298_v38 = vrot.slane %v3297_v24, 2 }
 0x134   : > { %v3144_v5 = vrot.slane %v3143_v7, 2  ;;  %v9982_v15 = vmax.f32 %v3290_v30, %v3291_v28  ;;  %v3208_v59 = vmax.f32 %v3206_v20, %v3207_v36  ;;  %v9984_v4 = vmax.f32 %v2567_v21, 0.0  ;;  %v2152_v30 = vpop.permute.xlu0 %2151  ;;  %v2172_v29 = vpop.permute.xlu2 %2171 }
 0x135   : > { %v9986_v53 = vmax.f32 %v2570_v46, 0.0  ;;  %v3151_v32 = vrot.slane %v3150_v43, 2  ;;  %v3158_v47 = vrot.slane %v3157_v25, 2  ;;  %v1988_v14 = vmul.f32 %v9640_v13, %v9935_v19 }
 0x136   : > { %1778 = vperm.xlu1 %8838, %v14916_v62   ;;  %v9990_v1 = vmax.f32 %v2565_v52, 0.0  ;;  %v3202_v45 = vrot.slane %v3201_v8, 1  ;;  %v3215_v27 = vmax.f32 %v3213_v44, %v3214_v39  ;;  %v9992_v18 = vmax.f32 %v3220_v23, %v3221_v35 }
 0x137   : > { %v3164_v33 = vmax.f32 %v3162_v61, %v3163_v51  ;;  %v9994_v6 = vmax.f32 %v3285_v41, %v3286_v49  ;;  %v9996_v9 = vmax.f32 %v3297_v24, %v3298_v38  ;;  %v3145_v20 = vmax.f32 %v3143_v7, %v3144_v5 }
 0x138   : > { %v1987_v42 = vmul.f32 %v9640_v13, %v1699_v16  ;;  %v3209_v17 = vrot.slane %v3208_v59, 1  ;;  %v3225_v19 = vsel %vm3140_vm11, %v9984_v4, -inf  ;;  %v2774_v44 = vrot.slane %v9986_v53, 2 }
 0x139   : > { %v3152_v23 = vmax.f32 %v3150_v43, %v3151_v32  ;;  %v3159_v28 = vmax.f32 %v3157_v25, %v3158_v47  ;;  %v3169_v41 = vsel %vm3140_vm11, %v9990_v1, -inf  ;;  %v2440_v24 = vmul.f32 %v9656_v31, %v2152_v30 }
 0x13a   : > { %v10006_v61 = vmax.f32 %v3201_v8, %v3202_v45  ;;  %v3216_v7 = vrot.slane %v3215_v27, 1  ;;  %v3223_v36 = vrot.slane %v9992_v18, 1  ;;  %v3165_v21 = vrot.slane %v3164_v33, 2 }
 0x13b   : > { %v3146_v46 = vrot.slane %v3145_v20, 1  ;;  %v3226_v52 = vrot.slane %v3225_v19, 4  ;;  %v2051_v62 = vadd.f32 %v1987_v42, %v9693_v11  ;;  %v2775_v39 = vrot.slane %v9986_v53, 4 }
 0x13c   : > { %v2759_v43 = vrot.slane %v9990_v1, 2  ;;  %v3170_v25 = vrot.slane %v3169_v41, 4  ;;  %v3309_v35 = vsel %vm3140_vm11, %v9986_v53, -inf  ;;  %v3316_v51 = vsel %vm3140_vm11, %v2774_v44, -inf  ;;  %v2147_v22 = vpop.permute.xlu0 %2146 }
 0x13d   : > { %v10015_v8 = vmax.f32 %v3208_v59, %v3209_v17  ;;  %v3153_v49 = vrot.slane %v3152_v23, 1  ;;  %v3160_v38 = vrot.slane %v3159_v28, 1  ;;  %v2504_v5 = vadd.f32 %v2440_v24, %v2051_v62  ;;  %v1694_v59 = vpop.permute.xlu1 %1693 }
 0x13e   : > { %v10017_v16 = vmax.f32 %v3215_v27, %v3216_v7  ;;  %v3166_v32 = vmax.f32 %v3164_v33, %v3165_v21  ;;  %v10020_v11 = vadd.f32 %v1988_v14, %v9755_v48  ;;  %v1989_v47 = vmul.f32 %v9640_v13, %v9967_v37 }
 0x13f   : > { %v2776_v45 = vrot.slane %v9986_v53, 6  ;;  %v3310_v30 = vrot.slane %v3309_v35, 4  ;;  %v3317_v42 = vrot.slane %v3316_v51, 4  ;;  %v3323_v44 = vsel %vm3140_vm11, %v2775_v39, -inf }
 0x140   : > { %v10026_v17 = vmax.f32 %v3145_v20, %v3146_v46  ;;  %v3227_v57 = vmax.f32 %v3225_v19, %v3226_v52  ;;  %v3171_v24 = vmax.f32 %v3169_v41, %v3170_v25  ;;  %v3176_v27 = vsel %vm3140_vm11, %v2759_v43, -inf  ;;  %v1580_v20 = vpop.permute.xlu2 %1579 }
 0x141   : > { %v10029_v33 = vmax.f32 %v3152_v23, %v3153_v49  ;;  %v10031_v48 = vmax.f32 %v3159_v28, %v3160_v38  ;;  %v2765_v14 = vrot.slane %v9984_v4, 2  ;;  %v2572_v37 = vadd.f32 %v9673_v12, %v2504_v5 }
 0x142   : > { %v3167_v53 = vrot.slane %v3166_v32, 1  ;;  %v2766_v7 = vrot.slane %v9984_v4, 4  ;;  %v2760_v21 = vrot.slane %v9990_v1, 4  ;;  %v3324_v62 = vrot.slane %v3323_v44, 4 }
 0x143   : > { %v3177_v46 = vrot.slane %v3176_v27, 4  ;;  %v3311_v19 = vmax.f32 %v3309_v35, %v3310_v30  ;;  %v3318_v41 = vmax.f32 %v3316_v51, %v3317_v42  ;;  %v3330_v52 = vsel %vm3140_vm11, %v2776_v45, -inf }
 0x144   : > { %v10039_v23 = vadd.f32 %v1989_v47, %v9744_v58  ;;  %v3228_v28 = vrot.slane %v3227_v57, 2  ;;  %v3172_v39 = vrot.slane %v3171_v24, 2  ;;  %v3232_v25 = vsel %vm3140_vm11, %v2765_v14, -inf }
 0x145   : > { %v10045_v38 = vmul.f32 %v9656_v31, %v2172_v29  ;;  %v2636_v5 = vmax.f32 %v2572_v37, 0.0  ;;  %v3183_v35 = vsel %vm3140_vm11, %v2760_v21, -inf  ;;  %v3325_v51 = vmax.f32 %v3323_v44, %v3324_v62 }
 0x146   : > { %v3331_v30 = vrot.slane %v3330_v52, 4  ;;  %v10048_v45 = vmax.f32 %v3166_v32, %v3167_v53  ;;  %v10051_v58 = vsel %vm3140_vm11, %v2766_v7, -inf  ;;  %v3178_v47 = vmax.f32 %v3176_v27, %v3177_v46  ;;  %v2157_v53 = vpop.permute.xlu1 %2156 }
 0x147   : > { %v3312_v42 = vrot.slane %v3311_v19, 2  ;;  %v3319_v60 = vrot.slane %v3318_v41, 2  ;;  %v10053_v43 = vmax.f32 %v3227_v57, %v3228_v28  ;;  %v3233_v14 = vrot.slane %v3232_v25, 4 }
 0x148   : > { %v3173_v49 = vmax.f32 %v3171_v24, %v3172_v39  ;;  %v10056_v29 = vmul.f32 %v9651_v54, %v1580_v20  ;;  %v2767_v37 = vrot.slane %v9984_v4, 6  ;;  %v3184_v21 = vrot.slane %v3183_v35, 4  ;;  %v2177_v39 = vpop.permute.xlu2 %2176 }
 0x149   : > { %v1986_v44 = vmul.f32 %v9640_v13, %v1694_v59  ;;  %v2780_v32 = vrot.slane %v2636_v5, 2  ;;  %v3240_v7 = vrot.slane %v10051_v58, 4  ;;  %v3326_v62 = vrot.slane %v3325_v51, 2 }
 0x14a   : > { %14917 = vst [vmem:[#allocation6_spill] sm:$0xff] %v10056_v29  ;;  %v3332_v27 = vmax.f32 %v3330_v52, %v3331_v30  ;;  %v10064_v57 = vmax.f32 %v9992_v18, %v3223_v36  ;;  %v2761_v24 = vrot.slane %v9990_v1, 6  ;;  %v3313_v54 = vmax.f32 %v3311_v19, %v3312_v42 }
 0x14b   : > { %v3320_v20 = vmax.f32 %v3318_v41, %v3319_v60  ;;  %v3179_v46 = vrot.slane %v3178_v47, 2  ;;  %v3234_v28 = vmax.f32 %v3232_v25, %v3233_v14  ;;  %v3174_v59 = vrot.slane %v3173_v49, 1 }
 0x14c   : > { %v2441_v29 = vmul.f32 %v9656_v31, %v2157_v53  ;;  %v2781_v10 = vrot.slane %v2636_v5, 4  ;;  %v3365_v52 = vsel %vm3140_vm11, %v2636_v5, -inf  ;;  %v3372_v30 = vsel %vm3140_vm11, %v2780_v32, -inf }
 0x14d   : > { %v3185_v18 = vmax.f32 %v3183_v35, %v3184_v21  ;;  %v10071_v36 = vmax.f32 %v3325_v51, %v3326_v62  ;;  %v3333_v1 = vrot.slane %v3332_v27, 2  ;;  %v10074_v60 = vadd.f32 %v1986_v44, %v9723_v0 }
 0x14e   : > { %v2782_v19 = vrot.slane %v2636_v5, 6  ;;  %v3314_v41 = vrot.slane %v3313_v54, 1  ;;  %v3321_v25 = vrot.slane %v3320_v20, 1  ;;  %v10077_v42 = vmul.f32 %v9656_v31, %v2177_v39 }
 0x14f   : > { %v3180_v14 = vmax.f32 %v3178_v47, %v3179_v46  ;;  %v3366_v53 = vrot.slane %v3365_v52, 4  ;;  %v3373_v4 = vrot.slane %v3372_v30, 4  ;;  %v2505_v32 = vadd.f32 %v2441_v29, %v10020_v11 }
 0x150   : > { %14918 = vst [vmem:[#allocation50_spill] sm:$0xff] %v10077_v42  ;;  %v2439_v35 = vmul.f32 %v9656_v31, %v2147_v22  ;;  %v3379_v51 = vsel %vm3140_vm11, %v2781_v10, -inf  ;;  %v3175_v21 = vmax.f32 %v3173_v49, %v3174_v59  ;;  %v3186_v0 = vrot.slane %v3185_v18, 2 }
 0x151   : > { %v3190_v5 = vsel %vm3140_vm11, %v2761_v24, -inf  ;;  %v10084_v62 = vmax.f32 %v3332_v27, %v3333_v1  ;;  %v10087_v47 = vsel %vm3140_vm11, %v2782_v19, -inf  ;;  %v10089_v39 = vmax.f32 %v3313_v54, %v3314_v41 }
 0x152   : > { %v3191_v46 = vrot.slane %v3190_v5, 4  ;;  %v10091_v11 = vmax.f32 %v3320_v20, %v3321_v25  ;;  %v3181_v22 = vrot.slane %v3180_v14, 1  ;;  %v3187_v29 = vmax.f32 %v3185_v18, %v3186_v0 }
 0x153   : > { %v10093_v42 = vmax.f32 %v3365_v52, %v3366_v53  ;;  %v10095_v10 = vmax.f32 %v3372_v30, %v3373_v4  ;;  %v3380_v49 = vrot.slane %v3379_v51, 4  ;;  %v3387_v59 = vrot.slane %v10087_v47, 4 }
 0x154   : > { %v3192_v24 = vmax.f32 %v3190_v5, %v3191_v46  ;;  %v3188_v27 = vrot.slane %v3187_v29, 1  ;;  %v3235_v1 = vrot.slane %v3234_v28, 2  ;;  %v3241_v19 = vmax.f32 %v10051_v58, %v3240_v7  ;;  %v10109_v5 = vld [vmem:[%s9196_s27 + $0x1c8] sm:$0xff] }
 0x155   : > { %v2573_v44 = vadd.f32 %v9673_v12, %v2505_v32  ;;  %v3246_v20 = vsel %vm3140_vm11, %v2767_v37, -inf  ;;  %v5190_v52 = vsel %vm5189_vm12, %v10029_v33, %v10026_v17  ;;  %v3182_v4 = vmax.f32 %v3180_v14, %v3181_v22 }
 0x156   : > { %v3193_v54 = vrot.slane %v3192_v24, 2  ;;  %v3236_v30 = vmax.f32 %v3234_v28, %v3235_v1  ;;  %v3242_v18 = vrot.slane %v3241_v19, 2  ;;  %v3247_v41 = vrot.slane %v3246_v20, 4 }
 0x157   : > { %v3189_v25 = vmax.f32 %v3187_v29, %v3188_v27  ;;  %v5192_v0 = vsel %vm5191_vm13, %v10031_v48, %v5190_v52  ;;  %v10111_v46 = vmax.f32 %v3379_v51, %v3380_v49  ;;  %v14919_v28 = vrot.slane %v10053_v43, 1 }
 0x158   : > { %v3194_v53 = vmax.f32 %v3192_v24, %v3193_v54  ;;  %v3237_v58 = vrot.slane %v3236_v30, 1  ;;  %v3243_v7 = vmax.f32 %v3241_v19, %v3242_v18  ;;  %v3248_v32 = vmax.f32 %v3246_v20, %v3247_v41 }
 0x159   : > { %v5194_v37 = vsel %vm5193_vm14, %v10048_v45, %v5192_v0  ;;  %v3231_v14 = vmax.f32 %v10053_v43, %v14919_v28  ;;  %v5203_v45 = vsel %vm5189_vm12, %v10015_v8, %v10006_v61  ;;  %v14694_v51 = vrot.slane %v10109_v5, 7 }
 0x15a   : > { %v3195_v17 = vrot.slane %v3194_v53, 1  ;;  %v5196_v33 = vsel %vm5195_vm15, %v3175_v21, %v5194_v37  ;;  %v3244_v48 = vrot.slane %v3243_v7, 1  ;;  %v3249_v22 = vrot.slane %v3248_v32, 2 }
 0x15b   : > { %v5198_v29 = vsel %vm5197_vm1, %v3182_v4, %v5196_v33  ;;  %v3238_v24 = vmax.f32 %v3236_v30, %v3237_v58  ;;  %v5204_v1 = vsel %vm5191_vm13, %v10017_v16, %v5203_v45  ;;  %v10125_v43 = vmax.f32 %v2573_v44, 0.0 }
 0x15c   : > { %v3245_v49 = vmax.f32 %v3243_v7, %v3244_v48  ;;  %v3250_v27 = vmax.f32 %v3248_v32, %v3249_v22  ;;  %v5200_v21 = vsel %vm5199_vm2, %v3189_v25, %v5198_v29  ;;  %v3196_v19 = vmax.f32 %v3194_v53, %v3195_v17  ;;  %v2162_v22 = vpop.permute.xlu1 %2161 }
 0x15d   : > { %v5205_v54 = vsel %vm5193_vm14, %v10064_v57, %v5204_v1  ;;  %v14920_v20 = vrot.slane %v9886_v34, 7  ;;  %v2503_v8 = vadd.f32 %v2439_v35, %v10074_v60  ;;  %v14922_v57 = vrot.slane %v9982_v15, 1 }
 0x15e   : > { %v3251_v52 = vrot.slane %v3250_v27, 1  ;;  %v5206_v4 = vsel %vm5195_vm15, %v3231_v14, %v5205_v54  ;;  %v10138_v16 = vsel %vm5201_vm3, %v3196_v19, %v5200_v21  ;;  %v3300_v18 = vrot.slane %v9996_v9, 1 }
 0x15f   : > { %v951_v61 = vsel %vm944_vm0, %v14920_v20, %v14694_v51  ;;  %14921 = vst [vmem:[#allocation51_spill] sm:$0xff] %v10138_v16  ;;  %v5207_v44 = vsel %vm5197_vm1, %v3238_v24, %v5206_v4  ;;  %v3294_v30 = vmax.f32 %v9982_v15, %v14922_v57  ;;  %v14923_v60 = vrot.slane %v9969_v56, 2 }
 0x160   : > { %1554 = vperm.xlu1 %8838, %v951_v61   ;;  %v3252_v41 = vmax.f32 %v3250_v27, %v3251_v52  ;;  %v5208_v25 = vsel %vm5199_vm2, %v3245_v49, %v5207_v44  ;;  %v5211_v53 = vsel %vm5191_vm13, %v9926_v63, %v9977_v55  ;;  %v3335_v0 = vrot.slane %v10084_v62, 1  ;;  %v1719_v63 = vpop.permute.xlu0 %1718 }
 0x161   : > { %v3306_v35 = vmax.f32 %v9969_v56, %v14923_v60  ;;  %v2783_v58 = vrot.slane %v10125_v43, 2  ;;  %v3393_v15 = vsel %vm3140_vm11, %v10125_v43, -inf  ;;  %v5212_v7 = vsel %vm5193_vm14, %v9965_v50, %v5211_v53 }
 0x162   : > { %v10159_v32 = vsel %vm5201_vm3, %v3252_v41, %v5208_v25  ;;  %v3301_v37 = vmax.f32 %v9996_v9, %v3300_v18  ;;  %v5213_v17 = vsel %vm5195_vm15, %v9994_v6, %v5212_v7  ;;  %v14925_v55 = vrot.slane %v10071_v36, 1 }
 0x163   : > { %14924 = vst [vmem:[#allocation52_spill] sm:$0xff] %v10159_v32  ;;  %v3307_v56 = vrot.slane %v3306_v35, 1  ;;  %v3368_v28 = vrot.slane %v10093_v42, 2  ;;  %v3375_v14 = vrot.slane %v10095_v10, 2  ;;  %v8840_v50 = vpack.i.bf16 %v10159_v32, %v10138_v16 }
 0x164   : > { %v10167_v33 = vmax.f32 %v10071_v36, %v14925_v55  ;;  %v3382_v48 = vrot.slane %v10111_v46, 2  ;;  %v3388_v9 = vmax.f32 %v10087_v47, %v3387_v59  ;;  %v2571_v6 = vadd.f32 %v9673_v12, %v2503_v8 }
 0x165   : > { %v5214_v29 = vsel %vm5197_vm1, %v3294_v30, %v5213_v17  ;;  %v2784_v36 = vrot.slane %v10125_v43, 4  ;;  %v3394_v24 = vrot.slane %v3393_v15, 4  ;;  %8841 = vrot.lane.b32.xlu2 %v8840_v50, %s9113_s18  ;;  %v3308_v45 = vmax.f32 %v3306_v35, %v3307_v56 }
 0x166   : > { %v1991_v49 = vmul.f32 %v9640_v13, %v1719_v63  ;;  %v3400_v27 = vsel %vm3140_vm11, %v2783_v58, -inf  ;;  %v5613_v21 = vrot.slane %v10159_v32, 1  ;;  %v14692_v47 = vrot.slane %v10138_v16, 1 }
 0x167   : > { %v5215_v59 = vsel %vm5199_vm2, %v3301_v37, %v5214_v29  ;;  %v10187_v1 = vmax.f32 %v10084_v62, %v3335_v0  ;;  %v2442_v19 = vmul.f32 %v9656_v31, %v2162_v22  ;;  %v472_v20 = vadd.s32 448, %v9191_v2 }
 0x168   : > { %v10191_v54 = vsel %vm5201_vm3, %v3308_v45, %v5215_v59  ;;  %v3369_v13 = vmax.f32 %v10093_v42, %v3368_v28  ;;  %v3376_v61 = vmax.f32 %v10095_v10, %v3375_v14  ;;  %v3389_v8 = vrot.slane %v3388_v9, 2  ;;  %v1974_v28 = vpop.permute.xlu2 %1973 }
 0x169   : > { %14926 = vst [vmem:[#allocation53_spill] sm:$0xff] %v10191_v54  ;;  %v10196_v52 = vmax.f32 %v2571_v6, 0.0  ;;  %v3401_v4 = vrot.slane %v3400_v27, 4  ;;  %v3407_v44 = vsel %vm3140_vm11, %v2784_v36, -inf  ;;  %v14697_v62 = vrot.slane %v10191_v54, 1 }
 0x16a   : > { %v2055_v57 = vadd.f32 %v1991_v49, %v9769_v40  ;;  %v3383_v31 = vmax.f32 %v10111_v46, %v3382_v48  ;;  %v2785_v30 = vrot.slane %v10125_v43, 6  ;;  %v3395_v18 = vmax.f32 %v3393_v15, %v3394_v24  ;;  %v10218_v15 = vld [vmem:[%s9196_s27 + $0x1a0] sm:$0xff] }
 0x16b   : > { %v5674_v42 = vsel %vm1137_vm7, %v14692_v47, %v5613_v21  ;;  %v2506_v10 = vadd.f32 %v2442_v19, %v10039_v23  ;;  %v5673_v41 = vsel %vm1137_vm7, %v5613_v21, %v14697_v62  ;;  %v536_v25 = vand.u32 63, %v472_v20  ;;  %14927 = vst [vmem:[#allocation54_spill] sm:$0xff] %v10218_v15 }
 0x16c   : > { %v14698_v40 = vrot.slane %v9931_v3, 7  ;;  %v3377_v46 = vrot.slane %v3376_v61, 1  ;;  %v3390_v60 = vmax.f32 %v3388_v9, %v3389_v8  ;;  %v3408_v35 = vrot.slane %v3407_v44, 4 }
 0x16d   : > { %v2777_v43 = vrot.slane %v10196_v52, 2  ;;  %v3402_v53 = vmax.f32 %v3400_v27, %v3401_v4  ;;  %v3337_v0 = vsel %vm3140_vm11, %v10196_v52, -inf  ;;  %v8845_v58 = vpack.i.bf16 %v5673_v41, %v5674_v42  ;;  %v10241_v4 = vpop.permute.xlu0 %1713 }
 0x16e   : > { %v2508_v23 = vadd.f32 %v10045_v38, %v2055_v57  ;;  %v3370_v7 = vrot.slane %v3369_v13, 1  ;;  %v3384_v37 = vrot.slane %v3383_v31, 1  ;;  %v3396_v56 = vrot.slane %v3395_v18, 2 }
 0x16f   : > { %v3414_v17 = vsel %vm3140_vm11, %v2785_v30, -inf  ;;  %v2778_v63 = vrot.slane %v10196_v52, 4  ;;  %v2574_v55 = vadd.f32 %v9673_v12, %v2506_v10  ;;  %8846 = vrot.lane.b32.xlu0 %v8845_v58, %s9114_s19  ;;  %vm10224_vm4 = vcmp.eq.s32.totalorder %v536_v25, 0 }
 0x170   : > { %v14930_v38 = vrot.slane %v9886_v34, 7  ;;  %v3391_v50 = vrot.slane %v3390_v60, 1  ;;  %v3338_v48 = vrot.slane %v3337_v0, 4  ;;  %v3344_v9 = vsel %vm3140_vm11, %v2777_v43, -inf }
 0x171   : > { %v932_v6 = vrot.slane %v10218_v15, 7  ;;  %v3378_v22 = vmax.f32 %v3376_v61, %v3377_v46  ;;  %v3403_v29 = vrot.slane %v3402_v53, 2  ;;  %v3409_v36 = vmax.f32 %v3407_v44, %v3408_v35  ;;  %v10244_v61 = vld [vmem:[%s9196_s27 + $0x198] sm:$0xff]  ;;  %v1724_v46 = vpop.permute.xlu1 %1723 }
 0x172   : > { %v952_v14 = vsel %vm944_vm0, %v14698_v40, %v14930_v38  ;;  %v2576_v24 = vadd.f32 %v9673_v12, %v2508_v23  ;;  %v3371_v45 = vmax.f32 %v3369_v13, %v3370_v7  ;;  %v3397_v49 = vmax.f32 %v3395_v18, %v3396_v56  ;;  %14931 = vst [vmem:[#allocation55_spill] sm:$0xff] %v10244_v61  ;;  %v10270_v7 = vld [vmem:[%s9196_s27 + $0xc0] sm:$0xff]  ;;  %v10274_v56 = vld [vmem:[%s9196_s27 + $0xc8] sm:$0xff] }
 0x173   : > { %v3415_v27 = vrot.slane %v3414_v17, 4  ;;  %v1065_v21 = vsel %vm10224_vm4, 0.0, %v952_v14  ;;  %v2779_v59 = vrot.slane %v10196_v52, 6  ;;  %v3345_v19 = vrot.slane %v3344_v9, 4  ;;  %v10283_v14 = vld [vmem:[%s14657_s1 + $0x1] ss:$0 sm:$0xff] }
 0x174   : > { %v3351_v20 = vsel %vm3140_vm11, %v2778_v63, -inf  ;;  %v2638_v8 = vmax.f32 %v2574_v55, 0.0  ;;  %1549 = vperm.xlu2 %8839, %v1065_v21   ;;  %v10246_v44 = vmax.f32 %v3383_v31, %v3384_v37  ;;  %v10248_v12 = vmax.f32 %v3390_v60, %v3391_v50 }
 0x175   : > { %v3339_v13 = vmax.f32 %v3337_v0, %v3338_v48  ;;  %v14932_v57 = vrot.slane %v9748_v26, 7  ;;  %v10255_v52 = vsel %vm5189_vm12, %v3378_v22, %v3371_v45  ;;  %v10257_v18 = vmax.f32 %v3402_v53, %v3403_v29  ;;  %v14933_v53 = vld [vmem:[#allocation23_spill] sm:$0xff] }
 0x176   : > { %v3410_v42 = vrot.slane %v3409_v36, 2  ;;  %v2640_v10 = vmax.f32 %v2576_v24, 0.0  ;;  %v3398_v31 = vrot.slane %v3397_v49, 1  ;;  %v10259_v41 = vmax.f32 %v3414_v17, %v3415_v27  ;;  %14934 = vst [vmem:[#allocation23_spill] sm:$0xff] %v10274_v56 }
 0x177   : > { %v955_v30 = vsel %vm944_vm0, %v932_v6, %v14932_v57  ;;  %v3352_v25 = vrot.slane %v3351_v20, 4  ;;  %v14693_v26 = vrot.slane %v10244_v61, 7  ;;  %v3346_v60 = vmax.f32 %v3344_v9, %v3345_v19  ;;  %1928 = vperm.xlu0 %8837, %v14933_v53   ;;  %v14941_v61 = vld [vmem:[#allocation6_spill] sm:$0xff] }
 0x178   : > { %1534 = vperm.xlu1 %8838, %v955_v30   ;;  %v3358_v35 = vsel %vm3140_vm11, %v2779_v59, -inf  ;;  %v2786_v43 = vrot.slane %v2638_v8, 2  ;;  %v3421_v0 = vsel %vm3140_vm11, %v2638_v8, -inf  ;;  %v3340_v58 = vrot.slane %v3339_v13, 2  ;;  %v14935_v30 = vld [vmem:[#allocation25_spill] sm:$0xff] }
 0x179   : > { %v956_v23 = vsel %vm944_vm0, %v14693_v26, %v932_v6  ;;  %v14699_v37 = vrot.slane %v10270_v7, 1  ;;  %v14695_v17 = vrot.slane %v10274_v56, 1  ;;  %v3405_v63 = vrot.slane %v10257_v18, 1 }
 0x17a   : > { %v10278_v55 = vmax.f32 %v3409_v36, %v3410_v42  ;;  %v2792_v38 = vrot.slane %v2640_v10, 2  ;;  %v1992_v50 = vmul.f32 %v10283_v14, %v1724_v46  ;;  %v2787_v48 = vrot.slane %v2638_v8, 4  ;;  %v1969_v46 = vpop.permute.xlu0 %1968 }
 0x17b   : > { %v2788_v9 = vrot.slane %v2638_v8, 6  ;;  %v3422_v6 = vrot.slane %v3421_v0, 4  ;;  %v1176_v22 = vsel %vm1137_vm7, %v14699_v37, %v14695_v17  ;;  %v3347_v29 = vrot.slane %v3346_v60, 2  ;;  %v14939_v37 = vld [vmem:[#allocation19_spill] sm:$0xff] }
 0x17c   : > { %v3353_v36 = vmax.f32 %v3351_v20, %v3352_v25  ;;  %v3359_v24 = vrot.slane %v3358_v35, 4  ;;  %v3428_v45 = vsel %vm3140_vm11, %v2786_v43, -inf  ;;  %1529 = vperm.xlu2 %8839, %v956_v23   ;;  %v10293_v27 = vmax.f32 %v3397_v49, %v3398_v31 }
 0x17d   : > { %v3341_v59 = vmax.f32 %v3339_v13, %v3340_v58  ;;  %v2793_v19 = vrot.slane %v2640_v10, 4  ;;  %v2794_v8 = vrot.slane %v2640_v10, 6  ;;  %v3484_v57 = vsel %vm3140_vm11, %v2792_v38, -inf }
 0x17e   : > { %v2056_v42 = vadd.f32 %v1992_v50, %v14935_v30  ;;  %v14696_v47 = vrot.slane %v10109_v5, 1  ;;  %v3423_v20 = vmax.f32 %v3421_v0, %v3422_v6  ;;  %v3429_v25 = vrot.slane %v3428_v45, 4  ;;  %v14937_v6 = vld [vmem:[#allocation50_spill] sm:$0xff] }
 0x17f   : > { %v3435_v43 = vsel %vm3140_vm11, %v2787_v48, -inf  ;;  %v3442_v49 = vsel %vm3140_vm11, %v2788_v9, -inf  ;;  %v10301_v31 = vmax.f32 %v3346_v60, %v3347_v29  ;;  %v3354_v23 = vrot.slane %v3353_v36, 2  ;;  %1918 = vperm.xlu0 %8837, %v10218_v15  }
 0x180   : > { %2231 = vperm.xlu1 %8838, %v1176_v22   ;;  %v10303_v13 = vmax.f32 %v3358_v35, %v3359_v24  ;;  %v3477_v58 = vsel %vm3140_vm11, %v2640_v10, -inf  ;;  %v3342_v38 = vrot.slane %v3341_v59, 1  ;;  %v3485_v50 = vrot.slane %v3484_v57, 4  ;;  %v10347_v10 = vld [vmem:[%s9196_s27 + $0x1a8] sm:$0xff] }
 0x181   : > { %v3491_v22 = vsel %vm3140_vm11, %v2793_v19, -inf  ;;  %v14936_v0 = vrot.slane %v9886_v34, 1  ;;  %v3436_v60 = vrot.slane %v3435_v43, 4  ;;  %v3443_v9 = vrot.slane %v3442_v49, 4 }
 0x182   : > { %v3498_v35 = vsel %vm3140_vm11, %v2794_v8, -inf  ;;  %v2509_v29 = vadd.f32 %v14937_v6, %v2056_v42  ;;  %v3424_v24 = vrot.slane %v3423_v20, 2  ;;  %v3430_v30 = vmax.f32 %v3428_v45, %v3429_v25  ;;  %v2167_v25 = vpop.permute.xlu1 %2166 }
 0x183   : > { %v1144_v48 = vsel %vm1137_vm7, %v14936_v0, %v14696_v47  ;;  %v3478_v26 = vrot.slane %v3477_v58, 4  ;;  %v10318_v19 = vmax.f32 %v10257_v18, %v3405_v63  ;;  %v10320_v51 = vmax.f32 %v3353_v36, %v3354_v23  ;;  %v10323_v47 = vpop.permute.xlu2 %1738  ;;  %v10334_v23 = vld [vmem:[%s14658_s2] ss:$0 sm:$0xff] }
 0x184   : > { %v3492_v0 = vrot.slane %v3491_v22, 4  ;;  %2391 = vperm.xlu2 %8839, %v1144_v48   ;;  %v10325_v8 = vmax.f32 %v3341_v59, %v3342_v38  ;;  %v3486_v6 = vmax.f32 %v3484_v57, %v3485_v50  ;;  %v3499_v45 = vrot.slane %v3498_v35, 4  ;;  %v10338_v38 = vld [vmem:[%s9196_s27 + $0xb8] sm:$0xff] }
 0x185   : > { %v10329_v18 = vmul.f32 %v10283_v14, %v1974_v28  ;;  %v3437_v63 = vmax.f32 %v3435_v43, %v3436_v60  ;;  %v3444_v36 = vmax.f32 %v3442_v49, %v3443_v9  ;;  %v2577_v59 = vadd.f32 %v10334_v23, %v2509_v29  ;;  %14938 = vst [vmem:[#allocation25_spill] sm:$0xff] %v10338_v38  ;;  %v9052_v49 = vld [vmem:[%s9196_s27 + $0xb0] sm:$0xff]  ;;  %v2422_v60 = vpop.permute.xlu0 %2421 }
 0x186   : > { %v3425_v50 = vmax.f32 %v3423_v20, %v3424_v24  ;;  %v3431_v48 = vrot.slane %v3430_v30, 2  ;;  %v3479_v28 = vmax.f32 %v3477_v58, %v3478_v26  ;;  %v3493_v62 = vmax.f32 %v3491_v22, %v3492_v0 }
 0x187   : > { %v1990_v43 = vmul.f32 %v10283_v14, %v10241_v4  ;;  %1768 = vperm.xlu0 %8837, %v9052_v49   ;;  %v14708_v9 = vrot.slane %v10218_v15, 1  ;;  %v14709_v29 = vrot.slane %v10347_v10, 1  ;;  %v3487_v21 = vrot.slane %v3486_v6, 2  ;;  %v10355_v4 = vld [vmem:[%s14657_s1 + $0x2] ss:$0 sm:$0xff] }
 0x188   : > { %1773 = vperm.xlu1 %8838, %v10338_v38   ;;  %v3500_v57 = vmax.f32 %v3498_v35, %v3499_v45  ;;  %v2041_v20 = vmul.f32 %v10283_v14, %v1969_v46  ;;  %v3438_v26 = vrot.slane %v3437_v63, 2  ;;  %v3445_v58 = vrot.slane %v3444_v36, 2 }
 0x189   : > { %v2641_v22 = vmax.f32 %v2577_v59, 0.0  ;;  %v2443_v24 = vmul.f32 %v10355_v4, %v2167_v25  ;;  %v3426_v0 = vrot.slane %v3425_v50, 1  ;;  %v3432_v49 = vmax.f32 %v3430_v30, %v3431_v48 }
 0x18a   : > { %v3480_v17 = vrot.slane %v3479_v28, 2  ;;  %v2494_v40 = vmul.f32 %v10355_v4, %v2422_v60  ;;  %v3494_v42 = vrot.slane %v3493_v62, 2  ;;  %v2054_v35 = vadd.f32 %v1990_v43, %v14939_v37 }
 0x18b   : > { %v1148_v46 = vsel %vm1137_vm7, %v14708_v9, %v14709_v29  ;;  %v10367_v45 = vadd.s32 184, %v9191_v2  ;;  %v3488_v59 = vmax.f32 %v3486_v6, %v3487_v21  ;;  %v3501_v25 = vrot.slane %v3500_v57, 2  ;;  %v1734_v43 = vpop.permute.xlu2 %1733  ;;  %v1585_v9 = vpop.permute.xlu1 %1584 }
 0x18c   : > { %v2105_v30 = vadd.f32 %v2041_v20, %v14941_v61  ;;  %2371 = vperm.xlu2 %8839, %v1148_v46   ;;  %v1096_v48 = vrot.slane %v10338_v38, 1  ;;  %v2795_v60 = vrot.slane %v2641_v22, 2  ;;  %v3505_v37 = vsel %vm3140_vm11, %v2641_v22, -inf }
 0x18d   : > { %14940 = vst [vmem:[#allocation50_spill] sm:$0xff] %v10367_v45  ;;  %v2507_v56 = vadd.f32 %v2443_v24, %v2054_v35  ;;  %v503_v15 = vand.u32 63, %v10367_v45  ;;  %v2796_v16 = vrot.slane %v2641_v22, 4  ;;  %v2797_v32 = vrot.slane %v2641_v22, 6 }
 0x18e   : > { %v2558_v29 = vadd.f32 %v2494_v40, %v2105_v30  ;;  %v14942_v34 = vrot.slane %v10270_v7, 1  ;;  %v10379_v21 = vmax.f32 %v3425_v50, %v3426_v0  ;;  %v3439_v6 = vmax.f32 %v3437_v63, %v3438_v26 }
 0x18f   : > { %v3446_v20 = vmax.f32 %v3444_v36, %v3445_v58  ;;  %v3481_v46 = vmax.f32 %v3479_v28, %v3480_v17  ;;  %v3495_v54 = vmax.f32 %v3493_v62, %v3494_v42  ;;  %v3502_v24 = vmax.f32 %v3500_v57, %v3501_v25 }
 0x190   : > { %v1177_v61 = vsel %vm1137_vm7, %v1096_v48, %v14942_v34  ;;  %v3506_v35 = vrot.slane %v3505_v37, 4  ;;  %vm631_vm5 = vcmp.eq.s32.totalorder %v503_v15, 63  ;;  %v3433_v45 = vrot.slane %v3432_v49, 1 }
 0x191   : > { %v3489_v22 = vrot.slane %v3488_v59, 1  ;;  %v2575_v40 = vadd.f32 %v10334_v23, %v2507_v56  ;;  %v1225_v30 = vsel %vm631_vm5, 0.0, %v1177_v61  ;;  %v3512_v7 = vsel %vm3140_vm11, %v2795_v60, -inf }
 0x192   : > { %v3519_v38 = vsel %vm3140_vm11, %v2796_v16, -inf  ;;  %v3526_v34 = vsel %vm3140_vm11, %v2797_v32, -inf  ;;  %v2626_v50 = vadd.f32 %v10334_v23, %v2558_v29  ;;  %2226 = vperm.xlu1 %8838, %v1225_v30   ;;  %v3440_v63 = vrot.slane %v3439_v6, 1 }
 0x193   : > { %v3447_v17 = vrot.slane %v3446_v20, 1  ;;  %v1995_v62 = vmul.f32 %v10283_v14, %v10323_v47  ;;  %v14943_v15 = vrot.slane %v9931_v3, 7  ;;  %v14944_v42 = vrot.slane %v14933_v53, 7 }
 0x194   : > { %v3482_v36 = vrot.slane %v3481_v46, 1  ;;  %v3496_v57 = vrot.slane %v3495_v54, 1  ;;  %v3503_v16 = vrot.slane %v3502_v24, 1  ;;  %v3507_v28 = vmax.f32 %v3505_v37, %v3506_v35  ;;  %1933 = vperm.xlu2 %8839, %v9931_v3   ;;  %v2197_v35 = vpop.permute.xlu2 %2196 }
 0x195   : > { %v953_v56 = vsel %vm944_vm0, %v14944_v42, %v14943_v15  ;;  %v3513_v32 = vrot.slane %v3512_v7, 4  ;;  %v3520_v29 = vrot.slane %v3519_v38, 4  ;;  %v3527_v26 = vrot.slane %v3526_v34, 4  ;;  %v14948_v15 = vld [vmem:[#allocation27_spill] sm:$0xff]  ;;  %v10410_v42 = vld [vmem:[%s14657_s1] ss:$0 sm:$0xff] }
 0x196   : > { %1544 = vperm.xlu0 %8837, %v953_v56   ;;  %v1994_v58 = vmul.f32 %v10283_v14, %v1734_v43  ;;  %v10396_v47 = vmax.f32 %v3432_v49, %v3433_v45  ;;  %v3490_v0 = vmax.f32 %v3488_v59, %v3489_v22  ;;  %v2639_v25 = vmax.f32 %v2575_v40, 0.0  ;;  %14949 = vst [vmem:[#allocation27_spill] sm:$0xff] %v10410_v42  ;;  %v10417_v22 = vpop.permute.xlu1 %1728 }
 0x197   : > { %v10398_v60 = vmax.f32 %v2626_v50, 0.0  ;;  %v10400_v61 = vmax.f32 %v3439_v6, %v3440_v63  ;;  %v10402_v30 = vmax.f32 %v3446_v20, %v3447_v17  ;;  %v10405_v37 = vadd.f32 %v1995_v62, %v14948_v15  ;;  %v2427_v20 = vpop.permute.xlu0 %2426  ;;  %v14952_v17 = vld [vmem:[#allocation28_spill] sm:$0xff] }
 0x198   : > { %14945 = vst [vmem:[#allocation19_spill] sm:$0xff] %v10396_v47  ;;  %v1653_v49 = vmul.f32 %v10410_v42, %v1585_v9  ;;  %v3483_v45 = vmax.f32 %v3481_v46, %v3482_v36  ;;  %v10413_v59 = vmax.f32 %v3495_v54, %v3496_v57  ;;  %v10415_v43 = vmax.f32 %v3502_v24, %v3503_v16 }
 0x199   : > { %14946 = vst [vmem:[#allocation6_spill] sm:$0xff] %v10400_v61  ;;  %v3508_v6 = vrot.slane %v3507_v28, 2  ;;  %v10419_v40 = vmax.f32 %v3512_v7, %v3513_v32  ;;  %v10421_v50 = vmax.f32 %v3519_v38, %v3520_v29  ;;  %v10423_v63 = vmax.f32 %v3526_v34, %v3527_v26 }
 0x19a   : > { %14947 = vst [vmem:[#allocation56_spill] sm:$0xff] %v10402_v30  ;;  %v10426_v62 = vadd.f32 %v1994_v58, %v14952_v17  ;;  %v10429_v9 = vsel %vm5189_vm12, %v3490_v0, %v3483_v45  ;;  %v2789_v54 = vrot.slane %v2639_v25, 2  ;;  %v10432_v46 = vsel %vm3140_vm11, %v2639_v25, -inf }
 0x19b   : > { %14950 = vst [vmem:[#allocation57_spill] sm:$0xff] %v10413_v59  ;;  %v2942_v24 = vrot.slane %v10398_v60, 2  ;;  %v10436_v56 = vmul.f32 %v10355_v4, %v2197_v35  ;;  %v2106_v38 = vadd.f32 %v10329_v18, %v1653_v49  ;;  %v2495_v7 = vmul.f32 %v10355_v4, %v2427_v20 }
 0x19c   : > { %14951 = vst [vmem:[#allocation58_spill] sm:$0xff] %v10415_v43  ;;  %v14954_v34 = vrot.slane %v10303_v13, 2  ;;  %v10443_v57 = vmax.f32 %v3507_v28, %v3508_v6  ;;  %v2790_v16 = vrot.slane %v2639_v25, 4  ;;  %v2791_v32 = vrot.slane %v2639_v25, 6  ;;  %1923 = vperm.xlu2 %8839, %v10347_v10  }
 0x19d   : > { %14953 = vst [vmem:[#allocation28_spill] sm:$0xff] %v10429_v9  ;;  %v3356_v29 = vrot.slane %v10320_v51, 1  ;;  %v3515_v26 = vrot.slane %v10419_v40, 2  ;;  %v3522_v18 = vrot.slane %v10421_v50, 2  ;;  %v3529_v58 = vrot.slane %v10423_v63, 2 }
 0x19e   : > { %v3362_v36 = vmax.f32 %v10303_v13, %v14954_v34  ;;  %1943 = vperm.xlu0 %8837, %v10109_v5   ;;  %v3450_v0 = vrot.slane %v10432_v46, 4  ;;  %v10453_v13 = vsel %vm3140_vm11, %v2789_v54, -inf  ;;  %v2943_v28 = vrot.slane %v10398_v60, 4 }
 0x19f   : > { %v4884_v25 = vsel %vm3140_vm11, %v2942_v24, -inf  ;;  %v14955_v15 = vrot.slane %v10259_v41, 2  ;;  %v2559_v49 = vadd.f32 %v2495_v7, %v2106_v38  ;;  %v14956_v45 = vrot.slane %v10301_v31, 1 }
 0x1a0   : > { %v3363_v20 = vrot.slane %v3362_v36, 1  ;;  %v5217_v17 = vsel %vm5189_vm12, %v10091_v11, %v10089_v39  ;;  %v10467_v54 = vsel %vm3140_vm11, %v2790_v16, -inf  ;;  %v2944_v34 = vrot.slane %v10398_v60, 6 }
 0x1a1   : > { %v3418_v35 = vmax.f32 %v10259_v41, %v14955_v15  ;;  %v3350_v6 = vmax.f32 %v10301_v31, %v14956_v45  ;;  %v3357_v24 = vmax.f32 %v10320_v51, %v3356_v29  ;;  %v5218_v41 = vsel %vm5191_vm13, %v10167_v33, %v5217_v17  ;;  %v2192_v29 = vpop.permute.xlu1 %2191 }
 0x1a2   : > { %v4877_v38 = vsel %vm3140_vm11, %v10398_v60, -inf  ;;  %v10476_v31 = vadd.s32 24, %v9191_v2  ;;  %v5219_v7 = vsel %vm5193_vm14, %v10187_v1, %v5218_v41  ;;  %v5225_v39 = vsel %vm5191_vm13, %v10246_v44, %v10255_v52 }
 0x1a3   : > { %v4885_v11 = vrot.slane %v4884_v25, 4  ;;  %v4891_v16 = vsel %vm3140_vm11, %v2943_v28, -inf  ;;  %v3419_v51 = vrot.slane %v3418_v35, 1  ;;  %v5220_v33 = vsel %vm5195_vm15, %v10325_v8, %v5219_v7 }
 0x1a4   : > { %14957 = vst [vmem:[#allocation59_spill] sm:$0xff] %v10476_v31  ;;  %v2627_v60 = vadd.f32 %v10334_v23, %v2559_v49  ;;  %v3364_v15 = vmax.f32 %v3362_v36, %v3363_v20  ;;  %v14958_v45 = vrot.slane %v10278_v55, 1  ;;  %v5221_v1 = vsel %vm5197_vm1, %v3350_v6, %v5220_v33 }
 0x1a5   : > { %v10492_v41 = vsel %vm3140_vm11, %v2791_v32, -inf  ;;  %v4878_v44 = vrot.slane %v4877_v38, 4  ;;  %v5222_v52 = vsel %vm5199_vm2, %v3357_v24, %v5221_v1  ;;  %v5226_v28 = vsel %vm5193_vm14, %v10248_v12, %v5225_v39 }
 0x1a6   : > { %v3413_v17 = vmax.f32 %v10278_v55, %v14958_v45  ;;  %v4892_v8 = vrot.slane %v4891_v16, 4  ;;  %v675_v7 = vand.u32 31, %v10476_v31  ;;  %v10499_v36 = vsel %vm5201_vm3, %v3364_v15, %v5222_v52 }
 0x1a7   : > { %14959 = vst [vmem:[#allocation60_spill] sm:$0xff] %v10499_v36  ;;  %v5227_v55 = vsel %vm5195_vm15, %v10293_v27, %v5226_v28  ;;  %v4886_v49 = vmax.f32 %v4884_v25, %v4885_v11  ;;  %v4898_v6 = vsel %vm3140_vm11, %v2944_v34, -inf  ;;  %v3420_v32 = vmax.f32 %v3418_v35, %v3419_v51 }
 0x1a8   : > { %v5228_v20 = vsel %vm5197_vm1, %v10318_v19, %v5227_v55  ;;  %v3510_v24 = vrot.slane %v10443_v57, 1  ;;  %v2691_v33 = vmax.f32 %v2627_v60, 0.0  ;;  %v5615_v39 = vrot.slane %v10499_v36, 1 }
 0x1a9   : > { %v5229_v12 = vsel %vm5199_vm2, %v3413_v17, %v5228_v20  ;;  %v3516_v15 = vmax.f32 %v10419_v40, %v3515_v26  ;;  %v10511_v45 = vmax.f32 %v10421_v50, %v3522_v18  ;;  %v4879_v27 = vmax.f32 %v4877_v38, %v4878_v44  ;;  %v14965_v50 = vld [vmem:[#allocation53_spill] sm:$0xff]  ;;  %v2182_v20 = vpop.permute.xlu0 %2181 }
 0x1aa   : > { %v10514_v25 = vsel %vm5201_vm3, %v3420_v32, %v5229_v12  ;;  %v4893_v35 = vmax.f32 %v4891_v16, %v4892_v8  ;;  %v4899_v34 = vrot.slane %v4898_v6, 4  ;;  %vm10516_vm6 = vcmp.eq.s32.totalorder %v675_v7, 31  ;;  %v10543_v8 = vpop.permute.xlu1 %2186 }
 0x1ab   : > { %14960 = vst [vmem:[#allocation61_spill] sm:$0xff] %v10511_v45  ;;  %v14716_v11 = vrot.slane %v10514_v25, 1  ;;  %v10522_v51 = vmax.f32 %v10423_v63, %v3529_v58  ;;  %v3451_v40 = vmax.f32 %v10432_v46, %v3450_v0  ;;  %v4887_v26 = vrot.slane %v4886_v49, 2  ;;  %v14968_v63 = vld [vmem:[#allocation4_spill] sm:$0xff] }
 0x1ac   : > { %14961 = vst [vmem:[#allocation62_spill] sm:$0xff] %v10514_v25  ;;  %v14966_v18 = vrot.slane %v14965_v50, 1  ;;  %v4905_v16 = vsel %vm3140_vm11, %v2691_v33, -inf  ;;  %v2448_v17 = vmul.f32 %v10355_v4, %v2192_v29  ;;  %v14969_v58 = vrot.slane %v14968_v63, 1 }
 0x1ad   : > { %14964 = vst [vmem:[#allocation63_spill] sm:$0xff] %v10522_v51  ;;  %v5671_v60 = vsel %vm1137_vm7, %v5615_v39, %v14716_v11  ;;  %v4880_v0 = vrot.slane %v4879_v27, 2  ;;  %v2945_v44 = vrot.slane %v2691_v33, 2  ;;  %v2946_v52 = vrot.slane %v2691_v33, 4 }
 0x1ae   : > { %v5672_v38 = vsel %vm1137_vm7, %v14966_v18, %v5615_v39  ;;  %v1178_v46 = vsel %vm1137_vm7, %v14969_v58, %v1096_v48  ;;  %v5743_v28 = vsel %vm10516_vm6, 0.0, %v5671_v60  ;;  %v4894_v7 = vrot.slane %v4893_v35, 2 }
 0x1af   : > { %2221 = vperm.xlu0 %8837, %v1178_v46   ;;  %v4900_v55 = vmax.f32 %v4898_v6, %v4899_v34  ;;  %v2947_v32 = vrot.slane %v2691_v33, 6  ;;  %v8855_v29 = vpack.i.bf16 %v5743_v28, %v5672_v38  ;;  %v3457_v12 = vrot.slane %v10453_v13, 4 }
 0x1b0   : > { %v3464_v39 = vrot.slane %v10467_v54, 4  ;;  %v4888_v18 = vmax.f32 %v4886_v49, %v4887_v26  ;;  %v4906_v48 = vrot.slane %v4905_v16, 4  ;;  %v10548_v1 = vmax.f32 %v10443_v57, %v3510_v24  ;;  %v2202_v57 = vpop.permute.xlu2 %2201 }
 0x1b1   : > { %v3471_v19 = vrot.slane %v10492_v41, 4  ;;  %v1993_v60 = vmul.f32 %v10283_v14, %v10417_v22  ;;  %8856 = vrot.lane.b32.xlu1 %v8855_v29, %s9114_s19  ;;  %v2512_v6 = vadd.f32 %v2448_v17, %v10405_v37  ;;  %v3452_v33 = vrot.slane %v3451_v40, 2  ;;  %v14971_v37 = vld [vmem:[#allocation20_spill] sm:$0xff] }
 0x1b2   : > { %14970 = vst [vmem:[#allocation25_spill] sm:$0xff] %v10548_v1  ;;  %v4881_v34 = vmax.f32 %v4879_v27, %v4880_v0  ;;  %v4912_v38 = vsel %vm3140_vm11, %v2945_v44, -inf  ;;  %v4919_v63 = vsel %vm3140_vm11, %v2946_v52, -inf  ;;  %v4895_v49 = vmax.f32 %v4893_v35, %v4894_v7  ;;  %v1744_v1 = vpop.permute.xlu0 %1743 }
 0x1b3   : > { %v4901_v26 = vrot.slane %v4900_v55, 2  ;;  %v4926_v24 = vsel %vm3140_vm11, %v2947_v32, -inf  ;;  %v2446_v58 = vmul.f32 %v10355_v4, %v2182_v20  ;;  %v3517_v46 = vrot.slane %v3516_v15, 1  ;;  %v10566_v32 = vld [vmem:[%s9196_s27 + $0x1d0] sm:$0xff] }
 0x1b4   : > { %v3458_v22 = vmax.f32 %v10453_v13, %v3457_v12  ;;  %v4889_v28 = vrot.slane %v4888_v18, 1  ;;  %v4907_v29 = vmax.f32 %v4905_v16, %v4906_v48  ;;  %v2057_v17 = vadd.f32 %v1993_v60, %v14971_v37 }
 0x1b5   : > { %v4913_v27 = vrot.slane %v4912_v38, 4  ;;  %v4920_v0 = vrot.slane %v4919_v63, 4  ;;  %v2580_v44 = vadd.f32 %v10334_v23, %v2512_v6  ;;  %v3453_v52 = vmax.f32 %v3451_v40, %v3452_v33  ;;  %v10574_v40 = vpop.permute.xlu1 %1758 }
 0x1b6   : > { %v10563_v35 = vmax.f32 %v10467_v54, %v3464_v39  ;;  %v4882_v7 = vrot.slane %v4881_v34, 1  ;;  %v4927_v11 = vrot.slane %v4926_v24, 4  ;;  %v4896_v31 = vrot.slane %v4895_v49, 1 }
 0x1b7   : > { %v4902_v13 = vmax.f32 %v4900_v55, %v4901_v26  ;;  %v2510_v12 = vadd.f32 %v2446_v58, %v2057_v17  ;;  %v10569_v16 = vmax.f32 %v3516_v15, %v3517_v46  ;;  %v10572_v48 = vmax.f32 %v10492_v41, %v3471_v19 }
 0x1b8   : > { %v4890_v60 = vmax.f32 %v4888_v18, %v4889_v28  ;;  %v4908_v6 = vrot.slane %v4907_v29, 2  ;;  %v3459_v54 = vrot.slane %v3458_v22, 2  ;;  %v4914_v39 = vmax.f32 %v4912_v38, %v4913_v27 }
 0x1b9   : > { %14972 = vst [vmem:[#allocation4_spill] sm:$0xff] %v10569_v16  ;;  %v4921_v33 = vmax.f32 %v4919_v63, %v4920_v0  ;;  %v2644_v37 = vmax.f32 %v2580_v44, 0.0  ;;  %1948 = vperm.xlu1 %8838, %v10566_v32   ;;  %v3454_v20 = vrot.slane %v3453_v52, 1  ;;  %v4883_v26 = vmax.f32 %v4881_v34, %v4882_v7 }
 0x1ba   : > { %v4928_v15 = vmax.f32 %v4926_v24, %v4927_v11  ;;  %v4897_v58 = vmax.f32 %v4895_v49, %v4896_v31  ;;  %v4903_v46 = vrot.slane %v4902_v13, 1  ;;  %v2578_v18 = vadd.f32 %v10334_v23, %v2510_v12  ;;  %v1764_v11 = vpop.permute.xlu2 %1763 }
 0x1bb   : > { %v5413_v28 = vsel %vm5189_vm12, %v4890_v60, %v4883_v26  ;;  %v10582_v38 = vmul.f32 %v10355_v4, %v2202_v57  ;;  %v10584_v63 = vmax.f32 %v4907_v29, %v4908_v6  ;;  %v1996_v17 = vmul.f32 %v10283_v14, %v1744_v1  ;;  %v14975_v6 = vld [vmem:[#allocation21_spill] sm:$0xff] }
 0x1bc   : > { %v10587_v27 = vmax.f32 %v3458_v22, %v3459_v54  ;;  %v4915_v0 = vrot.slane %v4914_v39, 2  ;;  %v4922_v34 = vrot.slane %v4921_v33, 2  ;;  %v2804_v31 = vrot.slane %v2644_v37, 2 }
 0x1bd   : > { %v10589_v49 = vmax.f32 %v3453_v52, %v3454_v20  ;;  %v4929_v24 = vrot.slane %v4928_v15, 2  ;;  %v2805_v44 = vrot.slane %v2644_v37, 4  ;;  %v2806_v7 = vrot.slane %v2644_v37, 6 }
 0x1be   : > { %v10591_v12 = vmax.f32 %v4902_v13, %v4903_v46  ;;  %v10594_v57 = vsel %vm5191_vm13, %v4897_v58, %v5413_v28  ;;  %v3589_v29 = vsel %vm3140_vm11, %v2644_v37, -inf  ;;  %v2642_v1 = vmax.f32 %v2578_v18, 0.0  ;;  %v10605_v58 = vld [vmem:[%s9196_s27 + $0x1e0] sm:$0xff] }
 0x1bf   : > { %14974 = vst [vmem:[#allocation20_spill] sm:$0xff] %v10589_v49  ;;  %v4910_v22 = vrot.slane %v10584_v63, 1  ;;  %v2000_v60 = vmul.f32 %v10283_v14, %v1764_v11  ;;  %v2060_v54 = vadd.f32 %v1996_v17, %v14975_v6  ;;  %v471_v52 = vadd.s32 440, %v9191_v2  ;;  %v10611_v11 = vpop.permute.xlu1 %1753  ;;  %v14976_v6 = vld [vmem:[#allocation47_spill] sm:$0xff] }
 0x1c0   : > { %v4916_v20 = vmax.f32 %v4914_v39, %v4915_v0  ;;  %v4923_v26 = vmax.f32 %v4921_v33, %v4922_v34  ;;  %v3596_v19 = vsel %vm3140_vm11, %v2804_v31, -inf  ;;  %v2447_v13 = vmul.f32 %v10355_v4, %v10543_v8 }
 0x1c1   : > { %v10607_v46 = vmax.f32 %v4928_v15, %v4929_v24  ;;  %v3590_v37 = vrot.slane %v3589_v29, 4  ;;  %v3603_v18 = vsel %vm3140_vm11, %v2805_v44, -inf  ;;  %v3610_v28 = vsel %vm3140_vm11, %v2806_v7, -inf }
 0x1c2   : > { %v2798_v17 = vrot.slane %v2642_v1, 2  ;;  %v2799_v39 = vrot.slane %v2642_v1, 4  ;;  %v2800_v33 = vrot.slane %v2642_v1, 6  ;;  %v3533_v0 = vsel %vm3140_vm11, %v2642_v1, -inf }
 0x1c3   : > { %v3597_v34 = vrot.slane %v3596_v19, 4  ;;  %v10615_v8 = vadd.f32 %v10436_v56, %v2060_v54  ;;  %v535_v15 = vand.u32 63, %v471_v52  ;;  %v3604_v24 = vrot.slane %v3603_v18, 4  ;;  %v10630_v54 = vld [vmem:[%s9196_s27 + $0x1e8] sm:$0xff] }
 0x1c4   : > { %v3611_v44 = vrot.slane %v3610_v28, 4  ;;  %v2511_v7 = vadd.f32 %v2447_v13, %v10426_v62  ;;  %v14977_v55 = vrot.slane %v14976_v6, 1  ;;  %v14978_v41 = vrot.slane %v9931_v3, 1  ;;  %v10637_v6 = vld [vmem:[%s9196_s27 + $0x1d8] sm:$0xff] }
 0x1c5   : > { %v3591_v1 = vmax.f32 %v3589_v29, %v3590_v37  ;;  %v3534_v51 = vrot.slane %v3533_v0, 4  ;;  %vm10625_vm8 = vcmp.eq.s32.totalorder %v535_v15, 63  ;;  %v14723_v52 = vrot.slane %v10630_v54, 1 }
 0x1c6   : > { %v1145_v16 = vsel %vm1137_vm7, %v14978_v41, %v14977_v55  ;;  %v4917_v31 = vrot.slane %v4916_v20, 1  ;;  %v3540_v62 = vsel %vm3140_vm11, %v2798_v17, -inf  ;;  %v3547_v13 = vsel %vm3140_vm11, %v2799_v39, -inf }
 0x1c7   : > { %v3598_v55 = vmax.f32 %v3596_v19, %v3597_v34  ;;  %v3554_v41 = vsel %vm3140_vm11, %v2800_v33, -inf  ;;  %v1257_v29 = vsel %vm10625_vm8, 0.0, %v1145_v16  ;;  %v14981_v37 = vrot.slane %v10605_v58, 1  ;;  %v1749_v19 = vpop.permute.xlu0 %1748 }
 0x1c8   : > { %v4924_v17 = vrot.slane %v4923_v26, 1  ;;  %v3605_v45 = vmax.f32 %v3603_v18, %v3604_v24  ;;  %v3612_v39 = vmax.f32 %v3610_v28, %v3611_v44  ;;  %2386 = vperm.xlu2 %8839, %v1257_v29   ;;  %v3592_v34 = vrot.slane %v3591_v1, 2  ;;  %v14984_v24 = vld [vmem:[#allocation34_spill] sm:$0xff] }
 0x1c9   : > { %v1140_v15 = vsel %vm1137_vm7, %v14981_v37, %v14723_v52  ;;  %v3535_v33 = vmax.f32 %v3533_v0, %v3534_v51  ;;  %v2579_v56 = vadd.f32 %v10334_v23, %v2511_v7  ;;  %v3541_v43 = vrot.slane %v3540_v62, 4  ;;  %v10664_v7 = vpop.permute.xlu1 %2216 }
 0x1ca   : > { %2411 = vperm.xlu1 %8838, %v1140_v15   ;;  %v3548_v59 = vrot.slane %v3547_v13, 4  ;;  %v3555_v9 = vrot.slane %v3554_v41, 4  ;;  %v14982_v25 = vrot.slane %v10566_v32, 1  ;;  %v14983_v37 = vrot.slane %v10109_v5, 1 }
 0x1cb   : > { %v10658_v28 = vmax.f32 %v10584_v63, %v4910_v22  ;;  %v10661_v44 = vadd.f32 %v2000_v60, %v14984_v24  ;;  %v3599_v51 = vrot.slane %v3598_v55, 2  ;;  %v1997_v0 = vmul.f32 %v10283_v14, %v1749_v19 }
 0x1cc   : > { %v1143_v18 = vsel %vm1137_vm7, %v14983_v37, %v14982_v25  ;;  %v10666_v29 = vmax.f32 %v4916_v20, %v4917_v31  ;;  %v10668_v15 = vmax.f32 %v4923_v26, %v4924_v17  ;;  %v3606_v52 = vrot.slane %v3605_v45, 2  ;;  %v14985_v37 = vld [vmem:[#allocation31_spill] sm:$0xff] }
 0x1cd   : > { %2396 = vperm.xlu0 %8837, %v1143_v18   ;;  %v3613_v3 = vrot.slane %v3612_v39, 2  ;;  %v3593_v16 = vmax.f32 %v3591_v1, %v3592_v34  ;;  %v3536_v25 = vrot.slane %v3535_v33, 2  ;;  %v2061_v63 = vadd.f32 %v1997_v0, %v14985_v37  ;;  %v14988_v34 = vld [vmem:[#allocation52_spill] sm:$0xff]  ;;  %v14990_v37 = vld [vmem:[#allocation51_spill] sm:$0xff] }
 0x1ce   : > { %v14986_v22 = vrot.slane %v10637_v6, 7  ;;  %v14987_v60 = vrot.slane %v10566_v32, 7  ;;  %v3542_v19 = vmax.f32 %v3540_v62, %v3541_v43  ;;  %v3549_v24 = vmax.f32 %v3547_v13, %v3548_v59 }
 0x1cf   : > { %v3556_v20 = vmax.f32 %v3554_v41, %v3555_v9  ;;  %v2643_v31 = vmax.f32 %v2579_v56, 0.0  ;;  %v3600_v26 = vmax.f32 %v3598_v55, %v3599_v51  ;;  %v2514_v17 = vadd.f32 %v10582_v38, %v2061_v63  ;;  %v14993_v9 = vld [vmem:[#allocation23_spill] sm:$0xff]  ;;  %v10699_v51 = vld [vmem:[%s9196_s27 + $0xd0] sm:$0xff] }
 0x1d0   : > { %v949_v18 = vsel %vm944_vm0, %v14987_v60, %v14986_v22  ;;  %v8850_v1 = vpack.i.bf16 %v10499_v36, %v14965_v50  ;;  %v14989_v0 = vrot.slane %v14988_v34, 7  ;;  %v14991_v49 = vrot.slane %v14990_v37, 7  ;;  %1783 = vperm.xlu2 %8839, %v14993_v9   ;;  %v2212_v22 = vpop.permute.xlu0 %2211  ;;  %v14997_v37 = vld [vmem:[#allocation22_spill] sm:$0xff] }
 0x1d1   : > { %v3607_v59 = vmax.f32 %v3605_v45, %v3606_v52  ;;  %v3614_v62 = vmax.f32 %v3612_v39, %v3613_v3  ;;  %v14994_v38 = vrot.slane %v14933_v53, 1  ;;  %v14995_v13 = vrot.slane %v10347_v10, 1  ;;  %v10715_v36 = vpop.permute.xlu1 %1539 }
 0x1d2   : > { %v10686_v30 = vsel %vm944_vm0, %v14991_v49, %v14989_v0  ;;  %1564 = vperm.xlu1 %8838, %v949_v18   ;;  %v3594_v41 = vrot.slane %v3593_v16, 1  ;;  %v3537_v56 = vmax.f32 %v3535_v33, %v3536_v25  ;;  %v2581_v49 = vadd.f32 %v10334_v23, %v10615_v8 }
 0x1d3   : > { %14992 = vst [vmem:[#allocation21_spill] sm:$0xff] %v10686_v30  ;;  %v1147_v55 = vsel %vm1137_vm7, %v14995_v13, %v14994_v38  ;;  %v14729_v45 = vrot.slane %v10699_v51, 1  ;;  %v3543_v52 = vrot.slane %v3542_v19, 2  ;;  %v3550_v3 = vrot.slane %v3549_v24, 2 }
 0x1d4   : > { %v3557_v39 = vrot.slane %v3556_v20, 2  ;;  %v2801_v63 = vrot.slane %v2643_v31, 2  ;;  %v3601_v53 = vrot.slane %v3600_v26, 1  ;;  %v2802_v60 = vrot.slane %v2643_v31, 4 }
 0x1d5   : > { %v3561_v10 = vsel %vm3140_vm11, %v2643_v31, -inf  ;;  %v1999_v18 = vmul.f32 %v10283_v14, %v10574_v40  ;;  %2376 = vperm.xlu0 %8837, %v1147_v55   ;;  %v3608_v33 = vrot.slane %v3607_v59, 1  ;;  %v3615_v25 = vrot.slane %v3614_v62, 1 }
 0x1d6   : > { %v2803_v8 = vrot.slane %v2643_v31, 6  ;;  %v2582_v0 = vadd.f32 %v10334_v23, %v2514_v17  ;;  %v3538_v38 = vrot.slane %v3537_v56, 1  ;;  %v10706_v13 = vmax.f32 %v2581_v49, 0.0 }
 0x1d7   : > { %v2452_v43 = vmul.f32 %v10355_v4, %v2212_v22  ;;  %v14996_v34 = vrot.slane %v14993_v9, 1  ;;  %v3544_v14 = vmax.f32 %v3542_v19, %v3543_v52  ;;  %v3551_v40 = vmax.f32 %v3549_v24, %v3550_v3 }
 0x1d8   : > { %v3562_v55 = vrot.slane %v3561_v10, 4  ;;  %v3568_v31 = vsel %vm3140_vm11, %v2801_v63, -inf  ;;  %v3602_v17 = vmax.f32 %v3600_v26, %v3601_v53  ;;  %v3558_v30 = vmax.f32 %v3556_v20, %v3557_v39 }
 0x1d9   : > { %v1175_v50 = vsel %vm1137_vm7, %v14996_v34, %v14729_v45  ;;  %v3575_v49 = vsel %vm3140_vm11, %v2802_v60, -inf  ;;  %v2063_v22 = vadd.f32 %v1999_v18, %v14997_v37  ;;  %v3595_v61 = vmax.f32 %v3593_v16, %v3594_v41 }
 0x1da   : > { %v3609_v42 = vmax.f32 %v3607_v59, %v3608_v33  ;;  %v3582_v9 = vsel %vm3140_vm11, %v2803_v8, -inf  ;;  %v2646_v47 = vmax.f32 %v2582_v0, 0.0  ;;  %2236 = vperm.xlu2 %8839, %v1175_v50   ;;  %1963 = vperm.xlu1 %8838, %v10630_v54   ;;  %v10722_v34 = vmax.f32 %v3614_v62, %v3615_v25 }
 0x1db   : > { %v3569_v19 = vrot.slane %v3568_v31, 4  ;;  %v2807_v24 = vrot.slane %v10706_v13, 2  ;;  %v2516_v52 = vadd.f32 %v2452_v43, %v2063_v22  ;;  %v10725_v26 = vmax.f32 %v3537_v56, %v3538_v38 }
 0x1dc   : > { %v3545_v20 = vrot.slane %v3544_v14, 1  ;;  %v3563_v3 = vmax.f32 %v3561_v10, %v3562_v55  ;;  %v3576_v39 = vrot.slane %v3575_v49, 4  ;;  %v5252_v16 = vsel %vm5189_vm12, %v3602_v17, %v3595_v61  ;;  %v10743_v55 = vpop.permute.xlu1 %1938 }
 0x1dd   : > { %14998 = vst [vmem:[#allocation47_spill] sm:$0xff] %v10725_v26  ;;  %v3552_v37 = vrot.slane %v3551_v40, 1  ;;  %v3559_v59 = vrot.slane %v3558_v30, 1  ;;  %v3583_v41 = vrot.slane %v3582_v9, 4  ;;  %8851 = vrot.lane.b32.xlu0 %v8850_v1, %s9113_s18  ;;  %v3617_v50 = vsel %vm3140_vm11, %v10706_v13, -inf }
 0x1de   : > { %v2810_v62 = vrot.slane %v2646_v47, 2  ;;  %v2811_v63 = vrot.slane %v2646_v47, 4  ;;  %v2812_v53 = vrot.slane %v2646_v47, 6  ;;  %v3570_v60 = vmax.f32 %v3568_v31, %v3569_v19 }
 0x1df   : > { %v2808_v43 = vrot.slane %v10706_v13, 4  ;;  %v3624_v56 = vsel %vm3140_vm11, %v2807_v24, -inf  ;;  %v2584_v10 = vadd.f32 %v10334_v23, %v2516_v52  ;;  %v10735_v61 = vsel %vm5191_vm13, %v3609_v42, %v5252_v16  ;;  %v10751_v24 = vpop.permute.xlu2 %8841 }
 0x1e0   : > { %v10737_v18 = vmax.f32 %v3544_v14, %v3545_v20  ;;  %v3564_v33 = vrot.slane %v3563_v3, 2  ;;  %v3577_v1 = vmax.f32 %v3575_v49, %v3576_v39  ;;  %v10739_v25 = vmax.f32 %v3582_v9, %v3583_v41  ;;  %v8763_v39 = vld [vmem:[%s14659_s3 + $0x28] sm:$0xff] }
 0x1e1   : > { %v2809_v8 = vrot.slane %v10706_v13, 6  ;;  %v3618_v0 = vrot.slane %v3617_v50, 4  ;;  %v3645_v38 = vsel %vm3140_vm11, %v2646_v47, -inf  ;;  %v3625_v31 = vrot.slane %v3624_v56, 4  ;;  %6181 = vmatpush.bf16.msra.mxu0 %v8763_v39  ;;  %8810 = vmatpush.bf16.msra.mxu3 %v8763_v39 }
 0x1e2   : > { %14999 = vst [vmem:[#allocation34_spill] sm:$0xff] %v10737_v18  ;;  %v3652_v17 = vsel %vm3140_vm11, %v2810_v62, -inf  ;;  %v3659_v22 = vsel %vm3140_vm11, %v2811_v63, -inf  ;;  %v3666_v42 = vsel %vm3140_vm11, %v2812_v53, -inf  ;;  %v10748_v14 = vmax.f32 %v3551_v40, %v3552_v37  ;;  %8808 = vmatpush.bf16.msra.mxu1 %v8763_v39  ;;  %8809 = vmatpush.bf16.msra.mxu2 %v8763_v39 }
 0x1e3   : > { %15000 = vst [vmem:[#allocation31_spill] sm:$0xff] %v10739_v25  ;;  %v3571_v19 = vrot.slane %v3570_v60, 2  ;;  %v3631_v49 = vsel %vm3140_vm11, %v2808_v43, -inf  ;;  %v2648_v9 = vmax.f32 %v2584_v10, 0.0  ;;  %v10753_v13 = vmax.f32 %v3558_v30, %v3559_v59 }
 0x1e4   : > { %15001 = vst [vmem:[#allocation23_spill] sm:$0xff] %v10748_v14  ;;  %v3565_v47 = vmax.f32 %v3563_v3, %v3564_v33  ;;  %v3578_v52 = vrot.slane %v3577_v1, 2  ;;  %v3646_v20 = vrot.slane %v3645_v38, 4  ;;  %v3653_v16 = vrot.slane %v3652_v17, 4 }
 0x1e5   : > { %15002 = vst [vmem:[#allocation22_spill] sm:$0xff] %v10753_v13  ;;  %v3660_v41 = vrot.slane %v3659_v22, 4  ;;  %v3667_v62 = vrot.slane %v3666_v42, 4  ;;  %v3619_v63 = vmax.f32 %v3617_v50, %v3618_v0  ;;  %v3626_v53 = vmax.f32 %v3624_v56, %v3625_v31 }
 0x1e6   : > { %v3632_v40 = vrot.slane %v3631_v49, 4  ;;  %v3638_v37 = vsel %vm3140_vm11, %v2809_v8, -inf  ;;  %v10757_v45 = vmax.f32 %v3570_v60, %v3571_v19  ;;  %v2816_v43 = vrot.slane %v2648_v9, 2  ;;  %v10765_v8 = vpop.permute.xlu1 %2381 }
 0x1e7   : > { %v2817_v10 = vrot.slane %v2648_v9, 4  ;;  %v3701_v30 = vsel %vm3140_vm11, %v2648_v9, -inf  ;;  %v3566_v59 = vrot.slane %v3565_v47, 1  ;;  %v10760_v3 = vmax.f32 %v3577_v1, %v3578_v52  ;;  %v8762_v1 = vld [vmem:[%s14659_s3 + $0x20] sm:$0xff]  ;;  %v10789_v39 = vpop.permute.xlu2 %1549 }
 0x1e8   : > { %15003 = vst [vmem:[#allocation64_spill] sm:$0xff] %v10757_v45  ;;  %v3647_v33 = vmax.f32 %v3645_v38, %v3646_v20  ;;  %v2818_v13 = vrot.slane %v2648_v9, 6  ;;  %v3639_v50 = vrot.slane %v3638_v37, 4  ;;  %v3654_v56 = vmax.f32 %v3652_v17, %v3653_v16  ;;  %6182 = vmatpush.bf16.msra.mxu0 %v8762_v1  ;;  %8813 = vmatpush.bf16.msra.mxu3 %v8762_v1 }
 0x1e9   : > { %15004 = vst [vmem:[#allocation65_spill] sm:$0xff] %v10760_v3  ;;  %v3661_v0 = vmax.f32 %v3659_v22, %v3660_v41  ;;  %v3668_v31 = vmax.f32 %v3666_v42, %v3667_v62  ;;  %v3620_v60 = vrot.slane %v3619_v63, 2  ;;  %v3627_v19 = vrot.slane %v3626_v53, 2  ;;  %8811 = vmatpush.bf16.msra.mxu1 %v8762_v1  ;;  %8812 = vmatpush.bf16.msra.mxu2 %v8762_v1 }
 0x1ea   : > { %v3633_v14 = vmax.f32 %v3631_v49, %v3632_v40  ;;  %v3702_v18 = vrot.slane %v3701_v30, 4  ;;  %v3708_v38 = vsel %vm3140_vm11, %v2816_v43, -inf  ;;  %v3715_v9 = vsel %vm3140_vm11, %v2817_v10, -inf }
 0x1eb   : > { %v15005_v17 = vrot.slane %v10566_v32, 7  ;;  %v15006_v22 = vrot.slane %v10109_v5, 7  ;;  %v14735_v49 = vrot.slane %v10637_v6, 1  ;;  %v3648_v20 = vrot.slane %v3647_v33, 2 }
 0x1ec   : > { %v3722_v16 = vsel %vm3140_vm11, %v2818_v13, -inf  ;;  %v2453_v41 = vmul.f32 %v10355_v4, %v10664_v7  ;;  %v3655_v62 = vrot.slane %v3654_v56, 2  ;;  %v3662_v40 = vrot.slane %v3661_v0, 2 }
 0x1ed   : > { %v950_v42 = vsel %vm944_vm0, %v15006_v22, %v15005_v17  ;;  %v3669_v43 = vrot.slane %v3668_v31, 2  ;;  %v15007_v5 = vrot.slane %v10605_v58, 1  ;;  %v3640_v17 = vmax.f32 %v3638_v37, %v3639_v50 }
 0x1ee   : > { %1559 = vperm.xlu2 %8839, %v950_v42   ;;  %v3703_v22 = vmax.f32 %v3701_v30, %v3702_v18  ;;  %v3709_v52 = vrot.slane %v3708_v38, 4  ;;  %v3716_v13 = vrot.slane %v3715_v9, 4  ;;  %v3621_v7 = vmax.f32 %v3619_v63, %v3620_v60  ;;  %v8761_v63 = vld [vmem:[%s14659_s3 + $0x18] sm:$0xff] }
 0x1ef   : > { %v1141_v10 = vsel %vm1137_vm7, %v14735_v49, %v15007_v5  ;;  %v3628_v42 = vmax.f32 %v3626_v53, %v3627_v19  ;;  %v3634_v26 = vrot.slane %v3633_v14, 2  ;;  %v3723_v45 = vrot.slane %v3722_v16, 4  ;;  %v10796_v5 = vld [vmem:[%s14657_s1 + $0x1] ss:$0 sm:$0xff]  ;;  %6183 = vmatpush.bf16.msra.mxu0 %v8761_v63  ;;  %8816 = vmatpush.bf16.msra.mxu3 %v8761_v63 }
 0x1f0   : > { %2406 = vperm.xlu1 %8838, %v1141_v10   ;;  %v10791_v25 = vmax.f32 %v3565_v47, %v3566_v59  ;;  %v3649_v3 = vmax.f32 %v3647_v33, %v3648_v20  ;;  %v1998_v18 = vmul.f32 %v10796_v5, %v10611_v11  ;;  %v2517_v37 = vadd.f32 %v2453_v41, %v10661_v44  ;;  %v2207_v59 = vpop.permute.xlu0 %2206  ;;  %v10807_v41 = vpop.permute.xlu1 %1778 }
 0x1f1   : > { %v3656_v53 = vmax.f32 %v3654_v56, %v3655_v62  ;;  %v3663_v30 = vmax.f32 %v3661_v0, %v3662_v40  ;;  %v3670_v47 = vmax.f32 %v3668_v31, %v3669_v43  ;;  %v940_v33 = vrot.slane %v10605_v58, 7  ;;  %v8760_v56 = vld [vmem:[%s14659_s3 + $0x10] sm:$0xff]  ;;  %8814 = vmatpush.bf16.msra.mxu1 %v8761_v63  ;;  %v15009_v31 = vld [vmem:[#allocation30_spill] sm:$0xff]  ;;  %8815 = vmatpush.bf16.msra.mxu2 %v8761_v63 }
 0x1f2   : > { %15008 = vst [vmem:[#allocation66_spill] sm:$0xff] %v10791_v25  ;;  %v3641_v50 = vrot.slane %v3640_v17, 2  ;;  %v3704_v60 = vrot.slane %v3703_v22, 2  ;;  %v3710_v19 = vmax.f32 %v3708_v38, %v3709_v52  ;;  %v3717_v20 = vmax.f32 %v3715_v9, %v3716_v13 }
 0x1f3   : > { %v3622_v10 = vrot.slane %v3621_v7, 1  ;;  %v3629_v11 = vrot.slane %v3628_v42, 1  ;;  %v10805_v49 = vmax.f32 %v3633_v14, %v3634_v26  ;;  %v3724_v44 = vmax.f32 %v3722_v16, %v3723_v45  ;;  %6184 = vmatpush.bf16.msra.mxu0 %v8760_v56  ;;  %8819 = vmatpush.bf16.msra.mxu3 %v8760_v56 }
 0x1f4   : > { %v3650_v0 = vrot.slane %v3649_v3, 1  ;;  %v2062_v1 = vadd.f32 %v1998_v18, %v15009_v31  ;;  %v2585_v38 = vadd.f32 %v10334_v23, %v2517_v37  ;;  %v2451_v9 = vmul.f32 %v10355_v4, %v2207_v59  ;;  %v10825_v4 = vld [vmem:[%s9196_s27 + $0xe8] sm:$0xff]  ;;  %v10833_v59 = vpop.permute.xlu2 %1529  ;;  %v15038_v37 = vld [vmem:[#allocation10_spill] sm:$0xff] }
 0x1f5   : > { %v3657_v45 = vrot.slane %v3656_v53, 1  ;;  %v3664_v26 = vrot.slane %v3663_v30, 1  ;;  %v3671_v14 = vrot.slane %v3670_v47, 1  ;;  %v15010_v52 = vrot.slane %v10637_v6, 7  ;;  %8817 = vmatpush.bf16.msra.mxu1 %v8760_v56  ;;  %8818 = vmatpush.bf16.msra.mxu2 %v8760_v56 }
 0x1f6   : > { %1958 = vperm.xlu2 %8839, %v10605_v58   ;;  %v10822_v62 = vmax.f32 %v3640_v17, %v3641_v50  ;;  %v3705_v40 = vmax.f32 %v3703_v22, %v3704_v60  ;;  %v3711_v43 = vrot.slane %v3710_v19, 2  ;;  %v3718_v23 = vrot.slane %v3717_v20, 2 }
 0x1f7   : > { %v948_v16 = vsel %vm944_vm0, %v15010_v52, %v940_v33  ;;  %v10828_v13 = vmax.f32 %v3621_v7, %v3622_v10  ;;  %v10830_v18 = vmax.f32 %v3628_v42, %v3629_v11  ;;  %v3725_v63 = vrot.slane %v3724_v44, 2 }
 0x1f8   : > { %1569 = vperm.xlu0 %8837, %v948_v16   ;;  %1803 = vperm.xlu1 %8838, %v10825_v4   ;;  %v10835_v17 = vmax.f32 %v3649_v3, %v3650_v0  ;;  %v10837_v22 = vmax.f32 %v2585_v38, 0.0  ;;  %v2515_v50 = vadd.f32 %v2451_v9, %v2062_v1  ;;  %v5415_v60 = vsel %vm5193_vm14, %v10591_v12, %v10594_v57  ;;  %v10892_v52 = vpop.permute.xlu0 %8846 }
 0x1f9   : > { %15011 = vst [vmem:[#allocation30_spill] sm:$0xff] %v10830_v18  ;;  %v10842_v7 = vmax.f32 %v3656_v53, %v3657_v45  ;;  %v10844_v42 = vmax.f32 %v3663_v30, %v3664_v26  ;;  %v10846_v10 = vmax.f32 %v3670_v47, %v3671_v14  ;;  %v5416_v11 = vsel %vm5195_vm15, %v10658_v28, %v5415_v60  ;;  %v10887_v26 = vpop.permute.xlu1 %1554  ;;  %v8759_v14 = vld [vmem:[%s14659_s3 + $0x8] sm:$0xff] }
 0x1fa   : > { %v3706_v3 = vrot.slane %v3705_v40, 1  ;;  %v10850_v0 = vmax.f32 %v3710_v19, %v3711_v43  ;;  %v10852_v31 = vmax.f32 %v3717_v20, %v3718_v23  ;;  %v5417_v1 = vsel %vm5197_vm1, %v10666_v29, %v5416_v11  ;;  %v15019_v23 = vld [vmem:[#allocation19_spill] sm:$0xff]  ;;  %6185 = vmatpush.bf16.msra.mxu0 %v8759_v14  ;;  %8822 = vmatpush.bf16.msra.mxu3 %v8759_v14 }
 0x1fb   : > { %15012 = vst [vmem:[#allocation67_spill] sm:$0xff] %v10844_v42  ;;  %v10856_v12 = vmax.f32 %v3724_v44, %v3725_v63  ;;  %v15014_v57 = vrot.slane %v10607_v46, 1  ;;  %v5418_v30 = vsel %vm5199_vm2, %v10668_v15, %v5417_v1  ;;  %v15015_v47 = vrot.slane %v10637_v6, 1  ;;  %v10877_v15 = vld [vmem:[%s14658_s2] ss:$0 sm:$0xff]  ;;  %v15020_v63 = vld [vmem:[#allocation27_spill] sm:$0xff]  ;;  %8820 = vmatpush.bf16.msra.mxu1 %v8759_v14  ;;  %8821 = vmatpush.bf16.msra.mxu2 %v8759_v14 }
 0x1fc   : > { %15013 = vst [vmem:[#allocation68_spill] sm:$0xff] %v10846_v10  ;;  %v15016_v28 = vrot.slane %v10566_v32, 1  ;;  %v2819_v20 = vrot.slane %v10837_v22, 2  ;;  %v2820_v29 = vrot.slane %v10837_v22, 4  ;;  %v2821_v44 = vrot.slane %v10837_v22, 6 }
 0x1fd   : > { %v4932_v53 = vmax.f32 %v10607_v46, %v15014_v57  ;;  %v3461_v46 = vrot.slane %v10587_v27, 1  ;;  %v2583_v32 = vadd.f32 %v10877_v15, %v2515_v50  ;;  %v15018_v38 = vrot.slane %v10563_v35, 2  ;;  %v15021_v57 = vld [vmem:[#allocation6_spill] sm:$0xff] }
 0x1fe   : > { %v1142_v19 = vsel %vm1137_vm7, %v15016_v28, %v15015_v47  ;;  %1788 = vperm.xlu2 %8839, %v10699_v51   ;;  %v3473_v45 = vrot.slane %v10572_v48, 2  ;;  %v2035_v16 = vmul.f32 %v10796_v5, %v10743_v55  ;;  %v1646_v50 = vmul.f32 %v15020_v63, %v10789_v39 }
 0x1ff   : > { %v10881_v56 = vsel %vm5201_vm3, %v4932_v53, %v5418_v30  ;;  %v3467_v9 = vmax.f32 %v10563_v35, %v15018_v38  ;;  %v3462_v43 = vmax.f32 %v10587_v27, %v3461_v46  ;;  %v5231_v35 = vsel %vm5189_vm12, %v15019_v23, %v10379_v21  ;;  %v8758_v27 = vld [vmem:[%s14659_s3] sm:$0xff]  ;;  %v15022_v30 = vld [vmem:[#allocation56_spill] sm:$0xff]  ;;  %v15024_v38 = vld [vmem:[#allocation9_spill] sm:$0xff] }
 0x200   : > { %15017 = vst [vmem:[#allocation69_spill] sm:$0xff] %v10881_v56  ;;  %2401 = vperm.xlu0 %8837, %v1142_v19   ;;  %v672_v60 = vand.u32 31, %v9191_v2  ;;  %v3474_v1 = vmax.f32 %v10572_v48, %v3473_v45  ;;  %v5232_v53 = vsel %vm5191_vm13, %v15021_v57, %v5231_v35  ;;  %v10909_v55 = vmax.f32 %v3705_v40, %v3706_v3  ;;  %v15023_v19 = vld [vmem:[#allocation20_spill] sm:$0xff]  ;;  %v2392_v3 = vpop.permute.xlu2 %2391  ;;  %v15028_v57 = vld [vmem:[#allocation51_spill] sm:$0xff] }
 0x201   : > { %v3468_v11 = vrot.slane %v3467_v9, 1  ;;  %v14736_v21 = vrot.slane %v10881_v56, 7  ;;  %v5233_v39 = vsel %vm5193_vm14, %v15022_v30, %v5232_v53  ;;  %v2099_v47 = vadd.f32 %v2035_v16, %v1646_v50  ;;  %6186 = vmatpush.bf16.msra.mxu0 %v8758_v27  ;;  %8825 = vmatpush.bf16.msra.mxu3 %v8758_v27 }
 0x202   : > { %v3475_v28 = vrot.slane %v3474_v1, 1  ;;  %v5234_v46 = vsel %vm5195_vm15, %v15023_v19, %v5233_v39  ;;  %v15025_v45 = vrot.slane %v15024_v38, 7  ;;  %v3729_v23 = vsel %vm3140_vm11, %v10837_v22, -inf  ;;  %8823 = vmatpush.bf16.msra.mxu1 %v8758_v27  ;;  %8824 = vmatpush.bf16.msra.mxu2 %v8758_v27  ;;  %v15031_v38 = vld [vmem:[#allocation62_spill] sm:$0xff] }
 0x203   : > { %v3469_v48 = vmax.f32 %v3467_v9, %v3468_v11  ;;  %v10925_v16 = vsel %vm3140_vm11, %v2819_v20, -inf  ;;  %v10927_v9 = vmax.f32 %v2583_v32, 0.0  ;;  %v5235_v14 = vsel %vm5197_vm1, %v3462_v43, %v5234_v46  ;;  %v10944_v43 = vld [vmem:[%s9196_s27 + $0xd8] sm:$0xff] }
 0x204   : > { %v947_v40 = vsel %vm944_vm0, %v940_v33, %v15025_v45  ;;  %vm10930_vm9 = vcmp.eq.s32.totalorder %v672_v60, 0  ;;  %v8844_v58 = vunpack.i.h.bf16 %v10751_v24  ;;  %v3476_v50 = vmax.f32 %v3474_v1, %v3475_v28  ;;  %v10950_v1 = vld [vmem:[%s14657_s1 + $0x2] ss:$0 sm:$0xff]  ;;  %v1929_v28 = vpop.permute.xlu0 %1928 }
 0x205   : > { %v5236_v33 = vsel %vm5199_vm2, %v3469_v48, %v5235_v14  ;;  %v8843_v11 = vunpack.i.l.bf16 %v10751_v24  ;;  %v15029_v20 = vrot.slane %v15028_v57, 7  ;;  %v14737_v60 = vrot.slane %v10944_v43, 1  ;;  %v10959_v48 = vpop.permute.xlu1 %1534 }
 0x206   : > { %1574 = vperm.xlu2 %8839, %v947_v40   ;;  %v2488_v24 = vmul.f32 %v10950_v1, %v2392_v3  ;;  %v3730_v53 = vrot.slane %v3729_v23, 4  ;;  %v10954_v30 = vsel %vm3140_vm11, %v2820_v29, -inf  ;;  %v10957_v39 = vsel %vm5201_vm3, %v3476_v50, %v5236_v33  ;;  %v10967_v40 = vld [vmem:[%s9196_s27 + $0xe0] sm:$0xff] }
 0x207   : > { %v5515_v32 = vsel %vm944_vm0, %v14736_v21, %v15029_v20  ;;  %15030 = vst [vmem:[#allocation19_spill] sm:$0xff] %v10957_v39  ;;  %v2813_v19 = vrot.slane %v10927_v9, 2  ;;  %v1644_v46 = vmul.f32 %v15020_v63, %v10715_v36  ;;  %v8860_v45 = vpack.i.bf16 %v10957_v39, %v15031_v38  ;;  %v15032_v36 = vld [vmem:[#allocation21_spill] sm:$0xff] }
 0x208   : > { %1798 = vperm.xlu0 %8837, %v10967_v40   ;;  %v2552_v29 = vadd.f32 %v2488_v24, %v2099_v47  ;;  %v2814_v3 = vrot.slane %v10927_v9, 4  ;;  %v5580_v14 = vsel %vm10930_vm9, 0.0, %v5515_v32  ;;  %v8849_v27 = vunpack.i.h.bf16 %v10892_v52 }
 0x209   : > { %v8848_v50 = vunpack.i.l.bf16 %v10892_v52  ;;  %v5997_v33 = vsel %vm5996_vm10, %v5580_v14, %v8843_v11  ;;  %v5998_v63 = vsel %vm5996_vm10, %v15032_v36, %v8844_v58  ;;  %8861 = vrot.lane.b32.xlu1 %v8860_v45, %s9113_s18  ;;  %v15033_v47 = vrot.slane %v10699_v51, 1 }
 0x20a   : > { %vm6029_vm4 = vcmask 523264   ;;  %vm6130_vm5 = vcmask 785408   ;;  %v2033_v52 = vmul.f32 %v10796_v5, %v1929_v28  ;;  %v3737_v11 = vrot.slane %v10925_v16, 4 }
 0x20b   : > { %v1174_v20 = vsel %vm1137_vm7, %v15033_v47, %v14737_v60  ;;  %v6030_v35 = vsel %vm6029_vm4, %v5997_v33, %v8848_v50  ;;  %v6031_v32 = vsel %vm6029_vm4, %v5998_v63, %v8849_v27  ;;  %v3750_v58 = vsel %vm3140_vm11, %v2821_v44, -inf }
 0x20c   : > { %v2003_v51 = vmul.f32 %v10796_v5, %v10807_v41  ;;  %v6062_v24 = vpack.c.bf16 %v6031_v32, %v6030_v35  ;;  %v3713_v45 = vrot.slane %v10850_v0, 1  ;;  %v3673_v14 = vsel %vm3140_vm11, %v10927_v9, -inf  ;;  %v15034_v32 = vld [vmem:[#allocation37_spill] sm:$0xff] }
 0x20d   : > { %v2486_v27 = vmul.f32 %v10950_v1, %v10765_v8  ;;  %v2097_v50 = vadd.f32 %v2033_v52, %v1644_v46  ;;  %v3744_v28 = vrot.slane %v10954_v30, 4  ;;  %v3680_v22 = vsel %vm3140_vm11, %v2813_v19, -inf  ;;  %v11005_v8 = vpop.permute.xlu2 %2371  ;;  %v2232_v47 = vpop.permute.xlu1 %2231 }
 0x20e   : > { %v3687_v44 = vsel %vm3140_vm11, %v2814_v3, -inf  ;;  %2241 = vperm.xlu2 %8839, %v1174_v20   ;;  %v2620_v41 = vadd.f32 %v10877_v15, %v2552_v29  ;;  %8556 = vmatmul.msk.bf16.vlgmr.msra.gmra.mxu0 %vm6130_vm5, %v6062_v24  ;;  %v3731_v33 = vmax.f32 %v3729_v23, %v3730_v53  ;;  %v3751_v36 = vrot.slane %v3750_v58, 4  ;;  %v11013_v29 = vld [vmem:[%s9196_s27 + $0x188] sm:$0xff]  ;;  %v11016_v20 = vld [vmem:[%s9196_s27 + $0x190] sm:$0xff] }
 0x20f   : > { %v2815_v63 = vrot.slane %v10927_v9, 6  ;;  %v11007_v46 = vadd.f32 %v2486_v27, %v2097_v50  ;;  %v3738_v19 = vmax.f32 %v10925_v16, %v3737_v11  ;;  %v3674_v35 = vrot.slane %v3673_v14, 4  ;;  %15035 = vst [vmem:[#allocation27_spill] sm:$0xff] %v11013_v29  ;;  %v1919_v9 = vpop.permute.xlu0 %1918  ;;  %v11022_v50 = vld [vmem:[%s9196_s27 + $0x100] sm:$0xff] }
 0x210   : > { %v2067_v3 = vadd.f32 %v2003_v51, %v15034_v32  ;;  %1953 = vperm.xlu0 %8837, %v10637_v6   ;;  %15036 = vst [vmem:[#allocation6_spill] sm:$0xff] %v11016_v20  ;;  %v2456_v23 = vmul.f32 %v10950_v1, %v2232_v47  ;;  %v3681_v53 = vrot.slane %v3680_v22, 4  ;;  %v3688_v52 = vrot.slane %v3687_v44, 4  ;;  %v11028_v6 = vld [vmem:[%s14657_s1] ss:$0 sm:$0xff] }
 0x211   : > { %v1101_v24 = vrot.slane %v10967_v40, 1  ;;  %1818 = vperm.xlu1 %8838, %v11022_v50   ;;  %15037 = vst [vmem:[#allocation56_spill] sm:$0xff] %v11028_v6  ;;  %v1642_v16 = vmul.f32 %v11028_v6, %v10833_v59  ;;  %v2684_v11 = vmax.f32 %v2620_v41, 0.0  ;;  %v2031_v47 = vmul.f32 %v10796_v5, %v1919_v9 }
 0x212   : > { %v11032_v51 = vadd.f32 %v2456_v23, %v2067_v3  ;;  %v3694_v40 = vsel %vm3140_vm11, %v2815_v63, -inf  ;;  %v15039_v60 = vrot.slane %v15038_v37, 1  ;;  %v15040_v27 = vrot.slane %v10630_v54, 1 }
 0x213   : > { %v3732_v56 = vrot.slane %v3731_v33, 2  ;;  %v3745_v59 = vmax.f32 %v10954_v30, %v3744_v28  ;;  %v3752_v41 = vmax.f32 %v3750_v58, %v3751_v36  ;;  %v11045_v3 = vadd.f32 %v2031_v47, %v1642_v16 }
 0x214   : > { %v1139_v57 = vsel %vm1137_vm7, %v15040_v27, %v15039_v60  ;;  %v3714_v23 = vmax.f32 %v10850_v0, %v3713_v45  ;;  %v3720_v63 = vrot.slane %v10852_v31, 1  ;;  %v3675_v9 = vmax.f32 %v3673_v14, %v3674_v35 }
 0x215   : > { %v15041_v32 = vrot.slane %v10825_v4, 1  ;;  %v3682_v54 = vmax.f32 %v3680_v22, %v3681_v53  ;;  %v3695_v21 = vrot.slane %v3694_v40, 4  ;;  %v2924_v25 = vrot.slane %v2684_v11, 2 }
 0x216   : > { %v2925_v60 = vrot.slane %v2684_v11, 4  ;;  %2416 = vperm.xlu2 %8839, %v1139_v57   ;;  %v3739_v27 = vrot.slane %v3738_v19, 2  ;;  %v3689_v30 = vmax.f32 %v3687_v44, %v3688_v52  ;;  %v15042_v58 = vrot.slane %v11016_v20, 7  ;;  %v11064_v52 = vpop.permute.xlu2 %1933 }
 0x217   : > { %v1172_v37 = vsel %vm1137_vm7, %v1101_v24, %v15041_v32  ;;  %v15043_v28 = vrot.slane %v11013_v29, 7  ;;  %v2926_v45 = vrot.slane %v2684_v11, 6  ;;  %v3727_v14 = vrot.slane %v10856_v12, 1 }
 0x218   : > { %v3733_v36 = vmax.f32 %v3731_v33, %v3732_v56  ;;  %v3746_v35 = vrot.slane %v3745_v59, 2  ;;  %v3753_v16 = vrot.slane %v3752_v41, 2  ;;  %2251 = vperm.xlu0 %8837, %v1172_v37   ;;  %v3721_v22 = vmax.f32 %v10852_v31, %v3720_v63 }
 0x219   : > { %v958_v0 = vsel %vm944_vm0, %v15043_v28, %v15042_v58  ;;  %v5266_v57 = vsel %vm5189_vm12, %v3714_v23, %v10909_v55  ;;  %v3676_v44 = vrot.slane %v3675_v9, 2  ;;  %v4709_v53 = vsel %vm3140_vm11, %v2684_v11, -inf }
 0x21a   : > { %v3683_v47 = vrot.slane %v3682_v54, 2  ;;  %v3696_v32 = vmax.f32 %v3694_v40, %v3695_v21  ;;  %1519 = vperm.xlu1 %8838, %v958_v0   ;;  %v4716_v58 = vsel %vm3140_vm11, %v2924_v25, -inf  ;;  %v4723_v56 = vsel %vm3140_vm11, %v2925_v60, -inf }
 0x21b   : > { %v3740_v33 = vmax.f32 %v3738_v19, %v3739_v27  ;;  %v3690_v28 = vrot.slane %v3689_v30, 2  ;;  %v4730_v37 = vsel %vm3140_vm11, %v2926_v45, -inf  ;;  %v15044_v31 = vrot.slane %v10944_v43, 1 }
 0x21c   : > { %v3734_v23 = vrot.slane %v3733_v36, 1  ;;  %v3747_v11 = vmax.f32 %v3745_v59, %v3746_v35  ;;  %v11073_v63 = vmax.f32 %v3752_v41, %v3753_v16  ;;  %v4710_v29 = vrot.slane %v4709_v53, 4 }
 0x21d   : > { %v1173_v55 = vsel %vm1137_vm7, %v15044_v31, %v1101_v24  ;;  %v11078_v25 = vsel %vm5189_vm12, %v10842_v7, %v10835_v17  ;;  %v3677_v21 = vmax.f32 %v3675_v9, %v3676_v44  ;;  %v4717_v19 = vrot.slane %v4716_v58, 4  ;;  %v11093_v44 = vld [vmem:[%s9196_s27 + $0xf0] sm:$0xff] }
 0x21e   : > { %15045 = vst [vmem:[#allocation20_spill] sm:$0xff] %v11073_v63  ;;  %v4724_v40 = vrot.slane %v4723_v56, 4  ;;  %v11081_v60 = vmax.f32 %v10856_v12, %v3727_v14  ;;  %v3684_v27 = vmax.f32 %v3682_v54, %v3683_v47  ;;  %v3697_v0 = vrot.slane %v3696_v32, 2  ;;  %2246 = vperm.xlu2 %8839, %v1173_v55   ;;  %v15064_v63 = vld [vmem:[#allocation54_spill] sm:$0xff] }
 0x21f   : > { %v4731_v24 = vrot.slane %v4730_v37, 4  ;;  %v11084_v59 = vsel %vm5191_vm13, %v3721_v22, %v5266_v57  ;;  %v3741_v41 = vrot.slane %v3740_v33, 1  ;;  %v3691_v45 = vmax.f32 %v3689_v30, %v3690_v28 }
 0x220   : > { %15046 = vst [vmem:[#allocation9_spill] sm:$0xff] %v11081_v60  ;;  %v2618_v17 = vadd.f32 %v10877_v15, %v11007_v46  ;;  %v11088_v7 = vmax.f32 %v3733_v36, %v3734_v23  ;;  %v3748_v9 = vrot.slane %v3747_v11, 1  ;;  %v4711_v12 = vmax.f32 %v4709_v53, %v4710_v29  ;;  %1793 = vperm.xlu0 %8837, %v10944_v43   ;;  %v11103_v53 = vld [vmem:[%s9196_s27 + $0x198] sm:$0xff] }
 0x221   : > { %15047 = vst [vmem:[#allocation21_spill] sm:$0xff] %v11084_v59  ;;  %v3678_v54 = vrot.slane %v3677_v21, 1  ;;  %v4718_v14 = vmax.f32 %v4716_v58, %v4717_v19  ;;  %v4725_v16 = vmax.f32 %v4723_v56, %v4724_v40  ;;  %v14742_v22 = vrot.slane %v11093_v44, 1  ;;  %v11106_v56 = vpop.permute.xlu2 %1923 }
 0x222   : > { %15048 = vst [vmem:[#allocation37_spill] sm:$0xff] %v11088_v7  ;;  %v3685_v30 = vrot.slane %v3684_v27, 1  ;;  %v11096_v57 = vmax.f32 %v3696_v32, %v3697_v0  ;;  %v4732_v46 = vmax.f32 %v4730_v37, %v4731_v24  ;;  %1908 = vperm.xlu1 %8838, %v11016_v20   ;;  %v2484_v36 = vmul.f32 %v10950_v1, %v11005_v8  ;;  %v15075_v7 = vld [vmem:[#allocation36_spill] sm:$0xff] }
 0x223   : > { %v3692_v47 = vrot.slane %v3691_v45, 1  ;;  %v2682_v29 = vmax.f32 %v2618_v17, 0.0  ;;  %v14741_v43 = vrot.slane %v11016_v20, 1  ;;  %v1124_v58 = vrot.slane %v11103_v53, 1  ;;  %v15057_v17 = vld [vmem:[#allocation57_spill] sm:$0xff] }
 0x224   : > { %15049 = vst [vmem:[#allocation10_spill] sm:$0xff] %v11096_v57  ;;  %v11108_v28 = vmax.f32 %v3740_v33, %v3741_v41  ;;  %v4712_v32 = vrot.slane %v4711_v12, 2  ;;  %v2588_v37 = vadd.f32 %v10877_v15, %v11032_v51  ;;  %v2548_v31 = vadd.f32 %v2484_v36, %v11045_v3 }
 0x225   : > { %v11113_v55 = vmax.f32 %v3747_v11, %v3748_v9  ;;  %v4719_v8 = vrot.slane %v4718_v14, 2  ;;  %v4726_v23 = vrot.slane %v4725_v16, 2  ;;  %v15052_v19 = vrot.slane %v10825_v4, 1  ;;  %v15056_v4 = vld [vmem:[#allocation28_spill] sm:$0xff] }
 0x226   : > { %15050 = vst [vmem:[#allocation70_spill] sm:$0xff] %v11108_v28  ;;  %v11121_v0 = vmax.f32 %v3677_v21, %v3678_v54  ;;  %v11123_v33 = vmax.f32 %v3684_v27, %v3685_v30  ;;  %v4733_v51 = vrot.slane %v4732_v46, 2  ;;  %v11126_v41 = vmax.f32 %v3691_v45, %v3692_v47 }
 0x227   : > { %15051 = vst [vmem:[#allocation71_spill] sm:$0xff] %v11113_v55  ;;  %v1171_v40 = vsel %vm1137_vm7, %v15052_v19, %v14742_v22  ;;  %v4653_v3 = vsel %vm3140_vm11, %v2682_v29, -inf  ;;  %v1150_v11 = vsel %vm1137_vm7, %v14741_v43, %v1124_v58  ;;  %v5239_v9 = vsel %vm5191_vm13, %v15057_v17, %v15056_v4  ;;  %v15058_v22 = vld [vmem:[#allocation58_spill] sm:$0xff]  ;;  %v15063_v55 = vld [vmem:[#allocation4_spill] sm:$0xff] }
 0x228   : > { %15053 = vst [vmem:[#allocation72_spill] sm:$0xff] %v11121_v0  ;;  %v4713_v21 = vmax.f32 %v4711_v12, %v4712_v32  ;;  %v11138_v27 = vmul.f32 %v11028_v6, %v10887_v26  ;;  %v2918_v54 = vrot.slane %v2682_v29, 2  ;;  %v2652_v30 = vmax.f32 %v2588_v37, 0.0  ;;  %2256 = vperm.xlu0 %8837, %v1171_v40   ;;  %v1774_v12 = vpop.permute.xlu1 %1773  ;;  %v15059_v26 = vld [vmem:[#allocation61_spill] sm:$0xff]  ;;  %v15061_v40 = vld [vmem:[#allocation63_spill] sm:$0xff] }
 0x229   : > { %15054 = vst [vmem:[#allocation73_spill] sm:$0xff] %v11123_v33  ;;  %v4720_v45 = vmax.f32 %v4718_v14, %v4719_v8  ;;  %v4727_v36 = vmax.f32 %v4725_v16, %v4726_v23  ;;  %v2919_v47 = vrot.slane %v2682_v29, 4  ;;  %v2920_v19 = vrot.slane %v2682_v29, 6  ;;  %v15062_v16 = vld [vmem:[#allocation25_spill] sm:$0xff]  ;;  %v11150_v8 = vpop.permute.xlu0 %1768 }
 0x22a   : > { %15055 = vst [vmem:[#allocation74_spill] sm:$0xff] %v11126_v41  ;;  %v4734_v24 = vmax.f32 %v4732_v46, %v4733_v51  ;;  %v4654_v43 = vrot.slane %v4653_v3, 4  ;;  %2361 = vperm.xlu1 %8838, %v1150_v11   ;;  %v5240_v4 = vsel %vm5193_vm14, %v15058_v22, %v5239_v9  ;;  %v5617_v32 = vrot.slane %v10957_v39, 1 }
 0x22b   : > { %v15060_v17 = vrot.slane %v15059_v26, 1  ;;  %v3531_v14 = vrot.slane %v15061_v40, 1  ;;  %v5241_v29 = vsel %vm5195_vm15, %v15062_v16, %v5240_v4  ;;  %v4714_v46 = vrot.slane %v4713_v21, 1 }
 0x22c   : > { %v4660_v23 = vsel %vm3140_vm11, %v2918_v54, -inf  ;;  %v11155_v22 = vmul.f32 %v10796_v5, %v11064_v52  ;;  %v2828_v51 = vrot.slane %v2652_v30, 2  ;;  %v4721_v11 = vrot.slane %v4720_v45, 1 }
 0x22d   : > { %v3525_v37 = vmax.f32 %v15059_v26, %v15060_v17  ;;  %v4728_v9 = vrot.slane %v4727_v36, 1  ;;  %v4667_v35 = vsel %vm3140_vm11, %v2919_v47, -inf  ;;  %v4674_v26 = vsel %vm3140_vm11, %v2920_v19, -inf  ;;  %v11159_v17 = vpop.permute.xlu2 %2386 }
 0x22e   : > { %v4735_v39 = vrot.slane %v4734_v24, 1  ;;  %v4655_v4 = vmax.f32 %v4653_v3, %v4654_v43  ;;  %v2829_v16 = vrot.slane %v2652_v30, 4  ;;  %v5242_v41 = vsel %vm5197_vm1, %v15063_v55, %v5241_v29 }
 0x22f   : > { %v3813_v54 = vsel %vm3140_vm11, %v2652_v30, -inf  ;;  %v3532_v52 = vmax.f32 %v15061_v40, %v3531_v14  ;;  %v5243_v33 = vsel %vm5199_vm2, %v3525_v37, %v5242_v41  ;;  %v15065_v57 = vrot.slane %v15064_v63, 1 }
 0x230   : > { %v4661_v19 = vrot.slane %v4660_v23, 4  ;;  %v4668_v28 = vrot.slane %v4667_v35, 4  ;;  %v4675_v0 = vrot.slane %v4674_v26, 4  ;;  %v3820_v43 = vsel %vm3140_vm11, %v2828_v51, -inf  ;;  %1808 = vperm.xlu0 %8837, %v11093_v44  }
 0x231   : > { %v1149_v47 = vsel %vm1137_vm7, %v1124_v58, %v15065_v57  ;;  %v4722_v3 = vmax.f32 %v4720_v45, %v4721_v11  ;;  %v2830_v55 = vrot.slane %v2652_v30, 6  ;;  %v2616_v29 = vadd.f32 %v10877_v15, %v2548_v31 }
 0x232   : > { %v11174_v40 = vsel %vm5201_vm3, %v3532_v52, %v5243_v33  ;;  %v3814_v41 = vrot.slane %v3813_v54, 4  ;;  %v3827_v63 = vsel %vm3140_vm11, %v2829_v16, -inf  ;;  %v15067_v57 = vrot.slane %v15031_v38, 1  ;;  %2366 = vperm.xlu1 %8838, %v1149_v47   ;;  %v2227_v52 = vpop.permute.xlu1 %2226 }
 0x233   : > { %15066 = vst [vmem:[#allocation28_spill] sm:$0xff] %v11174_v40  ;;  %v14750_v37 = vrot.slane %v11174_v40, 1  ;;  %v4715_v14 = vmax.f32 %v4713_v21, %v4714_v46  ;;  %v4729_v51 = vmax.f32 %v4727_v36, %v4728_v9  ;;  %v3821_v45 = vrot.slane %v3820_v43, 4  ;;  %v1545_v36 = vpop.permute.xlu0 %1544  ;;  %v15068_v9 = vld [vmem:[#allocation24_spill] sm:$0xff] }
 0x234   : > { %v5670_v58 = vsel %vm1137_vm7, %v15067_v57, %v5617_v32  ;;  %v2002_v30 = vmul.f32 %v10796_v5, %v1774_v12  ;;  %v4736_v31 = vmax.f32 %v4734_v24, %v4735_v39  ;;  %v4656_v11 = vrot.slane %v4655_v4, 2 }
 0x235   : > { %v4662_v33 = vmax.f32 %v4660_v23, %v4661_v19  ;;  %v5669_v16 = vsel %vm1137_vm7, %v5617_v32, %v14750_v37  ;;  %v3828_v10 = vrot.slane %v3827_v63, 4  ;;  %v3834_v38 = vsel %vm3140_vm11, %v2830_v55, -inf  ;;  %v1784_v55 = vpop.permute.xlu2 %1783  ;;  %v11194_v37 = vld [vmem:[%s9196_s27 + $0xf8] sm:$0xff] }
 0x236   : > { %v2680_v57 = vmax.f32 %v2616_v29, 0.0  ;;  %v8865_v21 = vpack.i.bf16 %v5669_v16, %v5670_v58  ;;  %v5392_v46 = vsel %vm5189_vm12, %v4722_v3, %v4715_v14  ;;  %v4669_v12 = vmax.f32 %v4667_v35, %v4668_v28  ;;  %v11198_v3 = vld [vmem:[%s9196_s27 + $0x108] sm:$0xff] }
 0x237   : > { %v4676_v39 = vmax.f32 %v4674_v26, %v4675_v0  ;;  %v3815_v24 = vmax.f32 %v3813_v54, %v3814_v41  ;;  %v3822_v23 = vmax.f32 %v3820_v43, %v3821_v45  ;;  %v2066_v47 = vadd.f32 %v2002_v30, %v15068_v9  ;;  %v11206_v45 = vld [vmem:[%s9196_s27 + $0x110] sm:$0xff] }
 0x238   : > { %8866 = vrot.lane.b32.xlu2 %v8865_v21, %s9114_s19  ;;  %v2455_v32 = vmul.f32 %v10950_v1, %v2227_v52  ;;  %v14752_v19 = vrot.slane %v11022_v50, 1  ;;  %v3835_v29 = vrot.slane %v3834_v38, 4  ;;  %v14753_v58 = vrot.slane %v11194_v37, 1 }
 0x239   : > { %v14751_v35 = vrot.slane %v11198_v3, 1  ;;  %v1645_v28 = vmul.f32 %v11028_v6, %v1545_v36  ;;  %v5393_v0 = vsel %vm5191_vm13, %v4729_v51, %v5392_v46  ;;  %v3829_v26 = vmax.f32 %v3827_v63, %v3828_v10  ;;  %v11219_v51 = vld [vmem:[%s9196_s27 + $0x120] sm:$0xff] }
 0x23a   : > { %v2912_v54 = vrot.slane %v2680_v57, 2  ;;  %v11203_v43 = vadd.f32 %v2455_v32, %v2066_v47  ;;  %v4657_v41 = vmax.f32 %v4655_v4, %v4656_v11  ;;  %v4663_v14 = vrot.slane %v4662_v33, 2  ;;  %1828 = vperm.xlu1 %8838, %v11206_v45   ;;  %15069 = vst [vmem:[#allocation57_spill] sm:$0xff] %v11219_v51  ;;  %v11223_v11 = vld [vmem:[%s9196_s27 + $0x128] sm:$0xff] }
 0x23b   : > { %v1168_v30 = vsel %vm1137_vm7, %v14752_v19, %v14751_v35  ;;  %v11216_v16 = vadd.f32 %v11155_v22, %v1645_v28  ;;  %v3823_v10 = vrot.slane %v3822_v23, 2  ;;  %v2913_v63 = vrot.slane %v2680_v57, 4  ;;  %15070 = vst [vmem:[#allocation58_spill] sm:$0xff] %v11223_v11 }
 0x23c   : > { %2271 = vperm.xlu0 %8837, %v1168_v30   ;;  %v1109_v4 = vrot.slane %v11219_v51, 1  ;;  %v3816_v21 = vrot.slane %v3815_v24, 2  ;;  %v3836_v36 = vmax.f32 %v3834_v38, %v3835_v29  ;;  %v2914_v46 = vrot.slane %v2680_v57, 6  ;;  %v11248_v51 = vpop.permute.xlu0 %1943 }
 0x23d   : > { %v15071_v9 = vrot.slane %v11093_v44, 1  ;;  %v4670_v47 = vrot.slane %v4669_v12, 2  ;;  %v4677_v32 = vrot.slane %v4676_v39, 2  ;;  %v3830_v28 = vrot.slane %v3829_v26, 2 }
 0x23e   : > { %v4604_v30 = vsel %vm3140_vm11, %v2912_v54, -inf  ;;  %v11235_v35 = vmul.f32 %v11028_v6, %v10959_v48  ;;  %v4658_v19 = vrot.slane %v4657_v41, 1  ;;  %v11237_v52 = vmax.f32 %v4662_v33, %v4663_v14 }
 0x23f   : > { %v1170_v22 = vsel %vm1137_vm7, %v15071_v9, %v14753_v58  ;;  %v4597_v38 = vsel %vm3140_vm11, %v2680_v57, -inf  ;;  %v11241_v29 = vsel %vm5193_vm14, %v4736_v31, %v5393_v0  ;;  %v3824_v44 = vmax.f32 %v3822_v23, %v3823_v10  ;;  %v2237_v10 = vpop.permute.xlu2 %2236 }
 0x240   : > { %15072 = vst [vmem:[#allocation61_spill] sm:$0xff] %v11241_v29  ;;  %v4611_v9 = vsel %vm3140_vm11, %v2913_v63, -inf  ;;  %2261 = vperm.xlu2 %8839, %v1170_v22   ;;  %v15073_v58 = vrot.slane %v11223_v11, 1  ;;  %v3817_v48 = vmax.f32 %v3815_v24, %v3816_v21  ;;  %v3837_v40 = vrot.slane %v3836_v36, 2 }
 0x241   : > { %v4605_v33 = vrot.slane %v4604_v30, 4  ;;  %v4618_v57 = vsel %vm3140_vm11, %v2914_v46, -inf  ;;  %v4671_v14 = vmax.f32 %v4669_v12, %v4670_v47  ;;  %v11251_v31 = vmax.f32 %v4676_v39, %v4677_v32  ;;  %v11262_v12 = vld [vmem:[%s9196_s27 + $0x118] sm:$0xff] }
 0x242   : > { %v1164_v54 = vsel %vm1137_vm7, %v1109_v4, %v15073_v58  ;;  %v3831_v23 = vmax.f32 %v3829_v26, %v3830_v28  ;;  %v4598_v0 = vrot.slane %v4597_v38, 4  ;;  %v11253_v63 = vmax.f32 %v4657_v41, %v4658_v19 }
 0x243   : > { %v4665_v22 = vrot.slane %v11237_v52, 1  ;;  %v4612_v11 = vrot.slane %v4611_v9, 4  ;;  %2291 = vperm.xlu1 %8838, %v1164_v54   ;;  %v2004_v58 = vmul.f32 %v10796_v5, %v1784_v55  ;;  %v3825_v24 = vrot.slane %v3824_v44, 1 }
 0x244   : > { %v4619_v21 = vrot.slane %v4618_v57, 4  ;;  %1823 = vperm.xlu0 %8837, %v11198_v3   ;;  %v11259_v46 = vadd.s32 248, %v9191_v2  ;;  %v14763_v39 = vrot.slane %v11262_v12, 1  ;;  %v3818_v26 = vrot.slane %v3817_v48, 1 }
 0x245   : > { %v3838_v19 = vmax.f32 %v3836_v36, %v3837_v40  ;;  %v4606_v41 = vmax.f32 %v4604_v30, %v4605_v33  ;;  %v2457_v47 = vmul.f32 %v10950_v1, %v2237_v10  ;;  %v4672_v32 = vrot.slane %v4671_v14, 1  ;;  %v2222_v10 = vpop.permute.xlu0 %2221 }
 0x246   : > { %15074 = vst [vmem:[#allocation63_spill] sm:$0xff] %v11259_v46  ;;  %v3832_v28 = vrot.slane %v3831_v23, 1  ;;  %v4599_v54 = vmax.f32 %v4597_v38, %v4598_v0  ;;  %v511_v55 = vand.u32 63, %v11259_v46  ;;  %v4679_v29 = vrot.slane %v11251_v31, 1 }
 0x247   : > { %v4613_v6 = vmax.f32 %v4611_v9, %v4612_v11  ;;  %v2068_v60 = vadd.f32 %v2004_v58, %v15075_v7  ;;  %v14762_v59 = vrot.slane %v11206_v45, 1  ;;  %v3826_v18 = vmax.f32 %v3824_v44, %v3825_v24 }
 0x248   : > { %v4620_v42 = vmax.f32 %v4618_v57, %v4619_v21  ;;  %v2587_v40 = vadd.f32 %v10877_v15, %v11203_v43  ;;  %1813 = vperm.xlu2 %8839, %v11194_v37   ;;  %v1165_v36 = vsel %vm1137_vm7, %v14763_v39, %v1109_v4  ;;  %v3819_v30 = vmax.f32 %v3817_v48, %v3818_v26 }
 0x249   : > { %v3839_v38 = vrot.slane %v3838_v19, 1  ;;  %v4607_v33 = vrot.slane %v4606_v41, 2  ;;  %v2521_v11 = vadd.f32 %v2457_v47, %v2068_v60  ;;  %v3833_v9 = vmax.f32 %v3831_v23, %v3832_v28 }
 0x24a   : > { %v4600_v7 = vrot.slane %v4599_v54, 2  ;;  %vm11277_vm6 = vcmp.eq.s32.totalorder %v511_v55, 63  ;;  %v15078_v44 = vrot.slane %v11022_v50, 1  ;;  %v15079_v43 = vrot.slane %v11194_v37, 1 }
 0x24b   : > { %v4614_v58 = vrot.slane %v4613_v6, 2  ;;  %v2001_v4 = vmul.f32 %v10796_v5, %v11150_v8  ;;  %2286 = vperm.xlu1 %8838, %v1165_v36   ;;  %v2589_v60 = vadd.f32 %v10877_v15, %v2521_v11  ;;  %v15080_v48 = vrot.slane %v11198_v3, 1 }
 0x24c   : > { %v1169_v57 = vsel %vm1137_vm7, %v15079_v43, %v15078_v44  ;;  %v5280_v37 = vsel %vm5189_vm12, %v3826_v18, %v3819_v30  ;;  %v4621_v23 = vrot.slane %v4620_v42, 2  ;;  %v2487_v24 = vmul.f32 %v10950_v1, %v11159_v17  ;;  %v15081_v17 = vld [vmem:[#allocation33_spill] sm:$0xff] }
 0x24d   : > { %v1167_v50 = vsel %vm1137_vm7, %v15080_v48, %v14762_v59  ;;  %v2651_v21 = vmax.f32 %v2587_v40, 0.0  ;;  %v4608_v26 = vmax.f32 %v4606_v41, %v4607_v33  ;;  %v1233_v8 = vsel %vm11277_vm6, 0.0, %v1169_v57  ;;  %v15114_v59 = vld [vmem:[#allocation23_spill] sm:$0xff] }
 0x24e   : > { %2276 = vperm.xlu0 %8837, %v1167_v50   ;;  %v11301_v47 = vmax.f32 %v2589_v60, 0.0  ;;  %v2454_v28 = vmul.f32 %v10950_v1, %v2222_v10  ;;  %v4666_v3 = vmax.f32 %v11237_v52, %v4665_v22  ;;  %v11305_v55 = vmax.f32 %v4671_v14, %v4672_v32 }
 0x24f   : > { %v3840_v36 = vmax.f32 %v3838_v19, %v3839_v38  ;;  %v2551_v18 = vadd.f32 %v2487_v24, %v11216_v16  ;;  %v4601_v30 = vmax.f32 %v4599_v54, %v4600_v7  ;;  %v4615_v11 = vmax.f32 %v4613_v6, %v4614_v58 }
 0x250   : > { %v2065_v40 = vadd.f32 %v2001_v4, %v15081_v17  ;;  %v3841_v41 = vsel %vm3140_vm11, %v11301_v47, -inf  ;;  %v5281_v33 = vsel %vm5191_vm13, %v3833_v9, %v5280_v37  ;;  %v4622_v0 = vmax.f32 %v4620_v42, %v4621_v23  ;;  %2266 = vperm.xlu2 %8839, %v1233_v8  }
 0x251   : > { %v3785_v44 = vsel %vm3140_vm11, %v2651_v21, -inf  ;;  %v3842_v43 = vrot.slane %v3841_v41, 4  ;;  %v4609_v52 = vrot.slane %v4608_v26, 1  ;;  %v2825_v14 = vrot.slane %v2651_v21, 2 }
 0x252   : > { %v2826_v22 = vrot.slane %v2651_v21, 4  ;;  %v11313_v19 = vadd.f32 %v2454_v28, %v2065_v40  ;;  %v2032_v6 = vmul.f32 %v10796_v5, %v11106_v56  ;;  %v2827_v16 = vrot.slane %v2651_v21, 6 }
 0x253   : > { %v2619_v32 = vadd.f32 %v10877_v15, %v2551_v18  ;;  %v3843_v54 = vmax.f32 %v3841_v41, %v3842_v43  ;;  %v11319_v38 = vmax.f32 %v11251_v31, %v4679_v29  ;;  %v4602_v42 = vrot.slane %v4601_v30, 1  ;;  %v11329_v29 = vpop.permute.xlu1 %8856  ;;  %v15082_v31 = vld [vmem:[#allocation55_spill] sm:$0xff] }
 0x254   : > { %v4616_v9 = vrot.slane %v4615_v11, 1  ;;  %v3786_v7 = vrot.slane %v3785_v44, 4  ;;  %v11323_v57 = vsel %vm5189_vm12, %v4666_v3, %v11253_v63  ;;  %v5282_v10 = vsel %vm5193_vm14, %v3840_v36, %v5281_v33 }
 0x255   : > { %v4623_v58 = vrot.slane %v4622_v0, 1  ;;  %v3844_v4 = vrot.slane %v3843_v54, 2  ;;  %v4610_v56 = vmax.f32 %v4608_v26, %v4609_v52  ;;  %v3792_v60 = vsel %vm3140_vm11, %v2825_v14, -inf }
 0x256   : > { %1913 = vperm.xlu0 %8837, %v11103_v53   ;;  %v3799_v48 = vsel %vm3140_vm11, %v2826_v22, -inf  ;;  %v15083_v50 = vrot.slane %v15082_v31, 7  ;;  %v15084_v37 = vrot.slane %v11016_v20, 7  ;;  %v11338_v23 = vadd.f32 %v2032_v6, %v11235_v35  ;;  %v15112_v22 = vld [vmem:[#allocation47_spill] sm:$0xff] }
 0x257   : > { %v3806_v24 = vsel %vm3140_vm11, %v2827_v16, -inf  ;;  %v2683_v53 = vmax.f32 %v2619_v32, 0.0  ;;  %v3845_v21 = vmax.f32 %v3843_v54, %v3844_v4  ;;  %v4603_v26 = vmax.f32 %v4601_v30, %v4602_v42 }
 0x258   : > { %v957_v63 = vsel %vm944_vm0, %v15084_v37, %v15083_v50  ;;  %v11341_v8 = vmax.f32 %v4615_v11, %v4616_v9  ;;  %v3787_v28 = vmax.f32 %v3785_v44, %v3786_v7  ;;  %v2036_v3 = vmul.f32 %v10796_v5, %v11248_v51  ;;  %v1560_v5 = vpop.permute.xlu2 %1559  ;;  %v2397_v9 = vpop.permute.xlu0 %2396 }
 0x259   : > { %v11345_v36 = vmax.f32 %v4622_v0, %v4623_v58  ;;  %v3793_v18 = vrot.slane %v3792_v60, 4  ;;  %v3800_v17 = vrot.slane %v3799_v48, 4  ;;  %v3846_v40 = vrot.slane %v3845_v21, 1  ;;  %1524 = vperm.xlu2 %8839, %v957_v63   ;;  %v15090_v63 = vld [vmem:[#allocation21_spill] sm:$0xff] }
 0x25a   : > { %v11348_v35 = vsel %vm5189_vm12, %v4610_v56, %v4603_v26  ;;  %v3807_v41 = vrot.slane %v3806_v24, 4  ;;  %v2921_v11 = vrot.slane %v2683_v53, 2  ;;  %v2922_v43 = vrot.slane %v2683_v53, 4 }
 0x25b   : > { %v4681_v44 = vsel %vm3140_vm11, %v2683_v53, -inf  ;;  %v3847_v52 = vmax.f32 %v3845_v21, %v3846_v40  ;;  %v3788_v51 = vrot.slane %v3787_v28, 2  ;;  %v2923_v0 = vrot.slane %v2683_v53, 6  ;;  %v1949_v37 = vpop.permute.xlu1 %1948  ;;  %v15093_v40 = vld [vmem:[#allocation68_spill] sm:$0xff] }
 0x25c   : > { %v2100_v14 = vadd.f32 %v2036_v3, %v11138_v27  ;;  %v11355_v6 = vmax.f32 %v3792_v60, %v3793_v18  ;;  %v11357_v16 = vmax.f32 %v3799_v48, %v3800_v17  ;;  %v15086_v54 = vrot.slane %v10805_v49, 1 }
 0x25d   : > { %v11360_v32 = vsel %vm5195_vm15, %v3847_v52, %v5282_v10  ;;  %v11365_v7 = vmax.f32 %v3806_v24, %v3807_v41  ;;  %v4682_v58 = vrot.slane %v4681_v44, 4  ;;  %v3643_v4 = vrot.slane %v10822_v62, 1  ;;  %v15091_v24 = vld [vmem:[#allocation9_spill] sm:$0xff]  ;;  %v15094_v52 = vld [vmem:[#allocation72_spill] sm:$0xff] }
 0x25e   : > { %15085 = vst [vmem:[#allocation25_spill] sm:$0xff] %v11360_v32  ;;  %v3637_v42 = vmax.f32 %v10805_v49, %v15086_v54  ;;  %v5254_v27 = vsel %vm5193_vm14, %v10722_v34, %v10735_v61  ;;  %v11372_v56 = vsel %vm3140_vm11, %v2921_v11, -inf  ;;  %v11375_v10 = vsel %vm3140_vm11, %v2922_v43, -inf  ;;  %v15088_v49 = vld [vmem:[#allocation67_spill] sm:$0xff]  ;;  %v15089_v34 = vld [vmem:[#allocation30_spill] sm:$0xff] }
 0x25f   : > { %15087 = vst [vmem:[#allocation4_spill] sm:$0xff] %v11365_v7  ;;  %v5255_v60 = vsel %vm5195_vm15, %v10828_v13, %v5254_v27  ;;  %v5260_v48 = vsel %vm5191_vm13, %v15088_v49, %v11078_v25  ;;  %v11382_v31 = vmax.f32 %v3787_v28, %v3788_v51  ;;  %v11385_v50 = vsel %vm3140_vm11, %v2923_v0, -inf  ;;  %v15092_v25 = vld [vmem:[#allocation37_spill] sm:$0xff]  ;;  %v15095_v0 = vld [vmem:[#allocation70_spill] sm:$0xff] }
 0x260   : > { %v5256_v61 = vsel %vm5197_vm1, %v15089_v34, %v5255_v60  ;;  %v5268_v53 = vsel %vm5193_vm14, %v15091_v24, %v15090_v63  ;;  %v3795_v21 = vrot.slane %v11355_v6, 2  ;;  %v3802_v13 = vrot.slane %v11357_v16, 2  ;;  %v15101_v49 = vld [vmem:[#allocation73_spill] sm:$0xff]  ;;  %v11423_v34 = vld [vmem:[%s14657_s1 + $0x1] ss:$0 sm:$0xff] }
 0x261   : > { %v5257_v26 = vsel %vm5199_vm2, %v3637_v42, %v5256_v61  ;;  %v5269_v28 = vsel %vm5195_vm15, %v15092_v25, %v5268_v53  ;;  %v11398_v18 = vmax.f32 %v4681_v44, %v4682_v58  ;;  %v3644_v17 = vmax.f32 %v10822_v62, %v3643_v4  ;;  %v15096_v42 = vld [vmem:[#allocation10_spill] sm:$0xff]  ;;  %v15098_v58 = vld [vmem:[#allocation20_spill] sm:$0xff]  ;;  %v15103_v53 = vld [vmem:[#allocation71_spill] sm:$0xff] }
 0x262   : > { %v5261_v41 = vsel %vm5193_vm14, %v15093_v40, %v5260_v48  ;;  %v4689_v11 = vrot.slane %v11372_v56, 4  ;;  %v4696_v43 = vrot.slane %v11375_v10, 4  ;;  %v5270_v54 = vsel %vm5197_vm1, %v15095_v0, %v5269_v28  ;;  %v15102_v63 = vld [vmem:[#allocation74_spill] sm:$0xff]  ;;  %v15104_v28 = vld [vmem:[#allocation56_spill] sm:$0xff] }
 0x263   : > { %v5262_v51 = vsel %vm5195_vm15, %v15094_v52, %v5261_v41  ;;  %v15097_v27 = vrot.slane %v15096_v42, 1  ;;  %v15099_v60 = vrot.slane %v15098_v58, 1  ;;  %v11416_v4 = vsel %vm5201_vm3, %v3644_v17, %v5257_v26  ;;  %v11431_v26 = vpop.permute.xlu2 %1958 }
 0x264   : > { %15100 = vst [vmem:[#allocation54_spill] sm:$0xff] %v11416_v4  ;;  %v5263_v48 = vsel %vm5197_vm1, %v15101_v49, %v5262_v51  ;;  %v2037_v61 = vmul.f32 %v11423_v34, %v1949_v37  ;;  %v5271_v25 = vsel %vm5199_vm2, %v15103_v53, %v5270_v54  ;;  %v1648_v40 = vmul.f32 %v15104_v28, %v1560_v5  ;;  %v11446_v5 = vpop.permute.xlu0 %2376 }
 0x265   : > { %v3700_v44 = vmax.f32 %v15096_v42, %v15097_v27  ;;  %v3756_v62 = vmax.f32 %v15098_v58, %v15099_v60  ;;  %v5264_v24 = vsel %vm5199_vm2, %v15102_v63, %v5263_v48  ;;  %v4703_v17 = vrot.slane %v11385_v50, 4  ;;  %v15107_v48 = vld [vmem:[#allocation65_spill] sm:$0xff]  ;;  %v15108_v63 = vld [vmem:[#allocation31_spill] sm:$0xff] }
 0x266   : > { %v2831_v41 = vrot.slane %v11301_v47, 2  ;;  %v5620_v37 = vrot.slane %v11416_v4, 1  ;;  %v11444_v42 = vadd.f32 %v2037_v61, %v1648_v40  ;;  %v2832_v27 = vrot.slane %v11301_v47, 4 }
 0x267   : > { %v11436_v52 = vsel %vm5201_vm3, %v3700_v44, %v5264_v24  ;;  %v11439_v51 = vsel %vm5201_vm3, %v3756_v62, %v5271_v25  ;;  %v2833_v58 = vrot.slane %v11301_v47, 6  ;;  %v2586_v44 = vadd.f32 %v10877_v15, %v11313_v19  ;;  %v11465_v19 = vpop.permute.xlu1 %2411 }
 0x268   : > { %15105 = vst [vmem:[#allocation24_spill] sm:$0xff] %v11436_v52  ;;  %v5621_v0 = vrot.slane %v11436_v52, 1  ;;  %v14761_v54 = vrot.slane %v11439_v51, 1  ;;  %v2489_v60 = vmul.f32 %v10950_v1, %v2397_v9  ;;  %v3580_v61 = vrot.slane %v15107_v48, 1  ;;  %v15110_v9 = vld [vmem:[#allocation64_spill] sm:$0xff] }
 0x269   : > { %15106 = vst [vmem:[#allocation36_spill] sm:$0xff] %v11439_v51  ;;  %v15109_v24 = vrot.slane %v15108_v63, 2  ;;  %v15111_v25 = vrot.slane %v15110_v9, 1 }
 0x26a   : > { %v5665_v62 = vsel %vm1137_vm7, %v5621_v0, %v14761_v54  ;;  %v5666_v49 = vsel %vm1137_vm7, %v5620_v37, %v5621_v0  ;;  %v2553_v1 = vadd.f32 %v2489_v60, %v2100_v14  ;;  %v15113_v54 = vld [vmem:[#allocation34_spill] sm:$0xff]  ;;  %v3581_v33 = vmax.f32 %v15107_v48, %v3580_v61 }
 0x26b   : > { %v3586_v47 = vmax.f32 %v15108_v63, %v15109_v24  ;;  %v8885_v53 = vpack.i.bf16 %v5665_v62, %v5666_v49  ;;  %v3574_v40 = vmax.f32 %v15110_v9, %v15111_v25  ;;  %v5245_v3 = vsel %vm5189_vm12, %v15113_v54, %v15112_v22  ;;  %v15115_v60 = vld [vmem:[#allocation22_spill] sm:$0xff] }
 0x26c   : > { %v5246_v63 = vsel %vm5191_vm13, %v15114_v59, %v5245_v3  ;;  %v3848_v62 = vsel %vm3140_vm11, %v2831_v41, -inf  ;;  %v11478_v49 = vmax.f32 %v2586_v44, 0.0  ;;  %v2621_v14 = vadd.f32 %v10877_v15, %v2553_v1  ;;  %v15117_v61 = vld [vmem:[#allocation66_spill] sm:$0xff] }
 0x26d   : > { %v3587_v30 = vrot.slane %v3586_v47, 1  ;;  %8886 = vrot.lane.b32.xlu1 %v8885_v53, %s9114_s19  ;;  %v5247_v24 = vsel %vm5193_vm14, %v15115_v60, %v5246_v63  ;;  %v11485_v22 = vmax.f32 %v11355_v6, %v3795_v21  ;;  %v3855_v54 = vsel %vm3140_vm11, %v2832_v27, -inf  ;;  %v15121_v60 = vld [vmem:[#allocation28_spill] sm:$0xff] }
 0x26e   : > { %v3862_v48 = vsel %vm3140_vm11, %v2833_v58, -inf  ;;  %v5248_v59 = vsel %vm5195_vm15, %v15117_v61, %v5247_v24  ;;  %v11492_v3 = vmax.f32 %v11357_v16, %v3802_v13  ;;  %v4684_v41 = vrot.slane %v11398_v18, 2  ;;  %v11502_v58 = vpop.permute.xlu2 %1788 }
 0x26f   : > { %15116 = vst [vmem:[#allocation33_spill] sm:$0xff] %v11485_v22  ;;  %v11495_v44 = vmax.f32 %v2621_v14, 0.0  ;;  %v5249_v15 = vsel %vm5197_vm1, %v3574_v40, %v5248_v59  ;;  %v11499_v53 = vmax.f32 %v11372_v56, %v4689_v11  ;;  %v3849_v6 = vrot.slane %v3848_v62, 4  ;;  %v15120_v56 = vld [vmem:[#allocation8_spill] sm:$0xff]  ;;  %v11512_v11 = vpop.permute.xlu0 %8851 }
 0x270   : > { %15118 = vst [vmem:[#allocation55_spill] sm:$0xff] %v11492_v3  ;;  %v3588_v21 = vmax.f32 %v3586_v47, %v3587_v30  ;;  %v5250_v27 = vsel %vm5199_vm2, %v3581_v33, %v5249_v15  ;;  %v3856_v1 = vrot.slane %v3855_v54, 4  ;;  %v3863_v9 = vrot.slane %v3862_v48, 4 }
 0x271   : > { %v2822_v16 = vrot.slane %v11478_v49, 2  ;;  %v4737_v13 = vsel %vm3140_vm11, %v11495_v44, -inf  ;;  %v4697_v25 = vmax.f32 %v11375_v10, %v4696_v43  ;;  %v679_v30 = vand.u32 31, %v15120_v56 }
 0x272   : > { %v4738_v63 = vrot.slane %v4737_v13, 4  ;;  %v11509_v40 = vsel %vm5201_vm3, %v3588_v21, %v5250_v27  ;;  %v11515_v33 = vmax.f32 %v11398_v18, %v4684_v41  ;;  %v4704_v47 = vmax.f32 %v11385_v50, %v4703_v17  ;;  %v11528_v17 = vld [vmem:[%s9196_s27 + $0x150] sm:$0xff]  ;;  %v11531_v41 = vpop.permute.xlu1 %1564 }
 0x273   : > { %15119 = vst [vmem:[#allocation67_spill] sm:$0xff] %v11509_v40  ;;  %v3757_v14 = vsel %vm3140_vm11, %v11478_v49, -inf  ;;  %v8870_v10 = vpack.i.bf16 %v11509_v40, %v15121_v60  ;;  %v4691_v43 = vrot.slane %v11499_v53, 2  ;;  %v3850_v24 = vmax.f32 %v3848_v62, %v3849_v6 }
 0x274   : > { %v2823_v61 = vrot.slane %v11478_v49, 4  ;;  %v4739_v59 = vmax.f32 %v4737_v13, %v4738_v63  ;;  %v3857_v15 = vmax.f32 %v3855_v54, %v3856_v1  ;;  %v3864_v21 = vmax.f32 %v3862_v48, %v3863_v9  ;;  %15122 = vst [vmem:[#allocation30_spill] sm:$0xff] %v11528_v17  ;;  %v11551_v13 = vld [vmem:[%s9196_s27 + $0x148] sm:$0xff] }
 0x275   : > { %v3764_v18 = vsel %vm3140_vm11, %v2822_v16, -inf  ;;  %8871 = vrot.lane.b32.xlu2 %v8870_v10, %s9113_s18  ;;  %v5619_v50 = vrot.slane %v11509_v40, 1  ;;  %1868 = vperm.xlu1 %8838, %v11528_v17   ;;  %v2824_v62 = vrot.slane %v11478_v49, 6  ;;  %v3758_v6 = vrot.slane %v3757_v14, 4  ;;  %v11547_v16 = vld [vmem:[%s9196_s27 + $0x140] sm:$0xff]  ;;  %15127 = vst [vmem:[#allocation9_spill] sm:$0xff] %v11551_v13 }
 0x276   : > { %v4740_v27 = vrot.slane %v4739_v59, 2  ;;  %vm11534_vm8 = vcmp.eq.s32.totalorder %v679_v30, 31  ;;  %v15125_v1 = vrot.slane %v15121_v60, 1  ;;  %15126 = vst [vmem:[#allocation21_spill] sm:$0xff] %v11547_v16  ;;  %v4698_v30 = vrot.slane %v4697_v25, 2  ;;  %v1575_v51 = vpop.permute.xlu2 %1574 }
 0x277   : > { %v5667_v48 = vsel %vm1137_vm7, %v5619_v50, %v5620_v37  ;;  %v3765_v10 = vrot.slane %v3764_v18, 4  ;;  %v3771_v39 = vsel %vm3140_vm11, %v2823_v61, -inf  ;;  %v4705_v56 = vrot.slane %v4704_v47, 2  ;;  %v11563_v61 = vld [vmem:[%s14657_s1 + $0x2] ss:$0 sm:$0xff]  ;;  %v1570_v7 = vpop.permute.xlu0 %1569 }
 0x278   : > { %v5668_v9 = vsel %vm1137_vm7, %v15125_v1, %v5619_v50  ;;  %v4741_v0 = vmax.f32 %v4739_v59, %v4740_v27  ;;  %v3851_v37 = vrot.slane %v3850_v24, 2  ;;  %v3858_v46 = vrot.slane %v3857_v15, 2 }
 0x279   : > { %v5747_v60 = vsel %vm11534_vm8, 0.0, %v5667_v48  ;;  %v3865_v50 = vrot.slane %v3864_v21, 2  ;;  %v11557_v1 = vmax.f32 %v3757_v14, %v3758_v6  ;;  %v3778_v49 = vsel %vm3140_vm11, %v2824_v62, -inf }
 0x27a   : > { %v4742_v32 = vrot.slane %v4741_v0, 1  ;;  %v3772_v3 = vrot.slane %v3771_v39, 4  ;;  %v8875_v63 = vpack.i.bf16 %v5747_v60, %v5668_v9  ;;  %v2485_v59 = vmul.f32 %v11563_v61, %v11446_v5 }
 0x27b   : > { %v15128_v27 = vrot.slane %v11551_v13, 1  ;;  %v15129_v54 = vrot.slane %v11547_v16, 1  ;;  %v15130_v62 = vrot.slane %v11382_v31, 1  ;;  %v11579_v48 = vmax.f32 %v3764_v18, %v3765_v10 }
 0x27c   : > { %v4743_v9 = vmax.f32 %v4741_v0, %v4742_v32  ;;  %v4686_v5 = vrot.slane %v11515_v33, 1  ;;  %v11583_v20 = vmax.f32 %v11499_v53, %v4691_v43  ;;  %v11585_v13 = vmax.f32 %v4697_v25, %v4698_v30  ;;  %8876 = vrot.lane.b32.xlu0 %v8875_v63, %s9114_s19  ;;  %v15133_v32 = vld [vmem:[#allocation61_spill] sm:$0xff]  ;;  %v1964_v30 = vpop.permute.xlu1 %1963 }
 0x27d   : > { %v1160_v14 = vsel %vm1137_vm7, %v15129_v54, %v15128_v27  ;;  %v11576_v6 = vmax.f32 %v11382_v31, %v15130_v62  ;;  %v3779_v17 = vrot.slane %v3778_v49, 4  ;;  %v15132_v27 = vld [vmem:[#allocation57_spill] sm:$0xff]  ;;  %v11589_v31 = vmax.f32 %v4704_v47, %v4705_v56  ;;  %v15134_v47 = vld [vmem:[#allocation60_spill] sm:$0xff] }
 0x27e   : > { %1838 = vperm.xlu2 %8839, %v15132_v27   ;;  %v11591_v54 = vmax.f32 %v3850_v24, %v3851_v37  ;;  %v11593_v18 = vmax.f32 %v3857_v15, %v3858_v46  ;;  %v11597_v0 = vsel %vm5195_vm15, %v4743_v9, %v15133_v32  ;;  %2311 = vperm.xlu1 %8838, %v1160_v14   ;;  %v3760_v25 = vrot.slane %v11557_v1, 2  ;;  %v15138_v9 = vld [vmem:[#allocation52_spill] sm:$0xff] }
 0x27f   : > { %15131 = vst [vmem:[#allocation37_spill] sm:$0xff] %v11576_v6  ;;  %v11599_v53 = vmax.f32 %v3864_v21, %v3865_v50  ;;  %v3773_v43 = vmax.f32 %v3771_v39, %v3772_v3  ;;  %v2549_v63 = vadd.f32 %v2485_v59, %v11338_v23  ;;  %v3767_v56 = vrot.slane %v11579_v48, 2  ;;  %v15135_v50 = vld [vmem:[#allocation53_spill] sm:$0xff] }
 0x280   : > { %v14776_v24 = vrot.slane %v15134_v47, 7  ;;  %v8854_v46 = vunpack.i.h.bf16 %v11512_v11  ;;  %v8853_v15 = vunpack.i.l.bf16 %v11512_v11  ;;  %v11607_v10 = vmax.f32 %v3778_v49, %v3779_v17  ;;  %v11625_v49 = vld [vmem:[%s14658_s2] ss:$0 sm:$0xff] }
 0x281   : > { %v2927_v37 = vrot.slane %v11495_v44, 2  ;;  %v2928_v21 = vrot.slane %v11495_v44, 4  ;;  %v5454_v14 = vrot.slane %v15135_v50, 7  ;;  %v2039_v39 = vmul.f32 %v11423_v34, %v11431_v26 }
 0x282   : > { %v2040_v23 = vmul.f32 %v11423_v34, %v1964_v30  ;;  %v15136_v3 = vrot.slane %v11262_v12, 1  ;;  %v15137_v59 = vrot.slane %v11206_v45, 1  ;;  %v1651_v17 = vmul.f32 %v15104_v28, %v1575_v51 }
 0x283   : > { %v2617_v62 = vadd.f32 %v11625_v49, %v2549_v63  ;;  %v2005_v26 = vmul.f32 %v11423_v34, %v11502_v58  ;;  %v5512_v45 = vsel %vm944_vm0, %v5454_v14, %v14776_v24  ;;  %v15139_v27 = vrot.slane %v15138_v9, 7  ;;  %v2242_v58 = vpop.permute.xlu2 %2241 }
 0x284   : > { %v1166_v11 = vsel %vm1137_vm7, %v15137_v59, %v15136_v3  ;;  %v6000_v32 = vsel %vm5996_vm10, %v5512_v45, %v8854_v46  ;;  %v11640_v50 = vadd.f32 %v2040_v23, %v1651_v17  ;;  %v1650_v63 = vmul.f32 %v15104_v28, %v1570_v7  ;;  %v11650_v46 = vld [vmem:[%s9196_s27 + $0x138] sm:$0xff] }
 0x285   : > { %v5513_v51 = vsel %vm944_vm0, %v15139_v27, %v5454_v14  ;;  %v2492_v3 = vmul.f32 %v11563_v61, %v11465_v19  ;;  %v2929_v59 = vrot.slane %v11495_v44, 6  ;;  %v4744_v9 = vsel %vm3140_vm11, %v2927_v37, -inf  ;;  %2281 = vperm.xlu0 %8837, %v1166_v11   ;;  %v11660_v14 = vld [vmem:[%s9196_s27 + $0x130] sm:$0xff] }
 0x286   : > { %v5999_v30 = vsel %vm5996_vm10, %v5513_v51, %v8853_v15  ;;  %v4751_v60 = vsel %vm3140_vm11, %v2928_v21, -inf  ;;  %1833 = vperm.xlu2 %8839, %v11262_v12   ;;  %1853 = vperm.xlu1 %8838, %v11650_v46   ;;  %v15140_v15 = vunpack.i.l.bf16 %v11329_v29  ;;  %v15141_v28 = vunpack.i.h.bf16 %v11329_v29  ;;  %v2402_v21 = vpop.permute.xlu0 %2401  ;;  %v15142_v12 = vld [vmem:[#allocation26_spill] sm:$0xff] }
 0x287   : > { %v2103_v44 = vadd.f32 %v2039_v39, %v1650_v63  ;;  %v14777_v37 = vrot.slane %v11660_v14, 1  ;;  %v3774_v23 = vrot.slane %v3773_v43, 2  ;;  %v2069_v11 = vadd.f32 %v2005_v26, %v15142_v12 }
 0x288   : > { %v6032_v7 = vsel %vm6029_vm4, %v5999_v30, %v15140_v15  ;;  %v6033_v19 = vsel %vm6029_vm4, %v6000_v32, %v15141_v28  ;;  %v2458_v45 = vmul.f32 %v11563_v61, %v2242_v58  ;;  %v4745_v27 = vrot.slane %v4744_v9, 4  ;;  %v11686_v28 = vpop.permute.xlu1 %2406 }
 0x289   : > { %v6063_v17 = vpack.c.bf16 %v6033_v19, %v6032_v7  ;;  %v4752_v51 = vrot.slane %v4751_v60, 4  ;;  %v11665_v24 = vmax.f32 %v2617_v62, 0.0  ;;  %v2556_v30 = vadd.f32 %v2492_v3, %v2103_v44  ;;  %v15143_v62 = vld [vmem:[#allocation58_spill] sm:$0xff] }
 0x28a   : > { %v3761_v29 = vmax.f32 %v11557_v1, %v3760_v25  ;;  %v4758_v39 = vsel %vm3140_vm11, %v2929_v59, -inf  ;;  %v2522_v32 = vadd.f32 %v2458_v45, %v2069_v11  ;;  %v2490_v63 = vmul.f32 %v11563_v61, %v2402_v21 }
 0x28b   : > { %8557 = vmatmul.msk.bf16.gmra.mxu0 %vm6130_vm5, %v6063_v17  ;;  %v4693_v15 = vrot.slane %v11583_v20, 1  ;;  %v3768_v26 = vmax.f32 %v11579_v48, %v3767_v56  ;;  %v3781_v58 = vrot.slane %v11607_v10, 2  ;;  %v15144_v7 = vrot.slane %v15143_v62, 1 }
 0x28c   : > { %v11683_v25 = vmax.f32 %v11515_v33, %v4686_v5  ;;  %v3853_v3 = vrot.slane %v11591_v54, 1  ;;  %v3775_v59 = vmax.f32 %v3773_v43, %v3774_v23  ;;  %v11689_v48 = vadd.f32 %v2490_v63, %v11444_v42  ;;  %v11702_v23 = vld [vmem:[%s9196_s27 + $0x168] sm:$0xff] }
 0x28d   : > { %v1163_v1 = vsel %vm1137_vm7, %v15144_v7, %v14777_v37  ;;  %v4746_v56 = vmax.f32 %v4744_v9, %v4745_v27  ;;  %v4753_v19 = vmax.f32 %v4751_v60, %v4752_v51  ;;  %v4759_v44 = vrot.slane %v4758_v39, 4  ;;  %1843 = vperm.xlu0 %8837, %v15143_v62   ;;  %15145 = vst [vmem:[#allocation68_spill] sm:$0xff] %v11702_v23 }
 0x28e   : > { %v2915_v21 = vrot.slane %v11665_v24, 2  ;;  %v3860_v12 = vrot.slane %v11593_v18, 1  ;;  %v3867_v11 = vrot.slane %v11599_v53, 1  ;;  %v3762_v33 = vrot.slane %v3761_v29, 1  ;;  %2296 = vperm.xlu2 %8839, %v1163_v1   ;;  %1883 = vperm.xlu1 %8838, %v11702_v23  }
 0x28f   : > { %v2624_v5 = vadd.f32 %v11625_v49, %v2556_v30  ;;  %v11697_v43 = vmax.f32 %v11583_v20, %v4693_v15  ;;  %v3769_v9 = vrot.slane %v3768_v26, 1  ;;  %v3782_v60 = vmax.f32 %v11607_v10, %v3781_v58 }
 0x290   : > { %v11706_v17 = vmax.f32 %v11591_v54, %v3853_v3  ;;  %v3776_v45 = vrot.slane %v3775_v59, 1  ;;  %v2916_v27 = vrot.slane %v11665_v24, 4  ;;  %v4625_v51 = vsel %vm3140_vm11, %v11665_v24, -inf }
 0x291   : > { %v4747_v20 = vrot.slane %v4746_v56, 2  ;;  %v4754_v30 = vrot.slane %v4753_v19, 2  ;;  %v4760_v63 = vmax.f32 %v4758_v39, %v4759_v44  ;;  %v4632_v15 = vsel %vm3140_vm11, %v2915_v21, -inf }
 0x292   : > { %15146 = vst [vmem:[#allocation72_spill] sm:$0xff] %v11706_v17  ;;  %v11713_v10 = vmax.f32 %v11593_v18, %v3860_v12  ;;  %v11716_v58 = vmax.f32 %v11599_v53, %v3867_v11  ;;  %v3763_v62 = vmax.f32 %v3761_v29, %v3762_v33  ;;  %v2688_v54 = vmax.f32 %v2624_v5, 0.0  ;;  %v11730_v33 = vpop.permute.xlu1 %1803 }
 0x293   : > { %v3770_v7 = vmax.f32 %v3768_v26, %v3769_v9  ;;  %v3783_v1 = vrot.slane %v3782_v60, 1  ;;  %v4626_v3 = vrot.slane %v4625_v51, 4  ;;  %v2590_v37 = vadd.f32 %v11625_v49, %v2522_v32  ;;  %v11742_v9 = vld [vmem:[%s14657_s1] ss:$0 sm:$0xff] }
 0x294   : > { %15147 = vst [vmem:[#allocation70_spill] sm:$0xff] %v11713_v10  ;;  %v2917_v42 = vrot.slane %v11665_v24, 6  ;;  %v4633_v17 = vrot.slane %v4632_v15, 4  ;;  %v4639_v39 = vsel %vm3140_vm11, %v2916_v27, -inf  ;;  %v8880_v44 = vpack.i.bf16 %v11436_v52, %v11416_v4  ;;  %v11761_v10 = vld [vmem:[%s9196_s27 + $0x160] sm:$0xff] }
 0x295   : > { %15148 = vst [vmem:[#allocation10_spill] sm:$0xff] %v11716_v58  ;;  %v11723_v18 = vmax.f32 %v3775_v59, %v3776_v45  ;;  %v11725_v21 = vmax.f32 %v4746_v56, %v4747_v20  ;;  %v11727_v53 = vmax.f32 %v4753_v19, %v4754_v30  ;;  %v4761_v29 = vrot.slane %v4760_v63, 2 }
 0x296   : > { %v2936_v26 = vrot.slane %v2688_v54, 2  ;;  %v2937_v12 = vrot.slane %v2688_v54, 4  ;;  %v2938_v11 = vrot.slane %v2688_v54, 6  ;;  %v4821_v32 = vsel %vm3140_vm11, %v2688_v54, -inf  ;;  %8881 = vrot.lane.b32.xlu0 %v8880_v44, %s9113_s18  ;;  %1848 = vperm.xlu2 %8839, %v11660_v14   ;;  %15152 = vst [vmem:[#allocation71_spill] sm:$0xff] %v11742_v9 }
 0x297   : > { %15149 = vst [vmem:[#allocation20_spill] sm:$0xff] %v11723_v18  ;;  %v11735_v24 = vsel %vm5189_vm12, %v3770_v7, %v3763_v62  ;;  %v4627_v59 = vmax.f32 %v4625_v51, %v4626_v3  ;;  %v4640_v56 = vrot.slane %v4639_v39, 4  ;;  %v2654_v5 = vmax.f32 %v2590_v37, 0.0  ;;  %v2417_v3 = vpop.permute.xlu2 %2416 }
 0x298   : > { %15150 = vst [vmem:[#allocation73_spill] sm:$0xff] %v11735_v24  ;;  %v11737_v19 = vmax.f32 %v3782_v60, %v3783_v1  ;;  %v11746_v45 = vmul.f32 %v11742_v9, %v11531_v41  ;;  %v4634_v27 = vmax.f32 %v4632_v15, %v4633_v17  ;;  %v4646_v20 = vsel %vm3140_vm11, %v2917_v42, -inf }
 0x299   : > { %v4749_v30 = vrot.slane %v11725_v21, 1  ;;  %v4762_v62 = vmax.f32 %v4760_v63, %v4761_v29  ;;  %v4822_v37 = vrot.slane %v4821_v32, 4  ;;  %v4756_v60 = vrot.slane %v11727_v53, 1 }
 0x29a   : > { %15151 = vst [vmem:[#allocation74_spill] sm:$0xff] %v11737_v19  ;;  %v4828_v54 = vsel %vm3140_vm11, %v2936_v26, -inf  ;;  %v4835_v7 = vsel %vm3140_vm11, %v2937_v12, -inf  ;;  %v4842_v1 = vsel %vm3140_vm11, %v2938_v11, -inf  ;;  %v4628_v41 = vrot.slane %v4627_v59, 2  ;;  %v11757_v12 = vld [vmem:[%s9196_s27 + $0x158] sm:$0xff]  ;;  %v11770_v24 = vpop.permute.xlu1 %8861 }
 0x29b   : > { %15153 = vst [vmem:[#allocation56_spill] sm:$0xff] %v11746_v45  ;;  %v4641_v17 = vmax.f32 %v4639_v39, %v4640_v56  ;;  %v4647_v15 = vrot.slane %v4646_v20, 4  ;;  %v3869_v42 = vsel %vm3140_vm11, %v2654_v5, -inf  ;;  %v4635_v63 = vrot.slane %v4634_v27, 2 }
 0x29c   : > { %v2834_v44 = vrot.slane %v2654_v5, 2  ;;  %v2835_v29 = vrot.slane %v2654_v5, 4  ;;  %v2836_v51 = vrot.slane %v2654_v5, 6  ;;  %v4823_v52 = vmax.f32 %v4821_v32, %v4822_v37 }
 0x29d   : > { %v4829_v4 = vrot.slane %v4828_v54, 4  ;;  %v4836_v40 = vrot.slane %v4835_v7, 4  ;;  %v4843_v26 = vrot.slane %v4842_v1, 4  ;;  %v3870_v58 = vrot.slane %v3869_v42, 4 }
 0x29e   : > { %v2493_v56 = vmul.f32 %v11563_v61, %v2417_v3  ;;  %1858 = vperm.xlu0 %8837, %v11547_v16   ;;  %1878 = vperm.xlu2 %8839, %v11761_v10   ;;  %v4763_v5 = vrot.slane %v4762_v62, 1  ;;  %v4629_v32 = vmax.f32 %v4627_v59, %v4628_v41  ;;  %v4642_v37 = vrot.slane %v4641_v17, 2 }
 0x29f   : > { %v4648_v6 = vmax.f32 %v4646_v20, %v4647_v15  ;;  %v4636_v19 = vmax.f32 %v4634_v27, %v4635_v63  ;;  %v3876_v22 = vsel %vm3140_vm11, %v2834_v44, -inf  ;;  %v3883_v18 = vsel %vm3140_vm11, %v2835_v29, -inf }
 0x2a0   : > { %v3890_v11 = vsel %vm3140_vm11, %v2836_v51, -inf  ;;  %v4824_v39 = vrot.slane %v4823_v52, 2  ;;  %v4830_v9 = vmax.f32 %v4828_v54, %v4829_v4  ;;  %v4837_v3 = vmax.f32 %v4835_v7, %v4836_v40 }
 0x2a1   : > { %v4844_v23 = vmax.f32 %v4842_v1, %v4843_v26  ;;  %v3871_v16 = vmax.f32 %v3869_v42, %v3870_v58  ;;  %v2622_v45 = vadd.f32 %v11625_v49, %v11689_v48  ;;  %v15154_v59 = vrot.slane %v11761_v10, 1 }
 0x2a2   : > { %v15155_v27 = vrot.slane %v11757_v12, 1  ;;  %v2557_v41 = vadd.f32 %v2493_v56, %v11640_v50  ;;  %v11782_v51 = vmax.f32 %v11725_v21, %v4749_v30  ;;  %v4643_v15 = vmax.f32 %v4641_v17, %v4642_v37 }
 0x2a3   : > { %v4649_v4 = vrot.slane %v4648_v6, 2  ;;  %v3877_v40 = vrot.slane %v3876_v22, 4  ;;  %v11785_v58 = vmax.f32 %v11727_v53, %v4756_v60  ;;  %v4630_v48 = vrot.slane %v4629_v32, 1 }
 0x2a4   : > { %v1157_v20 = vsel %vm1137_vm7, %v15155_v27, %v15154_v59  ;;  %v3884_v54 = vrot.slane %v3883_v18, 4  ;;  %v3891_v7 = vrot.slane %v3890_v11, 4  ;;  %v4825_v1 = vmax.f32 %v4823_v52, %v4824_v39  ;;  %v11795_v39 = vpop.permute.xlu0 %1798 }
 0x2a5   : > { %2326 = vperm.xlu1 %8838, %v1157_v20   ;;  %v4831_v42 = vrot.slane %v4830_v9, 2  ;;  %v4838_v63 = vrot.slane %v4837_v3, 2  ;;  %v4845_v44 = vrot.slane %v4844_v23, 2  ;;  %v11787_v29 = vmax.f32 %v4762_v62, %v4763_v5 }
 0x2a6   : > { %v4637_v50 = vrot.slane %v4636_v19, 1  ;;  %v3872_v26 = vrot.slane %v3871_v16, 2  ;;  %v2686_v21 = vmax.f32 %v2622_v45, 0.0  ;;  %v4644_v30 = vrot.slane %v4643_v15, 1 }
 0x2a7   : > { %v4650_v17 = vmax.f32 %v4648_v6, %v4649_v4  ;;  %v11791_v56 = vmul.f32 %v11563_v61, %v11686_v28  ;;  %v3878_v53 = vmax.f32 %v3876_v22, %v3877_v40  ;;  %v4631_v60 = vmax.f32 %v4629_v32, %v4630_v48  ;;  %v11803_v22 = vpop.permute.xlu1 %1818 }
 0x2a8   : > { %v3885_v37 = vmax.f32 %v3883_v18, %v3884_v54  ;;  %v3892_v59 = vmax.f32 %v3890_v11, %v3891_v7  ;;  %v2008_v52 = vmul.f32 %v11423_v34, %v11730_v33  ;;  %v4826_v62 = vrot.slane %v4825_v1, 1  ;;  %v15156_v54 = vld [vmem:[#allocation29_spill] sm:$0xff] }
 0x2a9   : > { %v4832_v5 = vmax.f32 %v4830_v9, %v4831_v42  ;;  %v11797_v27 = vmax.f32 %v4837_v3, %v4838_v63  ;;  %v11799_v45 = vmax.f32 %v4844_v23, %v4845_v44  ;;  %v4638_v6 = vmax.f32 %v4636_v19, %v4637_v50 }
 0x2aa   : > { %v11801_v20 = vmax.f32 %v3871_v16, %v3872_v26  ;;  %v2930_v28 = vrot.slane %v2686_v21, 2  ;;  %v2931_v4 = vrot.slane %v2686_v21, 4  ;;  %v4645_v18 = vmax.f32 %v4643_v15, %v4644_v30  ;;  %v15158_v30 = vld [vmem:[#allocation62_spill] sm:$0xff]  ;;  %v11838_v15 = vpop.permute.xlu2 %2246 }
 0x2ab   : > { %v4651_v11 = vrot.slane %v4650_v17, 1  ;;  %v3879_v32 = vrot.slane %v3878_v53, 2  ;;  %v2932_v40 = vrot.slane %v2686_v21, 6  ;;  %v3886_v33 = vrot.slane %v3885_v37, 2 }
 0x2ac   : > { %v3893_v48 = vrot.slane %v3892_v59, 2  ;;  %v11806_v7 = vadd.f32 %v2008_v52, %v15156_v54  ;;  %v11809_v9 = vadd.s32 32, %v9191_v2  ;;  %v11811_v23 = vmax.f32 %v4825_v1, %v4826_v62 }
 0x2ad   : > { %v4833_v16 = vrot.slane %v4832_v5, 1  ;;  %v4840_v19 = vrot.slane %v11797_v27, 1  ;;  %v4847_v3 = vrot.slane %v11799_v45, 1  ;;  %v11817_v42 = vsel %vm3140_vm11, %v2686_v21, -inf }
 0x2ae   : > { %15157 = vst [vmem:[#allocation65_spill] sm:$0xff] %v11809_v9  ;;  %v11820_v63 = vsel %vm3140_vm11, %v2930_v28, -inf  ;;  %v11823_v44 = vsel %vm3140_vm11, %v2931_v4, -inf  ;;  %v11825_v50 = vmax.f32 %v3878_v53, %v3879_v32  ;;  %v11828_v1 = vsel %vm3140_vm11, %v2932_v40, -inf }
 0x2af   : > { %v2625_v26 = vadd.f32 %v11625_v49, %v2557_v41  ;;  %v5456_v52 = vrot.slane %v15158_v30, 7  ;;  %v11832_v62 = vmax.f32 %v3885_v37, %v3886_v33  ;;  %v11834_v54 = vmax.f32 %v3892_v59, %v3893_v48 }
 0x2b0   : > { %v676_v21 = vand.u32 31, %v11809_v9  ;;  %v443_v28 = vadd.s32 216, %v9191_v2  ;;  %v11840_v4 = vmax.f32 %v4832_v5, %v4833_v16  ;;  %v4707_v37 = vrot.slane %v11589_v31, 1  ;;  %v1954_v5 = vpop.permute.xlu0 %1953 }
 0x2b1   : > { %v5379_v59 = vsel %vm5191_vm13, %v11341_v8, %v11348_v35  ;;  %v5386_v33 = vsel %vm5191_vm13, %v11305_v55, %v11323_v57  ;;  %v11853_v48 = vmax.f32 %v2625_v26, 0.0  ;;  %v15159_v16 = vrot.slane %v15134_v47, 7  ;;  %v1520_v47 = vpop.permute.xlu1 %1519 }
 0x2b2   : > { %v8864_v40 = vunpack.i.h.bf16 %v11770_v24  ;;  %v15160_v41 = vrot.slane %v11585_v13, 1  ;;  %vm11863_vm9 = vcmp.eq.s32.totalorder %v676_v21, 0  ;;  %v699_v35 = vand.u32 31, %v443_v28 }
 0x2b3   : > { %v5511_v30 = vsel %vm944_vm0, %v15159_v16, %v5456_v52  ;;  %v5380_v55 = vsel %vm5193_vm14, %v11345_v36, %v5379_v59  ;;  %v5387_v57 = vsel %vm5193_vm14, %v11319_v38, %v5386_v33  ;;  %v8863_v26 = vunpack.i.l.bf16 %v11770_v24  ;;  %v8867_v33 = vpop.permute.xlu2 %8866 }
 0x2b4   : > { %v4701_v32 = vmax.f32 %v11585_v13, %v15160_v41  ;;  %v4652_v16 = vmax.f32 %v4650_v17, %v4651_v11  ;;  %v5381_v53 = vsel %vm5195_vm15, %v4631_v60, %v5380_v55  ;;  %v5388_v13 = vsel %vm5195_vm15, %v11683_v25, %v5387_v57  ;;  %v15170_v57 = vld [vmem:[#allocation56_spill] sm:$0xff] }
 0x2b5   : > { %v4708_v21 = vmax.f32 %v11589_v31, %v4707_v37  ;;  %v5382_v28 = vsel %vm5197_vm1, %v4638_v6, %v5381_v53  ;;  %v5389_v36 = vsel %vm5197_vm1, %v11697_v43, %v5388_v13  ;;  %v5396_v38 = vsel %vm5197_vm1, %v11782_v51, %v11597_v0  ;;  %v11903_v51 = vld [vmem:[%s9196_s27 + $0x180] sm:$0xff] }
 0x2b6   : > { %v5584_v24 = vsel %vm11863_vm9, 0.0, %v5511_v30  ;;  %v5383_v17 = vsel %vm5199_vm2, %v4645_v18, %v5382_v28  ;;  %v5390_v60 = vsel %vm5199_vm2, %v4701_v32, %v5389_v36  ;;  %v5397_v25 = vsel %vm5199_vm2, %v11785_v58, %v5396_v38  ;;  %v15168_v37 = vld [vmem:[#allocation30_spill] sm:$0xff]  ;;  %v15172_v36 = vld [vmem:[#allocation19_spill] sm:$0xff] }
 0x2b7   : > { %vm11888_vm6 = vcmp.eq.s32.totalorder %v699_v35, 31  ;;  %v11893_v43 = vsel %vm5201_vm3, %v4652_v16, %v5383_v17  ;;  %v11896_v6 = vsel %vm5201_vm3, %v4708_v21, %v5390_v60  ;;  %v11900_v0 = vsel %vm5201_vm3, %v11787_v29, %v5397_v25 }
 0x2b8   : > { %15165 = vst [vmem:[#allocation31_spill] sm:$0xff] %v11893_v43  ;;  %v14789_v18 = vrot.slane %v11893_v43, 1  ;;  %v5639_v58 = vrot.slane %v11896_v6, 1  ;;  %v14790_v11 = vrot.slane %v11900_v0, 1  ;;  %v1112_v53 = vrot.slane %v11650_v46, 1 }
 0x2b9   : > { %15166 = vst [vmem:[#allocation64_spill] sm:$0xff] %v11896_v6  ;;  %v2007_v32 = vmul.f32 %v11423_v34, %v11795_v39  ;;  %v2038_v41 = vmul.f32 %v11423_v34, %v1954_v5  ;;  %v1115_v59 = vrot.slane %v15168_v37, 1  ;;  %v464_v29 = vadd.s32 384, %v9191_v2 }
 0x2ba   : > { %15167 = vst [vmem:[#allocation47_spill] sm:$0xff] %v11900_v0  ;;  %v5647_v30 = vsel %vm1137_vm7, %v5639_v58, %v14790_v11  ;;  %v5648_v8 = vsel %vm1137_vm7, %v14789_v18, %v5639_v58  ;;  %v15169_v39 = vrot.slane %v11660_v14, 1  ;;  %v14791_v35 = vrot.slane %v11903_v51, 7  ;;  %v2252_v14 = vpop.permute.xlu0 %2251 }
 0x2bb   : > { %v5767_v55 = vsel %vm11888_vm6, 0.0, %v5647_v30  ;;  %v2102_v16 = vadd.f32 %v2038_v41, %v15170_v57  ;;  %v15171_v13 = vrot.slane %v11757_v12, 1  ;;  %v528_v28 = vand.u32 63, %v464_v29  ;;  %v1909_v57 = vpop.permute.xlu1 %1908  ;;  %v15175_v29 = vld [vmem:[#allocation39_spill] sm:$0xff] }
 0x2bc   : > { %v1162_v5 = vsel %vm1137_vm7, %v15169_v39, %v1112_v53  ;;  %v15173_v38 = vrot.slane %v15172_v36, 7  ;;  %v8895_v60 = vpack.i.bf16 %v5767_v55, %v5648_v8  ;;  %v8869_v25 = vunpack.i.h.bf16 %v8867_v33  ;;  %v15174_v39 = vld [vmem:[#allocation68_spill] sm:$0xff]  ;;  %v15180_v55 = vld [vmem:[#allocation71_spill] sm:$0xff] }
 0x2bd   : > { %2301 = vperm.xlu0 %8837, %v1162_v5   ;;  %v1158_v21 = vsel %vm1137_vm7, %v1115_v59, %v15171_v13  ;;  %v8868_v31 = vunpack.i.l.bf16 %v8867_v33  ;;  %v6001_v58 = vsel %vm5996_vm10, %v5584_v24, %v8863_v26  ;;  %v2555_v30 = vadd.f32 %v11791_v56, %v2102_v16  ;;  %v15178_v56 = vld [vmem:[#allocation7_spill] sm:$0xff] }
 0x2be   : > { %v5510_v17 = vsel %vm944_vm0, %v5456_v52, %v15173_v38  ;;  %2321 = vperm.xlu2 %8839, %v1158_v21   ;;  %v14792_v5 = vrot.slane %v15174_v39, 1  ;;  %v2071_v13 = vadd.f32 %v2007_v32, %v15175_v29  ;;  %8896 = vrot.lane.b32.xlu1 %v8895_v60, %s9114_s19  ;;  %v2460_v18 = vmul.f32 %v11563_v61, %v2252_v14  ;;  %v15214_v36 = vld [vmem:[#allocation55_spill] sm:$0xff] }
 0x2bf   : > { %v6002_v41 = vsel %vm5996_vm10, %v5510_v17, %v8864_v40  ;;  %v6034_v52 = vsel %vm6029_vm4, %v6001_v58, %v8868_v31  ;;  %v2939_v33 = vrot.slane %v11853_v48, 2  ;;  %vm11952_vm8 = vcmp.eq.s32.totalorder %v528_v28, 0 }
 0x2c0   : > { %v6035_v8 = vsel %vm6029_vm4, %v6002_v41, %v8869_v25  ;;  %v15179_v40 = vrot.slane %v15178_v56, 7  ;;  %v1640_v16 = vmul.f32 %v15180_v55, %v1520_v47  ;;  %v15181_v21 = vrot.slane %v11761_v10, 1 }
 0x2c1   : > { %v6064_v32 = vpack.c.bf16 %v6035_v8, %v6034_v52  ;;  %v2524_v14 = vadd.f32 %v2460_v18, %v2071_v13  ;;  %v2029_v38 = vmul.f32 %v11423_v34, %v1909_v57  ;;  %v11973_v17 = vmax.f32 %v11797_v27, %v4840_v19  ;;  %v15187_v52 = vld [vmem:[#allocation9_spill] sm:$0xff] }
 0x2c2   : > { %v960_v24 = vsel %vm944_vm0, %v15179_v40, %v14791_v35  ;;  %v1156_v28 = vsel %vm1137_vm7, %v15181_v21, %v14792_v5  ;;  %v11978_v60 = vmax.f32 %v11799_v45, %v4847_v3  ;;  %v15182_v47 = vrot.slane %v11817_v42, 4  ;;  %v1794_v5 = vpop.permute.xlu0 %1793 }
 0x2c3   : > { %v15183_v25 = vrot.slane %v11820_v63, 4  ;;  %8558 = vmatmul.msk.bf16.gmra.mxu0 %vm6130_vm5, %v6064_v32  ;;  %v15184_v31 = vrot.slane %v11823_v44, 4  ;;  %v15185_v19 = vrot.slane %v11828_v1, 4  ;;  %v4849_v45 = vsel %vm3140_vm11, %v11853_v48, -inf }
 0x2c4   : > { %v4767_v10 = vmax.f32 %v11817_v42, %v15182_v47  ;;  %v11995_v3 = vadd.f32 %v2029_v38, %v1640_v16  ;;  %v15186_v42 = vrot.slane %v11801_v20, 1  ;;  %v3888_v57 = vrot.slane %v11832_v62, 1  ;;  %v12022_v38 = vld [vmem:[%s9196_s27 + $0x178] sm:$0xff] }
 0x2c5   : > { %v4774_v18 = vmax.f32 %v11820_v63, %v15183_v25  ;;  %v4781_v27 = vmax.f32 %v11823_v44, %v15184_v31  ;;  %v4788_v58 = vmax.f32 %v11828_v1, %v15185_v19  ;;  %v3881_v63 = vrot.slane %v11825_v50, 1  ;;  %2331 = vperm.xlu0 %8837, %v1156_v28   ;;  %v12018_v28 = vld [vmem:[%s9196_s27 + $0x170] sm:$0xff]  ;;  %15188 = vst [vmem:[#allocation34_spill] sm:$0xff] %v12022_v38 }
 0x2c6   : > { %v3875_v41 = vmax.f32 %v11801_v20, %v15186_v42  ;;  %v1057_v44 = vsel %vm11952_vm8, 0.0, %v960_v24  ;;  %v2940_v29 = vrot.slane %v11853_v48, 4  ;;  %v4856_v1 = vsel %vm3140_vm11, %v2939_v33, -inf  ;;  %1863 = vperm.xlu2 %8839, %v15187_v52  }
 0x2c7   : > { %v2592_v13 = vadd.f32 %v11625_v49, %v2524_v14  ;;  %v455_v20 = vadd.s32 312, %v9191_v2  ;;  %v3895_v8 = vrot.slane %v11834_v54, 1  ;;  %v4768_v56 = vrot.slane %v4767_v10, 2  ;;  %1509 = vperm.xlu1 %8838, %v1057_v44  }
 0x2c8   : > { %v2941_v40 = vrot.slane %v11853_v48, 6  ;;  %v4850_v26 = vrot.slane %v4849_v45, 4  ;;  %v12014_v24 = vsel %vm5189_vm12, %v11840_v4, %v11811_v23  ;;  %v4775_v32 = vrot.slane %v4774_v18, 2 }
 0x2c9   : > { %v4782_v33 = vrot.slane %v4781_v27, 2  ;;  %v4789_v55 = vrot.slane %v4788_v58, 2  ;;  %v3882_v16 = vmax.f32 %v11825_v50, %v3881_v63  ;;  %v4857_v21 = vrot.slane %v4856_v1, 4 }
 0x2ca   : > { %v1119_v14 = vrot.slane %v12018_v28, 1  ;;  %v14793_v48 = vrot.slane %v12022_v38, 1  ;;  %v12026_v47 = vmax.f32 %v11832_v62, %v3888_v57  ;;  %v4863_v23 = vsel %vm3140_vm11, %v2940_v29, -inf }
 0x2cb   : > { %v12029_v4 = vmax.f32 %v2592_v13, 0.0  ;;  %v519_v25 = vand.u32 63, %v455_v20  ;;  %v4769_v31 = vmax.f32 %v4767_v10, %v4768_v56  ;;  %v4851_v19 = vmax.f32 %v4849_v45, %v4850_v26  ;;  %v15189_v45 = vld [vmem:[#allocation21_spill] sm:$0xff] }
 0x2cc   : > { %v4870_v50 = vsel %vm3140_vm11, %v2941_v40, -inf  ;;  %v2623_v42 = vadd.f32 %v11625_v49, %v2555_v30  ;;  %v12034_v63 = vmax.f32 %v11834_v54, %v3895_v8  ;;  %v4776_v44 = vmax.f32 %v4774_v18, %v4775_v32  ;;  %v2362_v18 = vpop.permute.xlu1 %2361 }
 0x2cd   : > { %v4783_v11 = vmax.f32 %v4781_v27, %v4782_v33  ;;  %v4790_v35 = vmax.f32 %v4788_v58, %v4789_v55  ;;  %v4858_v62 = vmax.f32 %v4856_v1, %v4857_v21  ;;  %v4864_v57 = vrot.slane %v4863_v23, 4  ;;  %1873 = vperm.xlu0 %8837, %v11757_v12  }
 0x2ce   : > { %v1154_v10 = vsel %vm1137_vm7, %v1119_v14, %v14793_v48  ;;  %v15190_v30 = vrot.slane %v15189_v45, 1  ;;  %v12050_v27 = vsel %vm5189_vm12, %v3882_v16, %v3875_v41  ;;  %v4871_v58 = vrot.slane %v4870_v50, 4 }
 0x2cf   : > { %v2840_v29 = vrot.slane %v12029_v4, 2  ;;  %vm647_vm9 = vcmp.eq.s32.totalorder %v519_v25, 63  ;;  %v4770_v1 = vrot.slane %v4769_v31, 1  ;;  %v4852_v13 = vrot.slane %v4851_v19, 2  ;;  %2341 = vperm.xlu1 %8838, %v1154_v10  }
 0x2d0   : > { %v1161_v54 = vsel %vm1137_vm7, %v1112_v53, %v15190_v30  ;;  %v12053_v20 = vmax.f32 %v2623_v42, 0.0  ;;  %v2006_v12 = vmul.f32 %v11423_v34, %v1794_v5  ;;  %v4777_v8 = vrot.slane %v4776_v44, 1  ;;  %v12070_v42 = vpop.permute.xlu2 %2261 }
 0x2d1   : > { %v4784_v56 = vrot.slane %v4783_v11, 1  ;;  %v1241_v46 = vsel %vm647_vm9, 0.0, %v1161_v54  ;;  %v2482_v53 = vmul.f32 %v11563_v61, %v2362_v18  ;;  %v4791_v40 = vrot.slane %v4790_v35, 1 }
 0x2d2   : > { %v4859_v26 = vrot.slane %v4858_v62, 2  ;;  %v4865_v41 = vmax.f32 %v4863_v23, %v4864_v57  ;;  %v2841_v32 = vrot.slane %v12029_v4, 4  ;;  %2306 = vperm.xlu2 %8839, %v1241_v46   ;;  %v4872_v33 = vmax.f32 %v4870_v50, %v4871_v58  ;;  %v15192_v50 = vld [vmem:[#allocation40_spill] sm:$0xff] }
 0x2d3   : > { %v3932_v55 = vsel %vm3140_vm11, %v2840_v29, -inf  ;;  %v2546_v16 = vadd.f32 %v2482_v53, %v11995_v3  ;;  %v15191_v34 = vrot.slane %v15187_v52, 1  ;;  %v4853_v21 = vmax.f32 %v4851_v19, %v4852_v13 }
 0x2d4   : > { %v4793_v25 = vsel %vm3140_vm11, %v12053_v20, -inf  ;;  %v3925_v23 = vsel %vm3140_vm11, %v12029_v4, -inf  ;;  %v2070_v57 = vadd.f32 %v2006_v12, %v15192_v50  ;;  %v4771_v10 = vmax.f32 %v4769_v31, %v4770_v1 }
 0x2d5   : > { %v1159_v5 = vsel %vm1137_vm7, %v15191_v34, %v1115_v59  ;;  %v4778_v3 = vmax.f32 %v4776_v44, %v4777_v8  ;;  %v2933_v37 = vrot.slane %v12053_v20, 2  ;;  %v2842_v52 = vrot.slane %v12029_v4, 6 }
 0x2d6   : > { %v4866_v45 = vrot.slane %v4865_v41, 2  ;;  %v2459_v59 = vmul.f32 %v11563_v61, %v11838_v15  ;;  %v3933_v19 = vrot.slane %v3932_v55, 4  ;;  %v3939_v30 = vsel %vm3140_vm11, %v2841_v32, -inf  ;;  %2316 = vperm.xlu0 %8837, %v1159_v5  }
 0x2d7   : > { %v12078_v54 = vmax.f32 %v4783_v11, %v4784_v56  ;;  %v4860_v18 = vmax.f32 %v4858_v62, %v4859_v26  ;;  %v4794_v58 = vrot.slane %v4793_v25, 4  ;;  %v3926_v29 = vrot.slane %v3925_v23, 4  ;;  %1893 = vperm.xlu1 %8838, %v12022_v38  }
 0x2d8   : > { %v12080_v13 = vmax.f32 %v4790_v35, %v4791_v40  ;;  %v4854_v31 = vrot.slane %v4853_v21, 1  ;;  %v4873_v44 = vrot.slane %v4872_v33, 2  ;;  %v2523_v1 = vadd.f32 %v2459_v59, %v2070_v57 }
 0x2d9   : > { %15193 = vst [vmem:[#allocation23_spill] sm:$0xff] %v12078_v54  ;;  %v2934_v4 = vrot.slane %v12053_v20, 4  ;;  %v4800_v12 = vsel %vm3140_vm11, %v2933_v37, -inf  ;;  %v3940_v8 = vrot.slane %v3939_v30, 4  ;;  %v3946_v15 = vsel %vm3140_vm11, %v2842_v52, -inf  ;;  %v1814_v37 = vpop.permute.xlu2 %1813 }
 0x2da   : > { %15194 = vst [vmem:[#allocation22_spill] sm:$0xff] %v12080_v13  ;;  %v12087_v11 = vsel %vm5189_vm12, %v4778_v3, %v4771_v10  ;;  %v4867_v62 = vmax.f32 %v4865_v41, %v4866_v45  ;;  %v2935_v56 = vrot.slane %v12053_v20, 6  ;;  %v3934_v35 = vmax.f32 %v3932_v55, %v3933_v19  ;;  %v2257_v41 = vpop.permute.xlu0 %2256 }
 0x2db   : > { %15195 = vst [vmem:[#allocation66_spill] sm:$0xff] %v12087_v11  ;;  %v4861_v46 = vrot.slane %v4860_v18, 1  ;;  %v4795_v53 = vmax.f32 %v4793_v25, %v4794_v58  ;;  %v3927_v40 = vmax.f32 %v3925_v23, %v3926_v29  ;;  %v15196_v26 = vrot.slane %v15174_v39, 1  ;;  %v12106_v39 = vld [vmem:[%s14657_s1 + $0x1] ss:$0 sm:$0xff] }
 0x2dc   : > { %v12096_v34 = vmax.f32 %v4872_v33, %v4873_v44  ;;  %v4801_v5 = vrot.slane %v4800_v12, 4  ;;  %v3947_v50 = vrot.slane %v3946_v15, 4  ;;  %v2591_v57 = vadd.f32 %v11625_v49, %v2523_v1 }
 0x2dd   : > { %v1155_v32 = vsel %vm1137_vm7, %v15196_v26, %v1119_v14  ;;  %v12099_v20 = vmax.f32 %v4853_v21, %v4854_v31  ;;  %v4807_v55 = vsel %vm3140_vm11, %v2934_v4, -inf  ;;  %v3941_v25 = vmax.f32 %v3939_v30, %v3940_v8  ;;  %v15201_v8 = vld [vmem:[#allocation32_spill] sm:$0xff] }
 0x2de   : > { %15197 = vst [vmem:[#allocation57_spill] sm:$0xff] %v12096_v34  ;;  %2336 = vperm.xlu2 %8839, %v1155_v32   ;;  %v2614_v23 = vadd.f32 %v11625_v49, %v2546_v16  ;;  %v4868_v10 = vrot.slane %v4867_v62, 1  ;;  %v2011_v14 = vmul.f32 %v12106_v39, %v11803_v22  ;;  %v4814_v33 = vsel %vm3140_vm11, %v2935_v56, -inf }
 0x2df   : > { %15198 = vst [vmem:[#allocation61_spill] sm:$0xff] %v12099_v20  ;;  %v3935_v3 = vrot.slane %v3934_v35, 2  ;;  %v12111_v21 = vmax.f32 %v4860_v18, %v4861_v46  ;;  %v4796_v52 = vrot.slane %v4795_v53, 2  ;;  %v3928_v45 = vrot.slane %v3927_v40, 2 }
 0x2e0   : > { %v2461_v59 = vmul.f32 %v11563_v61, %v2257_v41  ;;  %v4802_v16 = vmax.f32 %v4800_v12, %v4801_v5  ;;  %v4808_v19 = vrot.slane %v4807_v55, 4  ;;  %v3948_v30 = vmax.f32 %v3946_v15, %v3947_v50 }
 0x2e1   : > { %15199 = vst [vmem:[#allocation60_spill] sm:$0xff] %v12111_v21  ;;  %v2655_v58 = vmax.f32 %v2591_v57, 0.0  ;;  %v4815_v29 = vrot.slane %v4814_v33, 4  ;;  %v3942_v31 = vrot.slane %v3941_v25, 2  ;;  %v2010_v44 = vmul.f32 %v12106_v39, %v1814_v37 }
 0x2e2   : > { %v2678_v1 = vmax.f32 %v2614_v23, 0.0  ;;  %v12115_v22 = vmax.f32 %v4867_v62, %v4868_v10  ;;  %v12119_v18 = vadd.f32 %v2011_v14, %v15201_v8  ;;  %v3936_v56 = vmax.f32 %v3934_v35, %v3935_v3  ;;  %v15204_v23 = vld [vmem:[#allocation42_spill] sm:$0xff] }
 0x2e3   : > { %v4797_v46 = vmax.f32 %v4795_v53, %v4796_v52  ;;  %v3929_v26 = vmax.f32 %v3927_v40, %v3928_v45  ;;  %v12123_v12 = vmul.f32 %v11563_v61, %v12070_v42  ;;  %v2525_v15 = vadd.f32 %v2461_v59, %v11806_v7 }
 0x2e4   : > { %15200 = vst [vmem:[#allocation53_spill] sm:$0xff] %v12115_v22  ;;  %v4803_v32 = vrot.slane %v4802_v16, 2  ;;  %v12126_v5 = vmax.f32 %v4807_v55, %v4808_v19  ;;  %v3949_v50 = vrot.slane %v3948_v30, 2  ;;  %v3897_v62 = vsel %vm3140_vm11, %v2655_v58, -inf }
 0x2e5   : > { %v12129_v57 = vmax.f32 %v4814_v33, %v4815_v29  ;;  %v3943_v41 = vmax.f32 %v3941_v25, %v3942_v31  ;;  %v12132_v10 = vadd.f32 %v2010_v44, %v15204_v23  ;;  %v2906_v35 = vrot.slane %v2678_v1, 2 }
 0x2e6   : > { %15202 = vst [vmem:[#allocation52_spill] sm:$0xff] %v12126_v5  ;;  %v3937_v53 = vrot.slane %v3936_v56, 1  ;;  %v2837_v40 = vrot.slane %v2655_v58, 2  ;;  %v2907_v14 = vrot.slane %v2678_v1, 4  ;;  %v2908_v61 = vrot.slane %v2678_v1, 6 }
 0x2e7   : > { %15203 = vst [vmem:[#allocation26_spill] sm:$0xff] %v12129_v57  ;;  %v4798_v42 = vrot.slane %v4797_v46, 1  ;;  %v3930_v3 = vrot.slane %v3929_v26, 1  ;;  %v3898_v7 = vrot.slane %v3897_v62, 4  ;;  %v2593_v55 = vadd.f32 %v11625_v49, %v2525_v15 }
 0x2e8   : > { %v12135_v37 = vmax.f32 %v4802_v16, %v4803_v32  ;;  %v3950_v33 = vmax.f32 %v3948_v30, %v3949_v50  ;;  %v2838_v45 = vrot.slane %v2655_v58, 4  ;;  %v3944_v25 = vrot.slane %v3943_v41, 1  ;;  %v12146_v16 = vld [vmem:[%s14660_s4] ss:$0 sm:$0xff] }
 0x2e9   : > { %v2839_v59 = vrot.slane %v2655_v58, 6  ;;  %v4541_v19 = vsel %vm3140_vm11, %v2678_v1, -inf  ;;  %v4548_v29 = vsel %vm3140_vm11, %v2906_v35, -inf  ;;  %v3938_v31 = vmax.f32 %v3936_v56, %v3937_v53  ;;  %v6188_v1 = vpop.f32.mrf.mxu0  ;;  %v12152_v35 = vld [vmem:[%s9196_s27 + $0x188] sm:$0xff]  ;;  %s8529_s27 = sshll.u32 %s15477_s22, 3 }
 0x2ea   : > { %15205 = vst [vmem:[#allocation58_spill] sm:$0xff] %v12135_v37  ;;  %v3904_v44 = vsel %vm3140_vm11, %v2837_v40, -inf  ;;  %v4555_v8 = vsel %vm3140_vm11, %v2907_v14, -inf  ;;  %v4562_v49 = vsel %vm3140_vm11, %v2908_v61, -inf  ;;  %v12148_v30 = vmax.f32 %v4797_v46, %v4798_v42  ;;  %s413_s25 = scalar_lea.vmem %s14668_s12, %s8529_s27 }
 0x2eb   : > { %v3931_v58 = vmax.f32 %v3929_v26, %v3930_v3  ;;  %v3899_v15 = vmax.f32 %v3897_v62, %v3898_v7  ;;  %v2657_v32 = vmax.f32 %v2593_v55, 0.0  ;;  %v3911_v50 = vsel %vm3140_vm11, %v2838_v45, -inf  ;;  %v15207_v55 = vld [vmem:[#allocation6_spill] sm:$0xff] }
 0x2ec   : > { %15206 = vst [vmem:[#allocation29_spill] sm:$0xff] %v12148_v30  ;;  %v4542_v56 = vrot.slane %v4541_v19, 4  ;;  %v4549_v23 = vrot.slane %v4548_v29, 4  ;;  %v14797_v53 = vrot.slane %v12152_v35, 1  ;;  %v3951_v40 = vrot.slane %v3950_v33, 1 }
 0x2ed   : > { %v3905_v14 = vrot.slane %v3904_v44, 4  ;;  %v4556_v61 = vrot.slane %v4555_v8, 4  ;;  %v4563_v52 = vrot.slane %v4562_v49, 4  ;;  %v3945_v48 = vmax.f32 %v3943_v41, %v3944_v25 }
 0x2ee   : > { %v5294_v46 = vsel %vm5189_vm12, %v3938_v31, %v3931_v58  ;;  %v3918_v26 = vsel %vm3140_vm11, %v2839_v59, -inf  ;;  %v6189_v62 = vadd.f32 %v12146_v16, %v6188_v1  ;;  %v3900_v42 = vrot.slane %v3899_v15, 2 }
 0x2ef   : > { %v3912_v3 = vrot.slane %v3911_v50, 4  ;;  %v2843_v7 = vrot.slane %v2657_v32, 2  ;;  %v15208_v45 = vrot.slane %v15207_v55, 1  ;;  %v4543_v9 = vmax.f32 %v4541_v19, %v4542_v56 }
 0x2f0   : > { %v4550_v0 = vmax.f32 %v4548_v29, %v4549_v23  ;;  %v2844_v30 = vrot.slane %v2657_v32, 4  ;;  %v3953_v41 = vsel %vm3140_vm11, %v2657_v32, -inf  ;;  %v3906_v25 = vmax.f32 %v3904_v44, %v3905_v14 }
 0x2f1   : > { %v1151_v4 = vsel %vm1137_vm7, %v14797_v53, %v15208_v45  ;;  %v3919_v59 = vrot.slane %v3918_v26, 4  ;;  %v4557_v31 = vmax.f32 %v4555_v8, %v4556_v61  ;;  %v4564_v58 = vmax.f32 %v4562_v49, %v4563_v52 }
 0x2f2   : > { %2356 = vperm.xlu1 %8838, %v1151_v4   ;;  %v12165_v1 = vmax.f32 %v3950_v33, %v3951_v40  ;;  %v12168_v13 = vsel %vm5191_vm13, %v3945_v48, %v5294_v46  ;;  %v6268_v55 = vmax.f32 %v6189_v62, 0.0  ;;  %v8890_v54 = vpack.i.bf16 %v11896_v6, %v11893_v43  ;;  %v2267_v4 = vpop.permute.xlu2 %2266  ;;  %v1809_v62 = vpop.permute.xlu0 %1808 }
 0x2f3   : > { %15210 = vst [vmem:[#allocation30_spill] sm:$0xff] %v12168_v13  ;;  %v3901_v45 = vmax.f32 %v3899_v15, %v3900_v42  ;;  %v12172_v19 = vmax.f32 %v3911_v50, %v3912_v3  ;;  %v3954_v29 = vrot.slane %v3953_v41, 4  ;;  %v3960_v56 = vsel %vm3140_vm11, %v2843_v7, -inf  ;;  %v12182_v50 = vld [vmem:[%s14657_s1 + $0x2] ss:$0 sm:$0xff] }
 0x2f4   : > { %15209 = vst [vmem:[#allocation62_spill] sm:$0xff] %v12165_v1  ;;  %v4544_v44 = vrot.slane %v4543_v9, 2  ;;  %v4551_v23 = vrot.slane %v4550_v0, 2  ;;  %v2845_v8 = vrot.slane %v2657_v32, 6  ;;  %v3967_v52 = vsel %vm3140_vm11, %v2844_v30, -inf  ;;  %8891 = vrot.lane.b32.xlu0 %v8890_v54, %s9113_s18 }
 0x2f5   : > { %v3907_v48 = vrot.slane %v3906_v25, 2  ;;  %v12177_v33 = vmax.f32 %v3918_v26, %v3919_v59  ;;  %v4558_v49 = vrot.slane %v4557_v31, 2  ;;  %v4565_v40 = vrot.slane %v4564_v58, 2 }
 0x2f6   : > { %v3961_v14 = vrot.slane %v3960_v56, 4  ;;  %v6332_v15 = vrot.slane %v6268_v55, 2  ;;  %vm6524_vm6 = vcmask 517120   ;;  %v2463_v61 = vmul.f32 %v12182_v50, %v2267_v4 }
 0x2f7   : > { %v3902_v32 = vrot.slane %v3901_v45, 1  ;;  %v3955_v46 = vmax.f32 %v3953_v41, %v3954_v29  ;;  %v3968_v54 = vrot.slane %v3967_v52, 4  ;;  %v4545_v26 = vmax.f32 %v4543_v9, %v4544_v44 }
 0x2f8   : > { %v4552_v42 = vmax.f32 %v4550_v0, %v4551_v23  ;;  %v3974_v3 = vsel %vm3140_vm11, %v2845_v8, -inf  ;;  %v6333_v7 = vrot.slane %v6268_v55, 4  ;;  %v4559_v59 = vmax.f32 %v4557_v31, %v4558_v49 }
 0x2f9   : > { %v12187_v53 = vmax.f32 %v4564_v58, %v4565_v40  ;;  %v6334_v43 = vrot.slane %v6268_v55, 6  ;;  %v6525_v6 = vsel %vm6524_vm6, %v6268_v55, -inf  ;;  %v3962_v1 = vmax.f32 %v3960_v56, %v3961_v14 }
 0x2fa   : > { %v6532_v4 = vsel %vm6524_vm6, %v6332_v15, -inf  ;;  %v2527_v13 = vadd.f32 %v2463_v61, %v12132_v10  ;;  %v2009_v41 = vmul.f32 %v12106_v39, %v1809_v62  ;;  %v12193_v29 = vmax.f32 %v3901_v45, %v3902_v32 }
 0x2fb   : > { %v12195_v9 = vmax.f32 %v3906_v25, %v3907_v48  ;;  %v3956_v0 = vrot.slane %v3955_v46, 2  ;;  %v3969_v44 = vmax.f32 %v3967_v52, %v3968_v54  ;;  %v4553_v23 = vrot.slane %v4552_v42, 1  ;;  %v12203_v25 = vld [vmem:[%s14658_s2] ss:$0 sm:$0xff]  ;;  %v15211_v52 = vld [vmem:[#allocation43_spill] sm:$0xff]  ;;  %v15212_v54 = vld [vmem:[#allocation4_spill] sm:$0xff] }
 0x2fc   : > { %v3975_v31 = vrot.slane %v3974_v3, 4  ;;  %v6526_v58 = vrot.slane %v6525_v6, 4  ;;  %v6539_v8 = vsel %vm6524_vm6, %v6333_v7, -inf  ;;  %v4546_v49 = vrot.slane %v4545_v26, 1 }
 0x2fd   : > { %v4560_v55 = vrot.slane %v4559_v59, 1  ;;  %v6533_v56 = vrot.slane %v6532_v4, 4  ;;  %v6546_v40 = vsel %vm6524_vm6, %v6334_v43, -inf  ;;  %v4567_v10 = vrot.slane %v12187_v53, 1 }
 0x2fe   : > { %v3963_v14 = vrot.slane %v3962_v1, 2  ;;  %v2595_v45 = vadd.f32 %v12203_v25, %v2527_v13  ;;  %v2073_v48 = vadd.f32 %v2009_v41, %v15211_v52  ;;  %v3957_v15 = vmax.f32 %v3955_v46, %v3956_v0  ;;  %v15215_v46 = vld [vmem:[#allocation73_spill] sm:$0xff]  ;;  %v15216_v0 = vld [vmem:[#allocation20_spill] sm:$0xff] }
 0x2ff   : > { %v3970_v61 = vrot.slane %v3969_v44, 2  ;;  %v6540_v32 = vrot.slane %v6539_v8, 4  ;;  %v15213_v62 = vrot.slane %v15212_v54, 2  ;;  %v4554_v43 = vmax.f32 %v4552_v42, %v4553_v23  ;;  %v15217_v23 = vld [vmem:[#allocation33_spill] sm:$0xff] }
 0x300   : > { %v3976_v30 = vmax.f32 %v3974_v3, %v3975_v31  ;;  %v6527_v11 = vmax.f32 %v6525_v6, %v6526_v58  ;;  %v6547_v57 = vrot.slane %v6546_v40, 4  ;;  %v4547_v5 = vmax.f32 %v4545_v26, %v4546_v49  ;;  %v15219_v58 = vld [vmem:[#allocation74_spill] sm:$0xff] }
 0x301   : > { %v3810_v7 = vmax.f32 %v15212_v54, %v15213_v62  ;;  %v4561_v37 = vmax.f32 %v4559_v59, %v4560_v55  ;;  %v6534_v38 = vmax.f32 %v6532_v4, %v6533_v56  ;;  %v3804_v22 = vrot.slane %v15214_v36, 1  ;;  %v15220_v56 = vld [vmem:[#allocation37_spill] sm:$0xff] }
 0x302   : > { %v3964_v34 = vmax.f32 %v3962_v1, %v3963_v14  ;;  %v2659_v13 = vmax.f32 %v2595_v45, 0.0  ;;  %v2526_v41 = vadd.f32 %v12123_v12, %v2073_v48  ;;  %v5274_v52 = vsel %vm5191_vm13, %v15216_v0, %v15215_v46 }
 0x303   : > { %v3958_v21 = vrot.slane %v3957_v15, 1  ;;  %v3971_v20 = vmax.f32 %v3969_v44, %v3970_v61  ;;  %v6541_v54 = vmax.f32 %v6539_v8, %v6540_v32  ;;  %v3811_v42 = vrot.slane %v3810_v7, 1 }
 0x304   : > { %v5371_v6 = vsel %vm5189_vm12, %v4554_v43, %v4547_v5  ;;  %v3977_v3 = vrot.slane %v3976_v30, 2  ;;  %v6528_v26 = vrot.slane %v6527_v11, 2  ;;  %v6548_v59 = vmax.f32 %v6546_v40, %v6547_v57 }
 0x305   : > { %v6535_v4 = vrot.slane %v6534_v38, 2  ;;  %v15218_v31 = vrot.slane %v15217_v23, 1  ;;  %v3805_v12 = vmax.f32 %v15214_v36, %v3804_v22  ;;  %v5275_v49 = vsel %vm5193_vm14, %v15219_v58, %v5274_v52 }
 0x306   : > { %v2849_v55 = vrot.slane %v2659_v13, 2  ;;  %v4009_v44 = vsel %vm3140_vm11, %v2659_v13, -inf  ;;  %v2594_v8 = vadd.f32 %v12203_v25, %v2526_v41  ;;  %v5276_v5 = vsel %vm5195_vm15, %v15220_v56, %v5275_v49  ;;  %v15227_v49 = vld [vmem:[#allocation72_spill] sm:$0xff]  ;;  %v15228_v56 = vld [vmem:[#allocation70_spill] sm:$0xff] }
 0x307   : > { %v3798_v1 = vmax.f32 %v15217_v23, %v15218_v31  ;;  %v3965_v14 = vrot.slane %v3964_v34, 1  ;;  %v6542_v57 = vrot.slane %v6541_v54, 2  ;;  %v3812_v40 = vmax.f32 %v3810_v7, %v3811_v42  ;;  %v15222_v23 = vld [vmem:[#allocation36_spill] sm:$0xff] }
 0x308   : > { %v3972_v48 = vrot.slane %v3971_v20, 1  ;;  %v12227_v61 = vmax.f32 %v3976_v30, %v3977_v3  ;;  %v6549_v36 = vrot.slane %v6548_v59, 2  ;;  %v6529_v32 = vmax.f32 %v6527_v11, %v6528_v26 }
 0x309   : > { %v5277_v45 = vsel %vm5197_vm1, %v3798_v1, %v5276_v5  ;;  %v2850_v62 = vrot.slane %v2659_v13, 4  ;;  %v4010_v43 = vrot.slane %v4009_v44, 4  ;;  %v6536_v41 = vmax.f32 %v6534_v38, %v6535_v4 }
 0x30a   : > { %v5278_v22 = vsel %vm5199_vm2, %v3805_v12, %v5277_v45  ;;  %v4016_v0 = vsel %vm3140_vm11, %v2849_v55, -inf  ;;  %v2658_v52 = vmax.f32 %v2594_v8, 0.0  ;;  %v12237_v42 = vmax.f32 %v12187_v53, %v4567_v10 }
 0x30b   : > { %v12231_v46 = vsel %vm5201_vm3, %v3812_v40, %v5278_v22  ;;  %v12240_v30 = vsel %vm5191_vm13, %v4561_v37, %v5371_v6  ;;  %v12242_v3 = vmax.f32 %v3957_v15, %v3958_v21  ;;  %v6543_v11 = vmax.f32 %v6541_v54, %v6542_v57 }
 0x30c   : > { %15221 = vst [vmem:[#allocation56_spill] sm:$0xff] %v12231_v46  ;;  %v8900_v7 = vpack.i.bf16 %v12231_v46, %v15222_v23  ;;  %v12244_v26 = vmax.f32 %v3964_v34, %v3965_v14  ;;  %v12246_v31 = vmax.f32 %v3971_v20, %v3972_v48  ;;  %v2851_v4 = vrot.slane %v2659_v13, 6  ;;  %v12254_v20 = vpop.permute.xlu2 %1524  ;;  %v15226_v13 = vld [vmem:[#allocation25_spill] sm:$0xff]  ;;  %v2272_v14 = vpop.permute.xlu0 %2271  ;;  %v15229_v48 = vld [vmem:[#allocation10_spill] sm:$0xff] }
 0x30d   : > { %15223 = vst [vmem:[#allocation68_spill] sm:$0xff] %v12237_v42  ;;  %v12250_v1 = vmax.f32 %v6548_v59, %v6549_v36  ;;  %v4011_v12 = vmax.f32 %v4009_v44, %v4010_v43  ;;  %v4017_v53 = vrot.slane %v4016_v0, 4  ;;  %v4023_v10 = vsel %vm3140_vm11, %v2850_v62, -inf }
 0x30e   : > { %15224 = vst [vmem:[#allocation39_spill] sm:$0xff] %v12240_v30  ;;  %8901 = vrot.lane.b32.xlu2 %v8900_v7, %s9113_s18  ;;  %v6530_v37 = vrot.slane %v6529_v32, 1  ;;  %v6537_v6 = vrot.slane %v6536_v41, 1  ;;  %v2846_v21 = vrot.slane %v2658_v52, 2  ;;  %v2847_v15 = vrot.slane %v2658_v52, 4  ;;  %v15278_v30 = vld [vmem:[#allocation23_spill] sm:$0xff] }
 0x30f   : > { %v6544_v54 = vrot.slane %v6543_v11, 1  ;;  %v5623_v34 = vrot.slane %v12231_v46, 1  ;;  %v12257_v58 = vadd.s32 88, %v9191_v2  ;;  %v5284_v59 = vsel %vm5197_vm1, %v15227_v49, %v15226_v13  ;;  %v6190_v49 = vpop.f32.mrf.mxu0 }
 0x310   : > { %v4024_v55 = vrot.slane %v4023_v10, 4  ;;  %v4030_v44 = vsel %vm3140_vm11, %v2851_v4, -inf  ;;  %v3981_v8 = vsel %vm3140_vm11, %v2658_v52, -inf  ;;  %v5285_v5 = vsel %vm5199_vm2, %v15228_v56, %v5284_v59  ;;  %v2367_v4 = vpop.permute.xlu1 %2366 }
 0x311   : > { %15225 = vst [vmem:[#allocation7_spill] sm:$0xff] %v12257_v58  ;;  %v4012_v57 = vrot.slane %v4011_v12, 2  ;;  %v4018_v40 = vmax.f32 %v4016_v0, %v4017_v53  ;;  %v683_v45 = vand.u32 31, %v12257_v58  ;;  %v12269_v36 = vsel %vm5201_vm3, %v15229_v48, %v5285_v5 }
 0x312   : > { %15230 = vst [vmem:[#allocation71_spill] sm:$0xff] %v12269_v36  ;;  %v2848_v22 = vrot.slane %v2658_v52, 6  ;;  %v3988_v62 = vsel %vm3140_vm11, %v2846_v21, -inf  ;;  %v3995_v43 = vsel %vm3140_vm11, %v2847_v15, -inf  ;;  %v14810_v7 = vrot.slane %v12269_v36, 1 }
 0x313   : > { %v3982_v13 = vrot.slane %v3981_v8, 4  ;;  %vm747_vm8 = vcmp.eq.s32.totalorder %v683_v45, 31  ;;  %v15231_v59 = vrot.slane %v15222_v23, 1  ;;  %v2464_v53 = vmul.f32 %v12182_v50, %v2272_v14 }
 0x314   : > { %v6538_v56 = vmax.f32 %v6536_v41, %v6537_v6  ;;  %v4025_v5 = vmax.f32 %v4023_v10, %v4024_v55  ;;  %v4031_v52 = vrot.slane %v4030_v44, 4  ;;  %v5663_v21 = vsel %vm1137_vm7, %v5623_v34, %v14810_v7 }
 0x315   : > { %v5664_v0 = vsel %vm1137_vm7, %v15231_v59, %v5623_v34  ;;  %v4013_v15 = vmax.f32 %v4011_v12, %v4012_v57  ;;  %v3989_v48 = vrot.slane %v3988_v62, 4  ;;  %v3996_v45 = vrot.slane %v3995_v43, 4 }
 0x316   : > { %1888 = vperm.xlu2 %8839, %v12018_v28   ;;  %v5751_v38 = vsel %vm747_vm8, 0.0, %v5663_v21  ;;  %v6531_v58 = vmax.f32 %v6529_v32, %v6530_v37  ;;  %v12285_v42 = vmul.f32 %v12182_v50, %v2367_v4  ;;  %v6191_v14 = vadd.f32 %v12146_v16, %v6190_v49 }
 0x317   : > { %v8905_v41 = vpack.i.bf16 %v5751_v38, %v5664_v0  ;;  %v4019_v10 = vrot.slane %v4018_v40, 2  ;;  %v3983_v6 = vmax.f32 %v3981_v8, %v3982_v13  ;;  %v4002_v55 = vsel %vm3140_vm11, %v2848_v22, -inf  ;;  %v12295_v38 = vpop.permute.xlu2 %8871 }
 0x318   : > { %v2528_v59 = vadd.f32 %v2464_v53, %v12119_v18  ;;  %v6545_v34 = vmax.f32 %v6543_v11, %v6544_v54  ;;  %v6551_v28 = vrot.slane %v12250_v1, 1  ;;  %v4026_v12 = vrot.slane %v4025_v5, 2 }
 0x319   : > { %v12291_v57 = vmax.f32 %v4030_v44, %v4031_v52  ;;  %8906 = vrot.lane.b32.xlu0 %v8905_v41, %s9114_s19  ;;  %v7549_v32 = vsel %vm5189_vm12, %v6538_v56, %v6531_v58  ;;  %v4014_v37 = vrot.slane %v4013_v15, 1  ;;  %v3990_v4 = vmax.f32 %v3988_v62, %v3989_v48  ;;  %v1829_v41 = vpop.permute.xlu1 %1828 }
 0x31a   : > { %v3997_v16 = vmax.f32 %v3995_v43, %v3996_v45  ;;  %v4003_v8 = vrot.slane %v4002_v55, 4  ;;  %v12297_v13 = vmax.f32 %v6191_v14, 0.0  ;;  %v15232_v18 = vrot.slane %v12172_v19, 2 }
 0x31b   : > { %v3921_v54 = vrot.slane %v12177_v33, 2  ;;  %v12303_v44 = vmax.f32 %v4018_v40, %v4019_v10  ;;  %v3984_v22 = vrot.slane %v3983_v6, 2  ;;  %v2596_v49 = vadd.f32 %v12203_v25, %v2528_v59 }
 0x31c   : > { %v3915_v11 = vmax.f32 %v12172_v19, %v15232_v18  ;;  %v3909_v58 = vrot.slane %v12195_v9, 1  ;;  %v12308_v62 = vmax.f32 %v12250_v1, %v6551_v28  ;;  %v12311_v43 = vsel %vm5191_vm13, %v6545_v34, %v7549_v32 }
 0x31d   : > { %15234 = vst [vmem:[#allocation21_spill] sm:$0xff] %v12311_v43  ;;  %v12313_v0 = vmax.f32 %v4025_v5, %v4026_v12  ;;  %v12316_v19 = vmax.f32 %v4013_v15, %v4014_v37  ;;  %v3922_v40 = vmax.f32 %v12177_v33, %v3921_v54  ;;  %v5288_v52 = vsel %vm5191_vm13, %v12026_v47, %v12050_v27  ;;  %v9092_v27 = vld [vmem:[%s14657_s1] ss:$0 sm:$0xff] }
 0x31e   : > { %15233 = vst [vmem:[#allocation9_spill] sm:$0xff] %v12308_v62  ;;  %v3916_v56 = vrot.slane %v3915_v11, 1  ;;  %v3991_v21 = vrot.slane %v3990_v4, 2  ;;  %v3998_v48 = vrot.slane %v3997_v16, 2  ;;  %v12322_v1 = vmax.f32 %v4002_v55, %v4003_v8  ;;  %v1824_v8 = vpop.permute.xlu0 %1823  ;;  %v15277_v43 = vld [vmem:[#allocation66_spill] sm:$0xff] }
 0x31f   : > { %15235 = vst [vmem:[#allocation40_spill] sm:$0xff] %v12316_v19  ;;  %v6335_v45 = vrot.slane %v12297_v13, 2  ;;  %v12326_v14 = vmax.f32 %v3983_v6, %v3984_v22  ;;  %v12328_v15 = vmax.f32 %v2596_v49, 0.0  ;;  %v3910_v10 = vmax.f32 %v12195_v9, %v3909_v58 }
 0x320   : > { %v6336_v33 = vrot.slane %v12297_v13, 4  ;;  %v6553_v47 = vsel %vm6524_vm6, %v12297_v13, -inf  ;;  %v12338_v55 = vmul.f32 %v9092_v27, %v12254_v20  ;;  %v5289_v6 = vsel %vm5193_vm14, %v12034_v63, %v5288_v52 }
 0x321   : > { %1898 = vperm.xlu0 %8837, %v11903_v51   ;;  %v3917_v59 = vmax.f32 %v3915_v11, %v3916_v56  ;;  %v3923_v34 = vrot.slane %v3922_v40, 1  ;;  %v5290_v9 = vsel %vm5195_vm15, %v12193_v29, %v5289_v6  ;;  %v14811_v28 = vrot.slane %v11903_v51, 1 }
 0x322   : > { %v12346_v12 = vmax.f32 %v3990_v4, %v3991_v21  ;;  %v12348_v32 = vmax.f32 %v3997_v16, %v3998_v48  ;;  %v4005_v37 = vrot.slane %v12322_v1, 2  ;;  %v6560_v20 = vsel %vm6524_vm6, %v6335_v45, -inf  ;;  %v1839_v4 = vpop.permute.xlu2 %1838  ;;  %v15237_v48 = vld [vmem:[#allocation27_spill] sm:$0xff] }
 0x323   : > { %v3986_v18 = vrot.slane %v12326_v14, 1  ;;  %v2852_v63 = vrot.slane %v12328_v15, 2  ;;  %v5291_v11 = vsel %vm5197_vm1, %v3910_v10, %v5290_v9  ;;  %v15236_v54 = vrot.slane %v12152_v35, 1 }
 0x324   : > { %v6337_v16 = vrot.slane %v12297_v13, 6  ;;  %v6554_v22 = vrot.slane %v6553_v47, 4  ;;  %v6567_v49 = vsel %vm6524_vm6, %v6336_v33, -inf  ;;  %v12364_v58 = vmul.f32 %v12106_v39, %v1829_v41  ;;  %v15249_v13 = vld [vmem:[#allocation63_spill] sm:$0xff] }
 0x325   : > { %v1152_v29 = vsel %vm1137_vm7, %v14811_v28, %v15236_v54  ;;  %v6561_v56 = vrot.slane %v6560_v20, 4  ;;  %v3924_v52 = vmax.f32 %v3922_v40, %v3923_v34  ;;  %v5292_v21 = vsel %vm5199_vm2, %v3917_v59, %v5291_v11 }
 0x326   : > { %2351 = vperm.xlu2 %8839, %v1152_v29   ;;  %v15238_v45 = vrot.slane %v15237_v48, 7  ;;  %v15239_v10 = vrot.slane %v11903_v51, 7  ;;  %v2853_v6 = vrot.slane %v12328_v15, 4  ;;  %v4037_v41 = vsel %vm3140_vm11, %v12328_v15, -inf }
 0x327   : > { %v2015_v33 = vmul.f32 %v12106_v39, %v1839_v4  ;;  %v6568_v9 = vrot.slane %v6567_v49, 4  ;;  %v4044_v40 = vsel %vm3140_vm11, %v2852_v63, -inf  ;;  %v12380_v59 = vsel %vm5201_vm3, %v3924_v52, %v5292_v21 }
 0x328   : > { %v959_v27 = vsel %vm944_vm0, %v15239_v10, %v15238_v45  ;;  %15240 = vst [vmem:[#allocation32_spill] sm:$0xff] %v12380_v59  ;;  %v5407_v34 = vsel %vm5191_vm13, %v11973_v17, %v12014_v24  ;;  %v6555_v54 = vmax.f32 %v6553_v47, %v6554_v22  ;;  %v6574_v29 = vsel %vm6524_vm6, %v6337_v16, -inf  ;;  %v2292_v10 = vpop.permute.xlu1 %2291  ;;  %v15241_v24 = vld [vmem:[#allocation13_spill] sm:$0xff] }
 0x329   : > { %v8920_v48 = vpack.i.bf16 %v12380_v59, %v12269_v36  ;;  %1514 = vperm.xlu0 %8837, %v959_v27   ;;  %v6562_v4 = vmax.f32 %v6560_v20, %v6561_v56  ;;  %v2854_v45 = vrot.slane %v12328_v15, 6  ;;  %v4038_v63 = vrot.slane %v4037_v41, 4  ;;  %v15242_v16 = vld [vmem:[#allocation61_spill] sm:$0xff]  ;;  %v15243_v20 = vld [vmem:[#allocation60_spill] sm:$0xff] }
 0x32a   : > { %v5408_v52 = vsel %vm5193_vm14, %v11978_v60, %v5407_v34  ;;  %v4045_v21 = vrot.slane %v4044_v40, 4  ;;  %v4051_v17 = vsel %vm3140_vm11, %v2853_v6, -inf  ;;  %v2079_v47 = vadd.f32 %v2015_v33, %v15241_v24  ;;  %v15244_v56 = vld [vmem:[#allocation69_spill] sm:$0xff]  ;;  %v2277_v24 = vpop.permute.xlu0 %2276 }
 0x32b   : > { %8921 = vrot.lane.b32.xlu1 %v8920_v48, %s9113_s18  ;;  %v5409_v22 = vsel %vm5195_vm15, %v15242_v16, %v5408_v52  ;;  %v6569_v5 = vmax.f32 %v6567_v49, %v6568_v9  ;;  %v6575_v27 = vrot.slane %v6574_v29, 4  ;;  %v5643_v53 = vrot.slane %v15244_v56, 1  ;;  %v15245_v34 = vld [vmem:[#allocation57_spill] sm:$0xff] }
 0x32c   : > { %v5410_v15 = vsel %vm5197_vm1, %v15243_v20, %v5409_v22  ;;  %v6556_v7 = vrot.slane %v6555_v54, 2  ;;  %v2468_v60 = vmul.f32 %v12182_v50, %v2292_v10  ;;  %v15246_v28 = vrot.slane %v15245_v34, 1  ;;  %v15247_v48 = vld [vmem:[#allocation53_spill] sm:$0xff] }
 0x32d   : > { %v5411_v33 = vsel %vm5199_vm2, %v15247_v48, %v5410_v15  ;;  %v6563_v49 = vrot.slane %v6562_v4, 2  ;;  %v4052_v9 = vrot.slane %v4051_v17, 4  ;;  %v4058_v52 = vsel %vm3140_vm11, %v2854_v45, -inf  ;;  %v15253_v15 = vld [vmem:[#allocation51_spill] sm:$0xff] }
 0x32e   : > { %v4876_v6 = vmax.f32 %v15245_v34, %v15246_v28  ;;  %1903 = vperm.xlu2 %8839, %v12152_v35   ;;  %v2012_v16 = vmul.f32 %v12106_v39, %v1824_v8  ;;  %v4039_v22 = vmax.f32 %v4037_v41, %v4038_v63  ;;  %v4046_v20 = vmax.f32 %v4044_v40, %v4045_v21 }
 0x32f   : > { %v2532_v11 = vadd.f32 %v2468_v60, %v2079_v47  ;;  %v15250_v28 = vand.u32 31, %v15249_v13  ;;  %v15254_v48 = vrot.slane %v15253_v15, 1  ;;  %v2465_v8 = vmul.f32 %v12182_v50, %v2277_v24  ;;  %v15255_v60 = vld [vmem:[#allocation12_spill] sm:$0xff] }
 0x330   : > { %v12410_v10 = vsel %vm5201_vm3, %v4876_v6, %v5411_v33  ;;  %v4006_v41 = vmax.f32 %v12322_v1, %v4005_v37  ;;  %v6557_v40 = vmax.f32 %v6555_v54, %v6556_v7  ;;  %v6570_v63 = vrot.slane %v6569_v5, 2 }
 0x331   : > { %15248 = vst [vmem:[#allocation42_spill] sm:$0xff] %v12410_v10  ;;  %vm12414_vm9 = vcmp.eq.s32.totalorder %v15250_v28, 31  ;;  %v14812_v35 = vrot.slane %v12410_v10, 1  ;;  %v5675_v45 = vsel %vm1137_vm7, %v5643_v53, %v15254_v48  ;;  %v6576_v21 = vmax.f32 %v6574_v29, %v6575_v27 }
 0x332   : > { %v4053_v47 = vmax.f32 %v4051_v17, %v4052_v9  ;;  %v4059_v13 = vrot.slane %v4058_v52, 4  ;;  %v2076_v6 = vadd.f32 %v2012_v16, %v15255_v60  ;;  %v6564_v28 = vmax.f32 %v6562_v4, %v6563_v49  ;;  %v15257_v16 = vld [vmem:[#allocation28_spill] sm:$0xff]  ;;  %v1914_v17 = vpop.permute.xlu0 %1913 }
 0x333   : > { %v5644_v33 = vsel %vm1137_vm7, %v14812_v35, %v5643_v53  ;;  %v4047_v15 = vrot.slane %v4046_v20, 2  ;;  %v2600_v48 = vadd.f32 %v12203_v25, %v2532_v11  ;;  %v5771_v24 = vsel %vm12414_vm9, 0.0, %v5675_v45 }
 0x334   : > { %v12436_v7 = vmax.f32 %v12326_v14, %v3986_v18  ;;  %v4040_v1 = vrot.slane %v4039_v22, 2  ;;  %v8935_v37 = vpack.i.bf16 %v5771_v24, %v5644_v33  ;;  %v2529_v54 = vadd.f32 %v2465_v8, %v2076_v6 }
 0x335   : > { %v4007_v29 = vrot.slane %v4006_v41, 1  ;;  %v6571_v27 = vmax.f32 %v6569_v5, %v6570_v63  ;;  %v6577_v53 = vrot.slane %v6576_v21, 2  ;;  %v15256_v4 = vrot.slane %v12346_v12, 1  ;;  %v15259_v63 = vld [vmem:[#allocation11_spill] sm:$0xff] }
 0x336   : > { %v4054_v49 = vrot.slane %v4053_v47, 2  ;;  %v4060_v9 = vmax.f32 %v4058_v52, %v4059_v13  ;;  %v5458_v34 = vrot.slane %v15257_v16, 7  ;;  %8936 = vrot.lane.b32.xlu1 %v8935_v37, %s9114_s19  ;;  %v6558_v14 = vrot.slane %v6557_v40, 1  ;;  %v15262_v37 = vld [vmem:[#allocation19_spill] sm:$0xff] }
 0x337   : > { %v12442_v11 = vmax.f32 %v12346_v12, %v15256_v4  ;;  %v6565_v18 = vrot.slane %v6564_v28, 1  ;;  %v4048_v45 = vmax.f32 %v4046_v20, %v4047_v15  ;;  %v2664_v8 = vmax.f32 %v2600_v48, 0.0 }
 0x338   : > { %v15258_v60 = vrot.slane %v12348_v32, 1  ;;  %v12453_v6 = vadd.f32 %v12364_v58, %v15259_v63  ;;  %v4041_v12 = vmax.f32 %v4039_v22, %v4040_v1  ;;  %v2597_v52 = vadd.f32 %v12203_v25, %v2529_v54 }
 0x339   : > { %v12456_v13 = vmax.f32 %v4006_v41, %v4007_v29  ;;  %v6572_v33 = vrot.slane %v6571_v27, 1  ;;  %v12458_v24 = vmax.f32 %v6576_v21, %v6577_v53  ;;  %v15263_v20 = vrot.slane %v15262_v37, 7  ;;  %v2287_v53 = vpop.permute.xlu1 %2286 }
 0x33a   : > { %v12449_v5 = vmax.f32 %v12348_v32, %v15258_v60  ;;  %15260 = vst [vmem:[#allocation6_spill] sm:$0xff] %v12453_v6  ;;  %v4055_v48 = vmax.f32 %v4053_v47, %v4054_v49  ;;  %v4061_v32 = vrot.slane %v4060_v9, 2  ;;  %v8874_v4 = vunpack.i.h.bf16 %v12295_v38  ;;  %v15266_v47 = vld [vmem:[#allocation67_spill] sm:$0xff] }
 0x33b   : > { %15261 = vst [vmem:[#allocation43_spill] sm:$0xff] %v12458_v24  ;;  %v5509_v15 = vsel %vm944_vm0, %v15263_v20, %v5458_v34  ;;  %v8873_v58 = vunpack.i.l.bf16 %v12295_v38  ;;  %v12466_v16 = vmax.f32 %v6557_v40, %v6558_v14  ;;  %v12468_v22 = vmax.f32 %v6564_v28, %v6565_v18  ;;  %v1834_v24 = vpop.permute.xlu2 %1833 }
 0x33c   : > { %v4049_v41 = vrot.slane %v4048_v45, 1  ;;  %v4149_v1 = vsel %vm3140_vm11, %v2664_v8, -inf  ;;  %v4042_v21 = vrot.slane %v4041_v12, 1  ;;  %v2864_v54 = vrot.slane %v2664_v8, 2 }
 0x33d   : > { %15264 = vst [vmem:[#allocation4_spill] sm:$0xff] %v12466_v16  ;;  %v2865_v29 = vrot.slane %v2664_v8, 4  ;;  %v2661_v60 = vmax.f32 %v2597_v52, 0.0  ;;  %v15267_v49 = vrot.slane %v15266_v47, 7  ;;  %v2866_v38 = vrot.slane %v2664_v8, 6 }
 0x33e   : > { %15265 = vst [vmem:[#allocation55_spill] sm:$0xff] %v12468_v22  ;;  %v463_v40 = vadd.s32 376, %v9191_v2  ;;  %v12477_v28 = vmax.f32 %v6571_v27, %v6572_v33  ;;  %v4056_v14 = vrot.slane %v4055_v48, 1  ;;  %v4062_v18 = vmax.f32 %v4060_v9, %v4061_v32 }
 0x33f   : > { %v5508_v37 = vsel %vm944_vm0, %v5458_v34, %v15267_v49  ;;  %v4150_v20 = vrot.slane %v4149_v1, 4  ;;  %v4050_v35 = vmax.f32 %v4048_v45, %v4049_v41  ;;  %v12480_v22 = vsel %vm5996_vm10, %v5509_v15, %v8873_v58 }
 0x340   : > { %15268 = vst [vmem:[#allocation73_spill] sm:$0xff] %v12477_v28  ;;  %v12483_v52 = vsel %vm5996_vm10, %v5508_v37, %v8874_v4  ;;  %v2467_v63 = vmul.f32 %v12182_v50, %v2287_v53  ;;  %v4043_v34 = vmax.f32 %v4041_v12, %v4042_v21  ;;  %v4156_v8 = vsel %vm3140_vm11, %v2864_v54, -inf  ;;  %v15270_v54 = vld [vmem:[#allocation34_spill] sm:$0xff] }
 0x341   : > { %v4163_v27 = vsel %vm3140_vm11, %v2865_v29, -inf  ;;  %v2855_v33 = vrot.slane %v2661_v60, 2  ;;  %v4170_v9 = vsel %vm3140_vm11, %v2866_v38, -inf  ;;  %v2856_v32 = vrot.slane %v2661_v60, 4 }
 0x342   : > { %v527_v49 = vand.u32 63, %v463_v40  ;;  %v2030_v45 = vmul.f32 %v12106_v39, %v1914_v17  ;;  %v4057_v15 = vmax.f32 %v4055_v48, %v4056_v14  ;;  %v4063_v58 = vrot.slane %v4062_v18, 1 }
 0x343   : > { %v4151_v41 = vmax.f32 %v4149_v1, %v4150_v20  ;;  %v2014_v4 = vmul.f32 %v12106_v39, %v1834_v24  ;;  %v5308_v53 = vsel %vm5189_vm12, %v4050_v35, %v4043_v34  ;;  %v4157_v37 = vrot.slane %v4156_v8, 4  ;;  %v15272_v35 = vld [vmem:[#allocation58_spill] sm:$0xff] }
 0x344   : > { %v4065_v12 = vsel %vm3140_vm11, %v2661_v60, -inf  ;;  %v15269_v21 = vrot.slane %v11903_v51, 1  ;;  %v15271_v29 = vrot.slane %v15270_v54, 1  ;;  %v4164_v40 = vrot.slane %v4163_v27, 4  ;;  %v15273_v51 = vld [vmem:[#allocation35_spill] sm:$0xff] }
 0x345   : > { %v4171_v28 = vrot.slane %v4170_v9, 4  ;;  %v2857_v17 = vrot.slane %v2661_v60, 6  ;;  %v4072_v48 = vsel %vm3140_vm11, %v2855_v33, -inf  ;;  %v4079_v1 = vsel %vm3140_vm11, %v2856_v32, -inf  ;;  %v15274_v33 = vld [vmem:[#allocation52_spill] sm:$0xff] }
 0x346   : > { %v1153_v38 = vsel %vm1137_vm7, %v15271_v29, %v15269_v21  ;;  %vm655_vm8 = vcmp.eq.s32.totalorder %v527_v49, 63  ;;  %v2094_v39 = vadd.f32 %v2030_v45, %v12338_v55  ;;  %v4805_v24 = vrot.slane %v15272_v35, 1  ;;  %v15276_v45 = vld [vmem:[#allocation26_spill] sm:$0xff] }
 0x347   : > { %v4152_v14 = vrot.slane %v4151_v41, 2  ;;  %v4066_v20 = vrot.slane %v4065_v12, 4  ;;  %v2078_v34 = vadd.f32 %v2014_v4, %v15273_v51  ;;  %v1249_v54 = vsel %vm655_vm8, 0.0, %v1153_v38 }
 0x348   : > { %v4073_v16 = vrot.slane %v4072_v48, 4  ;;  %2346 = vperm.xlu0 %8837, %v1249_v54   ;;  %v12505_v21 = vadd.f32 %v12285_v42, %v2094_v39  ;;  %v4806_v60 = vmax.f32 %v15272_v35, %v4805_v24  ;;  %v15275_v29 = vrot.slane %v15274_v33, 2  ;;  %v15279_v42 = vld [vmem:[#allocation22_spill] sm:$0xff] }
 0x349   : > { %v4080_v49 = vrot.slane %v4079_v1, 4  ;;  %v4086_v55 = vsel %vm3140_vm11, %v2857_v17, -inf  ;;  %v4817_v62 = vrot.slane %v15276_v45, 2  ;;  %v5400_v4 = vsel %vm5191_vm13, %v15278_v30, %v15277_v43 }
 0x34a   : > { %v4811_v32 = vmax.f32 %v15274_v33, %v15275_v29  ;;  %v4158_v38 = vmax.f32 %v4156_v8, %v4157_v37  ;;  %v4165_v51 = vmax.f32 %v4163_v27, %v4164_v40  ;;  %v5401_v39 = vsel %vm5193_vm14, %v15279_v42, %v5400_v4  ;;  %v15280_v33 = vld [vmem:[#allocation29_spill] sm:$0xff] }
 0x34b   : > { %v4172_v35 = vmax.f32 %v4170_v9, %v4171_v28  ;;  %v4067_v24 = vmax.f32 %v4065_v12, %v4066_v20  ;;  %v4818_v46 = vmax.f32 %v15276_v45, %v4817_v62  ;;  %v5402_v29 = vsel %vm5195_vm15, %v15280_v33, %v5401_v39  ;;  %v12523_v9 = vpop.permute.xlu2 %2296  ;;  %v12525_v20 = vpop.permute.xlu1 %8886 }
 0x34c   : > { %v4812_v54 = vrot.slane %v4811_v32, 1  ;;  %v4074_v17 = vmax.f32 %v4072_v48, %v4073_v16  ;;  %v4087_v23 = vrot.slane %v4086_v55, 4  ;;  %v5403_v6 = vsel %vm5197_vm1, %v4806_v60, %v5402_v29  ;;  %v15285_v29 = vld [vmem:[#allocation30_spill] sm:$0xff] }
 0x34d   : > { %v4064_v19 = vmax.f32 %v4062_v18, %v4063_v58  ;;  %v4081_v30 = vmax.f32 %v4079_v1, %v4080_v49  ;;  %v2531_v43 = vadd.f32 %v2467_v63, %v2078_v34  ;;  %v4819_v8 = vrot.slane %v4818_v46, 1  ;;  %v8877_v1 = vpop.permute.xlu0 %8876 }
 0x34e   : > { %v4813_v47 = vmax.f32 %v4811_v32, %v4812_v54  ;;  %v5309_v27 = vsel %vm5191_vm13, %v4057_v15, %v5308_v53  ;;  %v4153_v37 = vmax.f32 %v4151_v41, %v4152_v14  ;;  %v4159_v40 = vrot.slane %v4158_v38, 2 }
 0x34f   : > { %v4166_v28 = vrot.slane %v4165_v51, 2  ;;  %v4173_v62 = vrot.slane %v4172_v35, 2  ;;  %v4068_v12 = vrot.slane %v4067_v24, 2  ;;  %v4820_v16 = vmax.f32 %v4818_v46, %v4819_v8 }
 0x350   : > { %v5404_v48 = vsel %vm5199_vm2, %v4813_v47, %v5403_v6  ;;  %v5625_v18 = vrot.slane %v12380_v59, 1  ;;  %v4075_v63 = vrot.slane %v4074_v17, 2  ;;  %v4088_v58 = vmax.f32 %v4086_v55, %v4087_v23  ;;  %v15282_v6 = vld [vmem:[#allocation47_spill] sm:$0xff] }
 0x351   : > { %v12531_v15 = vsel %vm5193_vm14, %v4064_v19, %v5309_v27  ;;  %v4082_v41 = vrot.slane %v4081_v30, 2  ;;  %v2599_v53 = vadd.f32 %v12203_v25, %v2531_v43  ;;  %v12535_v14 = vsel %vm5201_vm3, %v4820_v16, %v5404_v48 }
 0x352   : > { %15281 = vst [vmem:[#allocation20_spill] sm:$0xff] %v12535_v14  ;;  %v4154_v34 = vrot.slane %v4153_v37, 1  ;;  %v8910_v47 = vpack.i.bf16 %v12535_v14, %v15282_v6  ;;  %v5641_v32 = vrot.slane %v12535_v14, 1  ;;  %v12541_v49 = vmax.f32 %v4158_v38, %v4159_v40 }
 0x353   : > { %v12543_v23 = vmax.f32 %v4165_v51, %v4166_v28  ;;  %v12545_v19 = vmax.f32 %v4172_v35, %v4173_v62  ;;  %v4069_v55 = vmax.f32 %v4067_v24, %v4068_v12  ;;  %v4076_v45 = vmax.f32 %v4074_v17, %v4075_v63  ;;  %v15286_v24 = vld [vmem:[#allocation62_spill] sm:$0xff] }
 0x354   : > { %v4089_v4 = vrot.slane %v4088_v58, 2  ;;  %8911 = vrot.lane.b32.xlu2 %v8910_v47, %s9113_s18  ;;  %v15283_v54 = vrot.slane %v12410_v10, 1  ;;  %v15284_v39 = vrot.slane %v15282_v6, 1  ;;  %v4083_v33 = vmax.f32 %v4081_v30, %v4082_v41 }
 0x355   : > { %v12556_v51 = vmax.f32 %v2599_v53, 0.0  ;;  %v5296_v17 = vsel %vm5193_vm14, %v15286_v24, %v15285_v29  ;;  %v8879_v43 = vunpack.i.h.bf16 %v8877_v1  ;;  %v8878_v8 = vunpack.i.l.bf16 %v8877_v1  ;;  %v12582_v53 = vpop.permute.xlu2 %1848 }
 0x356   : > { %v5645_v42 = vsel %vm1137_vm7, %v5641_v32, %v15283_v54  ;;  %v5646_v38 = vsel %vm1137_vm7, %v15284_v39, %v5641_v32  ;;  %v5297_v27 = vsel %vm5195_vm15, %v12242_v3, %v5296_v17  ;;  %v15287_v40 = vrot.slane %v12269_v36, 1  ;;  %v12595_v39 = vpop.permute.xlu1 %1868 }
 0x357   : > { %v8915_v35 = vpack.i.bf16 %v5645_v42, %v5646_v38  ;;  %v4070_v62 = vrot.slane %v4069_v55, 1  ;;  %v2615_v30 = vadd.f32 %v12203_v25, %v12505_v21  ;;  %v15288_v12 = vrot.slane %v12227_v61, 1 }
 0x358   : > { %v5662_v28 = vsel %vm1137_vm7, %v15287_v40, %v5625_v18  ;;  %v5298_v48 = vsel %vm5197_vm1, %v12244_v26, %v5297_v27  ;;  %v12575_v63 = vmax.f32 %v4153_v37, %v4154_v34  ;;  %v4161_v3 = vrot.slane %v12541_v49, 1 }
 0x359   : > { %8916 = vrot.lane.b32.xlu0 %v8915_v35, %s9114_s19  ;;  %v3980_v16 = vmax.f32 %v12227_v61, %v15288_v12  ;;  %v12578_v1 = vmax.f32 %v4088_v58, %v4089_v4  ;;  %v5299_v41 = vsel %vm5199_vm2, %v12246_v31, %v5298_v48  ;;  %v4077_v21 = vrot.slane %v4076_v45, 1  ;;  %v2282_v31 = vpop.permute.xlu0 %2281 }
 0x35a   : > { %v4084_v47 = vrot.slane %v4083_v33, 1  ;;  %v2861_v32 = vrot.slane %v12556_v51, 2  ;;  %v2862_v26 = vrot.slane %v12556_v51, 4  ;;  %v6036_v58 = vsel %vm6029_vm4, %v12480_v22, %v8878_v8 }
 0x35b   : > { %v12586_v61 = vsel %vm5201_vm3, %v3980_v16, %v5299_v41  ;;  %v6037_v34 = vsel %vm6029_vm4, %v12483_v52, %v8879_v43  ;;  %v4071_v4 = vmax.f32 %v4069_v55, %v4070_v62  ;;  %v2863_v54 = vrot.slane %v12556_v51, 6  ;;  %v15293_v16 = vld [vmem:[#allocation6_spill] sm:$0xff] }
 0x35c   : > { %15289 = vst [vmem:[#allocation33_spill] sm:$0xff] %v12586_v61  ;;  %v5626_v37 = vrot.slane %v12586_v61, 1  ;;  %v2679_v42 = vmax.f32 %v2615_v30, 0.0  ;;  %v6065_v38 = vpack.c.bf16 %v6037_v34, %v6036_v58  ;;  %v4028_v29 = vrot.slane %v12313_v0, 1 }
 0x35d   : > { %v15290_v22 = vrot.slane %v12291_v57, 2  ;;  %v5301_v52 = vsel %vm5189_vm12, %v12442_v11, %v12436_v7  ;;  %v8930_v17 = vpack.i.bf16 %v15244_v56, %v12410_v10  ;;  %v2466_v43 = vmul.f32 %v12182_v50, %v2282_v31 }
 0x35e   : > { %v5661_v35 = vsel %vm1137_vm7, %v5625_v18, %v5626_v37  ;;  %8559 = vmatmul.msk.bf16.gmra.mxu0 %vm6130_vm5, %v6065_v38  ;;  %v5302_v18 = vsel %vm5191_vm13, %v12449_v5, %v5301_v52  ;;  %v4121_v8 = vsel %vm3140_vm11, %v12556_v51, -inf  ;;  %v4078_v11 = vmax.f32 %v4076_v45, %v4077_v21  ;;  %v15292_v5 = vld [vmem:[#allocation40_spill] sm:$0xff] }
 0x35f   : > { %v4034_v24 = vmax.f32 %v12291_v57, %v15290_v22  ;;  %v8925_v55 = vpack.i.bf16 %v5661_v35, %v5662_v28  ;;  %v15291_v57 = vrot.slane %v12303_v44, 1  ;;  %v5303_v7 = vsel %vm5193_vm14, %v12456_v13, %v5302_v18 }
 0x360   : > { %v2909_v28 = vrot.slane %v2679_v42, 2  ;;  %v4029_v50 = vmax.f32 %v12313_v0, %v4028_v29  ;;  %v5304_v62 = vsel %vm5195_vm15, %v15292_v5, %v5303_v7  ;;  %v5311_v51 = vsel %vm5195_vm15, %v4071_v4, %v12531_v15  ;;  %v12637_v15 = vpop.permute.xlu2 %1878 }
 0x361   : > { %v4022_v27 = vmax.f32 %v12303_v44, %v15291_v57  ;;  %v4035_v40 = vrot.slane %v4034_v24, 1  ;;  %8926 = vrot.lane.b32.xlu2 %v8925_v55, %s9114_s19  ;;  %8931 = vrot.lane.b32.xlu0 %v8930_v17, %s9113_s18  ;;  %v4128_v44 = vsel %vm3140_vm11, %v2861_v32, -inf  ;;  %v4135_v13 = vsel %vm3140_vm11, %v2862_v26, -inf  ;;  %v1844_v18 = vpop.permute.xlu0 %1843 }
 0x362   : > { %v2910_v45 = vrot.slane %v2679_v42, 4  ;;  %v2530_v48 = vadd.f32 %v2466_v43, %v15293_v16  ;;  %v4085_v21 = vmax.f32 %v4083_v33, %v4084_v47  ;;  %v4122_v0 = vrot.slane %v4121_v8, 4  ;;  %v15296_v16 = vld [vmem:[#allocation16_spill] sm:$0xff] }
 0x363   : > { %v4036_v30 = vmax.f32 %v4034_v24, %v4035_v40  ;;  %v5305_v12 = vsel %vm5197_vm1, %v4022_v27, %v5304_v62  ;;  %v4569_v58 = vsel %vm3140_vm11, %v2679_v42, -inf  ;;  %v4091_v32 = vrot.slane %v12578_v1, 1  ;;  %v12645_v24 = vpop.permute.xlu1 %2311 }
 0x364   : > { %v5306_v41 = vsel %vm5199_vm2, %v4029_v50, %v5305_v12  ;;  %v2911_v31 = vrot.slane %v2679_v42, 6  ;;  %v4576_v4 = vsel %vm3140_vm11, %v2909_v28, -inf  ;;  %v5312_v26 = vsel %vm5197_vm1, %v4078_v11, %v5311_v51 }
 0x365   : > { %v12635_v34 = vsel %vm5201_vm3, %v4036_v30, %v5306_v41  ;;  %v4168_v38 = vrot.slane %v12543_v23, 1  ;;  %v4129_v35 = vrot.slane %v4128_v44, 4  ;;  %v4136_v29 = vrot.slane %v4135_v13, 4 }
 0x366   : > { %15294 = vst [vmem:[#allocation74_spill] sm:$0xff] %v12635_v34  ;;  %v4142_v33 = vsel %vm3140_vm11, %v2863_v54, -inf  ;;  %v4570_v47 = vrot.slane %v4569_v58, 4  ;;  %v4583_v22 = vsel %vm3140_vm11, %v2910_v45, -inf  ;;  %v2598_v52 = vadd.f32 %v12203_v25, %v2530_v48 }
 0x367   : > { %v8940_v42 = vpack.i.bf16 %v12635_v34, %v12586_v61  ;;  %v4175_v55 = vrot.slane %v12545_v19, 1  ;;  %v4123_v17 = vmax.f32 %v4121_v8, %v4122_v0  ;;  %v4577_v43 = vrot.slane %v4576_v4, 4 }
 0x368   : > { %v5313_v57 = vsel %vm5199_vm2, %v4085_v21, %v5312_v26  ;;  %v4162_v54 = vmax.f32 %v12541_v49, %v4161_v3  ;;  %v4092_v27 = vmax.f32 %v12578_v1, %v4091_v32  ;;  %v4143_v40 = vrot.slane %v4142_v33, 4  ;;  %v12666_v49 = vld [vmem:[%s14657_s1 + $0x1] ss:$0 sm:$0xff] }
 0x369   : > { %v4590_v7 = vsel %vm3140_vm11, %v2911_v31, -inf  ;;  %8941 = vrot.lane.b32.xlu2 %v8940_v42, %s9113_s18  ;;  %v12659_v11 = vmax.f32 %v12543_v23, %v4168_v38  ;;  %v4130_v28 = vmax.f32 %v4128_v44, %v4129_v35  ;;  %v12661_v8 = vmax.f32 %v4135_v13, %v4136_v29 }
 0x36a   : > { %v4584_v50 = vrot.slane %v4583_v22, 4  ;;  %v4571_v5 = vmax.f32 %v4569_v58, %v4570_v47  ;;  %v2662_v62 = vmax.f32 %v2598_v52, 0.0  ;;  %v2016_v3 = vmul.f32 %v12666_v49, %v1844_v18  ;;  %v2322_v58 = vpop.permute.xlu2 %2321  ;;  %v12693_v47 = vld [vmem:[%s14657_s1 + $0x2] ss:$0 sm:$0xff] }
 0x36b   : > { %v12670_v1 = vsel %vm5201_vm3, %v4092_v27, %v5313_v57  ;;  %v12673_v51 = vmax.f32 %v12545_v19, %v4175_v55  ;;  %v4124_v23 = vrot.slane %v4123_v17, 2  ;;  %v4578_v44 = vmax.f32 %v4576_v4, %v4577_v43  ;;  %v15297_v4 = vld [vmem:[#allocation46_spill] sm:$0xff]  ;;  %v1854_v42 = vpop.permute.xlu1 %1853 }
 0x36c   : > { %15295 = vst [vmem:[#allocation37_spill] sm:$0xff] %v12670_v1  ;;  %v4591_v30 = vrot.slane %v4590_v7, 4  ;;  %v12677_v12 = vsel %vm5189_vm12, %v4162_v54, %v12575_v63  ;;  %v12679_v13 = vmax.f32 %v4142_v33, %v4143_v40  ;;  %v687_v48 = vand.u32 31, %v15296_v16  ;;  %v15300_v40 = vld [vmem:[#allocation18_spill] sm:$0xff] }
 0x36d   : > { %v4131_v41 = vrot.slane %v4130_v28, 2  ;;  %v2021_v19 = vmul.f32 %v12666_v49, %v12595_v39  ;;  %v14818_v0 = vrot.slane %v12670_v1, 1  ;;  %v4572_v32 = vrot.slane %v4571_v5, 2 }
 0x36e   : > { %v4585_v31 = vmax.f32 %v4583_v22, %v4584_v50  ;;  %v4093_v63 = vsel %vm3140_vm11, %v2662_v62, -inf  ;;  %v2080_v26 = vadd.f32 %v2016_v3, %v15297_v4  ;;  %v4125_v38 = vmax.f32 %v4123_v17, %v4124_v23 }
 0x36f   : > { %v4579_v35 = vrot.slane %v4578_v44, 2  ;;  %v4592_v29 = vmax.f32 %v4590_v7, %v4591_v30  ;;  %v5627_v33 = vrot.slane %v12635_v34, 1  ;;  %v2469_v39 = vmul.f32 %v12693_v47, %v12523_v9 }
 0x370   : > { %v2858_v52 = vrot.slane %v2662_v62, 2  ;;  %vm12697_vm9 = vcmp.eq.s32.totalorder %v687_v48, 31  ;;  %v2474_v55 = vmul.f32 %v12693_v47, %v2322_v58  ;;  %v2859_v17 = vrot.slane %v2662_v62, 4 }
 0x371   : > { %v2860_v43 = vrot.slane %v2662_v62, 6  ;;  %v4094_v18 = vrot.slane %v4093_v63, 4  ;;  %v5659_v57 = vsel %vm1137_vm7, %v5627_v33, %v14818_v0  ;;  %v4573_v54 = vmax.f32 %v4571_v5, %v4572_v32 }
 0x372   : > { %v4586_v27 = vrot.slane %v4585_v31, 2  ;;  %v2085_v9 = vadd.f32 %v2021_v19, %v15300_v40  ;;  %v2533_v7 = vadd.f32 %v2469_v39, %v2080_v26  ;;  %v4126_v50 = vrot.slane %v4125_v38, 1 }
 0x373   : > { %v4580_v3 = vmax.f32 %v4578_v44, %v4579_v35  ;;  %v4593_v23 = vrot.slane %v4592_v29, 2  ;;  %v5755_v30 = vsel %vm12697_vm9, 0.0, %v5659_v57  ;;  %v2017_v62 = vmul.f32 %v12666_v49, %v12582_v53 }
 0x374   : > { %v4100_v48 = vsel %vm3140_vm11, %v2858_v52, -inf  ;;  %v5660_v5 = vsel %vm1137_vm7, %v5626_v37, %v5627_v33  ;;  %v2538_v58 = vadd.f32 %v2474_v55, %v2085_v9  ;;  %v4095_v32 = vmax.f32 %v4093_v63, %v4094_v18  ;;  %v1884_v9 = vpop.permute.xlu1 %1883 }
 0x375   : > { %v4107_v19 = vsel %vm3140_vm11, %v2859_v17, -inf  ;;  %v4114_v44 = vsel %vm3140_vm11, %v2860_v43, -inf  ;;  %v8945_v4 = vpack.i.bf16 %v5755_v30, %v5660_v5  ;;  %v12718_v26 = vmax.f32 %v4130_v28, %v4131_v41  ;;  %v12732_v28 = vld [vmem:[%s14658_s2] ss:$0 sm:$0xff] }
 0x376   : > { %v4574_v35 = vrot.slane %v4573_v54, 1  ;;  %v12720_v39 = vmax.f32 %v4585_v31, %v4586_v27  ;;  %v2601_v53 = vadd.f32 %v12203_v25, %v2533_v7  ;;  %v12723_v52 = vmax.f32 %v4125_v38, %v4126_v50  ;;  %v15302_v31 = vld [vmem:[#allocation38_spill] sm:$0xff] }
 0x377   : > { %v4581_v22 = vrot.slane %v4580_v3, 1  ;;  %v2023_v37 = vmul.f32 %v12666_v49, %v12637_v15  ;;  %8946 = vrot.lane.b32.xlu0 %v8945_v4, %s9114_s19  ;;  %v4101_v63 = vrot.slane %v4100_v48, 4  ;;  %v4108_v33 = vrot.slane %v4107_v19, 4 }
 0x378   : > { %v4115_v55 = vrot.slane %v4114_v44, 4  ;;  %v2606_v25 = vadd.f32 %v12732_v28, %v2538_v58  ;;  %v12735_v41 = vmax.f32 %v4592_v29, %v4593_v23  ;;  %v12738_v38 = vadd.f32 %v2017_v62, %v15302_v31  ;;  %v15305_v29 = vld [vmem:[#allocation44_spill] sm:$0xff]  ;;  %v15306_v23 = vld [vmem:[#allocation2_spill] sm:$0xff] }
 0x379   : > { %v4096_v17 = vrot.slane %v4095_v32, 2  ;;  %v2018_v15 = vmul.f32 %v12666_v49, %v1854_v42  ;;  %v12741_v43 = vmax.f32 %v4573_v54, %v4574_v35  ;;  %v12746_v27 = vmul.f32 %v12693_v47, %v12645_v24  ;;  %v15307_v62 = vld [vmem:[#allocation54_spill] sm:$0xff]  ;;  %v8882_v42 = vpop.permute.xlu0 %8881  ;;  %v6193_v54 = vpop.f32.mrf.mxu0 }
 0x37a   : > { %15301 = vst [vmem:[#allocation25_spill] sm:$0xff] %v12735_v41  ;;  %v2665_v40 = vmax.f32 %v2601_v53, 0.0  ;;  %v12748_v7 = vmax.f32 %v4580_v3, %v4581_v22  ;;  %v12751_v50 = vadd.f32 %v2023_v37, %v15305_v29  ;;  %v680_v30 = vand.u32 31, %v15306_v23  ;;  %v15308_v53 = vld [vmem:[#allocation15_spill] sm:$0xff]  ;;  %v15309_v29 = vld [vmem:[#allocation24_spill] sm:$0xff]  ;;  %v1864_v41 = vpop.permute.xlu2 %1863 }
 0x37b   : > { %15303 = vst [vmem:[#allocation72_spill] sm:$0xff] %v12741_v43  ;;  %v5460_v5 = vrot.slane %v15307_v62, 7  ;;  %v4102_v58 = vmax.f32 %v4100_v48, %v4101_v63  ;;  %v4109_v4 = vmax.f32 %v4107_v19, %v4108_v33  ;;  %v4116_v35 = vmax.f32 %v4114_v44, %v4115_v55  ;;  %v12767_v48 = vld [vmem:[%s14660_s4] ss:$0 sm:$0xff]  ;;  %v15312_v44 = vld [vmem:[#allocation67_spill] sm:$0xff] }
 0x37c   : > { %15304 = vst [vmem:[#allocation70_spill] sm:$0xff] %v12748_v7  ;;  %v2670_v31 = vmax.f32 %v2606_v25, 0.0  ;;  %v4097_v60 = vmax.f32 %v4095_v32, %v4096_v17  ;;  %v12757_v57 = vadd.f32 %v2018_v15, %v15308_v53  ;;  %v12760_v3 = vmul.f32 %v12666_v49, %v1884_v9 }
 0x37d   : > { %v2867_v22 = vrot.slane %v2665_v40, 2  ;;  %v4177_v37 = vsel %vm3140_vm11, %v2665_v40, -inf  ;;  %v14822_v62 = vrot.slane %v15309_v29, 7  ;;  %v6194_v32 = vadd.f32 %v12767_v48, %v6193_v54 }
 0x37e   : > { %vm12770_vm8 = vcmp.eq.s32.totalorder %v680_v30, 0  ;;  %v15313_v63 = vrot.slane %v15312_v44, 7  ;;  %v8884_v55 = vunpack.i.h.bf16 %v8882_v42  ;;  %v8883_v25 = vunpack.i.l.bf16 %v8882_v42 }
 0x37f   : > { %v4103_v17 = vrot.slane %v4102_v58, 2  ;;  %v4110_v15 = vrot.slane %v4109_v4, 2  ;;  %v4117_v9 = vrot.slane %v4116_v35, 2  ;;  %v2882_v53 = vrot.slane %v2670_v31, 2 }
 0x380   : > { %v5507_v33 = vsel %vm944_vm0, %v15313_v63, %v5460_v5  ;;  %v2868_v24 = vrot.slane %v2665_v40, 4  ;;  %v2869_v18 = vrot.slane %v2665_v40, 6  ;;  %v4178_v0 = vrot.slane %v4177_v37, 4 }
 0x381   : > { %v12778_v21 = vmax.f32 %v6194_v32, 0.0  ;;  %v4184_v30 = vsel %vm3140_vm11, %v2867_v22, -inf  ;;  %v2883_v54 = vrot.slane %v2670_v31, 4  ;;  %v5506_v44 = vsel %vm944_vm0, %v5460_v5, %v14822_v62  ;;  %v6195_v7 = vpop.f32.mrf.mxu0 }
 0x382   : > { %v5588_v42 = vsel %vm12770_vm8, 0.0, %v5507_v33  ;;  %v4098_v63 = vrot.slane %v4097_v60, 1  ;;  %v2884_v46 = vrot.slane %v2670_v31, 6  ;;  %v6006_v45 = vsel %vm5996_vm10, %v5506_v44, %v8884_v55  ;;  %v1859_v33 = vpop.permute.xlu0 %1858 }
 0x383   : > { %v6005_v40 = vsel %vm5996_vm10, %v5588_v42, %v8883_v25  ;;  %v4104_v23 = vmax.f32 %v4102_v58, %v4103_v17  ;;  %v4111_v32 = vmax.f32 %v4109_v4, %v4110_v15  ;;  %v4317_v16 = vsel %vm3140_vm11, %v2670_v31, -inf }
 0x384   : > { %v4324_v22 = vsel %vm3140_vm11, %v2882_v53, -inf  ;;  %v4185_v34 = vrot.slane %v4184_v30, 4  ;;  %v4191_v61 = vsel %vm3140_vm11, %v2868_v24, -inf  ;;  %v4198_v5 = vsel %vm3140_vm11, %v2869_v18, -inf }
 0x385   : > { %v6338_v19 = vrot.slane %v12778_v21, 2  ;;  %v4179_v62 = vmax.f32 %v4177_v37, %v4178_v0  ;;  %v4331_v56 = vsel %vm3140_vm11, %v2883_v54, -inf  ;;  %v15314_v55 = vunpack.i.l.bf16 %v12525_v20 }
 0x386   : > { %v15315_v4 = vunpack.i.h.bf16 %v12525_v20  ;;  %v4318_v25 = vrot.slane %v4317_v16, 4  ;;  %v4325_v17 = vrot.slane %v4324_v22, 4  ;;  %v4338_v24 = vsel %vm3140_vm11, %v2884_v46, -inf }
 0x387   : > { %v6038_v58 = vsel %vm6029_vm4, %v6005_v40, %v15314_v55  ;;  %v4099_v18 = vmax.f32 %v4097_v60, %v4098_v63  ;;  %v4118_v53 = vmax.f32 %v4116_v35, %v4117_v9  ;;  %v6339_v44 = vrot.slane %v12778_v21, 4 }
 0x388   : > { %v6039_v31 = vsel %vm6029_vm4, %v6006_v45, %v15315_v4  ;;  %v2019_v0 = vmul.f32 %v12666_v49, %v1859_v33  ;;  %v4186_v37 = vmax.f32 %v4184_v30, %v4185_v34  ;;  %v4192_v54 = vrot.slane %v4191_v61, 4  ;;  %v15316_v30 = vld [vmem:[#allocation14_spill] sm:$0xff] }
 0x389   : > { %v6066_v15 = vpack.c.bf16 %v6039_v31, %v6038_v58  ;;  %v4332_v42 = vrot.slane %v4331_v56, 4  ;;  %v6588_v40 = vsel %vm6524_vm6, %v6338_v19, -inf  ;;  %v4105_v20 = vrot.slane %v4104_v23, 1 }
 0x38a   : > { %v4112_v45 = vrot.slane %v4111_v32, 1  ;;  %v4199_v55 = vrot.slane %v4198_v5, 4  ;;  %v4339_v4 = vrot.slane %v4338_v24, 4  ;;  %v4180_v10 = vrot.slane %v4179_v62, 2 }
 0x38b   : > { %8560 = vmatmul.msk.bf16.gmra.mxu0 %vm6130_vm5, %v6066_v15  ;;  %v4319_v46 = vmax.f32 %v4317_v16, %v4318_v25  ;;  %v4326_v58 = vmax.f32 %v4324_v22, %v4325_v17  ;;  %v6581_v60 = vsel %vm6524_vm6, %v12778_v21, -inf  ;;  %v6340_v35 = vrot.slane %v12778_v21, 6 }
 0x38c   : > { %v6589_v9 = vrot.slane %v6588_v40, 4  ;;  %v6595_v34 = vsel %vm6524_vm6, %v6339_v44, -inf  ;;  %v2083_v63 = vadd.f32 %v2019_v0, %v15316_v30  ;;  %v4119_v19 = vrot.slane %v4118_v53, 1 }
 0x38d   : > { %v4187_v33 = vrot.slane %v4186_v37, 2  ;;  %v4193_v31 = vmax.f32 %v4191_v61, %v4192_v54  ;;  %v4333_v15 = vmax.f32 %v4331_v56, %v4332_v42  ;;  %v4106_v59 = vmax.f32 %v4104_v23, %v4105_v20 }
 0x38e   : > { %v12811_v36 = vmax.f32 %v4111_v32, %v4112_v45  ;;  %v4340_v14 = vmax.f32 %v4338_v24, %v4339_v4  ;;  %v6582_v16 = vrot.slane %v6581_v60, 4  ;;  %v4181_v22 = vmax.f32 %v4179_v62, %v4180_v10 }
 0x38f   : > { %v4200_v25 = vmax.f32 %v4198_v5, %v4199_v55  ;;  %v4327_v17 = vrot.slane %v4326_v58, 2  ;;  %v6596_v6 = vrot.slane %v6595_v34, 4  ;;  %v4320_v21 = vrot.slane %v4319_v46, 2 }
 0x390   : > { %v6590_v43 = vmax.f32 %v6588_v40, %v6589_v9  ;;  %v6602_v44 = vsel %vm6524_vm6, %v6340_v35, -inf  ;;  %v2536_v0 = vadd.f32 %v12746_v27, %v2083_v63  ;;  %v12815_v30 = vmax.f32 %v4118_v53, %v4119_v19  ;;  %v15317_v35 = vld [vmem:[#allocation49_spill] sm:$0xff] }
 0x391   : > { %v4188_v56 = vmax.f32 %v4186_v37, %v4187_v33  ;;  %v4194_v61 = vrot.slane %v4193_v31, 2  ;;  %v4334_v23 = vrot.slane %v4333_v15, 2  ;;  %v12818_v32 = vsel %vm5189_vm12, %v4106_v59, %v4099_v18 }
 0x392   : > { %v4341_v10 = vrot.slane %v4340_v14, 2  ;;  %v6583_v62 = vmax.f32 %v6581_v60, %v6582_v16  ;;  %v6196_v5 = vadd.f32 %v12767_v48, %v6195_v7  ;;  %v4201_v24 = vrot.slane %v4200_v25, 2 }
 0x393   : > { %v4328_v54 = vmax.f32 %v4326_v58, %v4327_v17  ;;  %v6597_v42 = vmax.f32 %v6595_v34, %v6596_v6  ;;  %v6603_v40 = vrot.slane %v6602_v44, 4  ;;  %v4182_v20 = vrot.slane %v4181_v22, 1  ;;  %v2327_v58 = vpop.permute.xlu1 %2326 }
 0x394   : > { %v4321_v45 = vmax.f32 %v4319_v46, %v4320_v21  ;;  %v6591_v55 = vrot.slane %v6590_v43, 2  ;;  %v2604_v27 = vadd.f32 %v12732_v28, %v2536_v0  ;;  %v4189_v53 = vrot.slane %v4188_v56, 1 }
 0x395   : > { %v12822_v37 = vmax.f32 %v4193_v31, %v4194_v61  ;;  %v4335_v4 = vmax.f32 %v4333_v15, %v4334_v23  ;;  %v12826_v59 = vadd.f32 %v12760_v3, %v15317_v35  ;;  %v4342_v18 = vmax.f32 %v4340_v14, %v4341_v10 }
 0x396   : > { %v6584_v60 = vrot.slane %v6583_v62, 2  ;;  %v2020_v7 = vmul.f32 %v12666_v49, %v1864_v41  ;;  %v12829_v6 = vmax.f32 %v6196_v5, 0.0  ;;  %v12831_v9 = vmax.f32 %v4200_v25, %v4201_v24  ;;  %v15318_v25 = vld [vmem:[#allocation41_spill] sm:$0xff] }
 0x397   : > { %v4329_v46 = vrot.slane %v4328_v54, 1  ;;  %v6598_v34 = vrot.slane %v6597_v42, 2  ;;  %v6604_v63 = vmax.f32 %v6602_v44, %v6603_v40  ;;  %v12833_v19 = vmax.f32 %v4181_v22, %v4182_v20  ;;  %v2307_v22 = vpop.permute.xlu2 %2306 }
 0x398   : > { %v4322_v33 = vrot.slane %v4321_v45, 1  ;;  %v6592_v31 = vmax.f32 %v6590_v43, %v6591_v55  ;;  %v2668_v15 = vmax.f32 %v2604_v27, 0.0  ;;  %v12835_v16 = vmax.f32 %v4188_v56, %v4189_v53  ;;  %v15319_v27 = vld [vmem:[#allocation36_spill] sm:$0xff] }
 0x399   : > { %v4336_v3 = vrot.slane %v4335_v4, 1  ;;  %v12839_v41 = vmul.f32 %v12693_v47, %v2327_v58  ;;  %v4343_v17 = vrot.slane %v4342_v18, 1  ;;  %v6585_v21 = vmax.f32 %v6583_v62, %v6584_v60 }
 0x39a   : > { %v12842_v0 = vadd.f32 %v2020_v7, %v15318_v25  ;;  %v6341_v44 = vrot.slane %v12829_v6, 2  ;;  %v4330_v61 = vmax.f32 %v4328_v54, %v4329_v46  ;;  %v6599_v23 = vmax.f32 %v6597_v42, %v6598_v34 }
 0x39b   : > { %v6605_v43 = vrot.slane %v6604_v63, 2  ;;  %v6609_v56 = vsel %vm6524_vm6, %v12829_v6, -inf  ;;  %v4323_v10 = vmax.f32 %v4321_v45, %v4322_v33  ;;  %v6593_v5 = vrot.slane %v6592_v31, 1 }
 0x39c   : > { %v2876_v24 = vrot.slane %v2668_v15, 2  ;;  %v2877_v40 = vrot.slane %v2668_v15, 4  ;;  %v12847_v20 = vmax.f32 %v4335_v4, %v4336_v3  ;;  %v4261_v62 = vsel %vm3140_vm11, %v2668_v15, -inf }
 0x39d   : > { %v2471_v55 = vmul.f32 %v12693_v47, %v2307_v22  ;;  %v14832_v53 = vrot.slane %v15319_v27, 7  ;;  %v6586_v35 = vrot.slane %v6585_v21, 1  ;;  %v2878_v60 = vrot.slane %v2668_v15, 6 }
 0x39e   : > { %v6610_v54 = vrot.slane %v6609_v56, 4  ;;  %v6616_v42 = vsel %vm6524_vm6, %v6341_v44, -inf  ;;  %v12853_v7 = vmax.f32 %v4342_v18, %v4343_v17  ;;  %v12856_v45 = vsel %vm5189_vm12, %v4330_v61, %v4323_v10 }
 0x39f   : > { %v6600_v58 = vrot.slane %v6599_v23, 1  ;;  %v6606_v46 = vmax.f32 %v6604_v63, %v6605_v43  ;;  %v6594_v4 = vmax.f32 %v6592_v31, %v6593_v5  ;;  %v4262_v34 = vrot.slane %v4261_v62, 4 }
 0x3a0   : > { %15320 = vst [vmem:[#allocation10_spill] sm:$0xff] %v12853_v7  ;;  %v4268_v33 = vsel %vm3140_vm11, %v2876_v24, -inf  ;;  %v4275_v3 = vsel %vm3140_vm11, %v2877_v40, -inf  ;;  %v6342_v25 = vrot.slane %v12829_v6, 4  ;;  %v6617_v22 = vrot.slane %v6616_v42, 4 }
 0x3a1   : > { %v2535_v15 = vadd.f32 %v2471_v55, %v12757_v57  ;;  %v4145_v44 = vrot.slane %v12679_v13, 2  ;;  %v6587_v18 = vmax.f32 %v6585_v21, %v6586_v35  ;;  %v4282_v17 = vsel %vm3140_vm11, %v2878_v60, -inf  ;;  %v2302_v57 = vpop.permute.xlu0 %2301 }
 0x3a2   : > { %v6611_v61 = vmax.f32 %v6609_v56, %v6610_v54  ;;  %v15321_v63 = vrot.slane %v15309_v29, 7  ;;  %v6607_v43 = vrot.slane %v6606_v46, 1  ;;  %v4269_v10 = vrot.slane %v4268_v33, 4 }
 0x3a3   : > { %v4276_v5 = vrot.slane %v4275_v3, 4  ;;  %v6343_v24 = vrot.slane %v12829_v6, 6  ;;  %v6601_v40 = vmax.f32 %v6599_v23, %v6600_v58  ;;  %v7556_v21 = vsel %vm5189_vm12, %v6594_v4, %v6587_v18 }
 0x3a4   : > { %v12870_v31 = vsel %vm944_vm0, %v15321_v63, %v14832_v53  ;;  %v4263_v55 = vmax.f32 %v4261_v62, %v4262_v34  ;;  %v15322_v56 = vrot.slane %v12661_v8, 2  ;;  %v4283_v60 = vrot.slane %v4282_v17, 4 }
 0x3a5   : > { %v6618_v29 = vmax.f32 %v6616_v42, %v6617_v22  ;;  %v6623_v54 = vsel %vm6524_vm6, %v6342_v25, -inf  ;;  %v4146_v63 = vmax.f32 %v12679_v13, %v4145_v44  ;;  %v6612_v53 = vrot.slane %v6611_v61, 2 }
 0x3a6   : > { %v4139_v35 = vmax.f32 %v12661_v8, %v15322_v56  ;;  %v2603_v14 = vadd.f32 %v12732_v28, %v2535_v15  ;;  %v2470_v6 = vmul.f32 %v12693_v47, %v2302_v57  ;;  %v5316_v23 = vsel %vm5191_vm13, %v12811_v36, %v12818_v32 }
 0x3a7   : > { %v4270_v62 = vmax.f32 %v4268_v33, %v4269_v10  ;;  %v4277_v58 = vmax.f32 %v4275_v3, %v4276_v5  ;;  %v6630_v4 = vsel %vm6524_vm6, %v6343_v24, -inf  ;;  %v4133_v8 = vrot.slane %v12718_v26, 1 }
 0x3a8   : > { %v12886_v42 = vmax.f32 %v6606_v46, %v6607_v43  ;;  %v4264_v34 = vrot.slane %v4263_v55, 2  ;;  %v6624_v25 = vrot.slane %v6623_v54, 4  ;;  %v4140_v13 = vrot.slane %v4139_v35, 1 }
 0x3a9   : > { %v4284_v22 = vmax.f32 %v4282_v17, %v4283_v60  ;;  %v6619_v44 = vrot.slane %v6618_v29, 2  ;;  %v4147_v15 = vrot.slane %v4146_v63, 1  ;;  %v5317_v18 = vsel %vm5193_vm14, %v12815_v30, %v5316_v23  ;;  %v2337_v60 = vpop.permute.xlu2 %2336 }
 0x3aa   : > { %15323 = vst [vmem:[#allocation27_spill] sm:$0xff] %v12886_v42  ;;  %v12891_v57 = vsel %vm5191_vm13, %v6601_v40, %v7556_v21  ;;  %v6631_v36 = vrot.slane %v6630_v4, 4  ;;  %v2667_v32 = vmax.f32 %v2603_v14, 0.0  ;;  %v2534_v33 = vadd.f32 %v2470_v6, %v12738_v38 }
 0x3ab   : > { %15324 = vst [vmem:[#allocation13_spill] sm:$0xff] %v12891_v57  ;;  %v4271_v3 = vrot.slane %v4270_v62, 2  ;;  %v4278_v10 = vrot.slane %v4277_v58, 2  ;;  %v6613_v46 = vmax.f32 %v6611_v61, %v6612_v53  ;;  %v4134_v43 = vmax.f32 %v12718_v26, %v4133_v8 }
 0x3ac   : > { %v4265_v5 = vmax.f32 %v4263_v55, %v4264_v34  ;;  %v6625_v24 = vmax.f32 %v6623_v54, %v6624_v25  ;;  %v4141_v17 = vmax.f32 %v4139_v35, %v4140_v13  ;;  %v5318_v56 = vsel %vm5195_vm15, %v12723_v52, %v5317_v18  ;;  %v2332_v52 = vpop.permute.xlu0 %2331 }
 0x3ad   : > { %v4285_v30 = vrot.slane %v4284_v22, 2  ;;  %v6620_v23 = vmax.f32 %v6618_v29, %v6619_v44  ;;  %v4148_v40 = vmax.f32 %v4146_v63, %v4147_v15  ;;  %v5319_v21 = vsel %vm5197_vm1, %v4134_v43, %v5318_v56 }
 0x3ae   : > { %v6632_v14 = vmax.f32 %v6630_v4, %v6631_v36  ;;  %v2873_v42 = vrot.slane %v2667_v32, 2  ;;  %v2602_v38 = vadd.f32 %v12732_v28, %v2534_v33  ;;  %v5320_v53 = vsel %vm5199_vm2, %v4141_v17, %v5319_v21 }
 0x3af   : > { %v4272_v61 = vmax.f32 %v4270_v62, %v4271_v3  ;;  %v4279_v26 = vmax.f32 %v4277_v58, %v4278_v10  ;;  %v12901_v55 = vsel %vm5201_vm3, %v4148_v40, %v5320_v53  ;;  %v2477_v35 = vmul.f32 %v12693_v47, %v2337_v60  ;;  %v12920_v40 = vpop.permute.xlu1 %8896 }
 0x3b0   : > { %15325 = vst [vmem:[#allocation61_spill] sm:$0xff] %v12901_v55  ;;  %v6626_v54 = vrot.slane %v6625_v24, 2  ;;  %v2874_v6 = vrot.slane %v2667_v32, 4  ;;  %v2875_v29 = vrot.slane %v2667_v32, 6  ;;  %v8950_v63 = vpack.i.bf16 %v12901_v55, %v12670_v1 }
 0x3b1   : > { %v4266_v4 = vrot.slane %v4265_v5, 1  ;;  %v4286_v8 = vmax.f32 %v4284_v22, %v4285_v30  ;;  %v6614_v34 = vrot.slane %v6613_v46, 1  ;;  %v6621_v25 = vrot.slane %v6620_v23, 1 }
 0x3b2   : > { %v4233_v13 = vsel %vm3140_vm11, %v2667_v32, -inf  ;;  %v4240_v62 = vsel %vm3140_vm11, %v2873_v42, -inf  ;;  %v2666_v58 = vmax.f32 %v2602_v38, 0.0  ;;  %8951 = vrot.lane.b32.xlu1 %v8950_v63, %s9113_s18  ;;  %v2476_v44 = vmul.f32 %v12693_v47, %v2332_v52 }
 0x3b3   : > { %v4273_v15 = vrot.slane %v4272_v61, 1  ;;  %v4280_v18 = vrot.slane %v4279_v26, 1  ;;  %v6633_v36 = vrot.slane %v6632_v14, 2  ;;  %v2541_v33 = vadd.f32 %v2477_v35, %v12826_v59 }
 0x3b4   : > { %v6627_v3 = vmax.f32 %v6625_v24, %v6626_v54  ;;  %v4247_v10 = vsel %vm3140_vm11, %v2874_v6, -inf  ;;  %v4254_v22 = vsel %vm3140_vm11, %v2875_v29, -inf  ;;  %v2540_v43 = vadd.f32 %v2476_v44, %v12751_v50 }
 0x3b5   : > { %v4287_v32 = vrot.slane %v4286_v8, 1  ;;  %v12914_v17 = vmax.f32 %v6613_v46, %v6614_v34  ;;  %v4234_v42 = vrot.slane %v4233_v13, 4  ;;  %v4241_v56 = vrot.slane %v4240_v62, 4 }
 0x3b6   : > { %v12916_v60 = vmax.f32 %v4265_v5, %v4266_v4  ;;  %v12918_v30 = vmax.f32 %v6620_v23, %v6621_v25  ;;  %v2870_v21 = vrot.slane %v2666_v58, 2  ;;  %v2608_v59 = vadd.f32 %v12732_v28, %v2540_v43 }
 0x3b7   : > { %15326 = vst [vmem:[#allocation60_spill] sm:$0xff] %v12914_v17  ;;  %v4248_v24 = vrot.slane %v4247_v10, 4  ;;  %v4255_v38 = vrot.slane %v4254_v22, 4  ;;  %v2871_v53 = vrot.slane %v2666_v58, 4  ;;  %v2609_v35 = vadd.f32 %v12732_v28, %v2541_v33  ;;  %v15333_v17 = vld [vmem:[#allocation17_spill] sm:$0xff] }
 0x3b8   : > { %15327 = vst [vmem:[#allocation57_spill] sm:$0xff] %v12918_v30  ;;  %v12924_v50 = vmax.f32 %v4272_v61, %v4273_v15  ;;  %v12926_v46 = vmax.f32 %v4279_v26, %v4280_v18  ;;  %v6628_v52 = vrot.slane %v6627_v3, 1  ;;  %v12928_v54 = vmax.f32 %v6632_v14, %v6633_v36  ;;  %v12951_v15 = vpop.permute.xlu2 %8901 }
 0x3b9   : > { %v12930_v5 = vmax.f32 %v4286_v8, %v4287_v32  ;;  %v4235_v23 = vmax.f32 %v4233_v13, %v4234_v42  ;;  %v12932_v6 = vmax.f32 %v4240_v62, %v4241_v56  ;;  %v2872_v63 = vrot.slane %v2666_v58, 6  ;;  %v12970_v56 = vpop.permute.xlu1 %1509 }
 0x3ba   : > { %15328 = vst [vmem:[#allocation53_spill] sm:$0xff] %v12928_v54  ;;  %v4205_v4 = vsel %vm3140_vm11, %v2666_v58, -inf  ;;  %v4212_v34 = vsel %vm3140_vm11, %v2870_v21, -inf  ;;  %v12937_v25 = vmax.f32 %v2608_v59, 0.0  ;;  %v12939_v61 = vmax.f32 %v4247_v10, %v4248_v24 }
 0x3bb   : > { %15329 = vst [vmem:[#allocation63_spill] sm:$0xff] %v12930_v5  ;;  %v12941_v26 = vmax.f32 %v4254_v22, %v4255_v38  ;;  %v4219_v14 = vsel %vm3140_vm11, %v2871_v53, -inf  ;;  %v2673_v8 = vmax.f32 %v2609_v35, 0.0  ;;  %v12944_v44 = vmax.f32 %v6627_v3, %v6628_v52 }
 0x3bc   : > { %v5323_v58 = vsel %vm5191_vm13, %v12659_v11, %v12677_v12  ;;  %v4236_v18 = vrot.slane %v4235_v23, 2  ;;  %v4243_v36 = vrot.slane %v12932_v6, 2  ;;  %v4206_v33 = vrot.slane %v4205_v4, 4 }
 0x3bd   : > { %15330 = vst [vmem:[#allocation51_spill] sm:$0xff] %v12944_v44  ;;  %v4213_v10 = vrot.slane %v4212_v34, 4  ;;  %v4220_v22 = vrot.slane %v4219_v14, 4  ;;  %v4226_v43 = vsel %vm3140_vm11, %v2872_v63, -inf  ;;  %v2888_v3 = vrot.slane %v12937_v25, 2 }
 0x3be   : > { %v4203_v32 = vrot.slane %v12831_v9, 1  ;;  %v4250_v42 = vrot.slane %v12939_v61, 2  ;;  %v2891_v21 = vrot.slane %v2673_v8, 2  ;;  %v5324_v11 = vsel %vm5193_vm14, %v12673_v51, %v5323_v58 }
 0x3bf   : > { %v2892_v12 = vrot.slane %v2673_v8, 4  ;;  %v4401_v59 = vsel %vm3140_vm11, %v2673_v8, -inf  ;;  %v15331_v24 = vrot.slane %v12822_v37, 1  ;;  %v5325_v53 = vsel %vm5195_vm15, %v12833_v19, %v5324_v11 }
 0x3c0   : > { %v12967_v35 = vmax.f32 %v4235_v23, %v4236_v18  ;;  %v4207_v52 = vmax.f32 %v4205_v4, %v4206_v33  ;;  %v4227_v63 = vrot.slane %v4226_v43, 4  ;;  %v2889_v13 = vrot.slane %v12937_v25, 4 }
 0x3c1   : > { %v4197_v38 = vmax.f32 %v12822_v37, %v15331_v24  ;;  %v4214_v29 = vmax.f32 %v4212_v34, %v4213_v10  ;;  %v4221_v62 = vmax.f32 %v4219_v14, %v4220_v22  ;;  %v4380_v51 = vsel %vm3140_vm11, %v2888_v3, -inf  ;;  %v1874_v10 = vpop.permute.xlu0 %1873 }
 0x3c2   : > { %v4204_v58 = vmax.f32 %v12831_v9, %v4203_v32  ;;  %v2893_v44 = vrot.slane %v2673_v8, 6  ;;  %v4402_v30 = vrot.slane %v4401_v59, 4  ;;  %v4408_v37 = vsel %vm3140_vm11, %v2891_v21, -inf  ;;  %v1889_v21 = vpop.permute.xlu2 %1888 }
 0x3c3   : > { %v5326_v19 = vsel %vm5197_vm1, %v12835_v16, %v5325_v53  ;;  %v5629_v23 = vrot.slane %v12901_v55, 1  ;;  %v4415_v4 = vsel %vm3140_vm11, %v2892_v12, -inf  ;;  %v4373_v34 = vsel %vm3140_vm11, %v12937_v25, -inf }
 0x3c4   : > { %v5327_v14 = vsel %vm5199_vm2, %v4197_v38, %v5326_v19  ;;  %v2890_v18 = vrot.slane %v12937_v25, 6  ;;  %v4381_v33 = vrot.slane %v4380_v51, 4  ;;  %v4387_v9 = vsel %vm3140_vm11, %v2889_v13, -inf }
 0x3c5   : > { %v12985_v8 = vsel %vm5201_vm3, %v4204_v58, %v5327_v14  ;;  %v4215_v22 = vrot.slane %v4214_v29, 2  ;;  %v4228_v16 = vmax.f32 %v4226_v43, %v4227_v63  ;;  %v4409_v3 = vrot.slane %v4408_v37, 4 }
 0x3c6   : > { %v14835_v32 = vrot.slane %v12985_v8, 1  ;;  %v4403_v11 = vmax.f32 %v4401_v59, %v4402_v30  ;;  %v4416_v12 = vrot.slane %v4415_v4, 4  ;;  %v4422_v24 = vsel %vm3140_vm11, %v2893_v44, -inf }
 0x3c7   : > { %v4374_v38 = vrot.slane %v4373_v34, 4  ;;  %v4388_v53 = vrot.slane %v4387_v9, 4  ;;  %v15332_v13 = vrot.slane %v12670_v1, 1  ;;  %v2022_v63 = vmul.f32 %v12666_v49, %v1874_v10 }
 0x3c8   : > { %v5657_v25 = vsel %vm1137_vm7, %v5629_v23, %v14835_v32  ;;  %v4382_v58 = vmax.f32 %v4380_v51, %v4381_v33  ;;  %v4394_v30 = vsel %vm3140_vm11, %v2890_v18, -inf  ;;  %v2025_v44 = vmul.f32 %v12666_v49, %v1889_v21  ;;  %v2342_v21 = vpop.permute.xlu1 %2341 }
 0x3c9   : > { %v5658_v43 = vsel %vm1137_vm7, %v15332_v13, %v5629_v23  ;;  %v13001_v19 = vmax.f32 %v12932_v6, %v4243_v36  ;;  %v4208_v14 = vrot.slane %v4207_v52, 2  ;;  %v4423_v54 = vrot.slane %v4422_v24, 4 }
 0x3ca   : > { %v8955_v59 = vpack.i.bf16 %v5657_v25, %v5658_v43  ;;  %v2086_v32 = vadd.f32 %v2022_v63, %v15333_v17  ;;  %v13005_v1 = vmax.f32 %v12939_v61, %v4250_v42  ;;  %v4222_v57 = vrot.slane %v4221_v62, 2  ;;  %v15334_v43 = vld [vmem:[#allocation48_spill] sm:$0xff] }
 0x3cb   : > { %v4410_v23 = vmax.f32 %v4408_v37, %v4409_v3  ;;  %v4375_v13 = vmax.f32 %v4373_v34, %v4374_v38  ;;  %v4216_v51 = vmax.f32 %v4214_v29, %v4215_v22  ;;  %v4229_v18 = vrot.slane %v4228_v16, 2 }
 0x3cc   : > { %8956 = vrot.lane.b32.xlu2 %v8955_v59, %s9114_s19  ;;  %v4389_v33 = vmax.f32 %v4387_v9, %v4388_v53  ;;  %v4395_v10 = vrot.slane %v4394_v30, 4  ;;  %v4404_v25 = vrot.slane %v4403_v11, 2  ;;  %v4417_v6 = vmax.f32 %v4415_v4, %v4416_v12 }
 0x3cd   : > { %v4383_v36 = vrot.slane %v4382_v58, 2  ;;  %v2089_v7 = vadd.f32 %v2025_v44, %v15334_v43  ;;  %v4238_v17 = vrot.slane %v12967_v35, 1  ;;  %v4209_v63 = vmax.f32 %v4207_v52, %v4208_v14  ;;  %v15347_v44 = vld [vmem:[#allocation68_spill] sm:$0xff] }
 0x3ce   : > { %v4424_v61 = vmax.f32 %v4422_v24, %v4423_v54  ;;  %v2539_v42 = vadd.f32 %v12839_v41, %v2086_v32  ;;  %v4223_v37 = vmax.f32 %v4221_v62, %v4222_v57  ;;  %v4411_v34 = vrot.slane %v4410_v23, 2 }
 0x3cf   : > { %v4376_v3 = vrot.slane %v4375_v13, 2  ;;  %v2478_v29 = vmul.f32 %v12693_v47, %v2342_v21  ;;  %v4217_v22 = vrot.slane %v4216_v51, 1  ;;  %v4230_v9 = vmax.f32 %v4228_v16, %v4229_v18 }
 0x3d0   : > { %v4390_v38 = vrot.slane %v4389_v33, 2  ;;  %v4396_v53 = vmax.f32 %v4394_v30, %v4395_v10  ;;  %v4405_v59 = vmax.f32 %v4403_v11, %v4404_v25  ;;  %v4418_v4 = vrot.slane %v4417_v6, 2 }
 0x3d1   : > { %v4384_v12 = vmax.f32 %v4382_v58, %v4383_v36  ;;  %v2542_v5 = vadd.f32 %v2478_v29, %v2089_v7  ;;  %v4210_v43 = vrot.slane %v4209_v63, 1  ;;  %v4425_v52 = vrot.slane %v4424_v61, 2  ;;  %v6198_v36 = vpop.f32.mrf.mxu0 }
 0x3d2   : > { %v2607_v54 = vadd.f32 %v12732_v28, %v2539_v42  ;;  %v13015_v41 = vmax.f32 %v12967_v35, %v4238_v17  ;;  %v4224_v57 = vrot.slane %v4223_v37, 1  ;;  %v4412_v62 = vmax.f32 %v4410_v23, %v4411_v34  ;;  %v13023_v35 = vld [vmem:[%s14657_s1] ss:$0 sm:$0xff] }
 0x3d3   : > { %v4377_v32 = vmax.f32 %v4375_v13, %v4376_v3  ;;  %v4218_v24 = vmax.f32 %v4216_v51, %v4217_v22  ;;  %v4231_v16 = vrot.slane %v4230_v9, 1  ;;  %v4391_v14 = vmax.f32 %v4389_v33, %v4390_v38  ;;  %15336 = vst [vmem:[#allocation28_spill] sm:$0xff] %v13023_v35 }
 0x3d4   : > { %v4397_v30 = vrot.slane %v4396_v53, 2  ;;  %v4406_v11 = vrot.slane %v4405_v59, 1  ;;  %v4419_v18 = vmax.f32 %v4417_v6, %v4418_v4  ;;  %v4385_v58 = vrot.slane %v4384_v12, 1 }
 0x3d5   : > { %v2610_v7 = vadd.f32 %v12732_v28, %v2542_v5  ;;  %v4211_v10 = vmax.f32 %v4209_v63, %v4210_v43  ;;  %v13018_v21 = vmax.f32 %v4424_v61, %v4425_v52  ;;  %v13027_v23 = vmul.f32 %v13023_v35, %v12970_v56  ;;  %v2317_v5 = vpop.permute.xlu0 %2316 }
 0x3d6   : > { %v2671_v13 = vmax.f32 %v2607_v54, 0.0  ;;  %v13029_v51 = vmax.f32 %v4223_v37, %v4224_v57  ;;  %v4413_v25 = vrot.slane %v4412_v62, 1  ;;  %v4378_v6 = vrot.slane %v4377_v32, 1  ;;  %v15337_v57 = vld [vmem:[#allocation56_spill] sm:$0xff] }
 0x3d7   : > { %15335 = vst [vmem:[#allocation12_spill] sm:$0xff] %v13018_v21  ;;  %v13032_v17 = vmax.f32 %v4230_v9, %v4231_v16  ;;  %v13035_v63 = vsel %vm5189_vm12, %v4218_v24, %v4211_v10  ;;  %v4392_v61 = vrot.slane %v4391_v14, 1  ;;  %v4398_v42 = vmax.f32 %v4396_v53, %v4397_v30 }
 0x3d8   : > { %v13037_v34 = vmax.f32 %v4405_v59, %v4406_v11  ;;  %v4420_v56 = vrot.slane %v4419_v18, 1  ;;  %v4386_v3 = vmax.f32 %v4384_v12, %v4385_v58  ;;  %v2674_v29 = vmax.f32 %v2610_v7, 0.0  ;;  %v1894_v11 = vpop.permute.xlu1 %1893 }
 0x3d9   : > { %v4345_v22 = vsel %vm3140_vm11, %v2671_v13, -inf  ;;  %v2473_v38 = vmul.f32 %v12693_v47, %v2317_v5  ;;  %v6199_v4 = vadd.f32 %v12767_v48, %v6198_v36  ;;  %v13043_v9 = vmax.f32 %v4412_v62, %v4413_v25 }
 0x3da   : > { %v4379_v43 = vmax.f32 %v4377_v32, %v4378_v6  ;;  %v8904_v52 = vunpack.i.h.bf16 %v12951_v15  ;;  %v8903_v53 = vunpack.i.l.bf16 %v12951_v15  ;;  %v4393_v59 = vmax.f32 %v4391_v14, %v4392_v61 }
 0x3db   : > { %v4399_v54 = vrot.slane %v4398_v42, 1  ;;  %v15338_v12 = vrot.slane %v15337_v57, 7  ;;  %v15339_v24 = vrot.slane %v15319_v27, 7  ;;  %v2885_v30 = vrot.slane %v2671_v13, 2 }
 0x3dc   : > { %v5350_v47 = vsel %vm5189_vm12, %v4386_v3, %v4379_v43  ;;  %v2886_v48 = vrot.slane %v2671_v13, 4  ;;  %v4346_v62 = vrot.slane %v4345_v22, 4  ;;  %v4429_v32 = vsel %vm3140_vm11, %v2674_v29, -inf }
 0x3dd   : > { %v5504_v16 = vsel %vm944_vm0, %v15339_v24, %v15338_v12  ;;  %v2894_v58 = vrot.slane %v2674_v29, 2  ;;  %v2895_v7 = vrot.slane %v2674_v29, 4  ;;  %v2537_v15 = vadd.f32 %v2473_v38, %v12842_v0 }
 0x3de   : > { %v6272_v14 = vmax.f32 %v6199_v4, 0.0  ;;  %v13056_v10 = vmax.f32 %v4419_v18, %v4420_v56  ;;  %v13060_v27 = vsel %vm5996_vm10, %v12870_v31, %v8903_v53  ;;  %v13063_v25 = vsel %vm5996_vm10, %v5504_v16, %v8904_v52 }
 0x3df   : > { %v2887_v6 = vrot.slane %v2671_v13, 6  ;;  %v4352_v5 = vsel %vm3140_vm11, %v2885_v30, -inf  ;;  %v2896_v36 = vrot.slane %v2674_v29, 6  ;;  %v4430_v61 = vrot.slane %v4429_v32, 4  ;;  %v15341_v30 = vld [vmem:[#allocation45_spill] sm:$0xff] }
 0x3e0   : > { %15340 = vst [vmem:[#allocation11_spill] sm:$0xff] %v13056_v10  ;;  %v2026_v3 = vmul.f32 %v12666_v49, %v1894_v11  ;;  %v13067_v43 = vmax.f32 %v4398_v42, %v4399_v54  ;;  %v13070_v0 = vsel %vm5191_vm13, %v4393_v59, %v5350_v47  ;;  %v4347_v18 = vmax.f32 %v4345_v22, %v4346_v62  ;;  %v15343_v11 = vld [vmem:[#allocation64_spill] sm:$0xff] }
 0x3e1   : > { %v4359_v56 = vsel %vm3140_vm11, %v2886_v48, -inf  ;;  %v4436_v31 = vsel %vm3140_vm11, %v2894_v58, -inf  ;;  %v4443_v38 = vsel %vm3140_vm11, %v2895_v7, -inf  ;;  %v2605_v13 = vadd.f32 %v12732_v28, %v2537_v15 }
 0x3e2   : > { %v6344_v4 = vrot.slane %v6272_v14, 2  ;;  %v4353_v52 = vrot.slane %v4352_v5, 4  ;;  %v4366_v29 = vsel %vm3140_vm11, %v2887_v6, -inf  ;;  %v6345_v53 = vrot.slane %v6272_v14, 4 }
 0x3e3   : > { %v13078_v49 = vsel %vm6524_vm6, %v6272_v14, -inf  ;;  %v4360_v42 = vrot.slane %v4359_v56, 4  ;;  %v4431_v59 = vmax.f32 %v4429_v32, %v4430_v61  ;;  %v4450_v22 = vsel %vm3140_vm11, %v2896_v36, -inf }
 0x3e4   : > { %v6346_v54 = vrot.slane %v6272_v14, 6  ;;  %v4348_v12 = vrot.slane %v4347_v18, 2  ;;  %v4437_v24 = vrot.slane %v4436_v31, 4  ;;  %v4444_v16 = vrot.slane %v4443_v38, 4 }
 0x3e5   : > { %v13082_v47 = vadd.f32 %v2026_v3, %v15341_v30  ;;  %v4367_v28 = vrot.slane %v4366_v29, 4  ;;  %v2669_v48 = vmax.f32 %v2605_v13, 0.0  ;;  %v13086_v7 = vmax.f32 %v4352_v5, %v4353_v52  ;;  %v8892_v30 = vpop.permute.xlu0 %8891 }
 0x3e6   : > { %v4451_v15 = vrot.slane %v4450_v22, 4  ;;  %v13089_v32 = vsel %vm6524_vm6, %v6344_v4, -inf  ;;  %v13092_v14 = vsel %vm6524_vm6, %v6345_v53, -inf  ;;  %v13094_v6 = vmax.f32 %v4359_v56, %v4360_v42  ;;  %v15345_v4 = vld [vmem:[#allocation25_spill] sm:$0xff]  ;;  %v15346_v42 = vld [vmem:[#allocation39_spill] sm:$0xff] }
 0x3e7   : > { %15342 = vst [vmem:[#allocation19_spill] sm:$0xff] %v13082_v47  ;;  %v4432_v36 = vrot.slane %v4431_v59, 2  ;;  %v13097_v61 = vsel %vm6524_vm6, %v6346_v54, -inf  ;;  %v15344_v3 = vrot.slane %v12720_v39, 1  ;;  %v13102_v5 = vmax.f32 %v4347_v18, %v4348_v12  ;;  %v15349_v12 = vld [vmem:[#allocation70_spill] sm:$0xff] }
 0x3e8   : > { %v4438_v52 = vmax.f32 %v4436_v31, %v4437_v24  ;;  %v4445_v33 = vmax.f32 %v4443_v38, %v4444_v16  ;;  %v4595_v37 = vrot.slane %v15345_v4, 1  ;;  %v13105_v62 = vmax.f32 %v4366_v29, %v4367_v28 }
 0x3e9   : > { %v4589_v13 = vmax.f32 %v12720_v39, %v15344_v3  ;;  %v2879_v53 = vrot.slane %v2669_v48, 2  ;;  %v2880_v56 = vrot.slane %v2669_v48, 4  ;;  %v5373_v54 = vsel %vm5193_vm14, %v15347_v44, %v15346_v42  ;;  %v15348_v3 = vld [vmem:[#allocation72_spill] sm:$0xff]  ;;  %v13121_v42 = vpop.permute.xlu2 %2351 }
 0x3ea   : > { %v4452_v55 = vmax.f32 %v4450_v22, %v4451_v15  ;;  %v4289_v39 = vsel %vm3140_vm11, %v2669_v48, -inf  ;;  %v5374_v18 = vsel %vm5195_vm15, %v15348_v3, %v5373_v54  ;;  %v13115_v38 = vmax.f32 %v4431_v59, %v4432_v36 }
 0x3eb   : > { %v4596_v29 = vmax.f32 %v15345_v4, %v4595_v37  ;;  %v5375_v24 = vsel %vm5197_vm1, %v15349_v12, %v5374_v18  ;;  %v4439_v44 = vrot.slane %v4438_v52, 2  ;;  %v4446_v28 = vrot.slane %v4445_v33, 2  ;;  %v15350_v4 = vld [vmem:[#allocation31_spill] sm:$0xff] }
 0x3ec   : > { %v5376_v22 = vsel %vm5199_vm2, %v4589_v13, %v5375_v24  ;;  %v4290_v15 = vrot.slane %v4289_v39, 4  ;;  %v4296_v54 = vsel %vm3140_vm11, %v2879_v53, -inf  ;;  %v4303_v3 = vsel %vm3140_vm11, %v2880_v56, -inf }
 0x3ed   : > { %v13127_v59 = vsel %vm5201_vm3, %v4596_v29, %v5376_v22  ;;  %v4453_v37 = vrot.slane %v4452_v55, 2  ;;  %v5478_v18 = vrot.slane %v15350_v4, 7  ;;  %v8893_v12 = vunpack.i.l.bf16 %v8892_v30 }
 0x3ee   : > { %v4434_v31 = vrot.slane %v13115_v38, 1  ;;  %v2881_v16 = vrot.slane %v2669_v48, 6  ;;  %v8894_v58 = vunpack.i.h.bf16 %v8892_v30  ;;  %v15351_v13 = vrot.slane %v12941_v26, 2  ;;  %v8907_v30 = vpop.permute.xlu0 %8906 }
 0x3ef   : > { %v4297_v53 = vrot.slane %v4296_v54, 4  ;;  %v4304_v47 = vrot.slane %v4303_v3, 4  ;;  %v4252_v56 = vrot.slane %v13005_v1, 1  ;;  %v5330_v29 = vsel %vm5191_vm13, %v13029_v51, %v13035_v63 }
 0x3f0   : > { %v4258_v24 = vmax.f32 %v12941_v26, %v15351_v13  ;;  %v4440_v22 = vmax.f32 %v4438_v52, %v4439_v44  ;;  %v4447_v36 = vmax.f32 %v4445_v33, %v4446_v28  ;;  %v4291_v4 = vmax.f32 %v4289_v39, %v4290_v15 }
 0x3f1   : > { %v15352_v57 = vrot.slane %v13127_v59, 7  ;;  %v4454_v10 = vmax.f32 %v4452_v55, %v4453_v37  ;;  %v15353_v26 = vrot.slane %v15343_v11, 7  ;;  %v4310_v51 = vsel %vm3140_vm11, %v2881_v16, -inf }
 0x3f2   : > { %v4259_v35 = vrot.slane %v4258_v24, 1  ;;  %v15354_v63 = vrot.slane %v13001_v19, 1  ;;  %v4298_v55 = vmax.f32 %v4296_v54, %v4297_v53  ;;  %v4305_v39 = vmax.f32 %v4303_v3, %v4304_v47  ;;  %v1904_v54 = vpop.permute.xlu2 %1903 }
 0x3f3   : > { %v5489_v48 = vsel %vm944_vm0, %v15352_v57, %v5478_v18  ;;  %v5488_v13 = vsel %vm944_vm0, %v5478_v18, %v15353_v26  ;;  %v5331_v57 = vsel %vm5193_vm14, %v13032_v17, %v5330_v29  ;;  %v4253_v44 = vmax.f32 %v13005_v1, %v4252_v56 }
 0x3f4   : > { %v6023_v21 = vsel %vm5996_vm10, %v5489_v48, %v8893_v12  ;;  %v6024_v33 = vsel %vm5996_vm10, %v5488_v13, %v8894_v58  ;;  %v4246_v52 = vmax.f32 %v13001_v19, %v15354_v63  ;;  %v5332_v28 = vsel %vm5195_vm15, %v13015_v41, %v5331_v57 }
 0x3f5   : > { %v4292_v15 = vrot.slane %v4291_v4, 2  ;;  %v4260_v37 = vmax.f32 %v4258_v24, %v4259_v35  ;;  %v15355_v58 = vunpack.i.l.bf16 %v12920_v40  ;;  %v4311_v12 = vrot.slane %v4310_v51, 4 }
 0x3f6   : > { %v5333_v16 = vsel %vm5197_vm1, %v4246_v52, %v5332_v28  ;;  %v6645_v19 = vrot.slane %v13089_v32, 4  ;;  %v15356_v47 = vunpack.i.h.bf16 %v12920_v40  ;;  %v4441_v3 = vrot.slane %v4440_v22, 1 }
 0x3f7   : > { %v6056_v18 = vsel %vm6029_vm4, %v6023_v21, %v15355_v58  ;;  %v5334_v17 = vsel %vm5199_vm2, %v4253_v44, %v5333_v16  ;;  %v15357_v41 = vrot.slane %v13078_v49, 4  ;;  %v4448_v21 = vrot.slane %v4447_v36, 1  ;;  %v1899_v16 = vpop.permute.xlu0 %1898 }
 0x3f8   : > { %v6057_v1 = vsel %vm6029_vm4, %v6024_v33, %v15356_v47  ;;  %v13171_v24 = vsel %vm5201_vm3, %v4260_v37, %v5334_v17  ;;  %v4455_v56 = vrot.slane %v4454_v10, 1  ;;  %v4299_v29 = vrot.slane %v4298_v55, 2 }
 0x3f9   : > { %v6639_v35 = vmax.f32 %v13078_v49, %v15357_v41  ;;  %v6075_v53 = vpack.c.bf16 %v6057_v1, %v6056_v18  ;;  %v8960_v48 = vpack.i.bf16 %v13171_v24, %v12985_v8  ;;  %v15358_v26 = vrot.slane %v13086_v7, 2 }
 0x3fa   : > { %v4293_v13 = vmax.f32 %v4291_v4, %v4292_v15  ;;  %v4306_v33 = vrot.slane %v4305_v39, 2  ;;  %v6652_v63 = vrot.slane %v13092_v14, 4  ;;  %v4312_v49 = vmax.f32 %v4310_v51, %v4311_v12 }
 0x3fb   : > { %v13178_v40 = vmax.f32 %v13086_v7, %v15358_v26  ;;  %8569 = vmatmul.msk.bf16.vlgmr.msra.gmra.mxu3 %vm6130_vm5, %v6075_v53  ;;  %v6646_v52 = vmax.f32 %v13089_v32, %v6645_v19  ;;  %8961 = vrot.lane.b32.xlu0 %v8960_v48, %s9113_s18  ;;  %v8909_v57 = vunpack.i.h.bf16 %v8907_v30  ;;  %v8908_v44 = vunpack.i.l.bf16 %v8907_v30  ;;  %v8912_v53 = vpop.permute.xlu2 %8911 }
 0x3fc   : > { %v15359_v28 = vrot.slane %v13102_v5, 1  ;;  %v13190_v7 = vmax.f32 %v13115_v38, %v4434_v31  ;;  %v6640_v4 = vrot.slane %v6639_v35, 2  ;;  %v6659_v15 = vrot.slane %v13097_v61, 4 }
 0x3fd   : > { %v13193_v58 = vmax.f32 %v4440_v22, %v4441_v3  ;;  %v13195_v51 = vmax.f32 %v4447_v36, %v4448_v21  ;;  %v13197_v32 = vmax.f32 %v4454_v10, %v4455_v56  ;;  %v4300_v18 = vmax.f32 %v4298_v55, %v4299_v29  ;;  %v6200_v55 = vpop.f32.mrf.mxu0 }
 0x3fe   : > { %v13187_v37 = vmax.f32 %v13102_v5, %v15359_v28  ;;  %v4294_v30 = vrot.slane %v4293_v13, 1  ;;  %v4307_v12 = vmax.f32 %v4305_v39, %v4306_v33  ;;  %v13200_v19 = vmax.f32 %v13092_v14, %v6652_v63  ;;  %v2357_v5 = vpop.permute.xlu1 %2356  ;;  %v9098_v14 = vld [vmem:[%s14657_s1 + $0x1] ss:$0 sm:$0xff] }
 0x3ff   : > { %v444_v31 = vadd.s32 224, %v9191_v2  ;;  %v4313_v38 = vrot.slane %v4312_v49, 2  ;;  %v6647_v17 = vrot.slane %v6646_v52, 2  ;;  %v6040_v47 = vsel %vm6029_vm4, %v13060_v27, %v8908_v44  ;;  %v13218_v27 = vld [vmem:[%s14657_s1 + $0x2] ss:$0 sm:$0xff] }
 0x400   : > { %v6041_v36 = vsel %vm6029_vm4, %v13063_v25, %v8909_v57  ;;  %v13207_v22 = vmax.f32 %v6639_v35, %v6640_v4  ;;  %v13210_v10 = vmax.f32 %v13097_v61, %v6659_v15  ;;  %v2027_v1 = vmul.f32 %v9098_v14, %v1899_v16  ;;  %v15360_v61 = vld [vmem:[#allocation47_spill] sm:$0xff] }
 0x401   : > { %v6067_v39 = vpack.c.bf16 %v6041_v36, %v6040_v47  ;;  %v4301_v3 = vrot.slane %v4300_v18, 1  ;;  %v2480_v25 = vmul.f32 %v13218_v27, %v13121_v42  ;;  %v13223_v41 = vmul.f32 %v13218_v27, %v2357_v5  ;;  %v13234_v42 = vld [vmem:[%s14660_s4] ss:$0 sm:$0xff]  ;;  %v1515_v36 = vpop.permute.xlu0 %1514 }
 0x402   : > { %v5480_v35 = vrot.slane %v15360_v61, 7  ;;  %v4295_v21 = vmax.f32 %v4293_v13, %v4294_v30  ;;  %v6654_v56 = vrot.slane %v13200_v19, 2  ;;  %v700_v29 = vand.u32 31, %v444_v31 }
 0x403   : > { %8561 = vmatmul.msk.bf16.gmra.mxu0 %vm6130_vm5, %v6067_v39  ;;  %v2091_v48 = vadd.f32 %v2027_v1, %v13027_v23  ;;  %v13229_v26 = vmax.f32 %v6646_v52, %v6647_v17  ;;  %v13237_v33 = vadd.f32 %v13234_v42, %v6200_v55  ;;  %v5631_v63 = vrot.slane %v13171_v24, 1 }
 0x404   : > { %v13240_v13 = vmul.f32 %v9098_v14, %v1904_v54  ;;  %v8914_v57 = vunpack.i.h.bf16 %v8912_v53  ;;  %v8913_v44 = vunpack.i.l.bf16 %v8912_v53  ;;  %v4308_v4 = vrot.slane %v4307_v12, 1  ;;  %v15365_v54 = vld [vmem:[#allocation20_spill] sm:$0xff] }
 0x405   : > { %v2544_v28 = vadd.f32 %v2480_v25, %v2091_v48  ;;  %v15361_v23 = vrot.slane %v15343_v11, 7  ;;  %v4314_v15 = vmax.f32 %v4312_v49, %v4313_v38  ;;  %v4357_v16 = vrot.slane %v13178_v40, 1  ;;  %v13261_v11 = vld [vmem:[%s14658_s2] ss:$0 sm:$0xff] }
 0x406   : > { %v15362_v30 = vrot.slane %v13094_v6, 2  ;;  %vm13250_vm9 = vcmp.eq.s32.totalorder %v700_v29, 0  ;;  %v15366_v17 = vrot.slane %v15365_v54, 7  ;;  %v4369_v38 = vrot.slane %v13105_v62, 2  ;;  %v15368_v48 = vld [vmem:[#allocation10_spill] sm:$0xff] }
 0x407   : > { %v5487_v52 = vsel %vm944_vm0, %v15361_v23, %v5480_v35  ;;  %v2612_v49 = vadd.f32 %v13261_v11, %v2544_v28  ;;  %v5336_v39 = vsel %vm5189_vm12, %v12924_v50, %v12916_v60  ;;  %v5344_v14 = vsel %vm5191_vm13, %v12847_v20, %v12856_v45 }
 0x408   : > { %v4363_v5 = vmax.f32 %v13094_v6, %v15362_v30  ;;  %v5486_v47 = vsel %vm944_vm0, %v5480_v35, %v15366_v17  ;;  %v4302_v6 = vmax.f32 %v4300_v18, %v4301_v3  ;;  %v4309_v25 = vmax.f32 %v4307_v12, %v4308_v4  ;;  %v15367_v18 = vld [vmem:[#allocation63_spill] sm:$0xff] }
 0x409   : > { %v2676_v1 = vmax.f32 %v2612_v49, 0.0  ;;  %v4370_v61 = vmax.f32 %v13105_v62, %v4369_v38  ;;  %v5337_v35 = vsel %vm5191_vm13, %v12926_v46, %v5336_v39  ;;  %v4315_v53 = vrot.slane %v4314_v15, 1  ;;  %v8922_v38 = vpop.permute.xlu1 %8921 }
 0x40a   : > { %v4364_v55 = vrot.slane %v4363_v5, 1  ;;  %v4358_v29 = vmax.f32 %v13178_v40, %v4357_v16  ;;  %v5338_v3 = vsel %vm5193_vm14, %v15367_v18, %v5337_v35  ;;  %v5345_v60 = vsel %vm5193_vm14, %v15368_v48, %v5344_v14  ;;  %v8927_v14 = vpop.permute.xlu2 %8926 }
 0x40b   : > { %v2900_v50 = vrot.slane %v2676_v1, 2  ;;  %v2901_v28 = vrot.slane %v2676_v1, 4  ;;  %v2902_v23 = vrot.slane %v2676_v1, 6  ;;  %v4485_v20 = vsel %vm3140_vm11, %v2676_v1, -inf }
 0x40c   : > { %v4365_v45 = vmax.f32 %v4363_v5, %v4364_v55  ;;  %v4371_v12 = vrot.slane %v4370_v61, 1  ;;  %v5339_v62 = vsel %vm5195_vm15, %v4295_v21, %v5338_v3  ;;  %v5346_v46 = vsel %vm5195_vm15, %v13187_v37, %v5345_v60  ;;  %v15371_v60 = vld [vmem:[#allocation28_spill] sm:$0xff] }
 0x40d   : > { %v4492_v40 = vsel %vm3140_vm11, %v2900_v50, -inf  ;;  %v4499_v4 = vsel %vm3140_vm11, %v2901_v28, -inf  ;;  %v4506_v16 = vsel %vm3140_vm11, %v2902_v23, -inf  ;;  %v5340_v30 = vsel %vm5197_vm1, %v4302_v6, %v5339_v62  ;;  %v15372_v62 = vld [vmem:[#allocation12_spill] sm:$0xff] }
 0x40e   : > { %v5608_v17 = vsel %vm13250_vm9, 0.0, %v5487_v52  ;;  %v13290_v49 = vsel %vm5996_vm10, %v5486_v47, %v8914_v57  ;;  %v4486_v5 = vrot.slane %v4485_v20, 4  ;;  %v13293_v21 = vadd.s32 96, %v9191_v2 }
 0x40f   : > { %v4316_v37 = vmax.f32 %v4314_v15, %v4315_v53  ;;  %v5341_v55 = vsel %vm5199_vm2, %v4309_v25, %v5340_v30  ;;  %v5347_v39 = vsel %vm5197_vm1, %v4358_v29, %v5346_v46  ;;  %v5352_v6 = vsel %vm5193_vm14, %v13067_v43, %v13070_v0  ;;  %v2347_v53 = vpop.permute.xlu0 %2346  ;;  %v15370_v0 = vld [vmem:[#allocation71_spill] sm:$0xff] }
 0x410   : > { %15369 = vst [vmem:[#allocation34_spill] sm:$0xff] %v13293_v21  ;;  %v13301_v31 = vsel %vm5996_vm10, %v5608_v17, %v8913_v44  ;;  %v4493_v52 = vrot.slane %v4492_v40, 4  ;;  %v4500_v57 = vrot.slane %v4499_v4, 4  ;;  %v4507_v47 = vrot.slane %v4506_v16, 4  ;;  %v15374_v17 = vld [vmem:[#allocation11_spill] sm:$0xff] }
 0x411   : > { %v4372_v1 = vmax.f32 %v4370_v61, %v4371_v12  ;;  %v13304_v35 = vsel %vm5201_vm3, %v4316_v37, %v5341_v55  ;;  %v5348_v15 = vsel %vm5199_vm2, %v4365_v45, %v5347_v39  ;;  %v5353_v25 = vsel %vm5195_vm15, %v13037_v34, %v5352_v6  ;;  %v15379_v37 = vld [vmem:[#allocation32_spill] sm:$0xff] }
 0x412   : > { %v4487_v29 = vmax.f32 %v4485_v20, %v4486_v5  ;;  %v684_v43 = vand.u32 31, %v13293_v21  ;;  %v5464_v44 = vrot.slane %v15370_v0, 7  ;;  %v8924_v18 = vunpack.i.h.bf16 %v8922_v38 }
 0x413   : > { %v8923_v3 = vunpack.i.l.bf16 %v8922_v38  ;;  %v13312_v48 = vsel %vm5201_vm3, %v4372_v1, %v5348_v15  ;;  %v5354_v61 = vsel %vm5197_vm1, %v13043_v9, %v5353_v25  ;;  %v1639_v50 = vmul.f32 %v15371_v60, %v1515_v36  ;;  %v15377_v36 = vld [vmem:[#allocation56_spill] sm:$0xff] }
 0x414   : > { %v4494_v28 = vmax.f32 %v4492_v40, %v4493_v52  ;;  %v4501_v23 = vmax.f32 %v4499_v4, %v4500_v57  ;;  %v8929_v45 = vunpack.i.h.bf16 %v8927_v14  ;;  %v5632_v34 = vrot.slane %v13304_v35, 1 }
 0x415   : > { %v4508_v20 = vmax.f32 %v4506_v16, %v4507_v47  ;;  %v8965_v12 = vpack.i.bf16 %v13312_v48, %v13304_v35  ;;  %v15373_v46 = vrot.slane %v15372_v62, 1  ;;  %v5355_v5 = vsel %vm5199_vm2, %v15374_v17, %v5354_v61 }
 0x416   : > { %v4488_v38 = vrot.slane %v4487_v29, 2  ;;  %vm13325_vm8 = vcmp.eq.s32.totalorder %v684_v43, 0  ;;  %v15378_v40 = vrot.slane %v15377_v36, 7  ;;  %v5633_v16 = vrot.slane %v13312_v48, 1 }
 0x417   : > { %v4428_v30 = vmax.f32 %v15372_v62, %v15373_v46  ;;  %v15380_v55 = vrot.slane %v15379_v37, 7  ;;  %v8928_v6 = vunpack.i.l.bf16 %v8927_v14  ;;  %8966 = vrot.lane.b32.xlu1 %v8965_v12, %s9113_s18  ;;  %v2092_v57 = vadd.f32 %v13240_v13, %v1639_v50 }
 0x418   : > { %v5503_v4 = vsel %vm944_vm0, %v15378_v40, %v5464_v44  ;;  %v4495_v47 = vrot.slane %v4494_v28, 2  ;;  %v4502_v1 = vrot.slane %v4501_v23, 2  ;;  %v5654_v25 = vsel %vm1137_vm7, %v5632_v34, %v5633_v16 }
 0x419   : > { %v5502_v39 = vsel %vm944_vm0, %v5464_v44, %v15380_v55  ;;  %v13340_v52 = vsel %vm5201_vm3, %v4428_v30, %v5355_v5  ;;  %v4509_v43 = vrot.slane %v4508_v20, 2  ;;  %v5592_v0 = vsel %vm13325_vm8, 0.0, %v5503_v4 }
 0x41a   : > { %v5634_v15 = vrot.slane %v13340_v52, 1  ;;  %v2545_v14 = vadd.f32 %v13223_v41, %v2092_v57  ;;  %v435_v44 = vadd.s32 152, %v9191_v2  ;;  %v13350_v61 = vmax.f32 %v4487_v29, %v4488_v38  ;;  %v8917_v29 = vpop.permute.xlu0 %8916 }
 0x41b   : > { %v6009_v60 = vsel %vm5996_vm10, %v5592_v0, %v8923_v3  ;;  %v6010_v13 = vsel %vm5996_vm10, %v5502_v39, %v8924_v18  ;;  %v5655_v41 = vsel %vm1137_vm7, %v5631_v63, %v5632_v34  ;;  %v4496_v30 = vmax.f32 %v4494_v28, %v4495_v47 }
 0x41c   : > { %v5653_v50 = vsel %vm1137_vm7, %v5633_v16, %v5634_v15  ;;  %v2613_v62 = vadd.f32 %v13261_v11, %v2545_v14  ;;  %v691_v46 = vand.u32 31, %v435_v44  ;;  %v13363_v17 = vmax.f32 %v4501_v23, %v4502_v1 }
 0x41d   : > { %v8975_v12 = vpack.i.bf16 %v5653_v50, %v5654_v25  ;;  %v6042_v18 = vsel %vm6029_vm4, %v6009_v60, %v8928_v6  ;;  %v6043_v3 = vsel %vm6029_vm4, %v6010_v13, %v8929_v45  ;;  %v13367_v5 = vmax.f32 %v4508_v20, %v4509_v43  ;;  %v15382_v6 = vld [vmem:[#allocation19_spill] sm:$0xff] }
 0x41e   : > { %v2677_v38 = vmax.f32 %v2613_v62, 0.0  ;;  %vm755_vm9 = vcmp.eq.s32.totalorder %v691_v46, 31  ;;  %v15381_v9 = vrot.slane %v12985_v8, 1  ;;  %v6068_v23 = vpack.c.bf16 %v6043_v3, %v6042_v18 }
 0x41f   : > { %8976 = vrot.lane.b32.xlu0 %v8975_v12, %s9114_s19  ;;  %v5759_v28 = vsel %vm755_vm9, 0.0, %v5655_v41  ;;  %v2479_v36 = vmul.f32 %v13218_v27, %v2347_v53  ;;  %v8919_v40 = vunpack.i.h.bf16 %v8917_v29  ;;  %v8918_v47 = vunpack.i.l.bf16 %v8917_v29 }
 0x420   : > { %v5656_v34 = vsel %vm1137_vm7, %v15381_v9, %v5631_v63  ;;  %v2903_v4 = vrot.slane %v2677_v38, 2  ;;  %v2904_v45 = vrot.slane %v2677_v38, 4  ;;  %v2905_v20 = vrot.slane %v2677_v38, 6  ;;  %8562 = vmatmul.msk.bf16.gmra.mxu0 %vm6130_vm5, %v6068_v23 }
 0x421   : > { %v4513_v16 = vsel %vm3140_vm11, %v2677_v38, -inf  ;;  %v8970_v39 = vpack.i.bf16 %v5759_v28, %v5656_v34  ;;  %v2543_v57 = vadd.f32 %v2479_v36, %v15382_v6  ;;  %v4497_v1 = vrot.slane %v4496_v30, 1 }
 0x422   : > { %v4514_v55 = vrot.slane %v4513_v16, 4  ;;  %v4520_v63 = vsel %vm3140_vm11, %v2903_v4, -inf  ;;  %v4527_v25 = vsel %vm3140_vm11, %v2904_v45, -inf  ;;  %v4534_v27 = vsel %vm3140_vm11, %v2905_v20, -inf }
 0x423   : > { %v4521_v43 = vrot.slane %v4520_v63, 4  ;;  %v4528_v0 = vrot.slane %v4527_v25, 4  ;;  %8971 = vrot.lane.b32.xlu2 %v8970_v39, %s9114_s19  ;;  %v6059_v14 = vsel %vm6029_vm4, %v13290_v49, %v8919_v40  ;;  %v13387_v44 = vmax.f32 %v13237_v33, 0.0 }
 0x424   : > { %v4515_v53 = vmax.f32 %v4513_v16, %v4514_v55  ;;  %v4490_v60 = vrot.slane %v13350_v61, 1  ;;  %v2611_v13 = vadd.f32 %v13261_v11, %v2543_v57  ;;  %v6058_v50 = vsel %vm6029_vm4, %v13301_v31, %v8918_v47 }
 0x425   : > { %v4522_v62 = vmax.f32 %v4520_v63, %v4521_v43  ;;  %v4529_v46 = vmax.f32 %v4527_v25, %v4528_v0  ;;  %v4535_v41 = vrot.slane %v4534_v27, 4  ;;  %v4504_v29 = vrot.slane %v13363_v17, 1 }
 0x426   : > { %v4516_v12 = vrot.slane %v4515_v53, 2  ;;  %v4511_v18 = vrot.slane %v13367_v5, 1  ;;  %v2675_v3 = vmax.f32 %v2611_v13, 0.0  ;;  %v6076_v49 = vpack.c.bf16 %v6059_v14, %v6058_v50 }
 0x427   : > { %v4498_v38 = vmax.f32 %v4496_v30, %v4497_v1  ;;  %v4523_v9 = vrot.slane %v4522_v62, 2  ;;  %v4530_v34 = vrot.slane %v4529_v46, 2  ;;  %v4536_v4 = vmax.f32 %v4534_v27, %v4535_v41 }
 0x428   : > { %v4517_v33 = vmax.f32 %v4515_v53, %v4516_v12  ;;  %v2897_v28 = vrot.slane %v2675_v3, 2  ;;  %v2898_v23 = vrot.slane %v2675_v3, 4  ;;  %v2899_v11 = vrot.slane %v2675_v3, 6  ;;  %8570 = vmatmul.msk.bf16.gmra.mxu3 %vm6130_vm5, %v6076_v49 }
 0x429   : > { %v4457_v36 = vsel %vm3140_vm11, %v2675_v3, -inf  ;;  %v4524_v40 = vmax.f32 %v4522_v62, %v4523_v9  ;;  %v4531_v55 = vmax.f32 %v4529_v46, %v4530_v34  ;;  %v4491_v39 = vmax.f32 %v13350_v61, %v4490_v60  ;;  %v8932_v62 = vpop.permute.xlu0 %8931  ;;  %v8937_v61 = vpop.permute.xlu1 %8936 }
 0x42a   : > { %v4518_v31 = vrot.slane %v4517_v33, 1  ;;  %v4458_v45 = vrot.slane %v4457_v36, 4  ;;  %v4464_v20 = vsel %vm3140_vm11, %v2897_v28, -inf  ;;  %v4471_v16 = vsel %vm3140_vm11, %v2898_v23, -inf  ;;  %v6203_v23 = vpop.f32.mrf.mxu0 }
 0x42b   : > { %v4478_v30 = vsel %vm3140_vm11, %v2899_v11, -inf  ;;  %v4465_v57 = vrot.slane %v4464_v20, 4  ;;  %v4472_v47 = vrot.slane %v4471_v16, 4  ;;  %v4505_v1 = vmax.f32 %v13363_v17, %v4504_v29  ;;  %v15383_v29 = vld [vmem:[#allocation42_spill] sm:$0xff] }
 0x42c   : > { %v4459_v6 = vmax.f32 %v4457_v36, %v4458_v45  ;;  %v4479_v63 = vrot.slane %v4478_v30, 4  ;;  %v4525_v25 = vrot.slane %v4524_v40, 1  ;;  %v4532_v53 = vrot.slane %v4531_v55, 1 }
 0x42d   : > { %v4466_v27 = vmax.f32 %v4464_v20, %v4465_v57  ;;  %v4473_v0 = vmax.f32 %v4471_v16, %v4472_v47  ;;  %v4537_v14 = vrot.slane %v4536_v4, 2  ;;  %v4512_v13 = vmax.f32 %v13367_v5, %v4511_v18  ;;  %v8942_v57 = vpop.permute.xlu2 %8941  ;;  %v15384_v47 = vld [vmem:[#allocation69_spill] sm:$0xff] }
 0x42e   : > { %v4460_v43 = vrot.slane %v4459_v6, 2  ;;  %v4519_v50 = vmax.f32 %v4517_v33, %v4518_v31  ;;  %v4480_v12 = vmax.f32 %v4478_v30, %v4479_v63  ;;  %v5364_v46 = vsel %vm5189_vm12, %v4498_v38, %v4491_v39 }
 0x42f   : > { %v4467_v41 = vrot.slane %v4466_v27, 2  ;;  %v4474_v3 = vrot.slane %v4473_v0, 2  ;;  %v4538_v49 = vmax.f32 %v4536_v4, %v4537_v14  ;;  %v5482_v9 = vrot.slane %v15383_v29, 7 }
 0x430   : > { %v4461_v60 = vmax.f32 %v4459_v6, %v4460_v43  ;;  %v4481_v17 = vrot.slane %v4480_v12, 2  ;;  %v4526_v34 = vmax.f32 %v4524_v40, %v4525_v25  ;;  %v5365_v28 = vsel %vm5191_vm13, %v4505_v1, %v5364_v46 }
 0x431   : > { %v4468_v11 = vmax.f32 %v4466_v27, %v4467_v41  ;;  %v4475_v36 = vmax.f32 %v4473_v0, %v4474_v3  ;;  %v4533_v5 = vmax.f32 %v4531_v55, %v4532_v53  ;;  %v4539_v18 = vrot.slane %v4538_v49, 1  ;;  %v15387_v0 = vld [vmem:[#allocation33_spill] sm:$0xff]  ;;  %v15388_v41 = vld [vmem:[#allocation50_spill] sm:$0xff] }
 0x432   : > { %v8938_v33 = vunpack.i.l.bf16 %v8937_v61  ;;  %v8934_v31 = vunpack.i.h.bf16 %v8932_v62  ;;  %v8933_v45 = vunpack.i.l.bf16 %v8932_v62  ;;  %v5366_v38 = vsel %vm5193_vm14, %v4512_v13, %v5365_v28 }
 0x433   : > { %v4462_v20 = vrot.slane %v4461_v60, 1  ;;  %v5367_v16 = vsel %vm5195_vm15, %v4519_v50, %v5366_v38  ;;  %v6204_v4 = vadd.f32 %v13234_v42, %v6203_v23  ;;  %v4482_v30 = vmax.f32 %v4480_v12, %v4481_v17  ;;  %v8947_v50 = vpop.permute.xlu0 %8946  ;;  %v15393_v38 = vld [vmem:[#allocation74_spill] sm:$0xff] }
 0x434   : > { %v4469_v39 = vrot.slane %v4468_v11, 1  ;;  %v4540_v40 = vmax.f32 %v4538_v49, %v4539_v18  ;;  %v5368_v6 = vsel %vm5197_vm1, %v4526_v34, %v5367_v16  ;;  %v5357_v55 = vsel %vm5189_vm12, %v13193_v58, %v13190_v7 }
 0x435   : > { %v15385_v1 = vrot.slane %v15384_v47, 7  ;;  %v15386_v25 = vrot.slane %v15365_v54, 7  ;;  %v5369_v43 = vsel %vm5199_vm2, %v4533_v5, %v5368_v6  ;;  %v4476_v27 = vrot.slane %v4475_v36, 1 }
 0x436   : > { %v5466_v14 = vrot.slane %v15387_v0, 7  ;;  %v13426_v58 = vsel %vm5201_vm3, %v4540_v40, %v5369_v43  ;;  %v4463_v12 = vmax.f32 %v4461_v60, %v4462_v20  ;;  %v13430_v62 = vmax.f32 %v6204_v4, 0.0 }
 0x437   : > { %v5484_v63 = vsel %vm944_vm0, %v5482_v9, %v15385_v1  ;;  %v5485_v53 = vsel %vm944_vm0, %v15386_v25, %v5482_v9  ;;  %v8990_v54 = vpack.i.bf16 %v13127_v59, %v13426_v58  ;;  %v5358_v46 = vsel %vm5191_vm13, %v13195_v51, %v5357_v55 }
 0x438   : > { %v6028_v13 = vsel %vm5996_vm10, %v5484_v63, %v8934_v31  ;;  %v6027_v7 = vsel %vm5996_vm10, %v5485_v53, %v8933_v45  ;;  %v15389_v3 = vand.u32 31, %v15388_v41  ;;  %v8939_v17 = vunpack.i.h.bf16 %v8937_v61 }
 0x439   : > { %v8943_v29 = vunpack.i.l.bf16 %v8942_v57  ;;  %v4470_v9 = vmax.f32 %v4468_v11, %v4469_v39  ;;  %v4483_v34 = vrot.slane %v4482_v30, 1  ;;  %v8944_v28 = vunpack.i.h.bf16 %v8942_v57  ;;  %8991 = vrot.lane.b32.xlu0 %v8990_v54, %s9113_s18  ;;  %v6205_v39 = vpop.f32.mrf.mxu0 }
 0x43a   : > { %vm13436_vm11 = vcmp.eq.s32.totalorder %v15389_v3, 31  ;;  %v8948_v60 = vunpack.i.l.bf16 %v8947_v50  ;;  %v4477_v23 = vmax.f32 %v4475_v36, %v4476_v27  ;;  %v6060_v5 = vsel %vm6029_vm4, %v6027_v7, %v8938_v33 }
 0x43b   : > { %v13445_v51 = vmax.f32 %v13200_v19, %v6654_v56  ;;  %v8949_v18 = vunpack.i.h.bf16 %v8947_v50  ;;  %v5359_v31 = vsel %vm5193_vm14, %v13197_v32, %v5358_v46  ;;  %v6061_v61 = vsel %vm6029_vm4, %v6028_v13, %v8939_v17 }
 0x43c   : > { %v15392_v11 = vrot.slane %v15379_v37, 7  ;;  %v15394_v36 = vrot.slane %v15393_v38, 7  ;;  %v6350_v20 = vrot.slane %v13430_v62, 2  ;;  %v5360_v19 = vsel %vm5195_vm15, %v4463_v12, %v5359_v31 }
 0x43d   : > { %v4484_v16 = vmax.f32 %v4482_v30, %v4483_v34  ;;  %v5361_v32 = vsel %vm5197_vm1, %v4470_v9, %v5360_v19  ;;  %v6077_v4 = vpack.c.bf16 %v6061_v61, %v6060_v5  ;;  %v6347_v37 = vrot.slane %v13387_v44, 2 }
 0x43e   : > { %v5501_v45 = vsel %vm944_vm0, %v15392_v11, %v5466_v14  ;;  %v5500_v33 = vsel %vm944_vm0, %v5466_v14, %v15394_v36  ;;  %v5362_v6 = vsel %vm5199_vm2, %v4477_v23, %v5361_v32  ;;  %v6348_v57 = vrot.slane %v13387_v44, 4 }
 0x43f   : > { %v6011_v56 = vsel %vm5996_vm10, %v5501_v45, %v8943_v29  ;;  %v6012_v40 = vsel %vm5996_vm10, %v5500_v33, %v8944_v28  ;;  %v6351_v47 = vrot.slane %v13430_v62, 4  ;;  %v13469_v1 = vsel %vm5201_vm3, %v4484_v16, %v5362_v6  ;;  %8571 = vmatmul.msk.bf16.gmra.mxu3 %vm6130_vm5, %v6077_v4 }
 0x440   : > { %v6044_v55 = vsel %vm6029_vm4, %v6011_v56, %v8948_v60  ;;  %v6045_v30 = vsel %vm6029_vm4, %v6012_v40, %v8949_v18  ;;  %v6349_v63 = vrot.slane %v13387_v44, 6  ;;  %v6700_v25 = vsel %vm6524_vm6, %v6350_v20, -inf  ;;  %v15395_v56 = vld [vmem:[#allocation3_spill] sm:$0xff] }
 0x441   : > { %v8980_v53 = vpack.i.bf16 %v13469_v1, %v13340_v52  ;;  %v6206_v43 = vadd.f32 %v13234_v42, %v6205_v39  ;;  %v6665_v27 = vsel %vm6524_vm6, %v13387_v44, -inf  ;;  %v5636_v0 = vrot.slane %v13426_v58, 1  ;;  %v15399_v39 = vld [vmem:[#allocation31_spill] sm:$0xff] }
 0x442   : > { %v5635_v14 = vrot.slane %v13469_v1, 1  ;;  %v6069_v13 = vpack.c.bf16 %v6045_v30, %v6044_v55  ;;  %v6649_v7 = vrot.slane %v13229_v26, 1  ;;  %v6672_v50 = vsel %vm6524_vm6, %v6347_v37, -inf }
 0x443   : > { %v6352_v12 = vrot.slane %v13430_v62, 6  ;;  %v6693_v54 = vsel %vm6524_vm6, %v13430_v62, -inf  ;;  %8981 = vrot.lane.b32.xlu1 %v8980_v53, %s9113_s18  ;;  %v6701_v46 = vrot.slane %v6700_v25, 4  ;;  %v6707_v41 = vsel %vm6524_vm6, %v6351_v47, -inf  ;;  %v15401_v53 = vld [vmem:[#allocation21_spill] sm:$0xff] }
 0x444   : > { %v5651_v44 = vsel %vm1137_vm7, %v5635_v14, %v5636_v0  ;;  %v5652_v3 = vsel %vm1137_vm7, %v5634_v15, %v5635_v14  ;;  %8563 = vmatmul.msk.bf16.gmra.mxu0 %vm6130_vm5, %v6069_v13  ;;  %v6642_v17 = vrot.slane %v13207_v22, 1  ;;  %v6666_v29 = vrot.slane %v6665_v27, 4  ;;  %v15403_v14 = vld [vmem:[#allocation13_spill] sm:$0xff]  ;;  %v15404_v13 = vld [vmem:[#allocation27_spill] sm:$0xff] }
 0x445   : > { %v5763_v62 = vsel %vm13436_vm11, 0.0, %v5651_v44  ;;  %v6275_v9 = vmax.f32 %v6206_v43, 0.0  ;;  %v6673_v34 = vrot.slane %v6672_v50, 4  ;;  %v6679_v28 = vsel %vm6524_vm6, %v6348_v57, -inf  ;;  %v15402_v43 = vld [vmem:[#allocation9_spill] sm:$0xff]  ;;  %v15407_v44 = vld [vmem:[#allocation43_spill] sm:$0xff] }
 0x446   : > { %v13501_v60 = vsel %vm6524_vm6, %v6349_v63, -inf  ;;  %v8985_v23 = vpack.i.bf16 %v5763_v62, %v5652_v3  ;;  %v6694_v5 = vrot.slane %v6693_v54, 4  ;;  %v6708_v18 = vrot.slane %v6707_v41, 4  ;;  %v15409_v62 = vld [vmem:[#allocation53_spill] sm:$0xff] }
 0x447   : > { %v6714_v15 = vsel %vm6524_vm6, %v6352_v12, -inf  ;;  %v5637_v31 = vrot.slane %v13127_v59, 1  ;;  %v13506_v61 = vmax.f32 %v13229_v26, %v6649_v7  ;;  %v6656_v49 = vrot.slane %v13445_v51, 1 }
 0x448   : > { %v6661_v11 = vrot.slane %v13210_v10, 2  ;;  %v6702_v45 = vmax.f32 %v6700_v25, %v6701_v46  ;;  %8986 = vrot.lane.b32.xlu2 %v8985_v23, %s9114_s19  ;;  %v13511_v36 = vmax.f32 %v6665_v27, %v6666_v29  ;;  %v6680_v33 = vrot.slane %v6679_v28, 4  ;;  %v15406_v46 = vld [vmem:[#allocation60_spill] sm:$0xff] }
 0x449   : > { %v6687_v20 = vrot.slane %v13501_v60, 4  ;;  %v6353_v19 = vrot.slane %v6275_v9, 2  ;;  %v15396_v16 = vand.u32 31, %v15395_v56  ;;  %v13520_v26 = vmax.f32 %v6672_v50, %v6673_v34 }
 0x44a   : > { %v6715_v4 = vrot.slane %v6714_v15, 4  ;;  %v15400_v37 = vrot.slane %v15399_v39, 1  ;;  %v5650_v6 = vsel %vm1137_vm7, %v5636_v0, %v5637_v31  ;;  %v6695_v55 = vmax.f32 %v6693_v54, %v6694_v5  ;;  %v15405_v0 = vld [vmem:[#allocation4_spill] sm:$0xff]  ;;  %v15411_v5 = vld [vmem:[#allocation55_spill] sm:$0xff] }
 0x44b   : > { %vm13516_vm8 = vcmp.eq.s32.totalorder %v15396_v16, 0  ;;  %v6709_v57 = vmax.f32 %v6707_v41, %v6708_v18  ;;  %v6354_v47 = vrot.slane %v6275_v9, 4  ;;  %v6703_v63 = vrot.slane %v6702_v45, 2  ;;  %v15412_v18 = vld [vmem:[#allocation57_spill] sm:$0xff] }
 0x44c   : > { %v5649_v40 = vsel %vm1137_vm7, %v5637_v31, %v15400_v37  ;;  %v6721_v25 = vsel %vm6524_vm6, %v6275_v9, -inf  ;;  %v7551_v27 = vsel %vm5193_vm14, %v15402_v43, %v15401_v53  ;;  %v7558_v7 = vsel %vm5193_vm14, %v15404_v13, %v15403_v14  ;;  %v15413_v16 = vld [vmem:[#allocation73_spill] sm:$0xff]  ;;  %v15414_v37 = vld [vmem:[#allocation51_spill] sm:$0xff] }
 0x44d   : > { %v8995_v30 = vpack.i.bf16 %v5649_v40, %v5650_v6  ;;  %v6355_v50 = vrot.slane %v6275_v9, 6  ;;  %v6728_v12 = vsel %vm6524_vm6, %v6353_v19, -inf  ;;  %v7552_v54 = vsel %vm5195_vm15, %v15405_v0, %v7551_v27  ;;  %v8952_v27 = vpop.permute.xlu1 %8951 }
 0x44e   : > { %v7559_v41 = vsel %vm5195_vm15, %v15406_v46, %v7558_v7  ;;  %v15408_v3 = vrot.slane %v15407_v44, 1  ;;  %v15410_v34 = vrot.slane %v15409_v62, 1  ;;  %v7553_v9 = vsel %vm5197_vm1, %v15411_v5, %v7552_v54  ;;  %v15417_v5 = vld [vmem:[#allocation61_spill] sm:$0xff] }
 0x44f   : > { %8996 = vrot.lane.b32.xlu1 %v8995_v30, %s9114_s19  ;;  %v7560_v31 = vsel %vm5197_vm1, %v15412_v18, %v7559_v41  ;;  %v6722_v19 = vrot.slane %v6721_v25, 4  ;;  %v6735_v56 = vsel %vm6524_vm6, %v6354_v47, -inf  ;;  %v7554_v39 = vsel %vm5199_vm2, %v15413_v16, %v7553_v9  ;;  %v8957_v47 = vpop.permute.xlu2 %8956 }
 0x450   : > { %v6580_v29 = vmax.f32 %v15407_v44, %v15408_v3  ;;  %v6636_v23 = vmax.f32 %v15409_v62, %v15410_v34  ;;  %v7561_v40 = vsel %vm5199_vm2, %v15414_v37, %v7560_v31  ;;  %v6668_v6 = vrot.slane %v13511_v36, 2  ;;  %v15415_v44 = vld [vmem:[#allocation37_spill] sm:$0xff] }
 0x451   : > { %v6681_v30 = vmax.f32 %v6679_v28, %v6680_v33  ;;  %v6696_v14 = vrot.slane %v6695_v55, 2  ;;  %v6716_v13 = vmax.f32 %v6714_v15, %v6715_v4  ;;  %v6729_v7 = vrot.slane %v6728_v12, 4 }
 0x452   : > { %v13558_v53 = vsel %vm5201_vm3, %v6580_v29, %v7554_v39  ;;  %v13561_v43 = vsel %vm5201_vm3, %v6636_v23, %v7561_v40  ;;  %v6710_v54 = vrot.slane %v6709_v57, 2  ;;  %v6736_v46 = vrot.slane %v6735_v56, 4 }
 0x453   : > { %v9000_v0 = vpack.i.bf16 %v13561_v43, %v13558_v53  ;;  %v6742_v41 = vsel %vm6524_vm6, %v6355_v50, -inf  ;;  %v5468_v28 = vrot.slane %v15415_v44, 7  ;;  %v6704_v33 = vmax.f32 %v6702_v45, %v6703_v63 }
 0x454   : > { %v6723_v3 = vmax.f32 %v6721_v25, %v6722_v19  ;;  %v8954_v29 = vunpack.i.h.bf16 %v8952_v27  ;;  %v8953_v62 = vunpack.i.l.bf16 %v8952_v27  ;;  %v8959_v34 = vunpack.i.h.bf16 %v8957_v47 }
 0x455   : > { %9001 = vrot.lane.b32.xlu2 %v9000_v0, %s9114_s19  ;;  %v8958_v23 = vunpack.i.l.bf16 %v8957_v47  ;;  %v15416_v15 = vrot.slane %v15393_v38, 7  ;;  %v15418_v9 = vrot.slane %v15417_v5, 7  ;;  %v6730_v18 = vmax.f32 %v6728_v12, %v6729_v7 }
 0x456   : > { %v6743_v31 = vrot.slane %v6742_v41, 4  ;;  %v6697_v25 = vmax.f32 %v6695_v55, %v6696_v14  ;;  %v6737_v19 = vmax.f32 %v6735_v56, %v6736_v46  ;;  %v6675_v39 = vrot.slane %v13520_v26, 2 }
 0x457   : > { %v5499_v4 = vsel %vm944_vm0, %v15416_v15, %v5468_v28  ;;  %v5498_v50 = vsel %vm944_vm0, %v5468_v28, %v15418_v9  ;;  %v6711_v37 = vmax.f32 %v6709_v57, %v6710_v54  ;;  %v6724_v40 = vrot.slane %v6723_v3, 2 }
 0x458   : > { %v5596_v45 = vsel %vm13516_vm8, 0.0, %v5499_v4  ;;  %v6014_v63 = vsel %vm5996_vm10, %v5498_v50, %v8954_v29  ;;  %v6682_v47 = vrot.slane %v6681_v30, 2  ;;  %v6688_v32 = vmax.f32 %v13501_v60, %v6687_v20 }
 0x459   : > { %v6013_v16 = vsel %vm5996_vm10, %v5596_v45, %v8953_v62  ;;  %v6047_v38 = vsel %vm6029_vm4, %v6014_v63, %v8959_v34  ;;  %v6705_v12 = vrot.slane %v6704_v33, 1  ;;  %v6717_v7 = vrot.slane %v6716_v13, 2 }
 0x45a   : > { %v6046_v27 = vsel %vm6029_vm4, %v6013_v16, %v8958_v23  ;;  %v6669_v55 = vmax.f32 %v13511_v36, %v6668_v6  ;;  %v6731_v56 = vrot.slane %v6730_v18, 2  ;;  %v6744_v14 = vmax.f32 %v6742_v41, %v6743_v31 }
 0x45b   : > { %v6070_v0 = vpack.c.bf16 %v6047_v38, %v6046_v27  ;;  %v6643_v46 = vmax.f32 %v13207_v22, %v6642_v17  ;;  %v6662_v57 = vmax.f32 %v13210_v10, %v6661_v11  ;;  %v6698_v54 = vrot.slane %v6697_v25, 1 }
 0x45c   : > { %v6738_v44 = vrot.slane %v6737_v19, 2  ;;  %v6657_v60 = vmax.f32 %v13445_v51, %v6656_v49  ;;  %v6676_v20 = vmax.f32 %v13520_v26, %v6675_v39  ;;  %v6712_v36 = vrot.slane %v6711_v37, 1 }
 0x45d   : > { %v6725_v6 = vmax.f32 %v6723_v3, %v6724_v40  ;;  %8564 = vmatmul.msk.bf16.gmra.mxu0 %vm6130_vm5, %v6070_v0  ;;  %v7563_v41 = vsel %vm5189_vm12, %v13506_v61, %v6643_v46  ;;  %v6689_v22 = vrot.slane %v6688_v32, 2  ;;  %v6706_v17 = vmax.f32 %v6704_v33, %v6705_v12  ;;  %v6208_v61 = vpop.f32.mrf.mxu0 }
 0x45e   : > { %v6718_v28 = vmax.f32 %v6716_v13, %v6717_v7  ;;  %v6670_v29 = vrot.slane %v6669_v55, 1  ;;  %v6683_v10 = vmax.f32 %v6681_v30, %v6682_v47  ;;  %v6732_v11 = vmax.f32 %v6730_v18, %v6731_v56 }
 0x45f   : > { %v6745_v62 = vrot.slane %v6744_v14, 2  ;;  %v6663_v34 = vrot.slane %v6662_v57, 1  ;;  %v6699_v23 = vmax.f32 %v6697_v25, %v6698_v54  ;;  %v6739_v15 = vmax.f32 %v6737_v19, %v6738_v44 }
 0x460   : > { %v6677_v51 = vrot.slane %v6676_v20, 1  ;;  %v6713_v49 = vmax.f32 %v6711_v37, %v6712_v36  ;;  %v6726_v26 = vrot.slane %v6725_v6, 1  ;;  %v7564_v3 = vsel %vm5191_vm13, %v6657_v60, %v7563_v41 }
 0x461   : > { %v6690_v4 = vmax.f32 %v6688_v32, %v6689_v22  ;;  %v6719_v9 = vrot.slane %v6718_v28, 1  ;;  %v7570_v50 = vsel %vm5189_vm12, %v6706_v17, %v6699_v23  ;;  %v6671_v31 = vmax.f32 %v6669_v55, %v6670_v29 }
 0x462   : > { %v6684_v33 = vrot.slane %v6683_v10, 1  ;;  %v6733_v13 = vrot.slane %v6732_v11, 1  ;;  %v6746_v45 = vmax.f32 %v6744_v14, %v6745_v62  ;;  %v6664_v30 = vmax.f32 %v6662_v57, %v6663_v34 }
 0x463   : > { %v6740_v18 = vrot.slane %v6739_v15, 1  ;;  %v6678_v63 = vmax.f32 %v6676_v20, %v6677_v51  ;;  %v7571_v25 = vsel %vm5191_vm13, %v6713_v49, %v7570_v50  ;;  %v6727_v19 = vmax.f32 %v6725_v6, %v6726_v26 }
 0x464   : > { %v6691_v16 = vrot.slane %v6690_v4, 1  ;;  %v6720_v38 = vmax.f32 %v6718_v28, %v6719_v9  ;;  %v7565_v39 = vsel %vm5193_vm14, %v6664_v30, %v7564_v3  ;;  %v6685_v37 = vmax.f32 %v6683_v10, %v6684_v33 }
 0x465   : > { %v6734_v40 = vmax.f32 %v6732_v11, %v6733_v13  ;;  %v6747_v27 = vrot.slane %v6746_v45, 1  ;;  %v7566_v47 = vsel %vm5195_vm15, %v6671_v31, %v7565_v39  ;;  %v6741_v32 = vmax.f32 %v6739_v15, %v6740_v18  ;;  %v6210_v60 = vpop.f32.mrf.mxu0 }
 0x466   : > { %v6209_v12 = vadd.f32 %v13234_v42, %v6208_v61  ;;  %v7572_v7 = vsel %vm5193_vm14, %v6720_v38, %v7571_v25  ;;  %v7567_v55 = vsel %vm5197_vm1, %v6678_v63, %v7566_v47  ;;  %v5472_v14 = vrot.slane %v13304_v35, 7 }
 0x467   : > { %v7573_v56 = vsel %vm5195_vm15, %v6727_v19, %v7572_v7  ;;  %v6692_v0 = vmax.f32 %v6690_v4, %v6691_v16  ;;  %v6748_v46 = vmax.f32 %v6746_v45, %v6747_v27  ;;  %v7568_v57 = vsel %vm5199_vm2, %v6685_v37, %v7567_v55 }
 0x468   : > { %v7574_v54 = vsel %vm5197_vm1, %v6734_v40, %v7573_v56  ;;  %v6276_v44 = vmax.f32 %v6209_v12, 0.0  ;;  %v5471_v36 = vrot.slane %v13171_v24, 7  ;;  %v14843_v6 = vrot.slane %v13312_v48, 7 }
 0x469   : > { %v7575_v20 = vsel %vm5199_vm2, %v6741_v32, %v7574_v54  ;;  %v13616_v41 = vsel %vm5201_vm3, %v6692_v0, %v7568_v57  ;;  %v6211_v17 = vadd.f32 %v13234_v42, %v6210_v60  ;;  %v5470_v16 = vrot.slane %v12985_v8, 7  ;;  %v15419_v32 = vld [vmem:[#allocation5_spill] sm:$0xff] }
 0x46a   : > { %v13619_v22 = vsel %vm5201_vm3, %v6748_v46, %v7575_v20  ;;  %v13628_v28 = vsel %vm944_vm0, %v5472_v14, %v14843_v6  ;;  %v13632_v24 = vsel %vm944_vm0, %v5471_v36, %v5472_v14  ;;  %v6356_v29 = vrot.slane %v6276_v44, 2 }
 0x46b   : > { %v9005_v35 = vpack.i.bf16 %v13619_v22, %v13616_v41  ;;  %v6357_v10 = vrot.slane %v6276_v44, 4  ;;  %v6749_v11 = vsel %vm6524_vm6, %v6276_v44, -inf  ;;  %v6358_v62 = vrot.slane %v6276_v44, 6 }
 0x46c   : > { %v6277_v34 = vmax.f32 %v6211_v17, 0.0  ;;  %v6750_v23 = vrot.slane %v6749_v11, 4  ;;  %v6756_v15 = vsel %vm6524_vm6, %v6356_v29, -inf  ;;  %v696_v12 = vand.u32 31, %v15419_v32 }
 0x46d   : > { %9006 = vrot.lane.b32.xlu0 %v9005_v35, %s9114_s19  ;;  %v6763_v51 = vsel %vm6524_vm6, %v6357_v10, -inf  ;;  %v6770_v49 = vsel %vm6524_vm6, %v6358_v62, -inf  ;;  %v6757_v26 = vrot.slane %v6756_v15, 4  ;;  %v8962_v13 = vpop.permute.xlu0 %8961  ;;  %v5476_v7 = vrot.slane %v13426_v58, 7 }
 0x46e   : > { %v6359_v3 = vrot.slane %v6277_v34, 2  ;;  %v6360_v4 = vrot.slane %v6277_v34, 4  ;;  %v6751_v9 = vmax.f32 %v6749_v11, %v6750_v23  ;;  %v6764_v50 = vrot.slane %v6763_v51, 4 }
 0x46f   : > { %v6361_v61 = vrot.slane %v6277_v34, 6  ;;  %v6771_v31 = vrot.slane %v6770_v49, 4  ;;  %v6777_v33 = vsel %vm6524_vm6, %v6277_v34, -inf  ;;  %v6758_v45 = vmax.f32 %v6756_v15, %v6757_v26 }
 0x470   : > { %v6784_v30 = vsel %vm6524_vm6, %v6359_v3, -inf  ;;  %v6791_v18 = vsel %vm6524_vm6, %v6360_v4, -inf  ;;  %v6752_v63 = vrot.slane %v6751_v9, 2  ;;  %v6765_v25 = vmax.f32 %v6763_v51, %v6764_v50 }
 0x471   : > { %v6798_v19 = vsel %vm6524_vm6, %v6361_v61, -inf  ;;  %v6772_v38 = vmax.f32 %v6770_v49, %v6771_v31  ;;  %v6778_v39 = vrot.slane %v6777_v33, 4  ;;  %v8964_v37 = vunpack.i.h.bf16 %v8962_v13 }
 0x472   : > { %v8963_v40 = vunpack.i.l.bf16 %v8962_v13  ;;  %v6785_v27 = vrot.slane %v6784_v30, 4  ;;  %v6792_v47 = vrot.slane %v6791_v18, 4  ;;  %v6759_v55 = vrot.slane %v6758_v45, 2 }
 0x473   : > { %v6799_v56 = vrot.slane %v6798_v19, 4  ;;  %v6753_v14 = vmax.f32 %v6751_v9, %v6752_v63  ;;  %v6766_v0 = vrot.slane %v6765_v25, 2  ;;  %v5496_v46 = vsel %vm944_vm0, %v5470_v16, %v5471_v36 }
 0x474   : > { %v15420_v57 = vrot.slane %v15417_v5, 7  ;;  %v6773_v54 = vrot.slane %v6772_v38, 2  ;;  %v6779_v44 = vmax.f32 %v6777_v33, %v6778_v39  ;;  %v6016_v20 = vsel %vm5996_vm10, %v5496_v46, %v8964_v37 }
 0x475   : > { %v6786_v17 = vmax.f32 %v6784_v30, %v6785_v27  ;;  %v6793_v29 = vmax.f32 %v6791_v18, %v6792_v47  ;;  %v14842_v62 = vrot.slane %v13469_v1, 7  ;;  %v6760_v34 = vmax.f32 %v6758_v45, %v6759_v55 }
 0x476   : > { %v5497_v8 = vsel %vm944_vm0, %v15420_v57, %v5470_v16  ;;  %v6800_v5 = vmax.f32 %v6798_v19, %v6799_v56  ;;  %v6754_v15 = vrot.slane %v6753_v14, 1  ;;  %v6767_v3 = vmax.f32 %v6765_v25, %v6766_v0 }
 0x477   : > { %v6015_v35 = vsel %vm5996_vm10, %v5497_v8, %v8963_v40  ;;  %v6774_v4 = vmax.f32 %v6772_v38, %v6773_v54  ;;  %v6780_v9 = vrot.slane %v6779_v44, 2  ;;  %v6787_v31 = vrot.slane %v6786_v17, 2 }
 0x478   : > { %v6794_v33 = vrot.slane %v6793_v29, 2  ;;  %v6761_v18 = vrot.slane %v6760_v34, 1  ;;  %v6801_v63 = vrot.slane %v6800_v5, 2  ;;  %v436_v19 = vadd.s32 160, %v9191_v2 }
 0x479   : > { %v6755_v16 = vmax.f32 %v6753_v14, %v6754_v15  ;;  %v6768_v37 = vrot.slane %v6767_v3, 1  ;;  %v6775_v55 = vrot.slane %v6774_v4, 1  ;;  %v6781_v56 = vmax.f32 %v6779_v44, %v6780_v9 }
 0x47a   : > { %v13666_v0 = vmax.f32 %v6793_v29, %v6794_v33  ;;  %v6762_v46 = vmax.f32 %v6760_v34, %v6761_v18  ;;  %v13668_v57 = vmax.f32 %v6800_v5, %v6801_v63  ;;  %v692_v8 = vand.u32 31, %v436_v19 }
 0x47b   : > { %v6782_v15 = vrot.slane %v6781_v56, 1  ;;  %vm13730_vm11 = vcmp.eq.s32.totalorder %v696_v12, 0 }
 0x47c   : > { %vm13678_vm9 = vcmp.eq.s32.totalorder %v692_v8, 0  ;;  %v6803_v33 = vrot.slane %v13668_v57, 1  ;;  %v7577_v18 = vsel %vm5189_vm12, %v6762_v46, %v6755_v16 }
 0x47d   : > { %v8972_v60 = vpop.permute.xlu2 %8971  ;;  %v13693_v46 = vmax.f32 %v6781_v56, %v6782_v15 }
 0x47e   : > { %v8974_v10 = vunpack.i.h.bf16 %v8972_v60  ;;  %v8973_v11 = vunpack.i.l.bf16 %v8972_v60  ;;  %v6253_v23 = vpop.f32.mrf.mxu3  ;;  %v13788_v58 = vmax.f32 %v13668_v57, %v6803_v33 }
 0x47f   : > { %v6254_v26 = vadd.f32 %v13234_v42, %v6253_v23  ;;  %v13674_v23 = vmax.f32 %v6774_v4, %v6775_v55  ;;  %v6796_v4 = vrot.slane %v13666_v0, 1 }
 0x480   : > { %v6048_v51 = vsel %vm6029_vm4, %v6015_v35, %v8973_v11  ;;  %v6049_v49 = vsel %vm6029_vm4, %v6016_v20, %v8974_v10  ;;  %v6213_v61 = vpop.f32.mrf.mxu0  ;;  %v6769_v10 = vmax.f32 %v6767_v3, %v6768_v37 }
 0x481   : > { %v6071_v50 = vpack.c.bf16 %v6049_v49, %v6048_v51  ;;  %v6294_v13 = vmax.f32 %v6254_v26, 0.0  ;;  %v6214_v30 = vadd.f32 %v13234_v42, %v6213_v61  ;;  %v13664_v42 = vmax.f32 %v6786_v17, %v6787_v31 }
 0x482   : > { %v13691_v16 = vsel %vm5191_vm13, %v6769_v10, %v7577_v18  ;;  %v13710_v18 = vmax.f32 %v13666_v0, %v6796_v4 }
 0x483   : > { %8565 = vmatmul.msk.bf16.gmra.mxu0 %vm6130_vm5, %v6071_v50  ;;  %v6410_v39 = vrot.slane %v6294_v13, 2  ;;  %v6411_v25 = vrot.slane %v6294_v13, 4  ;;  %v7253_v38 = vsel %vm6524_vm6, %v6294_v13, -inf  ;;  %v6412_v40 = vrot.slane %v6294_v13, 6 }
 0x484   : > { %v7254_v27 = vrot.slane %v7253_v38, 4  ;;  %v6278_v47 = vmax.f32 %v6214_v30, 0.0  ;;  %v6789_v51 = vrot.slane %v13664_v42, 1 }
 0x485   : > { %v7260_v14 = vsel %vm6524_vm6, %v6410_v39, -inf  ;;  %v7267_v54 = vsel %vm6524_vm6, %v6411_v25, -inf  ;;  %v7274_v44 = vsel %vm6524_vm6, %v6412_v40, -inf }
 0x486   : > { %v6362_v60 = vrot.slane %v6278_v47, 2  ;;  %v6363_v20 = vrot.slane %v6278_v47, 4  ;;  %v6805_v35 = vsel %vm6524_vm6, %v6278_v47, -inf  ;;  %v7255_v11 = vmax.f32 %v7253_v38, %v7254_v27 }
 0x487   : > { %v6364_v17 = vrot.slane %v6278_v47, 6  ;;  %v7261_v29 = vrot.slane %v7260_v14, 4  ;;  %v6806_v34 = vrot.slane %v6805_v35, 4  ;;  %v7268_v9 = vrot.slane %v7267_v54, 4 }
 0x488   : > { %v6812_v5 = vsel %vm6524_vm6, %v6362_v60, -inf  ;;  %v7275_v3 = vrot.slane %v7274_v44, 4  ;;  %v6819_v31 = vsel %vm6524_vm6, %v6363_v20, -inf  ;;  %v7256_v13 = vrot.slane %v7255_v11, 2 }
 0x489   : > { %v8967_v26 = vpop.permute.xlu1 %8966  ;;  %v6807_v50 = vmax.f32 %v6805_v35, %v6806_v34  ;;  %v6813_v61 = vrot.slane %v6812_v5, 4  ;;  %v6826_v30 = vsel %vm6524_vm6, %v6364_v17, -inf  ;;  %v7262_v19 = vmax.f32 %v7260_v14, %v7261_v29 }
 0x48a   : > { %v8968_v63 = vunpack.i.l.bf16 %v8967_v26  ;;  %v8969_v25 = vunpack.i.h.bf16 %v8967_v26  ;;  %v5600_v38 = vsel %vm13678_vm9, 0.0, %v13632_v24  ;;  %v7269_v37 = vmax.f32 %v7267_v54, %v7268_v9  ;;  %v6255_v24 = vpop.f32.mrf.mxu3  ;;  %v6215_v26 = vpop.f32.mrf.mxu0 }
 0x48b   : > { %v6814_v39 = vmax.f32 %v6812_v5, %v6813_v61  ;;  %v6820_v40 = vrot.slane %v6819_v31, 4  ;;  %v7276_v47 = vmax.f32 %v7274_v44, %v7275_v3  ;;  %v6808_v55 = vrot.slane %v6807_v50, 2 }
 0x48c   : > { %v6827_v60 = vrot.slane %v6826_v30, 4  ;;  %v7257_v17 = vmax.f32 %v7255_v11, %v7256_v13  ;;  %v6017_v14 = vsel %vm5996_vm10, %v5600_v38, %v8968_v63  ;;  %v7263_v29 = vrot.slane %v7262_v19, 2 }
 0x48d   : > { %v6815_v8 = vrot.slane %v6814_v39, 2  ;;  %v6821_v34 = vmax.f32 %v6819_v31, %v6820_v40  ;;  %v6018_v54 = vsel %vm5996_vm10, %v13628_v28, %v8969_v25  ;;  %v7270_v44 = vrot.slane %v7269_v37, 2  ;;  %v13703_v31 = vld [vmem:[%s14660_s4] ss:$0 sm:$0xff] }
 0x48e   : > { %v7277_v9 = vrot.slane %v7276_v47, 2  ;;  %v6809_v11 = vmax.f32 %v6807_v50, %v6808_v55  ;;  %v6828_v3 = vmax.f32 %v6826_v30, %v6827_v60  ;;  %v7258_v61 = vrot.slane %v7257_v17, 1 }
 0x48f   : > { %v6816_v5 = vmax.f32 %v6814_v39, %v6815_v8  ;;  %v6822_v56 = vrot.slane %v6821_v34, 2  ;;  %v6256_v28 = vadd.f32 %v13703_v31, %v6255_v24  ;;  %v13707_v13 = vmax.f32 %v13664_v42, %v6789_v51 }
 0x490   : > { %v6216_v30 = vadd.f32 %v13703_v31, %v6215_v26  ;;  %v7264_v63 = vmax.f32 %v7262_v19, %v7263_v29  ;;  %v13714_v39 = vmax.f32 %v7269_v37, %v7270_v44  ;;  %v13717_v40 = vmax.f32 %v7276_v47, %v7277_v9 }
 0x491   : > { %v8977_v27 = vpop.permute.xlu0 %8976  ;;  %v6817_v25 = vrot.slane %v6816_v5, 1  ;;  %v6295_v38 = vmax.f32 %v6256_v28, 0.0  ;;  %v6829_v55 = vrot.slane %v6828_v3, 2  ;;  %v13719_v51 = vmax.f32 %v7257_v17, %v7258_v61 }
 0x492   : > { %v8979_v20 = vunpack.i.h.bf16 %v8977_v27  ;;  %v8978_v35 = vunpack.i.l.bf16 %v8977_v27  ;;  %v6810_v27 = vrot.slane %v6809_v11, 1  ;;  %v6279_v42 = vmax.f32 %v6216_v30, 0.0 }
 0x493   : > { %15423 = vst [vmem:[#allocation58_spill] sm:$0xff] %v13719_v51  ;;  %v6823_v0 = vmax.f32 %v6821_v34, %v6822_v56  ;;  %v6413_v4 = vrot.slane %v6295_v38, 2  ;;  %v6414_v8 = vrot.slane %v6295_v38, 4  ;;  %v6415_v60 = vrot.slane %v6295_v38, 6 }
 0x494   : > { %v6050_v49 = vsel %vm6029_vm4, %v6017_v14, %v8978_v35  ;;  %v6051_v10 = vsel %vm6029_vm4, %v6018_v54, %v8979_v20  ;;  %v7281_v20 = vsel %vm6524_vm6, %v6295_v38, -inf  ;;  %v6365_v19 = vrot.slane %v6279_v42, 2 }
 0x495   : > { %v6072_v15 = vpack.c.bf16 %v6051_v10, %v6050_v49  ;;  %v6366_v37 = vrot.slane %v6279_v42, 4  ;;  %v7265_v35 = vrot.slane %v7264_v63, 1  ;;  %v6818_v14 = vmax.f32 %v6816_v5, %v6817_v25 }
 0x496   : > { %v7282_v29 = vrot.slane %v7281_v20, 4  ;;  %v7288_v24 = vsel %vm6524_vm6, %v6413_v4, -inf  ;;  %v6811_v47 = vmax.f32 %v6809_v11, %v6810_v27  ;;  %v6830_v54 = vmax.f32 %v6828_v3, %v6829_v55 }
 0x497   : > { %8566 = vmatmul.msk.bf16.vlgmr.msra.gmra.mxu1 %vm6130_vm5, %v6072_v15  ;;  %v7295_v44 = vsel %vm6524_vm6, %v6414_v8, -inf  ;;  %v6367_v49 = vrot.slane %v6279_v42, 6  ;;  %v6824_v17 = vrot.slane %v6823_v0, 1  ;;  %v7289_v26 = vrot.slane %v7288_v24, 4 }
 0x498   : > { %v7302_v34 = vsel %vm6524_vm6, %v6415_v60, -inf  ;;  %v6833_v9 = vsel %vm6524_vm6, %v6279_v42, -inf  ;;  %v7283_v10 = vmax.f32 %v7281_v20, %v7282_v29  ;;  %v6840_v56 = vsel %vm6524_vm6, %v6365_v19, -inf }
 0x499   : > { %v6834_v61 = vrot.slane %v6833_v9, 4  ;;  %v6847_v5 = vsel %vm6524_vm6, %v6366_v37, -inf  ;;  %v7584_v28 = vsel %vm5189_vm12, %v6818_v14, %v6811_v47  ;;  %v7296_v30 = vrot.slane %v7295_v44, 4 }
 0x49a   : > { %v6841_v25 = vrot.slane %v6840_v56, 4  ;;  %v6831_v38 = vrot.slane %v6830_v54, 1  ;;  %v6848_v55 = vrot.slane %v6847_v5, 4  ;;  %v6854_v42 = vsel %vm6524_vm6, %v6367_v49, -inf }
 0x49b   : > { %v6835_v27 = vmax.f32 %v6833_v9, %v6834_v61  ;;  %v6825_v4 = vmax.f32 %v6823_v0, %v6824_v17  ;;  %v13737_v8 = vmax.f32 %v7288_v24, %v7289_v26  ;;  %v7303_v60 = vrot.slane %v7302_v34, 4 }
 0x49c   : > { %v6842_v32 = vmax.f32 %v6840_v56, %v6841_v25  ;;  %v7284_v12 = vrot.slane %v7283_v10, 2  ;;  %v6849_v19 = vmax.f32 %v6847_v5, %v6848_v55  ;;  %v6855_v37 = vrot.slane %v6854_v42, 4 }
 0x49d   : > { %v6218_v15 = vpop.f32.mrf.mxu0  ;;  %v6836_v20 = vrot.slane %v6835_v27, 2  ;;  %v13739_v29 = vmax.f32 %v7264_v63, %v7265_v35  ;;  %v13741_v3 = vmax.f32 %v7295_v44, %v7296_v30  ;;  %v6832_v9 = vmax.f32 %v6830_v54, %v6831_v38 }
 0x49e   : > { %v6843_v14 = vrot.slane %v6842_v32, 2  ;;  %v6850_v45 = vrot.slane %v6849_v19, 2  ;;  %v6856_v49 = vmax.f32 %v6854_v42, %v6855_v37  ;;  %v7585_v24 = vsel %vm5191_vm13, %v6825_v4, %v7584_v28 }
 0x49f   : > { %15426 = vst [vmem:[#allocation35_spill] sm:$0xff] %v13739_v29  ;;  %v6837_v61 = vmax.f32 %v6835_v27, %v6836_v20  ;;  %v13748_v26 = vmax.f32 %v7302_v34, %v7303_v60  ;;  %v13750_v63 = vmax.f32 %v7283_v10, %v7284_v12  ;;  %v6219_v34 = vadd.f32 %v13703_v31, %v6218_v15 }
 0x4a0   : > { %15427 = vst [vmem:[#allocation52_spill] sm:$0xff] %v13741_v3  ;;  %v6844_v56 = vmax.f32 %v6842_v32, %v6843_v14  ;;  %v6851_v44 = vmax.f32 %v6849_v19, %v6850_v45  ;;  %v6857_v5 = vrot.slane %v6856_v49, 2  ;;  %v15429_v4 = vrot.slane %v13127_v59, 7 }
 0x4a1   : > { %15428 = vst [vmem:[#allocation26_spill] sm:$0xff] %v13750_v63  ;;  %v6838_v35 = vrot.slane %v6837_v61, 1  ;;  %v13777_v32 = vsel %vm944_vm0, %v14842_v62, %v5476_v7  ;;  %v6280_v20 = vmax.f32 %v6219_v34, 0.0  ;;  %v13796_v37 = vsel %vm5193_vm14, %v6832_v9, %v7585_v24 }
 0x4a2   : > { %v13744_v0 = vpop.permute.xlu2 %8986  ;;  %v6845_v25 = vrot.slane %v6844_v56, 1  ;;  %v6852_v28 = vrot.slane %v6851_v44, 1  ;;  %v13757_v42 = vmax.f32 %v6856_v49, %v6857_v5  ;;  %v13769_v60 = vsel %vm944_vm0, %v5476_v7, %v15429_v4 }
 0x4a3   : > { %v13755_v55 = vmax.f32 %v6837_v61, %v6838_v35  ;;  %v13793_v7 = vsel %vm5193_vm14, %v13674_v23, %v13691_v16  ;;  %v6368_v14 = vrot.slane %v6280_v20, 2  ;;  %v6369_v61 = vrot.slane %v6280_v20, 4 }
 0x4a4   : > { %v13760_v10 = vmax.f32 %v6844_v56, %v6845_v25  ;;  %v13779_v15 = vmax.f32 %v6851_v44, %v6852_v28  ;;  %v6370_v49 = vrot.slane %v6280_v20, 6  ;;  %v6861_v56 = vsel %vm6524_vm6, %v6280_v20, -inf }
 0x4a5   : > { %v6220_v30 = vpop.f32.mrf.mxu0  ;;  %v6862_v35 = vrot.slane %v6861_v56, 4  ;;  %v6868_v57 = vsel %vm6524_vm6, %v6368_v14, -inf  ;;  %v6875_v33 = vsel %vm6524_vm6, %v6369_v61, -inf  ;;  %v5474_v11 = vrot.slane %v13340_v52, 7 }
 0x4a6   : > { %v6221_v45 = vadd.f32 %v13703_v31, %v6220_v30  ;;  %v6882_v25 = vsel %vm6524_vm6, %v6370_v49, -inf  ;;  %v6869_v9 = vrot.slane %v6868_v57, 4  ;;  %v6876_v24 = vrot.slane %v6875_v33, 4 }
 0x4a7   : > { %v6863_v16 = vmax.f32 %v6861_v56, %v6862_v35  ;;  %v6883_v28 = vrot.slane %v6882_v25, 4  ;;  %v15432_v52 = vrot.slane %v13312_v48, 7 }
 0x4a8   : > { %v6281_v19 = vmax.f32 %v6221_v45, 0.0  ;;  %v6870_v17 = vmax.f32 %v6868_v57, %v6869_v9  ;;  %v6877_v61 = vmax.f32 %v6875_v33, %v6876_v24 }
 0x4a9   : > { %v6864_v14 = vrot.slane %v6863_v16, 2  ;;  %v6884_v47 = vmax.f32 %v6882_v25, %v6883_v28 }
 0x4aa   : > { %v6371_v44 = vrot.slane %v6281_v19, 2  ;;  %v6372_v5 = vrot.slane %v6281_v19, 4  ;;  %v6373_v30 = vrot.slane %v6281_v19, 6  ;;  %v6889_v23 = vsel %vm6524_vm6, %v6281_v19, -inf }
 0x4ab   : > { %v6890_v34 = vrot.slane %v6889_v23, 4  ;;  %v13806_v54 = vpop.f32.mrf.mxu3  ;;  %v6865_v35 = vmax.f32 %v6863_v16, %v6864_v14  ;;  %v6871_v50 = vrot.slane %v6870_v17, 2  ;;  %v6878_v38 = vrot.slane %v6877_v61, 2 }
 0x4ac   : > { %v6896_v45 = vsel %vm6524_vm6, %v6371_v44, -inf  ;;  %v6903_v4 = vsel %vm6524_vm6, %v6372_v5, -inf  ;;  %v6910_v20 = vsel %vm6524_vm6, %v6373_v30, -inf  ;;  %v6885_v27 = vrot.slane %v6884_v47, 2 }
 0x4ad   : > { %v6891_v49 = vmax.f32 %v6889_v23, %v6890_v34  ;;  %v6897_v36 = vrot.slane %v6896_v45, 4  ;;  %v6904_v19 = vrot.slane %v6903_v4, 4  ;;  %v6911_v56 = vrot.slane %v6910_v20, 4 }
 0x4ae   : > { %v6866_v59 = vrot.slane %v6865_v35, 1  ;;  %v6872_v30 = vmax.f32 %v6870_v17, %v6871_v50  ;;  %v6879_v12 = vmax.f32 %v6877_v61, %v6878_v38  ;;  %v6886_v21 = vmax.f32 %v6884_v47, %v6885_v27 }
 0x4af   : > { %v6892_v62 = vrot.slane %v6891_v49, 2  ;;  %v6898_v44 = vmax.f32 %v6896_v45, %v6897_v36  ;;  %v6905_v6 = vmax.f32 %v6903_v4, %v6904_v19  ;;  %v6912_v5 = vmax.f32 %v6910_v20, %v6911_v56  ;;  %v13808_v9 = vpop.permute.xlu2 %9001  ;;  %v8992_v4 = vpop.permute.xlu0 %8991 }
 0x4b0   : > { %v6867_v24 = vmax.f32 %v6865_v35, %v6866_v59  ;;  %v6873_v16 = vrot.slane %v6872_v30, 1  ;;  %v6880_v28 = vrot.slane %v6879_v12, 1  ;;  %v6887_v34 = vrot.slane %v6886_v21, 1 }
 0x4b1   : > { %v6893_v57 = vmax.f32 %v6891_v49, %v6892_v62  ;;  %v6899_v33 = vrot.slane %v6898_v44, 2  ;;  %v6906_v25 = vrot.slane %v6905_v6, 2  ;;  %v6913_v23 = vrot.slane %v6912_v5, 2 }
 0x4b2   : > { %v6874_v50 = vmax.f32 %v6872_v30, %v6873_v16  ;;  %v6881_v17 = vmax.f32 %v6879_v12, %v6880_v28  ;;  %v13812_v47 = vmax.f32 %v6886_v21, %v6887_v34  ;;  %v8994_v19 = vunpack.i.h.bf16 %v8992_v4 }
 0x4b3   : > { %v6894_v14 = vrot.slane %v6893_v57, 1  ;;  %v6900_v63 = vmax.f32 %v6898_v44, %v6899_v33  ;;  %v6907_v36 = vmax.f32 %v6905_v6, %v6906_v25  ;;  %v13810_v45 = vmax.f32 %v6912_v5, %v6913_v23  ;;  %v6260_v61 = vpop.f32.mrf.mxu3 }
 0x4b4   : > { %v7591_v49 = vsel %vm5189_vm12, %v6874_v50, %v6867_v24  ;;  %v8993_v56 = vunpack.i.l.bf16 %v8992_v4  ;;  %v15430_v44 = vrot.slane %v13757_v42, 1  ;;  %v6022_v30 = vsel %vm5996_vm10, %v13769_v60, %v8994_v19 }
 0x4b5   : > { %v8982_v3 = vpop.permute.xlu1 %8981  ;;  %v13815_v38 = vmax.f32 %v6893_v57, %v6894_v14  ;;  %v6901_v27 = vrot.slane %v6900_v63, 1  ;;  %v6908_v20 = vrot.slane %v6907_v36, 1  ;;  %v6915_v59 = vrot.slane %v13810_v45, 1 }
 0x4b6   : > { %v13821_v35 = vsel %vm5191_vm13, %v6881_v17, %v7591_v49  ;;  %v6860_v5 = vmax.f32 %v13757_v42, %v15430_v44  ;;  %v15431_v57 = vsel %vm13730_vm11, 0.0, %v13777_v32  ;;  %v7587_v25 = vsel %vm5195_vm15, %v13755_v55, %v13796_v37 }
 0x4b7   : > { %v13823_v21 = vmax.f32 %v6900_v63, %v6901_v27  ;;  %v13825_v12 = vmax.f32 %v6907_v36, %v6908_v20  ;;  %v6021_v33 = vsel %vm5996_vm10, %v15431_v57, %v8993_v56  ;;  %v7580_v63 = vsel %vm5195_vm15, %v13693_v46, %v13793_v7  ;;  %v8775_v20 = vld [vmem:[%s14661_s5 + $0x58] sm:$0xff] }
 0x4b8   : > { %v7581_v42 = vsel %vm5197_vm1, %v13707_v13, %v7580_v63  ;;  %v7588_v60 = vsel %vm5197_vm1, %v13760_v10, %v7587_v25  ;;  %v8984_v23 = vunpack.i.h.bf16 %v8982_v3  ;;  %v8983_v46 = vunpack.i.l.bf16 %v8982_v3  ;;  %8094 = vmatpush.bf16.msrb.mxu2 %v8775_v20 }
 0x4b9   : > { %v7582_v32 = vsel %vm5199_vm2, %v13710_v18, %v7581_v42  ;;  %v7589_v24 = vsel %vm5199_vm2, %v13779_v15, %v7588_v60  ;;  %v6259_v7 = vadd.f32 %v13703_v31, %v13806_v54  ;;  %v5493_v18 = vsel %vm944_vm0, %v15432_v52, %v5474_v11 }
 0x4ba   : > { %v13856_v13 = vsel %vm5201_vm3, %v13788_v58, %v7582_v32  ;;  %v13859_v10 = vsel %vm5201_vm3, %v6860_v5, %v7589_v24  ;;  %v15433_v37 = vrot.slane %v13469_v1, 7  ;;  %v6019_v15 = vsel %vm5996_vm10, %v5493_v18, %v8983_v46 }
 0x4bb   : > { %v9010_v54 = vpack.i.bf16 %v13859_v10, %v13856_v13  ;;  %v6296_v16 = vmax.f32 %v6259_v7, 0.0  ;;  %v15434_v28 = vunpack.i.l.bf16 %v13744_v0  ;;  %v15435_v34 = vunpack.i.h.bf16 %v13744_v0 }
 0x4bc   : > { %v5492_v3 = vsel %vm944_vm0, %v5474_v11, %v15433_v37  ;;  %v6261_v56 = vadd.f32 %v13703_v31, %v6260_v61 }
 0x4bd   : > { %v6020_v58 = vsel %vm5996_vm10, %v5492_v3, %v8984_v23  ;;  %v6052_v48 = vsel %vm6029_vm4, %v6019_v15, %v15434_v28  ;;  %9011 = vrot.lane.b32.xlu1 %v9010_v54, %s9114_s19  ;;  %v6416_v4 = vrot.slane %v6296_v16, 2  ;;  %v6417_v50 = vrot.slane %v6296_v16, 4 }
 0x4be   : > { %v6053_v14 = vsel %vm6029_vm4, %v6020_v58, %v15435_v34  ;;  %v6418_v17 = vrot.slane %v6296_v16, 6  ;;  %v7309_v27 = vsel %vm6524_vm6, %v6296_v16, -inf  ;;  %v6297_v61 = vmax.f32 %v6261_v56, 0.0  ;;  %v8774_v56 = vld [vmem:[%s14661_s5 + $0x50] sm:$0xff] }
 0x4bf   : > { %v7310_v49 = vrot.slane %v7309_v27, 4  ;;  %v6073_v19 = vpack.c.bf16 %v6053_v14, %v6052_v48  ;;  %v7316_v57 = vsel %vm6524_vm6, %v6416_v4, -inf  ;;  %v7323_v63 = vsel %vm6524_vm6, %v6417_v50, -inf  ;;  %8095 = vmatpush.bf16.msrb.mxu2 %v8774_v56 }
 0x4c0   : > { %v7330_v25 = vsel %vm6524_vm6, %v6418_v17, -inf  ;;  %v7317_v11 = vrot.slane %v7316_v57, 4  ;;  %v7324_v23 = vrot.slane %v7323_v63, 4  ;;  %v6419_v37 = vrot.slane %v6297_v61, 2 }
 0x4c1   : > { %v8997_v55 = vpop.permute.xlu1 %8996  ;;  %v6223_v44 = vpop.f32.mrf.mxu0  ;;  %v7311_v60 = vmax.f32 %v7309_v27, %v7310_v49  ;;  %v7331_v32 = vrot.slane %v7330_v25, 4  ;;  %8567 = vmatmul.msk.bf16.gmra.mxu1 %vm6130_vm5, %v6073_v19  ;;  %v6421_v3 = vrot.slane %v6297_v61, 6  ;;  %v7337_v54 = vsel %vm6524_vm6, %v6297_v61, -inf }
 0x4c2   : > { %v8999_v1 = vunpack.i.h.bf16 %v8997_v55  ;;  %v8998_v36 = vunpack.i.l.bf16 %v8997_v55  ;;  %v6263_v5 = vpop.f32.mrf.mxu3  ;;  %v7318_v55 = vmax.f32 %v7316_v57, %v7317_v11  ;;  %v7325_v52 = vmax.f32 %v7323_v63, %v7324_v23 }
 0x4c3   : > { %v13893_v46 = vadd.f32 %v13703_v31, %v6263_v5  ;;  %v7312_v7 = vrot.slane %v7311_v60, 2  ;;  %v7332_v18 = vmax.f32 %v7330_v25, %v7331_v32  ;;  %v7338_v48 = vrot.slane %v7337_v54, 4 }
 0x4c4   : > { %v6054_v0 = vsel %vm6029_vm4, %v6021_v33, %v8998_v36  ;;  %v6055_v42 = vsel %vm6029_vm4, %v6022_v30, %v8999_v1  ;;  %v6224_v33 = vadd.f32 %v13703_v31, %v6223_v44  ;;  %v6420_v30 = vrot.slane %v6297_v61, 4 }
 0x4c5   : > { %v6074_v24 = vpack.c.bf16 %v6055_v42, %v6054_v0  ;;  %v7313_v15 = vmax.f32 %v7311_v60, %v7312_v7  ;;  %v7319_v58 = vrot.slane %v7318_v55, 2  ;;  %v7326_v16 = vrot.slane %v7325_v52, 2 }
 0x4c6   : > { %v7333_v28 = vrot.slane %v7332_v18, 2  ;;  %v7344_v34 = vsel %vm6524_vm6, %v6419_v37, -inf  ;;  %v7351_v14 = vsel %vm6524_vm6, %v6420_v30, -inf  ;;  %v7358_v1 = vsel %vm6524_vm6, %v6421_v3, -inf }
 0x4c7   : > { %8568 = vmatmul.msk.bf16.vlgmr.msra.gmra.mxu2 %vm6130_vm5, %v6074_v24  ;;  %v7314_v36 = vrot.slane %v7313_v15, 1  ;;  %v7320_v4 = vmax.f32 %v7318_v55, %v7319_v58  ;;  %v7327_v50 = vmax.f32 %v7325_v52, %v7326_v16  ;;  %v7339_v27 = vmax.f32 %v7337_v54, %v7338_v48  ;;  %v8773_v54 = vld [vmem:[%s14661_s5 + $0x48] sm:$0xff] }
 0x4c8   : > { %v7334_v17 = vmax.f32 %v7332_v18, %v7333_v28  ;;  %v7345_v20 = vrot.slane %v7344_v34, 4  ;;  %v7352_v49 = vrot.slane %v7351_v14, 4  ;;  %v7359_v19 = vrot.slane %v7358_v1, 4  ;;  %8096 = vmatpush.bf16.msrb.mxu2 %v8773_v54 }
 0x4c9   : > { %v7315_v0 = vmax.f32 %v7313_v15, %v7314_v36  ;;  %v7321_v44 = vrot.slane %v7320_v4, 1  ;;  %v7328_v5 = vrot.slane %v7327_v50, 1  ;;  %v7340_v63 = vrot.slane %v7339_v27, 2  ;;  %v8771_v15 = vld [vmem:[%s14661_s5 + $0x38] sm:$0xff] }
 0x4ca   : > { %v7335_v57 = vrot.slane %v7334_v17, 1  ;;  %v7346_v25 = vmax.f32 %v7344_v34, %v7345_v20  ;;  %v7353_v42 = vmax.f32 %v7351_v14, %v7352_v49  ;;  %v7360_v60 = vmax.f32 %v7358_v1, %v7359_v19  ;;  %8041 = vmatpush.bf16.msrb.mxu1 %v8771_v15 }
 0x4cb   : > { %v7322_v11 = vmax.f32 %v7320_v4, %v7321_v44  ;;  %v7329_v23 = vmax.f32 %v7327_v50, %v7328_v5  ;;  %v6282_v61 = vmax.f32 %v6224_v33, 0.0  ;;  %v7341_v24 = vmax.f32 %v7339_v27, %v7340_v63  ;;  %v6225_v27 = vpop.f32.mrf.mxu0 }
 0x4cc   : > { %v13903_v32 = vmax.f32 %v7334_v17, %v7335_v57  ;;  %v7347_v7 = vrot.slane %v7346_v25, 2  ;;  %v7354_v55 = vrot.slane %v7353_v42, 2  ;;  %v7361_v52 = vrot.slane %v7360_v60, 2 }
 0x4cd   : > { %v7647_v18 = vsel %vm5189_vm12, %v7322_v11, %v7315_v0  ;;  %v6374_v37 = vrot.slane %v6282_v61, 2  ;;  %v6375_v30 = vrot.slane %v6282_v61, 4  ;;  %v6376_v3 = vrot.slane %v6282_v61, 6  ;;  %v6265_v0 = vpop.f32.mrf.mxu3 }
 0x4ce   : > { %v13913_v58 = vsel %vm5191_vm13, %v7329_v23, %v7647_v18  ;;  %v7342_v33 = vrot.slane %v7341_v24, 1  ;;  %v7348_v16 = vmax.f32 %v7346_v25, %v7347_v7  ;;  %v7355_v28 = vmax.f32 %v7353_v42, %v7354_v55 }
 0x4cf   : > { %v13915_v48 = vmax.f32 %v7360_v60, %v7361_v52  ;;  %v6917_v34 = vsel %vm6524_vm6, %v6282_v61, -inf  ;;  %v6924_v14 = vsel %vm6524_vm6, %v6374_v37, -inf  ;;  %v6931_v1 = vsel %vm6524_vm6, %v6375_v30, -inf }
 0x4d0   : > { %v13920_v36 = vmax.f32 %v7341_v24, %v7342_v33  ;;  %v7349_v4 = vrot.slane %v7348_v16, 1  ;;  %v7356_v50 = vrot.slane %v7355_v28, 1  ;;  %v6918_v17 = vrot.slane %v6917_v34, 4  ;;  %v8770_v33 = vld [vmem:[%s14661_s5 + $0x30] sm:$0xff] }
 0x4d1   : > { %v6925_v49 = vrot.slane %v6924_v14, 4  ;;  %v6932_v19 = vrot.slane %v6931_v1, 4  ;;  %v6938_v56 = vsel %vm6524_vm6, %v6376_v3, -inf  ;;  %v6298_v60 = vmax.f32 %v13893_v46, 0.0  ;;  %v8772_v46 = vld [vmem:[%s14661_s5 + $0x40] sm:$0xff]  ;;  %8042 = vmatpush.bf16.msrb.mxu1 %v8770_v33 }
 0x4d2   : > { %v13924_v44 = vmax.f32 %v7348_v16, %v7349_v4  ;;  %v13926_v5 = vmax.f32 %v7355_v28, %v7356_v50  ;;  %v6919_v57 = vmax.f32 %v6917_v34, %v6918_v17  ;;  %v6939_v63 = vrot.slane %v6938_v56, 4  ;;  %8097 = vmatpush.bf16.msrb.mxu2 %v8772_v46 }
 0x4d3   : > { %v6926_v25 = vmax.f32 %v6924_v14, %v6925_v49  ;;  %v6933_v42 = vmax.f32 %v6931_v1, %v6932_v19  ;;  %v6226_v11 = vadd.f32 %v13703_v31, %v6225_v27  ;;  %v6266_v24 = vadd.f32 %v13703_v31, %v6265_v0  ;;  %v8769_v27 = vld [vmem:[%s14661_s5 + $0x28] sm:$0xff] }
 0x4d4   : > { %v6920_v23 = vrot.slane %v6919_v57, 2  ;;  %v6940_v61 = vmax.f32 %v6938_v56, %v6939_v63  ;;  %v13932_v7 = vadd.s32 8, %v9191_v2  ;;  %v6422_v18 = vrot.slane %v6298_v60, 2 }
 0x4d5   : > { %v6927_v55 = vrot.slane %v6926_v25, 2  ;;  %v6934_v52 = vrot.slane %v6933_v42, 2  ;;  %v6423_v37 = vrot.slane %v6298_v60, 4  ;;  %v6424_v54 = vrot.slane %v6298_v60, 6  ;;  %8043 = vmatpush.bf16.msrb.mxu1 %v8769_v27 }
 0x4d6   : > { %v6921_v30 = vmax.f32 %v6919_v57, %v6920_v23  ;;  %v6941_v3 = vrot.slane %v6940_v61, 2  ;;  %v7365_v15 = vsel %vm6524_vm6, %v6298_v60, -inf  ;;  %v7372_v14 = vsel %vm6524_vm6, %v6422_v18, -inf }
 0x4d7   : > { %v6928_v16 = vmax.f32 %v6926_v25, %v6927_v55  ;;  %v6935_v28 = vmax.f32 %v6933_v42, %v6934_v52  ;;  %v7366_v34 = vrot.slane %v7365_v15, 4  ;;  %v7373_v50 = vrot.slane %v7372_v14, 4 }
 0x4d8   : > { %v6922_v1 = vrot.slane %v6921_v30, 1  ;;  %v6942_v4 = vmax.f32 %v6940_v61, %v6941_v3  ;;  %v7379_v17 = vsel %vm6524_vm6, %v6423_v37, -inf  ;;  %v7386_v42 = vsel %vm6524_vm6, %v6424_v54, -inf }
 0x4d9   : > { %v6929_v49 = vrot.slane %v6928_v16, 1  ;;  %v6936_v19 = vrot.slane %v6935_v28, 1  ;;  %v7367_v56 = vmax.f32 %v7365_v15, %v7366_v34  ;;  %v7380_v0 = vrot.slane %v7379_v17, 4  ;;  %v8768_v15 = vld [vmem:[%s14661_s5 + $0x20] sm:$0xff] }
 0x4da   : > { %v6923_v57 = vmax.f32 %v6921_v30, %v6922_v1  ;;  %v6943_v63 = vrot.slane %v6942_v4, 1  ;;  %v7374_v25 = vmax.f32 %v7372_v14, %v7373_v50  ;;  %v7387_v37 = vrot.slane %v7386_v42, 4  ;;  %8044 = vmatpush.bf16.msrb.mxu1 %v8768_v15 }
 0x4db   : > { %v6930_v60 = vmax.f32 %v6928_v16, %v6929_v49  ;;  %v6937_v23 = vmax.f32 %v6935_v28, %v6936_v19  ;;  %v7368_v61 = vrot.slane %v7367_v56, 2  ;;  %v7381_v55 = vmax.f32 %v7379_v17, %v7380_v0 }
 0x4dc   : > { %v13947_v52 = vmax.f32 %v6942_v4, %v6943_v63  ;;  %v7375_v18 = vrot.slane %v7374_v25, 2  ;;  %v6283_v3 = vmax.f32 %v6226_v11, 0.0  ;;  %v6299_v34 = vmax.f32 %v6266_v24, 0.0 }
 0x4dd   : > { %v7598_v30 = vsel %vm5189_vm12, %v6930_v60, %v6923_v57  ;;  %v7369_v46 = vmax.f32 %v7367_v56, %v7368_v61  ;;  %v7382_v33 = vrot.slane %v7381_v55, 2  ;;  %v7388_v28 = vmax.f32 %v7386_v42, %v7387_v37 }
 0x4de   : > { %v13954_v54 = vsel %vm5191_vm13, %v6937_v23, %v7598_v30  ;;  %v7376_v16 = vmax.f32 %v7374_v25, %v7375_v18  ;;  %v6377_v14 = vrot.slane %v6283_v3, 2  ;;  %v6378_v50 = vrot.slane %v6283_v3, 4 }
 0x4df   : > { %v7370_v1 = vrot.slane %v7369_v46, 1  ;;  %v7383_v4 = vmax.f32 %v7381_v55, %v7382_v33  ;;  %v6379_v11 = vrot.slane %v6283_v3, 6  ;;  %v7389_v27 = vrot.slane %v7388_v28, 2 }
 0x4e0   : > { %v7377_v17 = vrot.slane %v7376_v16, 1  ;;  %v6945_v49 = vsel %vm6524_vm6, %v6283_v3, -inf  ;;  %v6952_v19 = vsel %vm6524_vm6, %v6377_v14, -inf  ;;  %v6959_v25 = vsel %vm6524_vm6, %v6378_v50, -inf }
 0x4e1   : > { %v7371_v56 = vmax.f32 %v7369_v46, %v7370_v1  ;;  %v7384_v0 = vrot.slane %v7383_v4, 1  ;;  %v6946_v24 = vrot.slane %v6945_v49, 4  ;;  %v6953_v57 = vrot.slane %v6952_v19, 4 }
 0x4e2   : > { %v7378_v63 = vmax.f32 %v7376_v16, %v7377_v17  ;;  %v7390_v60 = vmax.f32 %v7388_v28, %v7389_v27  ;;  %v6966_v42 = vsel %vm6524_vm6, %v6379_v11, -inf  ;;  %v6960_v18 = vrot.slane %v6959_v25, 4 }
 0x4e3   : > { %v7385_v23 = vmax.f32 %v7383_v4, %v7384_v0  ;;  %v6947_v61 = vmax.f32 %v6945_v49, %v6946_v24  ;;  %v6954_v55 = vmax.f32 %v6952_v19, %v6953_v57  ;;  %v6967_v30 = vrot.slane %v6966_v42, 4  ;;  %v8767_v4 = vld [vmem:[%s14661_s5 + $0x18] sm:$0xff] }
 0x4e4   : > { %v7391_v37 = vrot.slane %v7390_v60, 1  ;;  %v7654_v3 = vsel %vm5189_vm12, %v7378_v63, %v7371_v56  ;;  %v6425_v33 = vrot.slane %v6299_v34, 2  ;;  %v6961_v1 = vmax.f32 %v6959_v25, %v6960_v18  ;;  %8045 = vmatpush.bf16.msrb.mxu1 %v8767_v4  ;;  %v8766_v63 = vld [vmem:[%s14661_s5 + $0x10] sm:$0xff] }
 0x4e5   : > { %v7655_v15 = vsel %vm5191_vm13, %v7385_v23, %v7654_v3  ;;  %v6948_v46 = vrot.slane %v6947_v61, 2  ;;  %v6955_v14 = vrot.slane %v6954_v55, 2  ;;  %v6968_v28 = vmax.f32 %v6966_v42, %v6967_v30 }
 0x4e6   : > { %v7392_v16 = vmax.f32 %v7390_v60, %v7391_v37  ;;  %v6426_v17 = vrot.slane %v6299_v34, 4  ;;  %v6427_v50 = vrot.slane %v6299_v34, 6  ;;  %v6962_v49 = vrot.slane %v6961_v1, 2 }
 0x4e7   : > { %v6949_v11 = vmax.f32 %v6947_v61, %v6948_v46  ;;  %v6956_v27 = vmax.f32 %v6954_v55, %v6955_v14  ;;  %v7393_v19 = vsel %vm6524_vm6, %v6299_v34, -inf  ;;  %v6969_v0 = vrot.slane %v6968_v28, 2 }
 0x4e8   : > { %v7656_v56 = vsel %vm5193_vm14, %v7392_v16, %v7655_v15  ;;  %v7394_v24 = vrot.slane %v7393_v19, 4  ;;  %v7400_v57 = vsel %vm6524_vm6, %v6425_v33, -inf  ;;  %v6963_v42 = vmax.f32 %v6961_v1, %v6962_v49  ;;  %v13980_v1 = vpop.permute.xlu0 %9006  ;;  %8046 = vmatpush.bf16.msrb.mxu1 %v8766_v63 }
 0x4e9   : > { %v6950_v60 = vrot.slane %v6949_v11, 1  ;;  %v6957_v25 = vrot.slane %v6956_v27, 1  ;;  %v7401_v23 = vrot.slane %v7400_v57, 4  ;;  %v13971_v61 = vmax.f32 %v6968_v28, %v6969_v0  ;;  %v6228_v28 = vpop.f32.mrf.mxu0 }
 0x4ea   : > { %v7395_v55 = vmax.f32 %v7393_v19, %v7394_v24  ;;  %v7407_v34 = vsel %vm6524_vm6, %v6426_v17, -inf  ;;  %v7414_v18 = vsel %vm6524_vm6, %v6427_v50, -inf  ;;  %v6964_v30 = vrot.slane %v6963_v42, 1  ;;  %v8765_v17 = vld [vmem:[%s14661_s5 + $0x8] sm:$0xff] }
 0x4eb   : > { %v13975_v37 = vmax.f32 %v6949_v11, %v6950_v60  ;;  %v13977_v3 = vmax.f32 %v6956_v27, %v6957_v25  ;;  %v7402_v33 = vmax.f32 %v7400_v57, %v7401_v23  ;;  %v6971_v15 = vrot.slane %v13971_v61, 1 }
 0x4ec   : > { %v7396_v46 = vrot.slane %v7395_v55, 2  ;;  %v7408_v14 = vrot.slane %v7407_v34, 4  ;;  %v7415_v16 = vrot.slane %v7414_v18, 4  ;;  %v13985_v50 = vmax.f32 %v6963_v42, %v6964_v30  ;;  %8047 = vmatpush.bf16.msrb.mxu1 %v8765_v17 }
 0x4ed   : > { %v7403_v4 = vrot.slane %v7402_v33, 2  ;;  %v769_v11 = vand.u32 15, %v13932_v7  ;;  %v15436_v27 = vrot.slane %v13616_v41, 1  ;;  %v15437_v49 = vrot.slane %v13561_v43, 1 }
 0x4ee   : > { %v7397_v0 = vmax.f32 %v7395_v55, %v7396_v46  ;;  %v7409_v24 = vmax.f32 %v7407_v34, %v7408_v14  ;;  %v7416_v57 = vmax.f32 %v7414_v18, %v7415_v16  ;;  %v15439_v60 = vrot.slane %v13558_v53, 1  ;;  %v8764_v55 = vld [vmem:[%s14661_s5] sm:$0xff]  ;;  %v15440_v14 = vld [vmem:[#allocation59_spill] sm:$0xff] }
 0x4ef   : > { %v7786_v19 = vsel %vm1137_vm7, %v15437_v49, %v15436_v27  ;;  %v15438_v63 = vmov %v15437_v49  ;;  %v7404_v42 = vmax.f32 %v7402_v33, %v7403_v4  ;;  %vm801_vm10 = vcmp.eq.s32.totalorder %v769_v11, 15 }
 0x4f0   : > { %v7787_v25 = vsel %vm1137_vm7, %v15439_v60, %v15438_v63  ;;  %v7398_v30 = vrot.slane %v7397_v0, 1  ;;  %v7410_v20 = vrot.slane %v7409_v24, 2  ;;  %v7417_v6 = vrot.slane %v7416_v57, 2  ;;  %8048 = vmatpush.bf16.msrb.mxu1 %v8764_v55 }
 0x4f1   : > { %v7822_v27 = vsel %vm801_vm10, 0.0, %v7786_v19  ;;  %v7405_v34 = vrot.slane %v7404_v42, 1  ;;  %v6229_v46 = vadd.f32 %v13703_v31, %v6228_v28  ;;  %v771_v33 = vand.u32 15, %v15440_v14 }
 0x4f2   : > { %v7902_v18 = vpack.c.bf16 %v7822_v27, %v7787_v25  ;;  %v7399_v16 = vmax.f32 %v7397_v0, %v7398_v30  ;;  %v7411_v4 = vmax.f32 %v7409_v24, %v7410_v20  ;;  %v7418_v11 = vmax.f32 %v7416_v57, %v7417_v6 }
 0x4f3   : > { %v7760_v49 = vrot.slane %v13619_v22, 1  ;;  %v14008_v63 = vmax.f32 %v7404_v42, %v7405_v34  ;;  %v6284_v17 = vmax.f32 %v6229_v46, 0.0  ;;  %vm14011_vm5 = vcmp.eq.s32.totalorder %v771_v33, 15  ;;  %v6230_v46 = vpop.f32.mrf.mxu0 }
 0x4f4   : > { %8620 = vmatmul.msk.bf16.vlgmr.msrb.gmra.mxu2 %vm6029_vm4, %v7902_v18  ;;  %v14848_v60 = vrot.slane %v13856_v13, 1  ;;  %v7412_v25 = vrot.slane %v7411_v4, 1  ;;  %v7419_v28 = vrot.slane %v7418_v11, 1  ;;  %v14017_v27 = vsel %vm5195_vm15, %v7399_v16, %v7656_v56 }
 0x4f5   : > { %v15443_v6 = vrot.slane %v13616_v41, 1  ;;  %v6380_v0 = vrot.slane %v6284_v17, 2  ;;  %v6381_v24 = vrot.slane %v6284_v17, 4  ;;  %v6382_v57 = vrot.slane %v6284_v17, 6 }
 0x4f6   : > { %v6973_v42 = vsel %vm6524_vm6, %v6284_v17, -inf  ;;  %v14024_v30 = vmax.f32 %v7411_v4, %v7412_v25  ;;  %v14026_v34 = vmax.f32 %v7418_v11, %v7419_v28  ;;  %v7784_v56 = vsel %vm1137_vm7, %v7760_v49, %v14848_v60 }
 0x4f7   : > { %v7785_v20 = vsel %vm1137_vm7, %v15443_v6, %v7760_v49  ;;  %v6974_v18 = vrot.slane %v6973_v42, 4  ;;  %v6980_v14 = vsel %vm6524_vm6, %v6380_v0, -inf  ;;  %v6987_v55 = vsel %vm6524_vm6, %v6381_v24, -inf }
 0x4f8   : > { %v6994_v33 = vsel %vm6524_vm6, %v6382_v57, -inf  ;;  %v7824_v16 = vsel %vm14011_vm5, 0.0, %v7784_v56  ;;  %v6981_v17 = vrot.slane %v6980_v14, 4  ;;  %v6988_v11 = vrot.slane %v6987_v55, 4 }
 0x4f9   : > { %v6975_v4 = vmax.f32 %v6973_v42, %v6974_v18  ;;  %v6995_v25 = vrot.slane %v6994_v33, 4  ;;  %v7904_v28 = vpack.c.bf16 %v7824_v16, %v7785_v20  ;;  %v6231_v6 = vadd.f32 %v13703_v31, %v6230_v46 }
 0x4fa   : > { %v6916_v49 = vmax.f32 %v13810_v45, %v6915_v59  ;;  %v14044_v0 = vmax.f32 %v13971_v61, %v6971_v15  ;;  %v6982_v57 = vmax.f32 %v6980_v14, %v6981_v17  ;;  %v6989_v19 = vmax.f32 %v6987_v55, %v6988_v11 }
 0x4fb   : > { %v6976_v24 = vrot.slane %v6975_v4, 2  ;;  %v6996_v56 = vmax.f32 %v6994_v33, %v6995_v25  ;;  %v6285_v42 = vmax.f32 %v6231_v6, 0.0  ;;  %v7593_v20 = vsel %vm5193_vm14, %v13812_v47, %v13821_v35 }
 0x4fc   : > { %v7600_v31 = vsel %vm5193_vm14, %v13947_v52, %v13954_v54  ;;  %v768_v45 = vand.u32 15, %v9191_v2  ;;  %v6983_v18 = vrot.slane %v6982_v57, 2  ;;  %v6990_v46 = vrot.slane %v6989_v19, 2 }
 0x4fd   : > { %v6977_v59 = vmax.f32 %v6975_v4, %v6976_v24  ;;  %v6997_v61 = vrot.slane %v6996_v56, 2  ;;  %v6383_v15 = vrot.slane %v6285_v42, 2  ;;  %v6384_v16 = vrot.slane %v6285_v42, 4 }
 0x4fe   : > { %v6385_v14 = vrot.slane %v6285_v42, 6  ;;  %v7001_v55 = vsel %vm6524_vm6, %v6285_v42, -inf  ;;  %v6984_v17 = vmax.f32 %v6982_v57, %v6983_v18  ;;  %v6991_v11 = vmax.f32 %v6989_v19, %v6990_v46 }
 0x4ff   : > { %v6978_v33 = vrot.slane %v6977_v59, 1  ;;  %v6998_v25 = vmax.f32 %v6996_v56, %v6997_v61  ;;  %v7002_v47 = vrot.slane %v7001_v55, 4  ;;  %v7008_v35 = vsel %vm6524_vm6, %v6383_v15, -inf }
 0x500   : > { %v7015_v52 = vsel %vm6524_vm6, %v6384_v16, -inf  ;;  %v7022_v54 = vsel %vm6524_vm6, %v6385_v14, -inf  ;;  %v6985_v6 = vrot.slane %v6984_v17, 1  ;;  %v6992_v24 = vrot.slane %v6991_v11, 1 }
 0x501   : > { %v6979_v4 = vmax.f32 %v6977_v59, %v6978_v33  ;;  %v6999_v7 = vrot.slane %v6998_v25, 1  ;;  %v7003_v23 = vmax.f32 %v7001_v55, %v7002_v47  ;;  %v7009_v60 = vrot.slane %v7008_v35, 4 }
 0x502   : > { %v7016_v62 = vrot.slane %v7015_v52, 4  ;;  %v7023_v29 = vrot.slane %v7022_v54, 4  ;;  %v6986_v42 = vmax.f32 %v6984_v17, %v6985_v6  ;;  %v6993_v51 = vmax.f32 %v6991_v11, %v6992_v24 }
 0x503   : > { %v7000_v57 = vmax.f32 %v6998_v25, %v6999_v7  ;;  %v7594_v19 = vsel %vm5195_vm15, %v13815_v38, %v7593_v20  ;;  %v7004_v56 = vrot.slane %v7003_v23, 2  ;;  %v7010_v18 = vmax.f32 %v7008_v35, %v7009_v60 }
 0x504   : > { %8621 = vmatmul.msk.bf16.gmra.mxu2 %vm6029_vm4, %v7904_v28  ;;  %v7017_v46 = vmax.f32 %v7015_v52, %v7016_v62  ;;  %v7024_v61 = vmax.f32 %v7022_v54, %v7023_v29  ;;  %v7605_v59 = vsel %vm5189_vm12, %v6986_v42, %v6979_v4  ;;  %v7595_v15 = vsel %vm5197_vm1, %v13823_v21, %v7594_v19 }
 0x505   : > { %v7601_v16 = vsel %vm5195_vm15, %v13975_v37, %v7600_v31  ;;  %vm14065_vm8 = vcmp.eq.s32.totalorder %v768_v45, 0  ;;  %v7606_v38 = vsel %vm5191_vm13, %v6993_v51, %v7605_v59  ;;  %v7005_v7 = vmax.f32 %v7003_v23, %v7004_v56 }
 0x506   : > { %v7011_v28 = vrot.slane %v7010_v18, 2  ;;  %v7018_v20 = vrot.slane %v7017_v46, 2  ;;  %v7607_v62 = vsel %vm5193_vm14, %v7000_v57, %v7606_v38  ;;  %v7025_v29 = vrot.slane %v7024_v61, 2 }
 0x507   : > { %v7596_v60 = vsel %vm5199_vm2, %v13825_v12, %v7595_v15  ;;  %v7602_v21 = vsel %vm5197_vm1, %v13977_v3, %v7601_v16  ;;  %v7006_v55 = vrot.slane %v7005_v7, 1  ;;  %v7658_v23 = vsel %vm5197_vm1, %v14008_v63, %v14017_v27 }
 0x508   : > { %v7012_v37 = vmax.f32 %v7010_v18, %v7011_v28  ;;  %v7019_v31 = vmax.f32 %v7017_v46, %v7018_v20  ;;  %v14076_v45 = vsel %vm5201_vm3, %v6916_v49, %v7596_v60  ;;  %v7026_v33 = vmax.f32 %v7024_v61, %v7025_v29 }
 0x509   : > { %v7603_v51 = vsel %vm5199_vm2, %v13985_v50, %v7602_v21  ;;  %v7678_v17 = vrot.slane %v13561_v43, 7  ;;  %v7007_v12 = vmax.f32 %v7005_v7, %v7006_v55  ;;  %v7659_v50 = vsel %vm5199_vm2, %v14024_v30, %v7658_v23  ;;  %v6233_v43 = vpop.f32.mrf.mxu0 }
 0x50a   : > { %v7013_v11 = vrot.slane %v7012_v37, 1  ;;  %v7020_v25 = vrot.slane %v7019_v31, 1  ;;  %v14086_v3 = vsel %vm5201_vm3, %v14044_v0, %v7603_v51  ;;  %v7027_v47 = vrot.slane %v7026_v33, 1 }
 0x50b   : > { %v9015_v49 = vpack.i.bf16 %v14086_v3, %v14076_v45  ;;  %v15446_v35 = vrot.slane %v13558_v53, 7  ;;  %v7608_v54 = vsel %vm5195_vm15, %v7007_v12, %v7607_v62  ;;  %v14099_v0 = vsel %vm5201_vm3, %v14026_v34, %v7659_v50  ;;  %v14112_v34 = vld [vmem:[%s14660_s4] ss:$0 sm:$0xff] }
 0x50c   : > { %v7014_v27 = vmax.f32 %v7012_v37, %v7013_v11  ;;  %v7021_v52 = vmax.f32 %v7019_v31, %v7020_v25  ;;  %v7028_v4 = vmax.f32 %v7026_v33, %v7027_v47  ;;  %v7692_v6 = vrot.slane %v14099_v0, 7 }
 0x50d   : > { %v7707_v63 = vsel %vm944_vm0, %v15446_v35, %v7678_v17  ;;  %9016 = vrot.lane.b32.xlu2 %v9015_v49, %s9114_s19  ;;  %v15447_v30 = vunpack.i.h.bf16 %v13808_v9  ;;  %v421_v42 = vadd.s32 40, %v9191_v2  ;;  %v7762_v57 = vrot.slane %v13859_v10, 1 }
 0x50e   : > { %v7763_v19 = vrot.slane %v14076_v45, 1  ;;  %v6234_v56 = vadd.f32 %v14112_v34, %v6233_v43  ;;  %v418_v18 = vadd.s32 16, %v9191_v2  ;;  %v15448_v46 = vmov %v15446_v35 }
 0x50f   : > { %v7886_v24 = vsel %vm6029_vm4, %v7707_v63, %v15447_v30  ;;  %v7708_v61 = vsel %vm944_vm0, %v7692_v6, %v15448_v46  ;;  %v773_v59 = vand.u32 15, %v421_v42  ;;  %v7679_v15 = vrot.slane %v13616_v41, 7 }
 0x510   : > { %v7680_v16 = vrot.slane %v13619_v22, 7  ;;  %v7741_v38 = vsel %vm14065_vm8, 0.0, %v7708_v61  ;;  %v7782_v7 = vsel %vm1137_vm7, %v7762_v57, %v7763_v19  ;;  %v15449_v28 = vrot.slane %v13856_v13, 1  ;;  %v15453_v61 = vld [vmem:[#allocation8_spill] sm:$0xff] }
 0x511   : > { %v6286_v62 = vmax.f32 %v6234_v56, 0.0  ;;  %v15450_v60 = vunpack.i.l.bf16 %v13808_v9  ;;  %vm805_vm9 = vcmp.eq.s32.totalorder %v773_v59, 15  ;;  %v770_v41 = vand.u32 15, %v418_v18 }
 0x512   : > { %v7783_v20 = vsel %vm1137_vm7, %v15449_v28, %v7762_v57  ;;  %v7705_v14 = vsel %vm944_vm0, %v7679_v15, %v7680_v16  ;;  %v7826_v37 = vsel %vm805_vm9, 0.0, %v7782_v7  ;;  %v7706_v47 = vsel %vm944_vm0, %v7678_v17, %v7679_v15 }
 0x513   : > { %v7885_v21 = vsel %vm6029_vm4, %v7741_v38, %v15450_v60  ;;  %v6386_v31 = vrot.slane %v6286_v62, 2  ;;  %v6387_v33 = vrot.slane %v6286_v62, 4  ;;  %v7906_v51 = vpack.c.bf16 %v7826_v37, %v7783_v20  ;;  %v6235_v20 = vpop.f32.mrf.mxu0 }
 0x514   : > { %v6238_v29 = vpop.f32.mrf.mxu1  ;;  %v7901_v55 = vpack.c.bf16 %v7886_v24, %v7885_v21  ;;  %v6388_v23 = vrot.slane %v6286_v62, 6  ;;  %v7029_v12 = vsel %vm6524_vm6, %v6286_v62, -inf  ;;  %vm786_vm11 = vcmp.eq.s32.totalorder %v770_v41, 0 }
 0x515   : > { %v7030_v9 = vrot.slane %v7029_v12, 4  ;;  %v7036_v11 = vsel %vm6524_vm6, %v6386_v31, -inf  ;;  %v7043_v25 = vsel %vm6524_vm6, %v6387_v33, -inf  ;;  %8622 = vmatmul.msk.bf16.gmra.mxu2 %vm6029_vm4, %v7906_v51  ;;  %v7743_v63 = vsel %vm786_vm11, 0.0, %v7706_v47 }
 0x516   : > { %8049 = vmatmul.bf16.vlgmr.msrb.gmra.mxu1 %v7901_v55  ;;  %v7037_v49 = vrot.slane %v7036_v11, 4  ;;  %v7044_v50 = vrot.slane %v7043_v25, 4  ;;  %v7050_v35 = vsel %vm6524_vm6, %v6388_v23, -inf  ;;  %v15451_v24 = vunpack.i.l.bf16 %v13980_v1 }
 0x517   : > { %v7031_v43 = vmax.f32 %v7029_v12, %v7030_v9  ;;  %v7051_v30 = vrot.slane %v7050_v35, 4  ;;  %v15452_v57 = vunpack.i.h.bf16 %v13980_v1  ;;  %v775_v59 = vand.u32 15, %v15453_v61 }
 0x518   : > { %v7887_v42 = vsel %vm6029_vm4, %v7743_v63, %v15451_v24  ;;  %v7038_v18 = vmax.f32 %v7036_v11, %v7037_v49  ;;  %v7045_v46 = vmax.f32 %v7043_v25, %v7044_v50  ;;  %v7609_v7 = vsel %vm5197_vm1, %v7014_v27, %v7608_v54 }
 0x519   : > { %v7888_v56 = vsel %vm6029_vm4, %v7705_v14, %v15452_v57  ;;  %v7032_v15 = vrot.slane %v7031_v43, 2  ;;  %v7052_v38 = vmax.f32 %v7050_v35, %v7051_v30  ;;  %v7764_v28 = vrot.slane %v14086_v3, 1 }
 0x51a   : > { %v7903_v17 = vpack.c.bf16 %v7888_v56, %v7887_v42  ;;  %v7039_v62 = vrot.slane %v7038_v18, 2  ;;  %v7046_v60 = vrot.slane %v7045_v46, 2  ;;  %vm14155_vm10 = vcmp.eq.s32.totalorder %v775_v59, 15 }
 0x51b   : > { %v7610_v1 = vsel %vm5199_vm2, %v7021_v52, %v7609_v7  ;;  %v7033_v14 = vmax.f32 %v7031_v43, %v7032_v15  ;;  %v7053_v55 = vrot.slane %v7052_v38, 2  ;;  %v7781_v27 = vsel %vm1137_vm7, %v7763_v19, %v7764_v28 }
 0x51c   : > { %v6240_v41 = vpop.f32.mrf.mxu1  ;;  %v14161_v37 = vsel %vm5201_vm3, %v7028_v4, %v7610_v1  ;;  %v7040_v54 = vmax.f32 %v7038_v18, %v7039_v62  ;;  %v7047_v31 = vmax.f32 %v7045_v46, %v7046_v60  ;;  %v6236_v51 = vadd.f32 %v14112_v34, %v6235_v20 }
 0x51d   : > { %v7765_v33 = vrot.slane %v14161_v37, 1  ;;  %v7034_v23 = vrot.slane %v7033_v14, 1  ;;  %v7054_v12 = vmax.f32 %v7052_v38, %v7053_v55  ;;  %v6239_v9 = vadd.f32 %v14112_v34, %v6238_v29 }
 0x51e   : > { %v14169_v52 = vadd.f32 %v14112_v34, %v6240_v41  ;;  %v7041_v11 = vrot.slane %v7040_v54, 1  ;;  %v7048_v25 = vrot.slane %v7047_v31, 1  ;;  %v6287_v19 = vmax.f32 %v6236_v51, 0.0 }
 0x51f   : > { %v7780_v4 = vsel %vm1137_vm7, %v7764_v28, %v7765_v33  ;;  %v7035_v47 = vmax.f32 %v7033_v14, %v7034_v23  ;;  %v7055_v49 = vrot.slane %v7054_v12, 1  ;;  %v6288_v35 = vmax.f32 %v6239_v9, 0.0 }
 0x520   : > { %v7828_v50 = vsel %vm14155_vm10, 0.0, %v7780_v4  ;;  %v7042_v63 = vmax.f32 %v7040_v54, %v7041_v11  ;;  %v7049_v43 = vmax.f32 %v7047_v31, %v7048_v25  ;;  %v6389_v30 = vrot.slane %v6287_v19, 2 }
 0x521   : > { %v7908_v29 = vpack.c.bf16 %v7828_v50, %v7781_v27  ;;  %v7056_v24 = vmax.f32 %v7054_v12, %v7055_v49  ;;  %v6390_v42 = vrot.slane %v6287_v19, 4  ;;  %v6391_v57 = vrot.slane %v6287_v19, 6 }
 0x522   : > { %v7057_v56 = vsel %vm6524_vm6, %v6287_v19, -inf  ;;  %v7612_v18 = vsel %vm5189_vm12, %v7042_v63, %v7035_v47  ;;  %v7064_v61 = vsel %vm6524_vm6, %v6389_v30, -inf  ;;  %v6392_v59 = vrot.slane %v6288_v35, 2 }
 0x523   : > { %v7058_v46 = vrot.slane %v7057_v56, 4  ;;  %v7613_v15 = vsel %vm5191_vm13, %v7049_v43, %v7612_v18  ;;  %v7065_v38 = vrot.slane %v7064_v61, 4  ;;  %v7071_v7 = vsel %vm6524_vm6, %v6390_v42, -inf }
 0x524   : > { %v7078_v28 = vsel %vm6524_vm6, %v6391_v57, -inf  ;;  %v7072_v62 = vrot.slane %v7071_v7, 4  ;;  %v6393_v21 = vrot.slane %v6288_v35, 4  ;;  %v6394_v41 = vrot.slane %v6288_v35, 6 }
 0x525   : > { %v7059_v20 = vmax.f32 %v7057_v56, %v7058_v46  ;;  %v7079_v60 = vrot.slane %v7078_v28, 4  ;;  %v7066_v1 = vmax.f32 %v7064_v61, %v7065_v38  ;;  %v7085_v14 = vsel %vm6524_vm6, %v6288_v35, -inf  ;;  %8623 = vmatmul.msk.bf16.gmra.mxu2 %vm6029_vm4, %v7908_v29 }
 0x526   : > { %8054 = vmatmul.bf16.gmra.mxu1 %v7903_v17  ;;  %v7092_v55 = vsel %vm6524_vm6, %v6392_v59, -inf  ;;  %v7073_v54 = vmax.f32 %v7071_v7, %v7072_v62  ;;  %v7086_v51 = vrot.slane %v7085_v14, 4  ;;  %v7099_v9 = vsel %vm6524_vm6, %v6393_v21, -inf }
 0x527   : > { %v7060_v27 = vrot.slane %v7059_v20, 2  ;;  %v7080_v31 = vmax.f32 %v7078_v28, %v7079_v60  ;;  %v7067_v23 = vrot.slane %v7066_v1, 2  ;;  %v7093_v12 = vrot.slane %v7092_v55, 4 }
 0x528   : > { %v7106_v11 = vsel %vm6524_vm6, %v6394_v41, -inf  ;;  %v7074_v17 = vrot.slane %v7073_v54, 2  ;;  %v7087_v19 = vmax.f32 %v7085_v14, %v7086_v51  ;;  %v7100_v50 = vrot.slane %v7099_v9, 4 }
 0x529   : > { %v7061_v25 = vmax.f32 %v7059_v20, %v7060_v27  ;;  %v7081_v4 = vrot.slane %v7080_v31, 2  ;;  %v7068_v47 = vmax.f32 %v7066_v1, %v7067_v23  ;;  %v7094_v49 = vmax.f32 %v7092_v55, %v7093_v12 }
 0x52a   : > { %v7107_v35 = vrot.slane %v7106_v11, 4  ;;  %v7075_v43 = vmax.f32 %v7073_v54, %v7074_v17  ;;  %v7088_v30 = vrot.slane %v7087_v19, 2  ;;  %v7101_v56 = vmax.f32 %v7099_v9, %v7100_v50 }
 0x52b   : > { %v7062_v63 = vrot.slane %v7061_v25, 1  ;;  %v7082_v29 = vmax.f32 %v7080_v31, %v7081_v4  ;;  %v7069_v42 = vrot.slane %v7068_v47, 1  ;;  %v7095_v57 = vrot.slane %v7094_v49, 2 }
 0x52c   : > { %v7108_v18 = vmax.f32 %v7106_v11, %v7107_v35  ;;  %v7076_v61 = vrot.slane %v7075_v43, 1  ;;  %v7089_v38 = vmax.f32 %v7087_v19, %v7088_v30  ;;  %v7102_v20 = vrot.slane %v7101_v56, 2 }
 0x52d   : > { %v7063_v46 = vmax.f32 %v7061_v25, %v7062_v63  ;;  %v7083_v59 = vrot.slane %v7082_v29, 1  ;;  %v7070_v7 = vmax.f32 %v7068_v47, %v7069_v42  ;;  %v7096_v28 = vmax.f32 %v7094_v49, %v7095_v57 }
 0x52e   : > { %v7109_v62 = vrot.slane %v7108_v18, 2  ;;  %v7077_v60 = vmax.f32 %v7075_v43, %v7076_v61  ;;  %v7090_v21 = vrot.slane %v7089_v38, 1  ;;  %v6289_v1 = vmax.f32 %v14169_v52, 0.0 }
 0x52f   : > { %v7084_v41 = vmax.f32 %v7082_v29, %v7083_v59  ;;  %v7097_v14 = vrot.slane %v7096_v28, 1  ;;  %v7103_v55 = vmax.f32 %v7101_v56, %v7102_v20  ;;  %v7614_v54 = vsel %vm5193_vm14, %v7056_v24, %v7613_v15  ;;  %v9012_v49 = vpop.permute.xlu1 %9011 }
 0x530   : > { %v7110_v27 = vmax.f32 %v7108_v18, %v7109_v62  ;;  %v7091_v31 = vmax.f32 %v7089_v38, %v7090_v21  ;;  %v6395_v51 = vrot.slane %v6289_v1, 2  ;;  %v6396_v23 = vrot.slane %v6289_v1, 4 }
 0x531   : > { %v6397_v12 = vrot.slane %v6289_v1, 6  ;;  %v7098_v9 = vmax.f32 %v7096_v28, %v7097_v14  ;;  %v7104_v11 = vrot.slane %v7103_v55, 1  ;;  %v7113_v17 = vsel %vm6524_vm6, %v6289_v1, -inf }
 0x532   : > { %v7111_v25 = vrot.slane %v7110_v27, 1  ;;  %v7114_v4 = vrot.slane %v7113_v17, 4  ;;  %v7120_v19 = vsel %vm6524_vm6, %v6395_v51, -inf  ;;  %v7127_v52 = vsel %vm6524_vm6, %v6396_v23, -inf }
 0x533   : > { %v7134_v47 = vsel %vm6524_vm6, %v6397_v12, -inf  ;;  %v7105_v50 = vmax.f32 %v7103_v55, %v7104_v11  ;;  %v7619_v24 = vsel %vm5189_vm12, %v7098_v9, %v7091_v31  ;;  %v7121_v15 = vrot.slane %v7120_v19, 4 }
 0x534   : > { %v7112_v35 = vmax.f32 %v7110_v27, %v7111_v25  ;;  %v7115_v63 = vmax.f32 %v7113_v17, %v7114_v4  ;;  %v7128_v43 = vrot.slane %v7127_v52, 4  ;;  %v7135_v29 = vrot.slane %v7134_v47, 4 }
 0x535   : > { %v7615_v30 = vsel %vm5195_vm15, %v7063_v46, %v7614_v54  ;;  %v7620_v42 = vsel %vm5191_vm13, %v7105_v50, %v7619_v24  ;;  %v7122_v57 = vmax.f32 %v7120_v19, %v7121_v15  ;;  %v9014_v18 = vunpack.i.h.bf16 %v9012_v49 }
 0x536   : > { %v7616_v56 = vsel %vm5197_vm1, %v7070_v7, %v7615_v30  ;;  %v7621_v61 = vsel %vm5193_vm14, %v7112_v35, %v7620_v42  ;;  %v7116_v59 = vrot.slane %v7115_v63, 2  ;;  %v7129_v38 = vmax.f32 %v7127_v52, %v7128_v43 }
 0x537   : > { %v7136_v28 = vmax.f32 %v7134_v47, %v7135_v29  ;;  %v7123_v20 = vrot.slane %v7122_v57, 2  ;;  %v7617_v62 = vsel %vm5199_vm2, %v7077_v60, %v7616_v56  ;;  %v9013_v21 = vunpack.i.l.bf16 %v9012_v49  ;;  %v15457_v60 = vld [vmem:[#allocation65_spill] sm:$0xff] }
 0x538   : > { %v15456_v1 = vrot.slane %v13915_v48, 1  ;;  %v7117_v46 = vmax.f32 %v7115_v63, %v7116_v59  ;;  %v7130_v55 = vrot.slane %v7129_v38, 2  ;;  %v14204_v54 = vsel %vm5201_vm3, %v7084_v41, %v7617_v62 }
 0x539   : > { %v7137_v27 = vrot.slane %v7136_v28, 2  ;;  %v7124_v7 = vmax.f32 %v7122_v57, %v7123_v20  ;;  %v9020_v31 = vpack.i.bf16 %v14204_v54, %v14161_v37  ;;  %v7649_v51 = vsel %vm5193_vm14, %v13903_v32, %v13913_v58 }
 0x53a   : > { %v7364_v14 = vmax.f32 %v13915_v48, %v15456_v1  ;;  %v772_v23 = vand.u32 15, %v15457_v60  ;;  %v7118_v12 = vrot.slane %v7117_v46, 1  ;;  %v7131_v9 = vmax.f32 %v7129_v38, %v7130_v55 }
 0x53b   : > { %v7138_v11 = vmax.f32 %v7136_v28, %v7137_v27  ;;  %v7650_v48 = vsel %vm5195_vm15, %v13920_v36, %v7649_v51  ;;  %v7125_v25 = vrot.slane %v7124_v7, 1  ;;  %9021 = vrot.lane.b32.xlu0 %v9020_v31, %s9114_s19  ;;  %v7681_v32 = vrot.slane %v13856_v13, 7 }
 0x53c   : > { %v7651_v41 = vsel %vm5197_vm1, %v13924_v44, %v7650_v48  ;;  %vm14217_vm5 = vcmp.eq.s32.totalorder %v772_v23, 0  ;;  %v7119_v58 = vmax.f32 %v7117_v46, %v7118_v12  ;;  %v7132_v4 = vrot.slane %v7131_v9, 1  ;;  %v15463_v46 = vld [vmem:[#allocation35_spill] sm:$0xff] }
 0x53d   : > { %v7139_v19 = vrot.slane %v7138_v11, 1  ;;  %v7652_v52 = vsel %vm5199_vm2, %v13926_v5, %v7651_v41  ;;  %v7126_v47 = vmax.f32 %v7124_v7, %v7125_v25  ;;  %v7682_v49 = vrot.slane %v13859_v10, 7  ;;  %v15464_v7 = vld [vmem:[#allocation26_spill] sm:$0xff] }
 0x53e   : > { %v14225_v36 = vsel %vm5201_vm3, %v7364_v14, %v7652_v52  ;;  %v7704_v44 = vsel %vm944_vm0, %v7680_v16, %v7681_v32  ;;  %v7133_v50 = vmax.f32 %v7131_v9, %v7132_v4  ;;  %v7622_v13 = vsel %vm5195_vm15, %v7119_v58, %v7621_v61  ;;  %v6243_v42 = vpop.f32.mrf.mxu1  ;;  %v15462_v14 = vld [vmem:[#allocation58_spill] sm:$0xff] }
 0x53f   : > { %v7140_v35 = vmax.f32 %v7138_v11, %v7139_v19  ;;  %v9035_v24 = vpack.i.bf16 %v14099_v0, %v14225_v36  ;;  %v7703_v5 = vsel %vm944_vm0, %v7681_v32, %v7682_v49  ;;  %v7745_v15 = vsel %vm14217_vm5, 0.0, %v7704_v44 }
 0x540   : > { %v425_v22 = vadd.s32 72, %v9191_v2  ;;  %v7623_v63 = vsel %vm5197_vm1, %v7126_v47, %v7622_v13  ;;  %v7889_v16 = vsel %vm6029_vm4, %v7745_v15, %v9013_v21  ;;  %v7890_v43 = vsel %vm6029_vm4, %v7703_v5, %v9014_v18 }
 0x541   : > { %v7624_v29 = vsel %vm5199_vm2, %v7133_v50, %v7623_v63  ;;  %v7766_v30 = vrot.slane %v14204_v54, 1  ;;  %v7905_v57 = vpack.c.bf16 %v7890_v43, %v7889_v16  ;;  %v6244_v59 = vadd.f32 %v14112_v34, %v6243_v42 }
 0x542   : > { %v777_v56 = vand.u32 15, %v425_v22  ;;  %v14248_v61 = vsel %vm5201_vm3, %v7140_v35, %v7624_v29  ;;  %v7279_v38 = vrot.slane %v13717_v40, 1  ;;  %v15460_v28 = vrot.slane %v13737_v8, 2 }
 0x543   : > { %v7305_v18 = vrot.slane %v13748_v26, 2  ;;  %v7767_v62 = vrot.slane %v14248_v61, 1  ;;  %v15461_v21 = vrot.slane %v13714_v39, 1  ;;  %v7640_v55 = vsel %vm5189_vm12, %v15463_v46, %v15462_v14  ;;  %9036 = vrot.lane.b32.xlu0 %v9035_v24, %s9114_s19  ;;  %8059 = vmatmul.bf16.gmra.mxu1 %v7905_v57 }
 0x544   : > { %v7292_v20 = vmax.f32 %v13737_v8, %v15460_v28  ;;  %vm809_vm8 = vcmp.eq.s32.totalorder %v777_v56, 15  ;;  %v6290_v27 = vmax.f32 %v6244_v59, 0.0  ;;  %v7286_v31 = vrot.slane %v15464_v7, 1  ;;  %v15465_v8 = vld [vmem:[#allocation52_spill] sm:$0xff] }
 0x545   : > { %v7273_v1 = vmax.f32 %v13714_v39, %v15461_v21  ;;  %v15466_v51 = vrot.slane %v15465_v8, 2  ;;  %v7778_v39 = vsel %vm1137_vm7, %v7766_v30, %v7767_v62  ;;  %v7779_v23 = vsel %vm1137_vm7, %v7765_v33, %v7766_v30 }
 0x546   : > { %v7830_v12 = vsel %vm809_vm8, 0.0, %v7778_v39  ;;  %v6398_v9 = vrot.slane %v6290_v27, 2  ;;  %v6399_v11 = vrot.slane %v6290_v27, 4  ;;  %v6400_v48 = vrot.slane %v6290_v27, 6  ;;  %v6245_v5 = vpop.f32.mrf.mxu1 }
 0x547   : > { %v7299_v60 = vmax.f32 %v15465_v8, %v15466_v51  ;;  %v7293_v25 = vrot.slane %v7292_v20, 1  ;;  %v14277_v41 = vmax.f32 %v13748_v26, %v7305_v18  ;;  %v7910_v17 = vpack.c.bf16 %v7830_v12, %v7779_v23 }
 0x548   : > { %v7141_v32 = vsel %vm6524_vm6, %v6290_v27, -inf  ;;  %v7148_v4 = vsel %vm6524_vm6, %v6398_v9, -inf  ;;  %v7155_v19 = vsel %vm6524_vm6, %v6399_v11, -inf  ;;  %v7162_v52 = vsel %vm6524_vm6, %v6400_v48, -inf }
 0x549   : > { %v7142_v58 = vrot.slane %v7141_v32, 4  ;;  %v14284_v33 = vmax.f32 %v13717_v40, %v7279_v38  ;;  %8624 = vmatmul.msk.bf16.gmra.mxu2 %vm6029_vm4, %v7910_v17  ;;  %v7149_v47 = vrot.slane %v7148_v4, 4  ;;  %v7156_v44 = vrot.slane %v7155_v19, 4 }
 0x54a   : > { %v7163_v50 = vrot.slane %v7162_v52, 4  ;;  %v14288_v26 = vsel %vm5191_vm13, %v7273_v1, %v7640_v55  ;;  %v14291_v35 = vmax.f32 %v15464_v7, %v7286_v31  ;;  %v7300_v13 = vrot.slane %v7299_v60, 1  ;;  %v6248_v55 = vpop.f32.mrf.mxu2 }
 0x54b   : > { %v7143_v24 = vmax.f32 %v7141_v32, %v7142_v58  ;;  %v7150_v15 = vmax.f32 %v7148_v4, %v7149_v47  ;;  %v7157_v22 = vmax.f32 %v7155_v19, %v7156_v44  ;;  %v6246_v40 = vadd.f32 %v14112_v34, %v6245_v5 }
 0x54c   : > { %v7164_v63 = vmax.f32 %v7162_v52, %v7163_v50  ;;  %v14294_v16 = vmax.f32 %v7292_v20, %v7293_v25  ;;  %v7307_v43 = vrot.slane %v14277_v41, 1  ;;  %v422_v30 = vadd.s32 48, %v9191_v2 }
 0x54d   : > { %v7144_v29 = vrot.slane %v7143_v24, 2  ;;  %v7151_v42 = vrot.slane %v7150_v15, 2  ;;  %v7158_v57 = vrot.slane %v7157_v22, 2  ;;  %v6291_v59 = vmax.f32 %v6246_v40, 0.0 }
 0x54e   : > { %v7165_v56 = vrot.slane %v7164_v63, 2  ;;  %v14298_v38 = vmax.f32 %v7299_v60, %v7300_v13  ;;  %v7683_v18 = vrot.slane %v14076_v45, 7  ;;  %v7684_v21 = vrot.slane %v14086_v3, 7 }
 0x54f   : > { %v7145_v28 = vmax.f32 %v7143_v24, %v7144_v29  ;;  %v7152_v1 = vmax.f32 %v7150_v15, %v7151_v42  ;;  %v7159_v14 = vmax.f32 %v7157_v22, %v7158_v57  ;;  %v6401_v46 = vrot.slane %v6291_v59, 2 }
 0x550   : > { %v7166_v20 = vmax.f32 %v7164_v63, %v7165_v56  ;;  %v6402_v27 = vrot.slane %v6291_v59, 4  ;;  %v6403_v7 = vrot.slane %v6291_v59, 6  ;;  %v7169_v31 = vsel %vm6524_vm6, %v6291_v59, -inf }
 0x551   : > { %v774_v8 = vand.u32 15, %v422_v30  ;;  %v7146_v51 = vrot.slane %v7145_v28, 1  ;;  %v7153_v39 = vrot.slane %v7152_v1, 1  ;;  %v7160_v23 = vrot.slane %v7159_v14, 1 }
 0x552   : > { %v7170_v60 = vrot.slane %v7169_v31, 4  ;;  %v7167_v12 = vrot.slane %v7166_v20, 1  ;;  %v7176_v9 = vsel %vm6524_vm6, %v6401_v46, -inf  ;;  %v7183_v45 = vsel %vm6524_vm6, %v6402_v27, -inf  ;;  %v6250_v29 = vpop.f32.mrf.mxu2 }
 0x553   : > { %v7190_v11 = vsel %vm6524_vm6, %v6403_v7, -inf  ;;  %v7154_v48 = vmax.f32 %v7152_v1, %v7153_v39  ;;  %v14310_v17 = vsel %vm944_vm0, %v7683_v18, %v7684_v21  ;;  %v14316_v32 = vsel %vm944_vm0, %v7682_v49, %v7683_v18 }
 0x554   : > { %v7171_v25 = vmax.f32 %v7169_v31, %v7170_v60  ;;  %v7177_v58 = vrot.slane %v7176_v9, 4  ;;  %v7184_v4 = vrot.slane %v7183_v45, 4  ;;  %v7191_v19 = vrot.slane %v7190_v11, 4 }
 0x555   : > { %vm14318_vm9 = vcmp.eq.s32.totalorder %v774_v8, 0  ;;  %v7147_v47 = vmax.f32 %v7145_v28, %v7146_v51  ;;  %v7161_v44 = vmax.f32 %v7159_v14, %v7160_v23  ;;  %v6249_v13 = vadd.f32 %v14112_v34, %v6248_v55 }
 0x556   : > { %v7172_v50 = vrot.slane %v7171_v25, 2  ;;  %v14323_v24 = vmax.f32 %v7166_v20, %v7167_v12  ;;  %v7178_v5 = vmax.f32 %v7176_v9, %v7177_v58  ;;  %v7185_v10 = vmax.f32 %v7183_v45, %v7184_v4 }
 0x557   : > { %v7192_v15 = vmax.f32 %v7190_v11, %v7191_v19  ;;  %v7626_v49 = vsel %vm5189_vm12, %v7154_v48, %v7147_v47  ;;  %v7747_v63 = vsel %vm14318_vm9, 0.0, %v14316_v32  ;;  %v6292_v40 = vmax.f32 %v6249_v13, 0.0 }
 0x558   : > { %v7173_v22 = vmax.f32 %v7171_v25, %v7172_v50  ;;  %v7179_v30 = vrot.slane %v7178_v5, 2  ;;  %v7186_v42 = vrot.slane %v7185_v10, 2  ;;  %v6251_v56 = vadd.f32 %v14112_v34, %v6250_v29 }
 0x559   : > { %v7193_v57 = vrot.slane %v7192_v15, 2  ;;  %v6404_v28 = vrot.slane %v6292_v40, 2  ;;  %v6405_v18 = vrot.slane %v6292_v40, 4  ;;  %v6406_v1 = vrot.slane %v6292_v40, 6 }
 0x55a   : > { %v7174_v59 = vrot.slane %v7173_v22, 1  ;;  %v7180_v14 = vmax.f32 %v7178_v5, %v7179_v30  ;;  %v7187_v20 = vmax.f32 %v7185_v10, %v7186_v42  ;;  %v7197_v55 = vsel %vm6524_vm6, %v6292_v40, -inf }
 0x55b   : > { %v7194_v46 = vmax.f32 %v7192_v15, %v7193_v57  ;;  %v7627_v27 = vsel %vm5191_vm13, %v7161_v44, %v7626_v49  ;;  %v7198_v7 = vrot.slane %v7197_v55, 4  ;;  %v7204_v31 = vsel %vm6524_vm6, %v6404_v28, -inf }
 0x55c   : > { %v7211_v8 = vsel %vm6524_vm6, %v6405_v18, -inf  ;;  %v14334_v51 = vmax.f32 %v7173_v22, %v7174_v59  ;;  %v7181_v39 = vrot.slane %v7180_v14, 1  ;;  %v7188_v34 = vrot.slane %v7187_v20, 1 }
 0x55d   : > { %v7205_v23 = vrot.slane %v7204_v31, 4  ;;  %v7199_v60 = vmax.f32 %v7197_v55, %v7198_v7  ;;  %v7212_v12 = vrot.slane %v7211_v8, 4  ;;  %v7218_v9 = vsel %vm6524_vm6, %v6406_v1, -inf }
 0x55e   : > { %v6293_v45 = vmax.f32 %v6251_v56, 0.0  ;;  %v14337_v11 = vmax.f32 %v7180_v14, %v7181_v39  ;;  %v7195_v48 = vrot.slane %v7194_v46, 1  ;;  %v7219_v58 = vrot.slane %v7218_v9, 4 }
 0x55f   : > { %v7206_v25 = vmax.f32 %v7204_v31, %v7205_v23  ;;  %v7200_v4 = vrot.slane %v7199_v60, 2  ;;  %v7213_v19 = vmax.f32 %v7211_v8, %v7212_v12  ;;  %v7189_v31 = vmax.f32 %v7187_v20, %v7188_v34 }
 0x560   : > { %v6407_v47 = vrot.slane %v6293_v45, 2  ;;  %v6408_v44 = vrot.slane %v6293_v45, 4  ;;  %v7220_v13 = vmax.f32 %v7218_v9, %v7219_v58  ;;  %v6409_v5 = vrot.slane %v6293_v45, 6 }
 0x561   : > { %v7207_v50 = vrot.slane %v7206_v25, 2  ;;  %v7225_v10 = vsel %vm6524_vm6, %v6293_v45, -inf  ;;  %v7201_v15 = vmax.f32 %v7199_v60, %v7200_v4  ;;  %v7214_v49 = vrot.slane %v7213_v19, 2 }
 0x562   : > { %v7226_v22 = vrot.slane %v7225_v10, 4  ;;  %v7232_v40 = vsel %vm6524_vm6, %v6407_v47, -inf  ;;  %v7221_v30 = vrot.slane %v7220_v13, 2  ;;  %v7239_v57 = vsel %vm6524_vm6, %v6408_v44, -inf }
 0x563   : > { %v7208_v29 = vmax.f32 %v7206_v25, %v7207_v50  ;;  %v7233_v42 = vrot.slane %v7232_v40, 4  ;;  %v7202_v56 = vrot.slane %v7201_v15, 1  ;;  %v7215_v59 = vmax.f32 %v7213_v19, %v7214_v49 }
 0x564   : > { %v7227_v28 = vmax.f32 %v7225_v10, %v7226_v22  ;;  %v7240_v18 = vrot.slane %v7239_v57, 4  ;;  %v7222_v14 = vmax.f32 %v7220_v13, %v7221_v30  ;;  %v7246_v7 = vsel %vm6524_vm6, %v6409_v5, -inf }
 0x565   : > { %v7209_v1 = vrot.slane %v7208_v29, 1  ;;  %v7234_v55 = vmax.f32 %v7232_v40, %v7233_v42  ;;  %v7216_v8 = vrot.slane %v7215_v59, 1  ;;  %v7203_v60 = vmax.f32 %v7201_v15, %v7202_v56 }
 0x566   : > { %v7228_v39 = vrot.slane %v7227_v28, 2  ;;  %v7241_v23 = vmax.f32 %v7239_v57, %v7240_v18  ;;  %v7247_v45 = vrot.slane %v7246_v7, 4  ;;  %v7223_v58 = vrot.slane %v7222_v14, 1 }
 0x567   : > { %v7210_v12 = vmax.f32 %v7208_v29, %v7209_v1  ;;  %v7235_v9 = vrot.slane %v7234_v55, 2  ;;  %v7217_v25 = vmax.f32 %v7215_v59, %v7216_v8  ;;  %v7196_v13 = vmax.f32 %v7194_v46, %v7195_v48  ;;  %v9017_v10 = vpop.permute.xlu2 %9016 }
 0x568   : > { %v7229_v4 = vmax.f32 %v7227_v28, %v7228_v39  ;;  %v7242_v47 = vrot.slane %v7241_v23, 2  ;;  %v7248_v50 = vmax.f32 %v7246_v7, %v7247_v45  ;;  %v7628_v15 = vsel %vm5193_vm14, %v14323_v24, %v7627_v27  ;;  %v15469_v39 = vld [vmem:[#allocation7_spill] sm:$0xff] }
 0x569   : > { %v7633_v19 = vsel %vm5189_vm12, %v7210_v12, %v7203_v60  ;;  %v7236_v44 = vmax.f32 %v7234_v55, %v7235_v9  ;;  %v9019_v49 = vunpack.i.h.bf16 %v9017_v10  ;;  %v9018_v22 = vunpack.i.l.bf16 %v9017_v10  ;;  %v14410_v10 = vld [vmem:[%s14662_s6] ss:$0 sm:$0xff] }
 0x56a   : > { %v7634_v5 = vsel %vm5191_vm13, %v7217_v25, %v7633_v19  ;;  %v7230_v20 = vrot.slane %v7229_v4, 1  ;;  %v7243_v34 = vmax.f32 %v7241_v23, %v7242_v47  ;;  %v7249_v29 = vrot.slane %v7248_v50, 2 }
 0x56b   : > { %v7237_v40 = vrot.slane %v7236_v44, 1  ;;  %v7224_v30 = vmax.f32 %v7222_v14, %v7223_v58  ;;  %v7629_v56 = vsel %vm5195_vm15, %v14334_v51, %v7628_v15  ;;  %v7891_v46 = vsel %vm6029_vm4, %v7747_v63, %v9018_v22 }
 0x56c   : > { %v7231_v42 = vmax.f32 %v7229_v4, %v7230_v20  ;;  %v7244_v57 = vrot.slane %v7243_v34, 1  ;;  %v7892_v48 = vsel %vm6029_vm4, %v14310_v17, %v9019_v49  ;;  %v7250_v27 = vmax.f32 %v7248_v50, %v7249_v29 }
 0x56d   : > { %v7238_v24 = vmax.f32 %v7236_v44, %v7237_v40  ;;  %v7907_v59 = vpack.c.bf16 %v7892_v48, %v7891_v46  ;;  %v7630_v18 = vsel %vm5197_vm1, %v14337_v11, %v7629_v56  ;;  %v7635_v1 = vsel %vm5193_vm14, %v7224_v30, %v7634_v5 }
 0x56e   : > { %v7245_v28 = vmax.f32 %v7243_v34, %v7244_v57  ;;  %v7251_v14 = vrot.slane %v7250_v27, 1  ;;  %v7631_v51 = vsel %vm5199_vm2, %v7189_v31, %v7630_v18  ;;  %v7636_v52 = vsel %vm5195_vm15, %v7231_v42, %v7635_v1  ;;  %v15470_v34 = vld [vmem:[#allocation16_spill] sm:$0xff]  ;;  %v15472_v18 = vld [vmem:[#allocation2_spill] sm:$0xff] }
 0x56f   : > { %v7642_v32 = vsel %vm5193_vm14, %v14284_v33, %v14288_v26  ;;  %8064 = vmatmul.bf16.gmra.mxu1 %v7907_v59  ;;  %v14365_v17 = vsel %vm5201_vm3, %v7196_v13, %v7631_v51  ;;  %v7308_v63 = vmax.f32 %v14277_v41, %v7307_v43  ;;  %v7637_v11 = vsel %vm5197_vm1, %v7238_v24, %v7636_v52 }
 0x570   : > { %v7643_v55 = vsel %vm5195_vm15, %v14291_v35, %v7642_v32  ;;  %v9025_v7 = vpack.i.bf16 %v14365_v17, %v14248_v61  ;;  %v7252_v31 = vmax.f32 %v7250_v27, %v7251_v14  ;;  %v7638_v8 = vsel %vm5199_vm2, %v7245_v28, %v7637_v11 }
 0x571   : > { %v7644_v33 = vsel %vm5197_vm1, %v14294_v16, %v7643_v55  ;;  %v779_v23 = vand.u32 15, %v15469_v39  ;;  %v7768_v16 = vrot.slane %v14365_v17, 1  ;;  %v429_v25 = vadd.s32 104, %v9191_v2 }
 0x572   : > { %v7645_v26 = vsel %vm5199_vm2, %v14298_v38, %v7644_v33  ;;  %9026 = vrot.lane.b32.xlu1 %v9025_v7, %s9114_s19  ;;  %v14382_v41 = vsel %vm5201_vm3, %v7252_v31, %v7638_v8  ;;  %v7771_v4 = vrot.slane %v14225_v36, 1  ;;  %v783_v15 = vand.u32 15, %v15470_v34 }
 0x573   : > { %v14385_v43 = vsel %vm5201_vm3, %v7308_v63, %v7645_v26  ;;  %v7769_v60 = vrot.slane %v14382_v41, 1  ;;  %vm811_vm12 = vcmp.eq.s32.totalorder %v779_v23, 15  ;;  %v7777_v12 = vsel %vm1137_vm7, %v7767_v62, %v7768_v16 }
 0x574   : > { %v9030_v35 = vpack.i.bf16 %v14385_v43, %v14382_v41  ;;  %v7770_v58 = vrot.slane %v14385_v43, 1  ;;  %v781_v47 = vand.u32 15, %v429_v25  ;;  %v7772_v49 = vrot.slane %v14099_v0, 1 }
 0x575   : > { %v7776_v38 = vsel %vm1137_vm7, %v7768_v16, %v7769_v60  ;;  %vm815_vm14 = vcmp.eq.s32.totalorder %v783_v15, 15  ;;  %v15471_v40 = vrot.slane %v13558_v53, 1  ;;  %v776_v1 = vand.u32 15, %v15472_v18  ;;  %v15473_v15 = vld [vmem:[#allocation34_spill] sm:$0xff] }
 0x576   : > { %9031 = vrot.lane.b32.xlu2 %v9030_v35, %s9114_s19  ;;  %v7832_v9 = vsel %vm811_vm12, 0.0, %v7776_v38  ;;  %v7774_v19 = vsel %vm1137_vm7, %v7770_v58, %v7771_v4  ;;  %v7775_v44 = vsel %vm1137_vm7, %v7769_v60, %v7770_v58  ;;  %vm813_vm13 = vcmp.eq.s32.totalorder %v781_v47, 15 }
 0x577   : > { %v7912_v45 = vpack.c.bf16 %v7832_v9, %v7777_v12  ;;  %v7834_v50 = vsel %vm813_vm13, 0.0, %v7774_v19  ;;  %v8099_v13 = vpop.f32.mrf.mxu2  ;;  %v7788_v29 = vsel %vm1137_vm7, %v7772_v49, %v15471_v40  ;;  %v7773_v57 = vsel %vm1137_vm7, %v7771_v4, %v7772_v49 }
 0x578   : > { %v7914_v62 = vpack.c.bf16 %v7834_v50, %v7775_v44  ;;  %v7836_v56 = vsel %vm815_vm14, 0.0, %v7788_v29  ;;  %v7685_v14 = vrot.slane %v14161_v37, 7  ;;  %v7686_v32 = vrot.slane %v14204_v54, 7 }
 0x579   : > { %8625 = vmatmul.msk.bf16.gmra.mxu2 %vm6029_vm4, %v7912_v45  ;;  %v7916_v24 = vpack.c.bf16 %v7836_v56, %v7773_v57  ;;  %vm792_vm7 = vcmp.eq.s32.totalorder %v776_v1, 0  ;;  %v426_v9 = vadd.s32 80, %v9191_v2  ;;  %v7687_v25 = vrot.slane %v14248_v61, 7 }
 0x57a   : > { %v7700_v11 = vsel %vm944_vm0, %v7684_v21, %v7685_v14  ;;  %v7699_v37 = vsel %vm944_vm0, %v7685_v14, %v7686_v32  ;;  %v7688_v58 = vrot.slane %v14365_v17, 7  ;;  %v780_v49 = vand.u32 15, %v15473_v15 }
 0x57b   : > { %v7749_v33 = vsel %vm792_vm7, 0.0, %v7700_v11  ;;  %v778_v45 = vand.u32 15, %v426_v9  ;;  %v7698_v4 = vsel %vm944_vm0, %v7686_v32, %v7687_v25  ;;  %v7689_v40 = vrot.slane %v14382_v41, 7 }
 0x57c   : > { %v7697_v50 = vsel %vm944_vm0, %v7687_v25, %v7688_v58  ;;  %vm796_vm1 = vcmp.eq.s32.totalorder %v780_v49, 0 }
 0x57d   : > { %vm794_vm15 = vcmp.eq.s32.totalorder %v778_v45, 0  ;;  %v7696_v56 = vsel %vm944_vm0, %v7688_v58, %v7689_v40 }
 0x57f   : > { %v8101_v30 = vpop.f32.mrf.mxu2 }
 0x587   : > { %v8104_v27 = vpop.f32.mrf.mxu2 }
 0x589   : > { %8626 = vmatmul.msk.bf16.gmra.mxu2 %vm6029_vm4, %v7914_v62  ;;  %v7751_v62 = vsel %vm794_vm15, 0.0, %v7698_v4 }
 0x58f   : > { %v8106_v63 = vpop.f32.mrf.mxu2 }
 0x593   : > { %v8050_v5 = vpop.f32.mrf.mxu1 }
 0x594   : > { %v8051_v20 = vadd.f32 %v14410_v10, %v8050_v5 }
 0x596   : > { %v14416_v22 = vadd.f32 %v8099_v13, %v8051_v20 }
 0x598   : > { %v8109_v39 = vpop.f32.mrf.mxu2 }
 0x599   : > { %8627 = vmatmul.msk.bf16.gmra.mxu2 %vm6029_vm4, %v7916_v24 }
 0x59b   : > { %v8052_v42 = vpop.f32.mrf.mxu1 }
 0x59c   : > { %v8053_v46 = vadd.f32 %v14410_v10, %v8052_v42 }
 0x59e   : > { %v14425_v48 = vadd.f32 %v8101_v30, %v8053_v46  ;;  %v7690_v46 = vrot.slane %v14385_v43, 7  ;;  %v7691_v43 = vrot.slane %v14225_v36, 7 }
 0x5a0   : > { %v8111_v38 = vpop.f32.mrf.mxu2  ;;  %v8140_v0 = vmax.f32 %v14425_v48, 0.0 }
 0x5a3   : > { %v8055_v59 = vpop.f32.mrf.mxu1 }
 0x5a4   : > { %v8056_v53 = vadd.f32 %v14410_v10, %v8055_v59  ;;  %v7753_v59 = vsel %vm796_vm1, 0.0, %v7696_v56 }
 0x5a6   : > { %v14429_v28 = vadd.f32 %v8104_v27, %v8056_v53  ;;  %v7695_v27 = vsel %vm944_vm0, %v7689_v40, %v7690_v46 }
 0x5a8   : > { %v8114_v61 = vpop.f32.mrf.mxu2 }
 0x5ab   : > { %v8057_v51 = vpop.f32.mrf.mxu1 }
 0x5ac   : > { %v8058_v52 = vadd.f32 %v14410_v10, %v8057_v51 }
 0x5ad   : > { %v9022_v7 = vpop.permute.xlu0 %9021 }
 0x5ae   : > { %v14439_v55 = vadd.f32 %v8106_v63, %v8058_v52  ;;  %v9024_v31 = vunpack.i.h.bf16 %v9022_v7  ;;  %v9023_v8 = vunpack.i.l.bf16 %v9022_v7  ;;  %v430_v52 = vadd.s32 112, %v9191_v2 }
 0x5af   : > { %v8139_v2 = vmax.f32 %v14416_v22, 0.0 }
 0x5b0   : > { %v7893_v26 = vsel %vm6029_vm4, %v7749_v33, %v9023_v8  ;;  %v7894_v54 = vsel %vm6029_vm4, %v7699_v37, %v9024_v31  ;;  %v8116_v1 = vpop.f32.mrf.mxu2  ;;  %v782_v32 = vand.u32 15, %v430_v52  ;;  %v7694_v31 = vsel %vm944_vm0, %v7690_v46, %v7691_v43 }
 0x5b1   : > { %v7909_v35 = vpack.c.bf16 %v7894_v54, %v7893_v26  ;;  %v7693_v8 = vsel %vm944_vm0, %v7691_v43, %v7692_v6  ;;  %v8156_v9 = vpack.c.bf16 %v8140_v0, %v8139_v2  ;;  %v8142_v58 = vmax.f32 %v14439_v55, 0.0  ;;  %v8781_v2 = vld [vmem:[%s14664_s8 + $0x24] sm:$0xf0] }
 0x5b2   : > { %vm798_vm2 = vcmp.eq.s32.totalorder %v782_v32, 0 }
 0x5b3   : > { %8069 = vmatmul.bf16.gmra.mxu1 %v7909_v35  ;;  %v7755_v37 = vsel %vm798_vm2, 0.0, %v7694_v31 }
 0x5b5   : > { %v9037_v63 = vpop.permute.xlu0 %9036 }
 0x5b6   : > { %v9039_v11 = vunpack.i.h.bf16 %v9037_v63  ;;  %v9038_v7 = vunpack.i.l.bf16 %v9037_v63 }
 0x5b8   : > { %v7899_v33 = vsel %vm6029_vm4, %v7755_v37, %v9038_v7  ;;  %v7900_v26 = vsel %vm6029_vm4, %v7693_v8, %v9039_v11  ;;  %v8791_v7 = vld [vmem:[%s14664_s8 + $0x74] sm:$0xf0]  ;;  %v8678_v8 = vld [vmem:[%s14664_s8 + $0x60] sm:$0xf]  ;;  %v8789_v37 = vld [vmem:[%s14664_s8 + $0x64] sm:$0xf0] }
 0x5b9   : > { %v7915_v54 = vpack.c.bf16 %v7900_v26, %v7899_v33  ;;  %v8155_v33 = vld [vmem:[%s14663_s7] sm:$0xf]  ;;  %v8679_v26 = vor.u32 %v8789_v37, %v8678_v8 }
 0x5ba   : > { %v8800_v8 = vld [vmem:[%s14666_s10 + $0x40] sm:$0xff] }
 0x5bb   : > { %v8194_v37 = vld [vmem:[%s14665_s9] sm:$0x3] }
 0x5c0   : > { %v8060_v3 = vpop.f32.mrf.mxu1 }
 0x5c1   : > { %v8061_v23 = vadd.f32 %v14410_v10, %v8060_v3 }
 0x5c3   : > { %v14446_v21 = vadd.f32 %v8109_v39, %v8061_v23 }
 0x5c8   : > { %v8062_v16 = vpop.f32.mrf.mxu1 }
 0x5c9   : > { %v8063_v60 = vadd.f32 %v14410_v10, %v8062_v16 }
 0x5cb   : > { %v14449_v12 = vadd.f32 %v8111_v38, %v8063_v60 }
 0x5cc   : > { %v8119_v39 = vpop.f32.mrf.mxu2 }
 0x5d0   : > { %v9032_v29 = vpop.permute.xlu2 %9031 }
 0x5d1   : > { %v9034_v42 = vunpack.i.h.bf16 %v9032_v29  ;;  %v9033_v57 = vunpack.i.l.bf16 %v9032_v29 }
 0x5d3   : > { %v7897_v18 = vsel %vm6029_vm4, %v7753_v59, %v9033_v57  ;;  %v7898_v41 = vsel %vm6029_vm4, %v7695_v27, %v9034_v42 }
 0x5d4   : > { %v7913_v51 = vpack.c.bf16 %v7898_v41, %v7897_v18  ;;  %v8121_v23 = vpop.f32.mrf.mxu2 }
 0x5e4   : > { %v9027_v47 = vpop.permute.xlu1 %9026 }
 0x5e5   : > { %v9029_v19 = vunpack.i.h.bf16 %v9027_v47  ;;  %v9028_v44 = vunpack.i.l.bf16 %v9027_v47  ;;  %v8141_v47 = vmax.f32 %v14429_v28, 0.0 }
 0x5e7   : > { %v7895_v13 = vsel %vm6029_vm4, %v7751_v62, %v9028_v44  ;;  %v7896_v5 = vsel %vm6029_vm4, %v7697_v50, %v9029_v19  ;;  %v8157_v19 = vpack.c.bf16 %v8142_v58, %v8141_v47  ;;  %v8630_v58 = vld [vmem:[%s14664_s8] sm:$0xf]  ;;  %v8790_v47 = vld [vmem:[%s14664_s8 + $0x74] sm:$0xf] }
 0x5e8   : > { %v7911_v20 = vpack.c.bf16 %v7896_v5, %v7895_v13  ;;  %v8144_v5 = vmax.f32 %v14449_v12, 0.0 }
 0x5ea   : > { %8074 = vmatmul.bf16.gmra.mxu1 %v7911_v20  ;;  %v8143_v20 = vmax.f32 %v14446_v21, 0.0 }
 0x5ec   : > { %v8065_v34 = vpop.f32.mrf.mxu1 }
 0x5ed   : > { %v8066_v17 = vadd.f32 %v14410_v10, %v8065_v34  ;;  %v8158_v34 = vpack.c.bf16 %v8144_v5, %v8143_v20  ;;  %v8672_v20 = vld [vmem:[%s14664_s8 + $0x58] sm:$0xf0] }
 0x5ef   : > { %v8115_v30 = vadd.f32 %v8114_v61, %v8066_v17 }
 0x5f1   : > { %v8145_v13 = vmax.f32 %v8115_v30, 0.0 }
 0x5f4   : > { %v8067_v24 = vpop.f32.mrf.mxu1 }
 0x5f5   : > { %v8068_v53 = vadd.f32 %v14410_v10, %v8067_v24 }
 0x5f7   : > { %v8117_v14 = vadd.f32 %v8116_v1, %v8068_v53 }
 0x5f9   : > { %v8146_v62 = vmax.f32 %v8117_v14, 0.0 }
 0x5fa   : > { %8079 = vmatmul.bf16.gmra.mxu1 %v7913_v51 }
 0x5fb   : > { %v8159_v48 = vpack.c.bf16 %v8146_v62, %v8145_v13  ;;  %v8788_v62 = vld [vmem:[%s14664_s8 + $0x64] sm:$0xf]  ;;  %v8680_v13 = vld [vmem:[%s14664_s8 + $0x68] sm:$0xf0] }
 0x5fc   : > { %v8124_v16 = vpop.f32.mrf.mxu2  ;;  %v8683_v5 = vor.u32 %v8788_v62, %v8680_v13 }
 0x604   : > { %v8126_v6 = vpop.f32.mrf.mxu2 }
 0x60a   : > { %8084 = vmatmul.bf16.gmra.mxu1 %v7915_v54  ;;  %v8670_v54 = vld [vmem:[%s14664_s8 + $0x50] sm:$0xf] }
 0x60c   : > { %v8129_v25 = vpop.f32.mrf.mxu2 }
 0x614   : > { %v8131_v44 = vpop.f32.mrf.mxu2 }
 0x61c   : > { %v8134_v22 = vpop.f32.mrf.mxu2 }
 0x624   : > { %v8136_v29 = vpop.f32.mrf.mxu2 }
 0x630   : > { %v8070_v36 = vpop.f32.mrf.mxu1 }
 0x631   : > { %v8071_v35 = vadd.f32 %v14410_v10, %v8070_v36  ;;  %v8787_v36 = vld [vmem:[%s14664_s8 + $0x54] sm:$0xf0] }
 0x633   : > { %v8120_v3 = vadd.f32 %v8119_v39, %v8071_v35  ;;  %v8671_v35 = vor.u32 %v8787_v36, %v8670_v54  ;;  %v8662_v39 = vld [vmem:[%s14664_s8 + $0x40] sm:$0xf] }
 0x635   : > { %v8147_v63 = vmax.f32 %v8120_v3, 0.0  ;;  %v8785_v3 = vld [vmem:[%s14664_s8 + $0x44] sm:$0xf0] }
 0x638   : > { %v8072_v60 = vpop.f32.mrf.mxu1 }
 0x639   : > { %v8073_v24 = vadd.f32 %v14410_v10, %v8072_v60  ;;  %v8783_v60 = vld [vmem:[%s14664_s8 + $0x34] sm:$0xf0] }
 0x63b   : > { %v8122_v1 = vadd.f32 %v8121_v23, %v8073_v24  ;;  %v8663_v23 = vor.u32 %v8785_v3, %v8662_v39  ;;  %v8806_v24 = vld [vmem:[%s14666_s10 + $0x70] sm:$0xff]  ;;  %v8197_v3 = vperm.slane %v8194_v37, 1 }
 0x63d   : > { %v8148_v32 = vmax.f32 %v8122_v1, 0.0  ;;  %v8803_v1 = vld [vmem:[%s14666_s10 + $0x58] sm:$0xff] }
 0x63f   : > { %v8160_v11 = vpack.c.bf16 %v8148_v32, %v8147_v63  ;;  %v8797_v32 = vld [vmem:[%s14666_s10 + $0x28] sm:$0xff]  ;;  %v8795_v63 = vld [vmem:[%s14666_s10 + $0x18] sm:$0xff] }
 0x667   : > { %v8075_v38 = vpop.f32.mrf.mxu1 }
 0x668   : > { %v8076_v21 = vadd.f32 %v14410_v10, %v8075_v38  ;;  %v8646_v38 = vld [vmem:[%s14664_s8 + $0x20] sm:$0xf] }
 0x66a   : > { %v8125_v18 = vadd.f32 %v8124_v16, %v8076_v21  ;;  %v8654_v16 = vld [vmem:[%s14664_s8 + $0x30] sm:$0xf]  ;;  %v8776_v21 = vld [vmem:[%s14664_s8 + $0x4] sm:$0xf] }
 0x66b   : > { %v8655_v0 = vor.u32 %v8783_v60, %v8654_v16 }
 0x66c   : > { %v8149_v52 = vmax.f32 %v8125_v18, 0.0  ;;  %v8799_v18 = vld [vmem:[%s14666_s10 + $0x38] sm:$0xff] }
 0x66f   : > { %v8077_v45 = vpop.f32.mrf.mxu1 }
 0x670   : > { %v8078_v30 = vadd.f32 %v14410_v10, %v8077_v45  ;;  %v8779_v45 = vld [vmem:[%s14664_s8 + $0x14] sm:$0xf0] }
 0x672   : > { %v8127_v27 = vadd.f32 %v8126_v6, %v8078_v30  ;;  %v8647_v6 = vor.u32 %v8781_v2, %v8646_v38  ;;  %v8778_v30 = vld [vmem:[%s14664_s8 + $0x14] sm:$0xf] }
 0x674   : > { %v8150_v14 = vmax.f32 %v8127_v27, 0.0  ;;  %v8805_v27 = vld [vmem:[%s14666_s10 + $0x68] sm:$0xff] }
 0x676   : > { %v8161_v43 = vpack.c.bf16 %v8150_v14, %v8149_v52  ;;  %v8798_v14 = vld [vmem:[%s14666_s10 + $0x30] sm:$0xff] }
 0x677   : > { %v8080_v4 = vpop.f32.mrf.mxu1 }
 0x678   : > { %v8081_v28 = vadd.f32 %v14410_v10, %v8080_v4  ;;  %v8777_v4 = vld [vmem:[%s14664_s8 + $0x4] sm:$0xf0] }
 0x67a   : > { %v8130_v57 = vadd.f32 %v8129_v25, %v8081_v28 }
 0x67c   : > { %v8151_v41 = vmax.f32 %v8130_v57, 0.0  ;;  %v8632_v57 = vld [vmem:[%s14664_s8 + $0x8] sm:$0xf0] }
 0x67f   : > { %v8082_v50 = vpop.f32.mrf.mxu1 }
 0x680   : > { %v8083_v55 = vadd.f32 %v14410_v10, %v8082_v50 }
 0x682   : > { %v8132_v12 = vadd.f32 %v8131_v44, %v8083_v55  ;;  %v8631_v44 = vor.u32 %v8777_v4, %v8630_v58  ;;  %v8782_v55 = vld [vmem:[%s14664_s8 + $0x34] sm:$0xf] }
 0x684   : > { %v8152_v59 = vmax.f32 %v8132_v12, 0.0  ;;  %v8640_v12 = vld [vmem:[%s14664_s8 + $0x18] sm:$0xf0] }
 0x686   : > { %v8162_v51 = vpack.c.bf16 %v8152_v59, %v8151_v41  ;;  %v8804_v59 = vld [vmem:[%s14666_s10 + $0x60] sm:$0xff] }
 0x687   : > { %v8085_v61 = vpop.f32.mrf.mxu1 }
 0x688   : > { %v8086_v17 = vadd.f32 %v14410_v10, %v8085_v61  ;;  %v8784_v61 = vld [vmem:[%s14664_s8 + $0x44] sm:$0xf] }
 0x68a   : > { %v8135_v49 = vadd.f32 %v8134_v22, %v8086_v17 }
 0x68c   : > { %v8153_v56 = vmax.f32 %v8135_v49, 0.0  ;;  %v8780_v49 = vld [vmem:[%s14664_s8 + $0x24] sm:$0xf] }
 0x68f   : > { %v8087_v15 = vpop.f32.mrf.mxu1 }
 0x690   : > { %v8088_v40 = vadd.f32 %v14410_v10, %v8087_v15  ;;  %v8686_v10 = vld [vmem:[%s14664_s8 + $0x70] sm:$0xf]  ;;  %v8656_v15 = vld [vmem:[%s14664_s8 + $0x38] sm:$0xf0] }
 0x691   : > { %v8687_v31 = vor.u32 %v8791_v7, %v8686_v10  ;;  %v8659_v28 = vor.u32 %v8782_v55, %v8656_v15  ;;  %v8801_v10 = vld [vmem:[%s14666_s10 + $0x48] sm:$0xff] }
 0x692   : > { %v8137_v42 = vadd.f32 %v8136_v29, %v8088_v40  ;;  %v8648_v40 = vld [vmem:[%s14664_s8 + $0x28] sm:$0xf0] }
 0x693   : > { %v8651_v29 = vor.u32 %v8780_v49, %v8648_v40  ;;  %v8793_v7 = vld [vmem:[%s14666_s10 + $0x8] sm:$0xff] }
 0x694   : > { %v8154_v46 = vmax.f32 %v8137_v42, 0.0  ;;  %v8643_v42 = vor.u32 %v8778_v30, %v8640_v12 }
 0x696   : > { %v8163_v53 = vpack.c.bf16 %v8154_v46, %v8153_v56  ;;  %v8635_v56 = vor.u32 %v8776_v21, %v8632_v57  ;;  %v8807_v46 = vld [vmem:[%s14666_s10 + $0x78] sm:$0xff] }
 0x697   : > { %8455 = vmatpush.bf16.msra.mxu2 %v8807_v46 }
 0x698   : > { %8164 = vmatpush.bf16.msrb.mxu3 %v8163_v53 }
 0x69b   : > { %8456 = vmatpush.bf16.msra.mxu2 %v8806_v24 }
 0x69c   : > { %8165 = vmatpush.bf16.msrb.mxu3 %v8162_v51  ;;  %v8802_v51 = vld [vmem:[%s14666_s10 + $0x50] sm:$0xff] }
 0x69f   : > { %8457 = vmatpush.bf16.msra.mxu2 %v8805_v27 }
 0x6a0   : > { %8166 = vmatpush.bf16.msrb.mxu3 %v8161_v43  ;;  %v8796_v43 = vld [vmem:[%s14666_s10 + $0x20] sm:$0xff] }
 0x6a3   : > { %8458 = vmatpush.bf16.msra.mxu2 %v8804_v59 }
 0x6a4   : > { %8167 = vmatpush.bf16.msrb.mxu3 %v8160_v11  ;;  %v8794_v11 = vld [vmem:[%s14666_s10 + $0x10] sm:$0xff] }
 0x6a7   : > { %8459 = vmatpush.bf16.msra.mxu2 %v8803_v1 }
 0x6a8   : > { %8168 = vmatpush.bf16.msrb.mxu3 %v8159_v48  ;;  %v8786_v48 = vld [vmem:[%s14664_s8 + $0x54] sm:$0xf] }
 0x6a9   : > { %v8675_v22 = vor.u32 %v8786_v48, %v8672_v20 }
 0x6ab   : > { %8460 = vmatpush.bf16.msra.mxu2 %v8802_v51 }
 0x6ac   : > { %8169 = vmatpush.bf16.msrb.mxu3 %v8158_v34  ;;  %v8664_v34 = vld [vmem:[%s14664_s8 + $0x48] sm:$0xf0] }
 0x6ad   : > { %v8667_v17 = vor.u32 %v8784_v61, %v8664_v34 }
 0x6af   : > { %8461 = vmatpush.bf16.msra.mxu2 %v8801_v10 }
 0x6b0   : > { %8170 = vmatpush.bf16.msrb.mxu3 %v8157_v19  ;;  %v8688_v19 = vld [vmem:[%s14664_s8 + $0x78] sm:$0xf0] }
 0x6b1   : > { %v8691_v50 = vor.u32 %v8790_v47, %v8688_v19 }
 0x6b3   : > { %8462 = vmatpush.bf16.msra.mxu2 %v8800_v8 }
 0x6b4   : > { %8171 = vmatpush.bf16.msrb.mxu3 %v8156_v9  ;;  %v8638_v9 = vld [vmem:[%s14664_s8 + $0x10] sm:$0xf] }
 0x6b5   : > { %v8639_v25 = vor.u32 %v8779_v45, %v8638_v9  ;;  %v9046_v9 = vld [vmem:[%s14667_s11] ss:$0 sm:$0xff] }
 0x6b7   : > { %8172 = vmatmul.bf16.vlgmr.msrb.gmra.mxu3 %v8155_v33  ;;  %v8196_v33 = vperm.slane %v8194_v37, 0 }
 0x6b8   : > { %8280 = vmatpush.bf16.msra.mxu3 %v8687_v31  ;;  %v8792_v31 = vld [vmem:[%s14666_s10] sm:$0xff] }
 0x6bc   : > { %8281 = vmatpush.bf16.msra.mxu3 %v8679_v26 }
 0x6c0   : > { %8282 = vmatpush.bf16.msra.mxu3 %v8671_v35 }
 0x6c4   : > { %8283 = vmatpush.bf16.msra.mxu3 %v8663_v23 }
 0x6c8   : > { %8284 = vmatpush.bf16.msra.mxu3 %v8655_v0 }
 0x6cc   : > { %8285 = vmatpush.bf16.msra.mxu3 %v8647_v6 }
 0x6d0   : > { %8286 = vmatpush.bf16.msra.mxu3 %v8639_v25 }
 0x6d4   : > { %8287 = vmatpush.bf16.msra.mxu3 %v8631_v44 }
 0x6d8   : > { %8293 = vmatpush.bf16.msrb.mxu3 %v8691_v50 }
 0x6dc   : > { %8294 = vmatpush.bf16.msrb.mxu3 %v8683_v5 }
 0x6e0   : > { %8295 = vmatpush.bf16.msrb.mxu3 %v8675_v22 }
 0x6e4   : > { %8296 = vmatpush.bf16.msrb.mxu3 %v8667_v17 }
 0x6e8   : > { %8297 = vmatpush.bf16.msrb.mxu3 %v8659_v28 }
 0x6ec   : > { %8298 = vmatpush.bf16.msrb.mxu3 %v8651_v29 }
 0x6f0   : > { %8299 = vmatpush.bf16.msrb.mxu3 %v8643_v42 }
 0x6f4   : > { %8300 = vmatpush.bf16.msrb.mxu3 %v8635_v56 }
 0x73a   : > { %v8173_v53 = vpop.f32.mrf.mxu3 }
 0x73b   : > { %v8177_v41 = vpack.c.bf16 %v8173_v53, %v8173_v53 }
 0x73d   : > { %8288 = vmatmul.bf16.vlgmr.msra.gmra.mxu3 %v8177_v41 }
 0x73e   : > { %8442 = vmatpush.bf16.msra.mxu3 %v8799_v18 }
 0x742   : > { %v8175_v52 = vpop.f32.mrf.mxu3  ;;  %8443 = vmatpush.bf16.msra.mxu3 %v8798_v14 }
 0x746   : > { %8444 = vmatpush.bf16.msra.mxu3 %v8797_v32 }
 0x74a   : > { %8445 = vmatpush.bf16.msra.mxu3 %v8796_v43 }
 0x74d   : > { %8301 = vmatmul.bf16.vlgmr.msrb.gmra.mxu3 %v8177_v41 }
 0x74e   : > { %8446 = vmatpush.bf16.msra.mxu3 %v8795_v63 }
 0x752   : > { %8447 = vmatpush.bf16.msra.mxu3 %v8794_v11 }
 0x756   : > { %8448 = vmatpush.bf16.msra.mxu3 %v8793_v7 }
 0x75a   : > { %8449 = vmatpush.bf16.msra.mxu3 %v8792_v31 }
 0x7c0   : > { %v8289_v26 = vpop.f32.mrf.mxu3 }
 0x7c1   : > { %v8290_v54 = vadd.f32 %v8289_v26, %v8196_v33 }
 0x7c3   : > { %v8306_v36 = vmax.f32 %v8290_v54, 0.0 }
 0x7c5   : > { %v8308_v35 = vpack.c.bf16 %v8306_v36, %v8306_v36 }
 0x7c7   : > { %8450 = vmatmul.bf16.vlgmr.msra.gmra.mxu3 %v8308_v35 }
 0x7c8   : > { %v8291_v39 = vpop.f32.mrf.mxu3 }
 0x7d0   : > { %v8302_v23 = vpop.f32.mrf.mxu3 }
 0x7d1   : > { %v8303_v16 = vadd.f32 %v8302_v23, %v8197_v3 }
 0x7d3   : > { %v8307_v60 = vmax.f32 %v8303_v16, 0.0 }
 0x7d5   : > { %v8309_v0 = vpack.c.bf16 %v8307_v60, %v8307_v60 }
 0x7d7   : > { %8463 = vmatmul.bf16.vlgmr.msra.gmra.mxu2 %v8309_v0 }
 0x7d8   : > { %v8304_v38 = vpop.f32.mrf.mxu3 }
 0x84a   : > { %v8451_v2 = vpop.f32.mrf.mxu3 }
 0x84b   : > { %v8452_v45 = vadd.f32 %v9046_v9, %v8451_v2 }
 0x852   : > { %v8453_v6 = vpop.f32.mrf.mxu3 }
 0x85a   : > { %v8464_v25 = vpop.f32.mrf.mxu2 }
 0x85b   : > { %v8465_v58 = vadd.f32 %v8464_v25, %v8452_v45 }
 0x85d   : > { %8468 = vst [vmem:[%s413_s25] sm:$0xff] %v8465_v58 }
 0x862   : > { %v8466_v4 = vpop.f32.mrf.mxu2 }
 0x863 PF: > { %s22_s21 = sadd.s32 1, %s9110_s21  }
 0x864   : > { %p19_p5 = scmp.ge.s32.totalorder %s22_s21, 4  }
 0x866   :  { %21 = sbr.rel (!%p19_p5) target bundleno = 1 (0x1), region = 100 }

</bundles_post_ra>
